<compile_context>
chip_gen: v7x
topology: tpu7x:2x2x1
jax: 0.10.0
libtpu: 0.0.40
codegen_flags: <defaults>
</compile_context>

<pallas_src>
import functools

import numpy as np

import jax
import jax.numpy as jnp
from jax import lax
from jax.experimental import pallas as pl
from jax.experimental.pallas import tpu as pltpu


# -----------------------------------------------------------------------------
# In-kernel helpers
# -----------------------------------------------------------------------------
def _shift_lanes(v, k):
    """out[:, q] = v[:, (q + k) % L] via one XLU lane rotate (pltpu.roll).

    Circular wrap is safe here: interior lanes sit >= |k| away from both ends
    of the flattened axis (1-pixel ring + 120-lane zero tail), so wrapped
    values only land on ring/guard/tail lanes, which are re-zeroed by the
    interior mask after every layer.
    """
    if k == 0:
        return v
    return pltpu.roll(v, (-k) % v.shape[1], axis=1)


def _conv1_9tap(a, w_full, *, wp):
    """3x3 conv, Cin=3 -> Cout=32: full 9-tap im2col (27, L) + ONE MXU matmul.

    The (kh, kw, cin) tap order matches the host-side weight flattening.
    Pre-BN scalars (x+x, conv1*2) are already folded into w_full (exact, pow2).
    """
    taps = [_shift_lanes(a, dh * wp + dw)
            for dh in (-1, 0, 1) for dw in (-1, 0, 1)]
    b = jnp.concatenate(taps, axis=0).astype(jnp.bfloat16)          # (27, L)
    return jnp.dot(w_full, b, preferred_element_type=jnp.float32)   # (32, L) f32


def _conv2_rowwise(a, w2_ref, i, *, wp):
    """3x3 conv, Cin=32 -> Cout=3: width taps stacked (96, L), one matmul per
    kernel row, then XLU-roll the cheap (3, L) partials by +/-wp."""
    b = jnp.concatenate([_shift_lanes(a, -1), a, _shift_lanes(a, 1)],
                        axis=0).astype(jnp.bfloat16)                # (96, L)
    y = None
    for kh in range(3):
        part = jnp.dot(w2_ref[i, kh], b, preferred_element_type=jnp.float32)
        part = _shift_lanes(part, (kh - 1) * wp)
        y = part if y is None else y + part
    return y                                                        # (3, L) f32


def _bn_relu_mask(y, gamma, beta, mask, maskc, inv_count, eps):
    """Training-mode BatchNorm (biased var over the masked interior) -> ReLU ->
    re-zero the padding ring.  Masked stats run on the idle MXU."""
    s = jnp.dot(y, maskc, preferred_element_type=jnp.float32)[:, 0:1]        # Σ y·m
    ss = jnp.dot(y * y, maskc, preferred_element_type=jnp.float32)[:, 0:1]   # Σ y²·m
    mean = s * inv_count
    var = jnp.maximum(ss * inv_count - mean * mean, 0.0)   # clamp f32 cancellation
    scale = lax.rsqrt(var + eps) * gamma
    out = (y - mean) * scale + beta
    return jnp.maximum(out, 0.0) * mask                    # ReLU + re-zero ring/tail


def _fused_kernel(x_ref, mrow_ref, mcol_ref, w1_ref, g1_ref, b1_ref,
                  w2_ref, g2_ref, b2_ref, o_ref, *, wp, inv_count, eps, bias):
    """Entire SequentialModule: c1(m1, m2) -> c2(m1, m2), fully VMEM resident."""
    mask = mrow_ref[...]                    # (1, L)   interior mask (row form)
    maskc = mcol_ref[...]                   # (L, 128) interior mask (column form)
    bias_masked = mask * bias               # hoisted out of the unrolled loops
    a = x_ref[...]                          # (3, L) f32, zero outside interior

    for comp in range(2):                   # CompositeModule c1, c2
        for mod in range(2):                # BaseModule m1, m2
            i = 2 * comp + mod
            # conv1 -> (*2 / x+x folded into weights) -> bn1 -> relu
            h = _conv1_9tap(a, w1_ref[i], wp=wp)
            h = _bn_relu_mask(h, g1_ref[i], b1_ref[i], mask, maskc, inv_count, eps)
            # conv2 -> bn2 -> relu
            y = _conv2_rowwise(h, w2_ref, i, wp=wp)
            y = _bn_relu_mask(y, g2_ref[i], b2_ref[i], mask, maskc, inv_count, eps)
            # x1 + x2 + bias with x1 == x2 == y; padding ring must stay zero.
            a = 2.0 * y + bias_masked
        a = a * 2.0                         # CompositeModule tail `x * 2`

    o_ref[...] = a


# -----------------------------------------------------------------------------
# One-time host-side prep + jitted runner
# -----------------------------------------------------------------------------
def _prep_w1(w, scale):
    # (kh,kw,cin,cout) -> (cout, kh*kw*cin), taps flattened in (kh,kw,cin) order;
    # the exact power-of-two pre-BN scalar is folded in, then cast to bf16.
    kh, kw, cin, cout = w.shape
    wt = jnp.transpose(w, (3, 0, 1, 2)).reshape(cout, kh * kw * cin)
    return (wt * scale).astype(jnp.bfloat16)


def _prep_w2(w):
    # (kh,kw,cin,cout) -> (kh, cout, kw*cin) matching the im2col row order.
    kh, kw, cin, cout = w.shape
    return jnp.transpose(w, (0, 3, 1, 2)).reshape(kh, cout, kw * cin).astype(jnp.bfloat16)


def make_sequential_module(params, input_shape, *, bias=1.0, eps=1e-5):
    """Does ALL one-time prep (weight stacking/scaling, masks, pallas_call
    construction) and returns a jitted forward function x_nchw -> y_nchw."""
    n, cin, h, w = input_shape
    assert cin == 3, "SequentialModule expects 3 input channels"
    hp, wp = h + 2, w + 2                       # 1-pixel zero ring == conv padding
    flat = n * hp * wp
    l = ((flat + 127) // 128) * 128             # pad the flattened axis only (768)
    inv_count = 1.0 / float(n * h * w)

    # Interior mask: 1 inside the original HxW image, 0 on ring rows/cols + tail.
    row_ok = (np.arange(hp) >= 1) & (np.arange(hp) <= h)
    col_ok = (np.arange(wp) >= 1) & (np.arange(wp) <= w)
    m2d = (row_ok[:, None] & col_ok[None, :])
    mflat = np.zeros((l,), np.float32)
    mflat[:flat] = np.broadcast_to(m2d, (n, hp, wp)).reshape(-1).astype(np.float32)
    mask_row = jnp.asarray(mflat.reshape(1, l))
    mask_col = jnp.asarray(np.repeat(mflat.reshape(l, 1), 128, axis=1))

    # Stack the 4 BaseModules in execution order.  Pre-BN scalars per layer:
    # c1.m1 / c2.m1 see the composite's leading x+x (x2) and conv1's *2 -> 4;
    # c1.m2 / c2.m2 only conv1's *2 -> 2.  (Exact pow-2 folding.)
    order = [params["c1"]["m1"], params["c1"]["m2"],
             params["c2"]["m1"], params["c2"]["m2"]]
    pre_scale = [4.0, 2.0, 4.0, 2.0]
    w1 = jnp.stack([_prep_w1(p["w1"], s) for p, s in zip(order, pre_scale)])  # (4,32,27) bf16
    w2 = jnp.stack([_prep_w2(p["w2"]) for p in order])                        # (4,3,3,96) bf16
    g1 = jnp.stack([p["g1"].reshape(-1, 1) for p in order])                   # (4,32,1) f32
    b1 = jnp.stack([p["b1"].reshape(-1, 1) for p in order])
    g2 = jnp.stack([p["g2"].reshape(-1, 1) for p in order])                   # (4,3,1)  f32
    b2 = jnp.stack([p["b2"].reshape(-1, 1) for p in order])

    kernel = functools.partial(_fused_kernel, wp=wp, inv_count=inv_count,
                               eps=eps, bias=float(bias))
    vmem = pl.BlockSpec(memory_space=pltpu.MemorySpace.VMEM)
    call = pl.pallas_call(
        kernel,
        out_shape=jax.ShapeDtypeStruct((3, l), jnp.float32),
        in_specs=[vmem] * 9,
        out_specs=vmem,
        # Live footprint < 2 MiB; default scoped-VMEM limits are plenty on
        # v5e/v6e/v7x, so no vmem_limit_bytes override (per review).
    )

    @jax.jit
    def run(x_nchw):
        # NCHW -> channel-major lane-dense (C, L): zero ring + zero lane tail.
        xc = jnp.transpose(x_nchw, (1, 0, 2, 3))
        xc = jnp.pad(xc, ((0, 0), (0, 0), (1, 1), (1, 1))).reshape(cin, flat)
        x_lane = jnp.pad(xc, ((0, 0), (0, l - flat)))
        out_lane = call(x_lane, mask_row, mask_col, w1, g1, b1, w2, g2, b2)
        out = out_lane[:, :flat].reshape(3, n, hp, wp)[:, :, 1:h + 1, 1:w + 1]
        return jnp.transpose(out, (1, 0, 2, 3))

    return run


# -----------------------------------------------------------------------------
# Pure-JAX reference (mirrors the PyTorch graph literally, NCHW, f32)
# -----------------------------------------------------------------------------
def _bn_train_ref(x, gamma, beta, eps=1e-5):
    mean = jnp.mean(x, axis=(0, 2, 3), keepdims=True)
    var = jnp.mean((x - mean) ** 2, axis=(0, 2, 3), keepdims=True)
    return ((x - mean) * lax.rsqrt(var + eps) * gamma.reshape(1, -1, 1, 1)
            + beta.reshape(1, -1, 1, 1))


def _conv3x3_ref(x, w_khwc):
    w_oihw = jnp.transpose(w_khwc, (3, 2, 0, 1))
    return lax.conv_general_dilated(
        x, w_oihw, window_strides=(1, 1), padding=((1, 1), (1, 1)),
        dimension_numbers=("NCHW", "OIHW", "NCHW"),
        precision=lax.Precision.HIGHEST)


def _base_ref(x, p):
    x = jax.nn.relu(_bn_train_ref(_conv3x3_ref(x, p["w1"]) * 2.0, p["g1"], p["b1"]))
    x = jax.nn.relu(_bn_train_ref(_conv3x3_ref(x, p["w2"]), p["g2"], p["b2"]))
    return x, x


def _composite_ref(x, p, bias=1.0):
    x = x + x
    x1, x2 = _base_ref(x, p["m1"])
    x = x1 + x2 + bias
    x1, x2 = _base_ref(x, p["m2"])
    x = x1 + x2 + bias
    return x * 2.0


def _sequential_ref(x, params):
    return _composite_ref(_composite_ref(x, params["c1"]), params["c2"])


# -----------------------------------------------------------------------------
# Deterministic parameter init (shapes from the PyTorch __init__)
# -----------------------------------------------------------------------------
def init_base_params(key):
    k1, k2 = jax.random.split(key)
    return {
        "w1": 0.1 * jax.random.normal(k1, (3, 3, 3, 32), jnp.float32),  # kh,kw,cin,cout
        "g1": jnp.ones((32,), jnp.float32),   # fresh BatchNorm2d(32)
        "b1": jnp.zeros((32,), jnp.float32),
        "w2": 0.1 * jax.random.normal(k2, (3, 3, 32, 3), jnp.float32),
        "g2": jnp.ones((3,), jnp.float32),    # fresh BatchNorm2d(3)
        "b2": jnp.zeros((3,), jnp.float32),
    }


def init_params(key):
    k = jax.random.split(key, 4)
    return {
        "c1": {"m1": init_base_params(k[0]), "m2": init_base_params(k[1])},
        "c2": {"m1": init_base_params(k[2]), "m2": init_base_params(k[3])},
    }


if __name__ == "__main__":
    key = jax.random.PRNGKey(0)
    k_params, k_x = jax.random.split(key)
    params = init_params(k_params)

    # PyTorch-style NCHW input: (batch=2, channels=3, H=16, W=16)
    x = jax.random.normal(k_x, (2, 3, 16, 16), jnp.float32)

    fwd = make_sequential_module(params, x.shape)      # one-time prep + jit
    out = jax.block_until_ready(fwd(x))
    ref = jax.block_until_ready(_sequential_ref(x, params))

    assert out.shape == (2, 3, 16, 16)
    assert bool(jnp.all(jnp.isfinite(out)))
    # Tolerance re-derived for bf16 MXU operands (per review): ~0.2-0.4% per
    # conv, BN re-normalizes each layer, 8 layers -> well under 5% relative.
    max_err = float(jnp.max(jnp.abs(out - ref)))
    denom = max(1.0, float(jnp.max(jnp.abs(ref))))
    assert max_err / denom < 5e-2, f"kernel deviates: abs={max_err}, scale={denom}"
    print("KERNEL_OK")
</pallas_src>

<mosaic_0001>
module attributes {stable_mosaic.version = 11 : i64} {
  func.func @_fused_kernel(%arg0: memref<3x768xf32, #tpu.memory_space<vmem>>, %arg1: memref<1x768xf32, #tpu.memory_space<vmem>>, %arg2: memref<768x128xf32, #tpu.memory_space<vmem>>, %arg3: memref<4x32x27xbf16, #tpu.memory_space<vmem>>, %arg4: memref<4x32x1xf32, #tpu.memory_space<vmem>>, %arg5: memref<4x32x1xf32, #tpu.memory_space<vmem>>, %arg6: memref<4x3x3x96xbf16, #tpu.memory_space<vmem>>, %arg7: memref<4x3x1xf32, #tpu.memory_space<vmem>>, %arg8: memref<4x3x1xf32, #tpu.memory_space<vmem>>, %arg9: memref<3x768xf32, #tpu.memory_space<vmem>>) attributes {dimension_semantics = [], scalar_prefetch = 0 : i64, scratch_operands = 0 : i64, tpu.core_type = #tpu.core_type<tc>} {
    %c0 = arith.constant 0 : index
    %c0_0 = arith.constant 0 : index
    %0 = vector.load %arg1[%c0, %c0_0] : memref<1x768xf32, #tpu.memory_space<vmem>>, vector<1x768xf32>
    %c0_1 = arith.constant 0 : index
    %c0_2 = arith.constant 0 : index
    %1 = vector.load %arg2[%c0_1, %c0_2] : memref<768x128xf32, #tpu.memory_space<vmem>>, vector<768x128xf32>
    %cst = arith.constant 1.000000e+00 : f32
    %2 = vector.broadcast %cst : f32 to vector<1x768xf32>
    %3 = arith.mulf %0, %2 : vector<1x768xf32>
    %c0_3 = arith.constant 0 : index
    %c0_4 = arith.constant 0 : index
    %4 = vector.load %arg0[%c0_3, %c0_4] : memref<3x768xf32, #tpu.memory_space<vmem>>, vector<3x768xf32>
    %c0_5 = arith.constant 0 : index
    %c0_6 = arith.constant 0 : index
    %c0_7 = arith.constant 0 : index
    %5 = vector.load %arg3[%c0_5, %c0_6, %c0_7] : memref<4x32x27xbf16, #tpu.memory_space<vmem>>, vector<1x32x27xbf16>
    %6 = vector.shape_cast %5 : vector<1x32x27xbf16> to vector<32x27xbf16>
    %c19_i32 = arith.constant 19 : i32
    %7 = tpu.dynamic_rotate %4 by %c19_i32 dim 1 : vector<3x768xf32>, i32 -> vector<3x768xf32>
    %c18_i32 = arith.constant 18 : i32
    %8 = tpu.dynamic_rotate %4 by %c18_i32 dim 1 : vector<3x768xf32>, i32 -> vector<3x768xf32>
    %c17_i32 = arith.constant 17 : i32
    %9 = tpu.dynamic_rotate %4 by %c17_i32 dim 1 : vector<3x768xf32>, i32 -> vector<3x768xf32>
    %c1_i32 = arith.constant 1 : i32
    %10 = tpu.dynamic_rotate %4 by %c1_i32 dim 1 : vector<3x768xf32>, i32 -> vector<3x768xf32>
    %c767_i32 = arith.constant 767 : i32
    %11 = tpu.dynamic_rotate %4 by %c767_i32 dim 1 : vector<3x768xf32>, i32 -> vector<3x768xf32>
    %c751_i32 = arith.constant 751 : i32
    %12 = tpu.dynamic_rotate %4 by %c751_i32 dim 1 : vector<3x768xf32>, i32 -> vector<3x768xf32>
    %c750_i32 = arith.constant 750 : i32
    %13 = tpu.dynamic_rotate %4 by %c750_i32 dim 1 : vector<3x768xf32>, i32 -> vector<3x768xf32>
    %c749_i32 = arith.constant 749 : i32
    %14 = tpu.dynamic_rotate %4 by %c749_i32 dim 1 : vector<3x768xf32>, i32 -> vector<3x768xf32>
    %15 = tpu.concatenate %7, %8, %9, %10, %4, %11, %12, %13, %14 in 0 : vector<3x768xf32>, vector<3x768xf32>, vector<3x768xf32>, vector<3x768xf32>, vector<3x768xf32>, vector<3x768xf32>, vector<3x768xf32>, vector<3x768xf32>, vector<3x768xf32> -> vector<27x768xf32>
    %16 = arith.truncf %15 : vector<27x768xf32> to vector<27x768xbf16>
    %cst_8 = arith.constant dense<0.000000e+00> : vector<32x768xf32>
    %17 = tpu.matmul %6, %16, %cst_8 {dimension_numbers = #tpu.dot_dimension_numbers<[1], [0], [0], [1], [0, 0, 1, 1], [], []>} : vector<32x27xbf16>, vector<27x768xbf16>, vector<32x768xf32> -> vector<32x768xf32>
    %c0_9 = arith.constant 0 : index
    %c0_10 = arith.constant 0 : index
    %c0_11 = arith.constant 0 : index
    %18 = vector.load %arg4[%c0_9, %c0_10, %c0_11] : memref<4x32x1xf32, #tpu.memory_space<vmem>>, vector<1x32x1xf32>
    %19 = vector.shape_cast %18 : vector<1x32x1xf32> to vector<32x1xf32>
    %c0_12 = arith.constant 0 : index
    %c0_13 = arith.constant 0 : index
    %c0_14 = arith.constant 0 : index
    %20 = vector.load %arg5[%c0_12, %c0_13, %c0_14] : memref<4x32x1xf32, #tpu.memory_space<vmem>>, vector<1x32x1xf32>
    %21 = vector.shape_cast %20 : vector<1x32x1xf32> to vector<32x1xf32>
    %cst_15 = arith.constant dense<0.000000e+00> : vector<32x128xf32>
    %22 = tpu.matmul %17, %1, %cst_15 {dimension_numbers = #tpu.dot_dimension_numbers<[1], [0], [0], [1], [0, 0, 1, 1], [], []>} : vector<32x768xf32>, vector<768x128xf32>, vector<32x128xf32> -> vector<32x128xf32>
    %23 = vector.extract_strided_slice %22 {offsets = [0, 0], sizes = [32, 1], strides = [1, 1]} : vector<32x128xf32> to vector<32x1xf32>
    %24 = arith.mulf %17, %17 : vector<32x768xf32>
    %cst_16 = arith.constant dense<0.000000e+00> : vector<32x128xf32>
    %25 = tpu.matmul %24, %1, %cst_16 {dimension_numbers = #tpu.dot_dimension_numbers<[1], [0], [0], [1], [0, 0, 1, 1], [], []>} : vector<32x768xf32>, vector<768x128xf32>, vector<32x128xf32> -> vector<32x128xf32>
    %26 = vector.extract_strided_slice %25 {offsets = [0, 0], sizes = [32, 1], strides = [1, 1]} : vector<32x128xf32> to vector<32x1xf32>
    %cst_17 = arith.constant 0.001953125 : f32
    %27 = vector.broadcast %cst_17 : f32 to vector<32x1xf32>
    %28 = arith.mulf %23, %27 : vector<32x1xf32>
    %cst_18 = arith.constant 0.001953125 : f32
    %29 = vector.broadcast %cst_18 : f32 to vector<32x1xf32>
    %30 = arith.mulf %26, %29 : vector<32x1xf32>
    %31 = arith.mulf %28, %28 : vector<32x1xf32>
    %32 = arith.subf %30, %31 : vector<32x1xf32>
    %cst_19 = arith.constant 0.000000e+00 : f32
    %33 = vector.broadcast %cst_19 : f32 to vector<32x1xf32>
    %34 = arith.maximumf %32, %33 : vector<32x1xf32>
    %cst_20 = arith.constant 9.99999974E-6 : f32
    %35 = vector.broadcast %cst_20 : f32 to vector<32x1xf32>
    %36 = arith.addf %34, %35 : vector<32x1xf32>
    %37 = math.rsqrt %36 : vector<32x1xf32>
    %38 = arith.mulf %37, %19 : vector<32x1xf32>
    %39 = vector.broadcast %28 : vector<32x1xf32> to vector<32x768xf32>
    %40 = arith.subf %17, %39 : vector<32x768xf32>
    %41 = vector.broadcast %38 : vector<32x1xf32> to vector<32x768xf32>
    %42 = arith.mulf %40, %41 : vector<32x768xf32>
    %43 = vector.broadcast %21 : vector<32x1xf32> to vector<32x768xf32>
    %44 = arith.addf %42, %43 : vector<32x768xf32>
    %cst_21 = arith.constant 0.000000e+00 : f32
    %45 = vector.broadcast %cst_21 : f32 to vector<32x768xf32>
    %46 = arith.maximumf %44, %45 : vector<32x768xf32>
    %47 = vector.broadcast %0 : vector<1x768xf32> to vector<32x768xf32>
    %48 = arith.mulf %46, %47 : vector<32x768xf32>
    %c1_i32_22 = arith.constant 1 : i32
    %49 = tpu.dynamic_rotate %48 by %c1_i32_22 dim 1 : vector<32x768xf32>, i32 -> vector<32x768xf32>
    %c767_i32_23 = arith.constant 767 : i32
    %50 = tpu.dynamic_rotate %48 by %c767_i32_23 dim 1 : vector<32x768xf32>, i32 -> vector<32x768xf32>
    %51 = tpu.concatenate %49, %48, %50 in 0 : vector<32x768xf32>, vector<32x768xf32>, vector<32x768xf32> -> vector<96x768xf32>
    %52 = arith.truncf %51 : vector<96x768xf32> to vector<96x768xbf16>
    %c0_24 = arith.constant 0 : index
    %c0_25 = arith.constant 0 : index
    %c0_26 = arith.constant 0 : index
    %c0_27 = arith.constant 0 : index
    %53 = vector.load %arg6[%c0_24, %c0_25, %c0_26, %c0_27] : memref<4x3x3x96xbf16, #tpu.memory_space<vmem>>, vector<1x1x3x96xbf16>
    %54 = vector.shape_cast %53 : vector<1x1x3x96xbf16> to vector<3x96xbf16>
    %cst_28 = arith.constant dense<0.000000e+00> : vector<3x768xf32>
    %55 = tpu.matmul %54, %52, %cst_28 {dimension_numbers = #tpu.dot_dimension_numbers<[1], [0], [0], [1], [0, 0, 1, 1], [], []>} : vector<3x96xbf16>, vector<96x768xbf16>, vector<3x768xf32> -> vector<3x768xf32>
    %c18_i32_29 = arith.constant 18 : i32
    %56 = tpu.dynamic_rotate %55 by %c18_i32_29 dim 1 : vector<3x768xf32>, i32 -> vector<3x768xf32>
    %c0_30 = arith.constant 0 : index
    %c1 = arith.constant 1 : index
    %c0_31 = arith.constant 0 : index
    %c0_32 = arith.constant 0 : index
    %57 = vector.load %arg6[%c0_30, %c1, %c0_31, %c0_32] : memref<4x3x3x96xbf16, #tpu.memory_space<vmem>>, vector<1x1x3x96xbf16>
    %58 = vector.shape_cast %57 : vector<1x1x3x96xbf16> to vector<3x96xbf16>
    %cst_33 = arith.constant dense<0.000000e+00> : vector<3x768xf32>
    %59 = tpu.matmul %58, %52, %cst_33 {dimension_numbers = #tpu.dot_dimension_numbers<[1], [0], [0], [1], [0, 0, 1, 1], [], []>} : vector<3x96xbf16>, vector<96x768xbf16>, vector<3x768xf32> -> vector<3x768xf32>
    %60 = arith.addf %56, %59 : vector<3x768xf32>
    %c0_34 = arith.constant 0 : index
    %c2 = arith.constant 2 : index
    %c0_35 = arith.constant 0 : index
    %c0_36 = arith.constant 0 : index
    %61 = vector.load %arg6[%c0_34, %c2, %c0_35, %c0_36] : memref<4x3x3x96xbf16, #tpu.memory_space<vmem>>, vector<1x1x3x96xbf16>
    %62 = vector.shape_cast %61 : vector<1x1x3x96xbf16> to vector<3x96xbf16>
    %cst_37 = arith.constant dense<0.000000e+00> : vector<3x768xf32>
    %63 = tpu.matmul %62, %52, %cst_37 {dimension_numbers = #tpu.dot_dimension_numbers<[1], [0], [0], [1], [0, 0, 1, 1], [], []>} : vector<3x96xbf16>, vector<96x768xbf16>, vector<3x768xf32> -> vector<3x768xf32>
    %c750_i32_38 = arith.constant 750 : i32
    %64 = tpu.dynamic_rotate %63 by %c750_i32_38 dim 1 : vector<3x768xf32>, i32 -> vector<3x768xf32>
    %65 = arith.addf %60, %64 : vector<3x768xf32>
    %c0_39 = arith.constant 0 : index
    %c0_40 = arith.constant 0 : index
    %c0_41 = arith.constant 0 : index
    %66 = vector.load %arg7[%c0_39, %c0_40, %c0_41] : memref<4x3x1xf32, #tpu.memory_space<vmem>>, vector<1x3x1xf32>
    %67 = vector.shape_cast %66 : vector<1x3x1xf32> to vector<3x1xf32>
    %c0_42 = arith.constant 0 : index
    %c0_43 = arith.constant 0 : index
    %c0_44 = arith.constant 0 : index
    %68 = vector.load %arg8[%c0_42, %c0_43, %c0_44] : memref<4x3x1xf32, #tpu.memory_space<vmem>>, vector<1x3x1xf32>
    %69 = vector.shape_cast %68 : vector<1x3x1xf32> to vector<3x1xf32>
    %cst_45 = arith.constant dense<0.000000e+00> : vector<3x128xf32>
    %70 = tpu.matmul %65, %1, %cst_45 {dimension_numbers = #tpu.dot_dimension_numbers<[1], [0], [0], [1], [0, 0, 1, 1], [], []>} : vector<3x768xf32>, vector<768x128xf32>, vector<3x128xf32> -> vector<3x128xf32>
    %71 = vector.extract_strided_slice %70 {offsets = [0, 0], sizes = [3, 1], strides = [1, 1]} : vector<3x128xf32> to vector<3x1xf32>
    %72 = arith.mulf %65, %65 : vector<3x768xf32>
    %cst_46 = arith.constant dense<0.000000e+00> : vector<3x128xf32>
    %73 = tpu.matmul %72, %1, %cst_46 {dimension_numbers = #tpu.dot_dimension_numbers<[1], [0], [0], [1], [0, 0, 1, 1], [], []>} : vector<3x768xf32>, vector<768x128xf32>, vector<3x128xf32> -> vector<3x128xf32>
    %74 = vector.extract_strided_slice %73 {offsets = [0, 0], sizes = [3, 1], strides = [1, 1]} : vector<3x128xf32> to vector<3x1xf32>
    %cst_47 = arith.constant 0.001953125 : f32
    %75 = vector.broadcast %cst_47 : f32 to vector<3x1xf32>
    %76 = arith.mulf %71, %75 : vector<3x1xf32>
    %cst_48 = arith.constant 0.001953125 : f32
    %77 = vector.broadcast %cst_48 : f32 to vector<3x1xf32>
    %78 = arith.mulf %74, %77 : vector<3x1xf32>
    %79 = arith.mulf %76, %76 : vector<3x1xf32>
    %80 = arith.subf %78, %79 : vector<3x1xf32>
    %cst_49 = arith.constant 0.000000e+00 : f32
    %81 = vector.broadcast %cst_49 : f32 to vector<3x1xf32>
    %82 = arith.maximumf %80, %81 : vector<3x1xf32>
    %cst_50 = arith.constant 9.99999974E-6 : f32
    %83 = vector.broadcast %cst_50 : f32 to vector<3x1xf32>
    %84 = arith.addf %82, %83 : vector<3x1xf32>
    %85 = math.rsqrt %84 : vector<3x1xf32>
    %86 = arith.mulf %85, %67 : vector<3x1xf32>
    %87 = vector.broadcast %76 : vector<3x1xf32> to vector<3x768xf32>
    %88 = arith.subf %65, %87 : vector<3x768xf32>
    %89 = vector.broadcast %86 : vector<3x1xf32> to vector<3x768xf32>
    %90 = arith.mulf %88, %89 : vector<3x768xf32>
    %91 = vector.broadcast %69 : vector<3x1xf32> to vector<3x768xf32>
    %92 = arith.addf %90, %91 : vector<3x768xf32>
    %cst_51 = arith.constant 0.000000e+00 : f32
    %93 = vector.broadcast %cst_51 : f32 to vector<3x768xf32>
    %94 = arith.maximumf %92, %93 : vector<3x768xf32>
    %95 = vector.broadcast %0 : vector<1x768xf32> to vector<3x768xf32>
    %96 = arith.mulf %94, %95 : vector<3x768xf32>
    %cst_52 = arith.constant 2.000000e+00 : f32
    %97 = vector.broadcast %cst_52 : f32 to vector<3x768xf32>
    %98 = arith.mulf %97, %96 : vector<3x768xf32>
    %99 = vector.broadcast %3 : vector<1x768xf32> to vector<3x768xf32>
    %100 = arith.addf %98, %99 : vector<3x768xf32>
    %c1_53 = arith.constant 1 : index
    %c0_54 = arith.constant 0 : index
    %c0_55 = arith.constant 0 : index
    %101 = vector.load %arg3[%c1_53, %c0_54, %c0_55] : memref<4x32x27xbf16, #tpu.memory_space<vmem>>, vector<1x32x27xbf16>
    %102 = vector.shape_cast %101 : vector<1x32x27xbf16> to vector<32x27xbf16>
    %c19_i32_56 = arith.constant 19 : i32
    %103 = tpu.dynamic_rotate %100 by %c19_i32_56 dim 1 : vector<3x768xf32>, i32 -> vector<3x768xf32>
    %c18_i32_57 = arith.constant 18 : i32
    %104 = tpu.dynamic_rotate %100 by %c18_i32_57 dim 1 : vector<3x768xf32>, i32 -> vector<3x768xf32>
    %c17_i32_58 = arith.constant 17 : i32
    %105 = tpu.dynamic_rotate %100 by %c17_i32_58 dim 1 : vector<3x768xf32>, i32 -> vector<3x768xf32>
    %c1_i32_59 = arith.constant 1 : i32
    %106 = tpu.dynamic_rotate %100 by %c1_i32_59 dim 1 : vector<3x768xf32>, i32 -> vector<3x768xf32>
    %c767_i32_60 = arith.constant 767 : i32
    %107 = tpu.dynamic_rotate %100 by %c767_i32_60 dim 1 : vector<3x768xf32>, i32 -> vector<3x768xf32>
    %c751_i32_61 = arith.constant 751 : i32
    %108 = tpu.dynamic_rotate %100 by %c751_i32_61 dim 1 : vector<3x768xf32>, i32 -> vector<3x768xf32>
    %c750_i32_62 = arith.constant 750 : i32
    %109 = tpu.dynamic_rotate %100 by %c750_i32_62 dim 1 : vector<3x768xf32>, i32 -> vector<3x768xf32>
    %c749_i32_63 = arith.constant 749 : i32
    %110 = tpu.dynamic_rotate %100 by %c749_i32_63 dim 1 : vector<3x768xf32>, i32 -> vector<3x768xf32>
    %111 = tpu.concatenate %103, %104, %105, %106, %100, %107, %108, %109, %110 in 0 : vector<3x768xf32>, vector<3x768xf32>, vector<3x768xf32>, vector<3x768xf32>, vector<3x768xf32>, vector<3x768xf32>, vector<3x768xf32>, vector<3x768xf32>, vector<3x768xf32> -> vector<27x768xf32>
    %112 = arith.truncf %111 : vector<27x768xf32> to vector<27x768xbf16>
    %cst_64 = arith.constant dense<0.000000e+00> : vector<32x768xf32>
    %113 = tpu.matmul %102, %112, %cst_64 {dimension_numbers = #tpu.dot_dimension_numbers<[1], [0], [0], [1], [0, 0, 1, 1], [], []>} : vector<32x27xbf16>, vector<27x768xbf16>, vector<32x768xf32> -> vector<32x768xf32>
    %c1_65 = arith.constant 1 : index
    %c0_66 = arith.constant 0 : index
    %c0_67 = arith.constant 0 : index
    %114 = vector.load %arg4[%c1_65, %c0_66, %c0_67] : memref<4x32x1xf32, #tpu.memory_space<vmem>>, vector<1x32x1xf32>
    %115 = vector.shape_cast %114 : vector<1x32x1xf32> to vector<32x1xf32>
    %c1_68 = arith.constant 1 : index
    %c0_69 = arith.constant 0 : index
    %c0_70 = arith.constant 0 : index
    %116 = vector.load %arg5[%c1_68, %c0_69, %c0_70] : memref<4x32x1xf32, #tpu.memory_space<vmem>>, vector<1x32x1xf32>
    %117 = vector.shape_cast %116 : vector<1x32x1xf32> to vector<32x1xf32>
    %cst_71 = arith.constant dense<0.000000e+00> : vector<32x128xf32>
    %118 = tpu.matmul %113, %1, %cst_71 {dimension_numbers = #tpu.dot_dimension_numbers<[1], [0], [0], [1], [0, 0, 1, 1], [], []>} : vector<32x768xf32>, vector<768x128xf32>, vector<32x128xf32> -> vector<32x128xf32>
    %119 = vector.extract_strided_slice %118 {offsets = [0, 0], sizes = [32, 1], strides = [1, 1]} : vector<32x128xf32> to vector<32x1xf32>
    %120 = arith.mulf %113, %113 : vector<32x768xf32>
    %cst_72 = arith.constant dense<0.000000e+00> : vector<32x128xf32>
    %121 = tpu.matmul %120, %1, %cst_72 {dimension_numbers = #tpu.dot_dimension_numbers<[1], [0], [0], [1], [0, 0, 1, 1], [], []>} : vector<32x768xf32>, vector<768x128xf32>, vector<32x128xf32> -> vector<32x128xf32>
    %122 = vector.extract_strided_slice %121 {offsets = [0, 0], sizes = [32, 1], strides = [1, 1]} : vector<32x128xf32> to vector<32x1xf32>
    %cst_73 = arith.constant 0.001953125 : f32
    %123 = vector.broadcast %cst_73 : f32 to vector<32x1xf32>
    %124 = arith.mulf %119, %123 : vector<32x1xf32>
    %cst_74 = arith.constant 0.001953125 : f32
    %125 = vector.broadcast %cst_74 : f32 to vector<32x1xf32>
    %126 = arith.mulf %122, %125 : vector<32x1xf32>
    %127 = arith.mulf %124, %124 : vector<32x1xf32>
    %128 = arith.subf %126, %127 : vector<32x1xf32>
    %cst_75 = arith.constant 0.000000e+00 : f32
    %129 = vector.broadcast %cst_75 : f32 to vector<32x1xf32>
    %130 = arith.maximumf %128, %129 : vector<32x1xf32>
    %cst_76 = arith.constant 9.99999974E-6 : f32
    %131 = vector.broadcast %cst_76 : f32 to vector<32x1xf32>
    %132 = arith.addf %130, %131 : vector<32x1xf32>
    %133 = math.rsqrt %132 : vector<32x1xf32>
    %134 = arith.mulf %133, %115 : vector<32x1xf32>
    %135 = vector.broadcast %124 : vector<32x1xf32> to vector<32x768xf32>
    %136 = arith.subf %113, %135 : vector<32x768xf32>
    %137 = vector.broadcast %134 : vector<32x1xf32> to vector<32x768xf32>
    %138 = arith.mulf %136, %137 : vector<32x768xf32>
    %139 = vector.broadcast %117 : vector<32x1xf32> to vector<32x768xf32>
    %140 = arith.addf %138, %139 : vector<32x768xf32>
    %cst_77 = arith.constant 0.000000e+00 : f32
    %141 = vector.broadcast %cst_77 : f32 to vector<32x768xf32>
    %142 = arith.maximumf %140, %141 : vector<32x768xf32>
    %143 = vector.broadcast %0 : vector<1x768xf32> to vector<32x768xf32>
    %144 = arith.mulf %142, %143 : vector<32x768xf32>
    %c1_i32_78 = arith.constant 1 : i32
    %145 = tpu.dynamic_rotate %144 by %c1_i32_78 dim 1 : vector<32x768xf32>, i32 -> vector<32x768xf32>
    %c767_i32_79 = arith.constant 767 : i32
    %146 = tpu.dynamic_rotate %144 by %c767_i32_79 dim 1 : vector<32x768xf32>, i32 -> vector<32x768xf32>
    %147 = tpu.concatenate %145, %144, %146 in 0 : vector<32x768xf32>, vector<32x768xf32>, vector<32x768xf32> -> vector<96x768xf32>
    %148 = arith.truncf %147 : vector<96x768xf32> to vector<96x768xbf16>
    %c1_80 = arith.constant 1 : index
    %c0_81 = arith.constant 0 : index
    %c0_82 = arith.constant 0 : index
    %c0_83 = arith.constant 0 : index
    %149 = vector.load %arg6[%c1_80, %c0_81, %c0_82, %c0_83] : memref<4x3x3x96xbf16, #tpu.memory_space<vmem>>, vector<1x1x3x96xbf16>
    %150 = vector.shape_cast %149 : vector<1x1x3x96xbf16> to vector<3x96xbf16>
    %cst_84 = arith.constant dense<0.000000e+00> : vector<3x768xf32>
    %151 = tpu.matmul %150, %148, %cst_84 {dimension_numbers = #tpu.dot_dimension_numbers<[1], [0], [0], [1], [0, 0, 1, 1], [], []>} : vector<3x96xbf16>, vector<96x768xbf16>, vector<3x768xf32> -> vector<3x768xf32>
    %c18_i32_85 = arith.constant 18 : i32
    %152 = tpu.dynamic_rotate %151 by %c18_i32_85 dim 1 : vector<3x768xf32>, i32 -> vector<3x768xf32>
    %c1_86 = arith.constant 1 : index
    %c1_87 = arith.constant 1 : index
    %c0_88 = arith.constant 0 : index
    %c0_89 = arith.constant 0 : index
    %153 = vector.load %arg6[%c1_86, %c1_87, %c0_88, %c0_89] : memref<4x3x3x96xbf16, #tpu.memory_space<vmem>>, vector<1x1x3x96xbf16>
    %154 = vector.shape_cast %153 : vector<1x1x3x96xbf16> to vector<3x96xbf16>
    %cst_90 = arith.constant dense<0.000000e+00> : vector<3x768xf32>
    %155 = tpu.matmul %154, %148, %cst_90 {dimension_numbers = #tpu.dot_dimension_numbers<[1], [0], [0], [1], [0, 0, 1, 1], [], []>} : vector<3x96xbf16>, vector<96x768xbf16>, vector<3x768xf32> -> vector<3x768xf32>
    %156 = arith.addf %152, %155 : vector<3x768xf32>
    %c1_91 = arith.constant 1 : index
    %c2_92 = arith.constant 2 : index
    %c0_93 = arith.constant 0 : index
    %c0_94 = arith.constant 0 : index
    %157 = vector.load %arg6[%c1_91, %c2_92, %c0_93, %c0_94] : memref<4x3x3x96xbf16, #tpu.memory_space<vmem>>, vector<1x1x3x96xbf16>
    %158 = vector.shape_cast %157 : vector<1x1x3x96xbf16> to vector<3x96xbf16>
    %cst_95 = arith.constant dense<0.000000e+00> : vector<3x768xf32>
    %159 = tpu.matmul %158, %148, %cst_95 {dimension_numbers = #tpu.dot_dimension_numbers<[1], [0], [0], [1], [0, 0, 1, 1], [], []>} : vector<3x96xbf16>, vector<96x768xbf16>, vector<3x768xf32> -> vector<3x768xf32>
    %c750_i32_96 = arith.constant 750 : i32
    %160 = tpu.dynamic_rotate %159 by %c750_i32_96 dim 1 : vector<3x768xf32>, i32 -> vector<3x768xf32>
    %161 = arith.addf %156, %160 : vector<3x768xf32>
    %c1_97 = arith.constant 1 : index
    %c0_98 = arith.constant 0 : index
    %c0_99 = arith.constant 0 : index
    %162 = vector.load %arg7[%c1_97, %c0_98, %c0_99] : memref<4x3x1xf32, #tpu.memory_space<vmem>>, vector<1x3x1xf32>
    %163 = vector.shape_cast %162 : vector<1x3x1xf32> to vector<3x1xf32>
    %c1_100 = arith.constant 1 : index
    %c0_101 = arith.constant 0 : index
    %c0_102 = arith.constant 0 : index
    %164 = vector.load %arg8[%c1_100, %c0_101, %c0_102] : memref<4x3x1xf32, #tpu.memory_space<vmem>>, vector<1x3x1xf32>
    %165 = vector.shape_cast %164 : vector<1x3x1xf32> to vector<3x1xf32>
    %cst_103 = arith.constant dense<0.000000e+00> : vector<3x128xf32>
    %166 = tpu.matmul %161, %1, %cst_103 {dimension_numbers = #tpu.dot_dimension_numbers<[1], [0], [0], [1], [0, 0, 1, 1], [], []>} : vector<3x768xf32>, vector<768x128xf32>, vector<3x128xf32> -> vector<3x128xf32>
    %167 = vector.extract_strided_slice %166 {offsets = [0, 0], sizes = [3, 1], strides = [1, 1]} : vector<3x128xf32> to vector<3x1xf32>
    %168 = arith.mulf %161, %161 : vector<3x768xf32>
    %cst_104 = arith.constant dense<0.000000e+00> : vector<3x128xf32>
    %169 = tpu.matmul %168, %1, %cst_104 {dimension_numbers = #tpu.dot_dimension_numbers<[1], [0], [0], [1], [0, 0, 1, 1], [], []>} : vector<3x768xf32>, vector<768x128xf32>, vector<3x128xf32> -> vector<3x128xf32>
    %170 = vector.extract_strided_slice %169 {offsets = [0, 0], sizes = [3, 1], strides = [1, 1]} : vector<3x128xf32> to vector<3x1xf32>
    %cst_105 = arith.constant 0.001953125 : f32
    %171 = vector.broadcast %cst_105 : f32 to vector<3x1xf32>
    %172 = arith.mulf %167, %171 : vector<3x1xf32>
    %cst_106 = arith.constant 0.001953125 : f32
    %173 = vector.broadcast %cst_106 : f32 to vector<3x1xf32>
    %174 = arith.mulf %170, %173 : vector<3x1xf32>
    %175 = arith.mulf %172, %172 : vector<3x1xf32>
    %176 = arith.subf %174, %175 : vector<3x1xf32>
    %cst_107 = arith.constant 0.000000e+00 : f32
    %177 = vector.broadcast %cst_107 : f32 to vector<3x1xf32>
    %178 = arith.maximumf %176, %177 : vector<3x1xf32>
    %cst_108 = arith.constant 9.99999974E-6 : f32
    %179 = vector.broadcast %cst_108 : f32 to vector<3x1xf32>
    %180 = arith.addf %178, %179 : vector<3x1xf32>
    %181 = math.rsqrt %180 : vector<3x1xf32>
    %182 = arith.mulf %181, %163 : vector<3x1xf32>
    %183 = vector.broadcast %172 : vector<3x1xf32> to vector<3x768xf32>
    %184 = arith.subf %161, %183 : vector<3x768xf32>
    %185 = vector.broadcast %182 : vector<3x1xf32> to vector<3x768xf32>
    %186 = arith.mulf %184, %185 : vector<3x768xf32>
    %187 = vector.broadcast %165 : vector<3x1xf32> to vector<3x768xf32>
    %188 = arith.addf %186, %187 : vector<3x768xf32>
    %cst_109 = arith.constant 0.000000e+00 : f32
    %189 = vector.broadcast %cst_109 : f32 to vector<3x768xf32>
    %190 = arith.maximumf %188, %189 : vector<3x768xf32>
    %191 = vector.broadcast %0 : vector<1x768xf32> to vector<3x768xf32>
    %192 = arith.mulf %190, %191 : vector<3x768xf32>
    %cst_110 = arith.constant 2.000000e+00 : f32
    %193 = vector.broadcast %cst_110 : f32 to vector<3x768xf32>
    %194 = arith.mulf %193, %192 : vector<3x768xf32>
    %195 = vector.broadcast %3 : vector<1x768xf32> to vector<3x768xf32>
    %196 = arith.addf %194, %195 : vector<3x768xf32>
    %cst_111 = arith.constant 2.000000e+00 : f32
    %197 = vector.broadcast %cst_111 : f32 to vector<3x768xf32>
    %198 = arith.mulf %196, %197 : vector<3x768xf32>
    %c2_112 = arith.constant 2 : index
    %c0_113 = arith.constant 0 : index
    %c0_114 = arith.constant 0 : index
    %199 = vector.load %arg3[%c2_112, %c0_113, %c0_114] : memref<4x32x27xbf16, #tpu.memory_space<vmem>>, vector<1x32x27xbf16>
    %200 = vector.shape_cast %199 : vector<1x32x27xbf16> to vector<32x27xbf16>
    %c19_i32_115 = arith.constant 19 : i32
    %201 = tpu.dynamic_rotate %198 by %c19_i32_115 dim 1 : vector<3x768xf32>, i32 -> vector<3x768xf32>
    %c18_i32_116 = arith.constant 18 : i32
    %202 = tpu.dynamic_rotate %198 by %c18_i32_116 dim 1 : vector<3x768xf32>, i32 -> vector<3x768xf32>
    %c17_i32_117 = arith.constant 17 : i32
    %203 = tpu.dynamic_rotate %198 by %c17_i32_117 dim 1 : vector<3x768xf32>, i32 -> vector<3x768xf32>
    %c1_i32_118 = arith.constant 1 : i32
    %204 = tpu.dynamic_rotate %198 by %c1_i32_118 dim 1 : vector<3x768xf32>, i32 -> vector<3x768xf32>
    %c767_i32_119 = arith.constant 767 : i32
    %205 = tpu.dynamic_rotate %198 by %c767_i32_119 dim 1 : vector<3x768xf32>, i32 -> vector<3x768xf32>
    %c751_i32_120 = arith.constant 751 : i32
    %206 = tpu.dynamic_rotate %198 by %c751_i32_120 dim 1 : vector<3x768xf32>, i32 -> vector<3x768xf32>
    %c750_i32_121 = arith.constant 750 : i32
    %207 = tpu.dynamic_rotate %198 by %c750_i32_121 dim 1 : vector<3x768xf32>, i32 -> vector<3x768xf32>
    %c749_i32_122 = arith.constant 749 : i32
    %208 = tpu.dynamic_rotate %198 by %c749_i32_122 dim 1 : vector<3x768xf32>, i32 -> vector<3x768xf32>
    %209 = tpu.concatenate %201, %202, %203, %204, %198, %205, %206, %207, %208 in 0 : vector<3x768xf32>, vector<3x768xf32>, vector<3x768xf32>, vector<3x768xf32>, vector<3x768xf32>, vector<3x768xf32>, vector<3x768xf32>, vector<3x768xf32>, vector<3x768xf32> -> vector<27x768xf32>
    %210 = arith.truncf %209 : vector<27x768xf32> to vector<27x768xbf16>
    %cst_123 = arith.constant dense<0.000000e+00> : vector<32x768xf32>
    %211 = tpu.matmul %200, %210, %cst_123 {dimension_numbers = #tpu.dot_dimension_numbers<[1], [0], [0], [1], [0, 0, 1, 1], [], []>} : vector<32x27xbf16>, vector<27x768xbf16>, vector<32x768xf32> -> vector<32x768xf32>
    %c2_124 = arith.constant 2 : index
    %c0_125 = arith.constant 0 : index
    %c0_126 = arith.constant 0 : index
    %212 = vector.load %arg4[%c2_124, %c0_125, %c0_126] : memref<4x32x1xf32, #tpu.memory_space<vmem>>, vector<1x32x1xf32>
    %213 = vector.shape_cast %212 : vector<1x32x1xf32> to vector<32x1xf32>
    %c2_127 = arith.constant 2 : index
    %c0_128 = arith.constant 0 : index
    %c0_129 = arith.constant 0 : index
    %214 = vector.load %arg5[%c2_127, %c0_128, %c0_129] : memref<4x32x1xf32, #tpu.memory_space<vmem>>, vector<1x32x1xf32>
    %215 = vector.shape_cast %214 : vector<1x32x1xf32> to vector<32x1xf32>
    %cst_130 = arith.constant dense<0.000000e+00> : vector<32x128xf32>
    %216 = tpu.matmul %211, %1, %cst_130 {dimension_numbers = #tpu.dot_dimension_numbers<[1], [0], [0], [1], [0, 0, 1, 1], [], []>} : vector<32x768xf32>, vector<768x128xf32>, vector<32x128xf32> -> vector<32x128xf32>
    %217 = vector.extract_strided_slice %216 {offsets = [0, 0], sizes = [32, 1], strides = [1, 1]} : vector<32x128xf32> to vector<32x1xf32>
    %218 = arith.mulf %211, %211 : vector<32x768xf32>
    %cst_131 = arith.constant dense<0.000000e+00> : vector<32x128xf32>
    %219 = tpu.matmul %218, %1, %cst_131 {dimension_numbers = #tpu.dot_dimension_numbers<[1], [0], [0], [1], [0, 0, 1, 1], [], []>} : vector<32x768xf32>, vector<768x128xf32>, vector<32x128xf32> -> vector<32x128xf32>
    %220 = vector.extract_strided_slice %219 {offsets = [0, 0], sizes = [32, 1], strides = [1, 1]} : vector<32x128xf32> to vector<32x1xf32>
    %cst_132 = arith.constant 0.001953125 : f32
    %221 = vector.broadcast %cst_132 : f32 to vector<32x1xf32>
    %222 = arith.mulf %217, %221 : vector<32x1xf32>
    %cst_133 = arith.constant 0.001953125 : f32
    %223 = vector.broadcast %cst_133 : f32 to vector<32x1xf32>
    %224 = arith.mulf %220, %223 : vector<32x1xf32>
    %225 = arith.mulf %222, %222 : vector<32x1xf32>
    %226 = arith.subf %224, %225 : vector<32x1xf32>
    %cst_134 = arith.constant 0.000000e+00 : f32
    %227 = vector.broadcast %cst_134 : f32 to vector<32x1xf32>
    %228 = arith.maximumf %226, %227 : vector<32x1xf32>
    %cst_135 = arith.constant 9.99999974E-6 : f32
    %229 = vector.broadcast %cst_135 : f32 to vector<32x1xf32>
    %230 = arith.addf %228, %229 : vector<32x1xf32>
    %231 = math.rsqrt %230 : vector<32x1xf32>
    %232 = arith.mulf %231, %213 : vector<32x1xf32>
    %233 = vector.broadcast %222 : vector<32x1xf32> to vector<32x768xf32>
    %234 = arith.subf %211, %233 : vector<32x768xf32>
    %235 = vector.broadcast %232 : vector<32x1xf32> to vector<32x768xf32>
    %236 = arith.mulf %234, %235 : vector<32x768xf32>
    %237 = vector.broadcast %215 : vector<32x1xf32> to vector<32x768xf32>
    %238 = arith.addf %236, %237 : vector<32x768xf32>
    %cst_136 = arith.constant 0.000000e+00 : f32
    %239 = vector.broadcast %cst_136 : f32 to vector<32x768xf32>
    %240 = arith.maximumf %238, %239 : vector<32x768xf32>
    %241 = vector.broadcast %0 : vector<1x768xf32> to vector<32x768xf32>
    %242 = arith.mulf %240, %241 : vector<32x768xf32>
    %c1_i32_137 = arith.constant 1 : i32
    %243 = tpu.dynamic_rotate %242 by %c1_i32_137 dim 1 : vector<32x768xf32>, i32 -> vector<32x768xf32>
    %c767_i32_138 = arith.constant 767 : i32
    %244 = tpu.dynamic_rotate %242 by %c767_i32_138 dim 1 : vector<32x768xf32>, i32 -> vector<32x768xf32>
    %245 = tpu.concatenate %243, %242, %244 in 0 : vector<32x768xf32>, vector<32x768xf32>, vector<32x768xf32> -> vector<96x768xf32>
    %246 = arith.truncf %245 : vector<96x768xf32> to vector<96x768xbf16>
    %c2_139 = arith.constant 2 : index
    %c0_140 = arith.constant 0 : index
    %c0_141 = arith.constant 0 : index
    %c0_142 = arith.constant 0 : index
    %247 = vector.load %arg6[%c2_139, %c0_140, %c0_141, %c0_142] : memref<4x3x3x96xbf16, #tpu.memory_space<vmem>>, vector<1x1x3x96xbf16>
    %248 = vector.shape_cast %247 : vector<1x1x3x96xbf16> to vector<3x96xbf16>
    %cst_143 = arith.constant dense<0.000000e+00> : vector<3x768xf32>
    %249 = tpu.matmul %248, %246, %cst_143 {dimension_numbers = #tpu.dot_dimension_numbers<[1], [0], [0], [1], [0, 0, 1, 1], [], []>} : vector<3x96xbf16>, vector<96x768xbf16>, vector<3x768xf32> -> vector<3x768xf32>
    %c18_i32_144 = arith.constant 18 : i32
    %250 = tpu.dynamic_rotate %249 by %c18_i32_144 dim 1 : vector<3x768xf32>, i32 -> vector<3x768xf32>
    %c2_145 = arith.constant 2 : index
    %c1_146 = arith.constant 1 : index
    %c0_147 = arith.constant 0 : index
    %c0_148 = arith.constant 0 : index
    %251 = vector.load %arg6[%c2_145, %c1_146, %c0_147, %c0_148] : memref<4x3x3x96xbf16, #tpu.memory_space<vmem>>, vector<1x1x3x96xbf16>
    %252 = vector.shape_cast %251 : vector<1x1x3x96xbf16> to vector<3x96xbf16>
    %cst_149 = arith.constant dense<0.000000e+00> : vector<3x768xf32>
    %253 = tpu.matmul %252, %246, %cst_149 {dimension_numbers = #tpu.dot_dimension_numbers<[1], [0], [0], [1], [0, 0, 1, 1], [], []>} : vector<3x96xbf16>, vector<96x768xbf16>, vector<3x768xf32> -> vector<3x768xf32>
    %254 = arith.addf %250, %253 : vector<3x768xf32>
    %c2_150 = arith.constant 2 : index
    %c2_151 = arith.constant 2 : index
    %c0_152 = arith.constant 0 : index
    %c0_153 = arith.constant 0 : index
    %255 = vector.load %arg6[%c2_150, %c2_151, %c0_152, %c0_153] : memref<4x3x3x96xbf16, #tpu.memory_space<vmem>>, vector<1x1x3x96xbf16>
    %256 = vector.shape_cast %255 : vector<1x1x3x96xbf16> to vector<3x96xbf16>
    %cst_154 = arith.constant dense<0.000000e+00> : vector<3x768xf32>
    %257 = tpu.matmul %256, %246, %cst_154 {dimension_numbers = #tpu.dot_dimension_numbers<[1], [0], [0], [1], [0, 0, 1, 1], [], []>} : vector<3x96xbf16>, vector<96x768xbf16>, vector<3x768xf32> -> vector<3x768xf32>
    %c750_i32_155 = arith.constant 750 : i32
    %258 = tpu.dynamic_rotate %257 by %c750_i32_155 dim 1 : vector<3x768xf32>, i32 -> vector<3x768xf32>
    %259 = arith.addf %254, %258 : vector<3x768xf32>
    %c2_156 = arith.constant 2 : index
    %c0_157 = arith.constant 0 : index
    %c0_158 = arith.constant 0 : index
    %260 = vector.load %arg7[%c2_156, %c0_157, %c0_158] : memref<4x3x1xf32, #tpu.memory_space<vmem>>, vector<1x3x1xf32>
    %261 = vector.shape_cast %260 : vector<1x3x1xf32> to vector<3x1xf32>
    %c2_159 = arith.constant 2 : index
    %c0_160 = arith.constant 0 : index
    %c0_161 = arith.constant 0 : index
    %262 = vector.load %arg8[%c2_159, %c0_160, %c0_161] : memref<4x3x1xf32, #tpu.memory_space<vmem>>, vector<1x3x1xf32>
    %263 = vector.shape_cast %262 : vector<1x3x1xf32> to vector<3x1xf32>
    %cst_162 = arith.constant dense<0.000000e+00> : vector<3x128xf32>
    %264 = tpu.matmul %259, %1, %cst_162 {dimension_numbers = #tpu.dot_dimension_numbers<[1], [0], [0], [1], [0, 0, 1, 1], [], []>} : vector<3x768xf32>, vector<768x128xf32>, vector<3x128xf32> -> vector<3x128xf32>
    %265 = vector.extract_strided_slice %264 {offsets = [0, 0], sizes = [3, 1], strides = [1, 1]} : vector<3x128xf32> to vector<3x1xf32>
    %266 = arith.mulf %259, %259 : vector<3x768xf32>
    %cst_163 = arith.constant dense<0.000000e+00> : vector<3x128xf32>
    %267 = tpu.matmul %266, %1, %cst_163 {dimension_numbers = #tpu.dot_dimension_numbers<[1], [0], [0], [1], [0, 0, 1, 1], [], []>} : vector<3x768xf32>, vector<768x128xf32>, vector<3x128xf32> -> vector<3x128xf32>
    %268 = vector.extract_strided_slice %267 {offsets = [0, 0], sizes = [3, 1], strides = [1, 1]} : vector<3x128xf32> to vector<3x1xf32>
    %cst_164 = arith.constant 0.001953125 : f32
    %269 = vector.broadcast %cst_164 : f32 to vector<3x1xf32>
    %270 = arith.mulf %265, %269 : vector<3x1xf32>
    %cst_165 = arith.constant 0.001953125 : f32
    %271 = vector.broadcast %cst_165 : f32 to vector<3x1xf32>
    %272 = arith.mulf %268, %271 : vector<3x1xf32>
    %273 = arith.mulf %270, %270 : vector<3x1xf32>
    %274 = arith.subf %272, %273 : vector<3x1xf32>
    %cst_166 = arith.constant 0.000000e+00 : f32
    %275 = vector.broadcast %cst_166 : f32 to vector<3x1xf32>
    %276 = arith.maximumf %274, %275 : vector<3x1xf32>
    %cst_167 = arith.constant 9.99999974E-6 : f32
    %277 = vector.broadcast %cst_167 : f32 to vector<3x1xf32>
    %278 = arith.addf %276, %277 : vector<3x1xf32>
    %279 = math.rsqrt %278 : vector<3x1xf32>
    %280 = arith.mulf %279, %261 : vector<3x1xf32>
    %281 = vector.broadcast %270 : vector<3x1xf32> to vector<3x768xf32>
    %282 = arith.subf %259, %281 : vector<3x768xf32>
    %283 = vector.broadcast %280 : vector<3x1xf32> to vector<3x768xf32>
    %284 = arith.mulf %282, %283 : vector<3x768xf32>
    %285 = vector.broadcast %263 : vector<3x1xf32> to vector<3x768xf32>
    %286 = arith.addf %284, %285 : vector<3x768xf32>
    %cst_168 = arith.constant 0.000000e+00 : f32
    %287 = vector.broadcast %cst_168 : f32 to vector<3x768xf32>
    %288 = arith.maximumf %286, %287 : vector<3x768xf32>
    %289 = vector.broadcast %0 : vector<1x768xf32> to vector<3x768xf32>
    %290 = arith.mulf %288, %289 : vector<3x768xf32>
    %cst_169 = arith.constant 2.000000e+00 : f32
    %291 = vector.broadcast %cst_169 : f32 to vector<3x768xf32>
    %292 = arith.mulf %291, %290 : vector<3x768xf32>
    %293 = vector.broadcast %3 : vector<1x768xf32> to vector<3x768xf32>
    %294 = arith.addf %292, %293 : vector<3x768xf32>
    %c3 = arith.constant 3 : index
    %c0_170 = arith.constant 0 : index
    %c0_171 = arith.constant 0 : index
    %295 = vector.load %arg3[%c3, %c0_170, %c0_171] : memref<4x32x27xbf16, #tpu.memory_space<vmem>>, vector<1x32x27xbf16>
    %296 = vector.shape_cast %295 : vector<1x32x27xbf16> to vector<32x27xbf16>
    %c19_i32_172 = arith.constant 19 : i32
    %297 = tpu.dynamic_rotate %294 by %c19_i32_172 dim 1 : vector<3x768xf32>, i32 -> vector<3x768xf32>
    %c18_i32_173 = arith.constant 18 : i32
    %298 = tpu.dynamic_rotate %294 by %c18_i32_173 dim 1 : vector<3x768xf32>, i32 -> vector<3x768xf32>
    %c17_i32_174 = arith.constant 17 : i32
    %299 = tpu.dynamic_rotate %294 by %c17_i32_174 dim 1 : vector<3x768xf32>, i32 -> vector<3x768xf32>
    %c1_i32_175 = arith.constant 1 : i32
    %300 = tpu.dynamic_rotate %294 by %c1_i32_175 dim 1 : vector<3x768xf32>, i32 -> vector<3x768xf32>
    %c767_i32_176 = arith.constant 767 : i32
    %301 = tpu.dynamic_rotate %294 by %c767_i32_176 dim 1 : vector<3x768xf32>, i32 -> vector<3x768xf32>
    %c751_i32_177 = arith.constant 751 : i32
    %302 = tpu.dynamic_rotate %294 by %c751_i32_177 dim 1 : vector<3x768xf32>, i32 -> vector<3x768xf32>
    %c750_i32_178 = arith.constant 750 : i32
    %303 = tpu.dynamic_rotate %294 by %c750_i32_178 dim 1 : vector<3x768xf32>, i32 -> vector<3x768xf32>
    %c749_i32_179 = arith.constant 749 : i32
    %304 = tpu.dynamic_rotate %294 by %c749_i32_179 dim 1 : vector<3x768xf32>, i32 -> vector<3x768xf32>
    %305 = tpu.concatenate %297, %298, %299, %300, %294, %301, %302, %303, %304 in 0 : vector<3x768xf32>, vector<3x768xf32>, vector<3x768xf32>, vector<3x768xf32>, vector<3x768xf32>, vector<3x768xf32>, vector<3x768xf32>, vector<3x768xf32>, vector<3x768xf32> -> vector<27x768xf32>
    %306 = arith.truncf %305 : vector<27x768xf32> to vector<27x768xbf16>
    %cst_180 = arith.constant dense<0.000000e+00> : vector<32x768xf32>
    %307 = tpu.matmul %296, %306, %cst_180 {dimension_numbers = #tpu.dot_dimension_numbers<[1], [0], [0], [1], [0, 0, 1, 1], [], []>} : vector<32x27xbf16>, vector<27x768xbf16>, vector<32x768xf32> -> vector<32x768xf32>
    %c3_181 = arith.constant 3 : index
    %c0_182 = arith.constant 0 : index
    %c0_183 = arith.constant 0 : index
    %308 = vector.load %arg4[%c3_181, %c0_182, %c0_183] : memref<4x32x1xf32, #tpu.memory_space<vmem>>, vector<1x32x1xf32>
    %309 = vector.shape_cast %308 : vector<1x32x1xf32> to vector<32x1xf32>
    %c3_184 = arith.constant 3 : index
    %c0_185 = arith.constant 0 : index
    %c0_186 = arith.constant 0 : index
    %310 = vector.load %arg5[%c3_184, %c0_185, %c0_186] : memref<4x32x1xf32, #tpu.memory_space<vmem>>, vector<1x32x1xf32>
    %311 = vector.shape_cast %310 : vector<1x32x1xf32> to vector<32x1xf32>
    %cst_187 = arith.constant dense<0.000000e+00> : vector<32x128xf32>
    %312 = tpu.matmul %307, %1, %cst_187 {dimension_numbers = #tpu.dot_dimension_numbers<[1], [0], [0], [1], [0, 0, 1, 1], [], []>} : vector<32x768xf32>, vector<768x128xf32>, vector<32x128xf32> -> vector<32x128xf32>
    %313 = vector.extract_strided_slice %312 {offsets = [0, 0], sizes = [32, 1], strides = [1, 1]} : vector<32x128xf32> to vector<32x1xf32>
    %314 = arith.mulf %307, %307 : vector<32x768xf32>
    %cst_188 = arith.constant dense<0.000000e+00> : vector<32x128xf32>
    %315 = tpu.matmul %314, %1, %cst_188 {dimension_numbers = #tpu.dot_dimension_numbers<[1], [0], [0], [1], [0, 0, 1, 1], [], []>} : vector<32x768xf32>, vector<768x128xf32>, vector<32x128xf32> -> vector<32x128xf32>
    %316 = vector.extract_strided_slice %315 {offsets = [0, 0], sizes = [32, 1], strides = [1, 1]} : vector<32x128xf32> to vector<32x1xf32>
    %cst_189 = arith.constant 0.001953125 : f32
    %317 = vector.broadcast %cst_189 : f32 to vector<32x1xf32>
    %318 = arith.mulf %313, %317 : vector<32x1xf32>
    %cst_190 = arith.constant 0.001953125 : f32
    %319 = vector.broadcast %cst_190 : f32 to vector<32x1xf32>
    %320 = arith.mulf %316, %319 : vector<32x1xf32>
    %321 = arith.mulf %318, %318 : vector<32x1xf32>
    %322 = arith.subf %320, %321 : vector<32x1xf32>
    %cst_191 = arith.constant 0.000000e+00 : f32
    %323 = vector.broadcast %cst_191 : f32 to vector<32x1xf32>
    %324 = arith.maximumf %322, %323 : vector<32x1xf32>
    %cst_192 = arith.constant 9.99999974E-6 : f32
    %325 = vector.broadcast %cst_192 : f32 to vector<32x1xf32>
    %326 = arith.addf %324, %325 : vector<32x1xf32>
    %327 = math.rsqrt %326 : vector<32x1xf32>
    %328 = arith.mulf %327, %309 : vector<32x1xf32>
    %329 = vector.broadcast %318 : vector<32x1xf32> to vector<32x768xf32>
    %330 = arith.subf %307, %329 : vector<32x768xf32>
    %331 = vector.broadcast %328 : vector<32x1xf32> to vector<32x768xf32>
    %332 = arith.mulf %330, %331 : vector<32x768xf32>
    %333 = vector.broadcast %311 : vector<32x1xf32> to vector<32x768xf32>
    %334 = arith.addf %332, %333 : vector<32x768xf32>
    %cst_193 = arith.constant 0.000000e+00 : f32
    %335 = vector.broadcast %cst_193 : f32 to vector<32x768xf32>
    %336 = arith.maximumf %334, %335 : vector<32x768xf32>
    %337 = vector.broadcast %0 : vector<1x768xf32> to vector<32x768xf32>
    %338 = arith.mulf %336, %337 : vector<32x768xf32>
    %c1_i32_194 = arith.constant 1 : i32
    %339 = tpu.dynamic_rotate %338 by %c1_i32_194 dim 1 : vector<32x768xf32>, i32 -> vector<32x768xf32>
    %c767_i32_195 = arith.constant 767 : i32
    %340 = tpu.dynamic_rotate %338 by %c767_i32_195 dim 1 : vector<32x768xf32>, i32 -> vector<32x768xf32>
    %341 = tpu.concatenate %339, %338, %340 in 0 : vector<32x768xf32>, vector<32x768xf32>, vector<32x768xf32> -> vector<96x768xf32>
    %342 = arith.truncf %341 : vector<96x768xf32> to vector<96x768xbf16>
    %c3_196 = arith.constant 3 : index
    %c0_197 = arith.constant 0 : index
    %c0_198 = arith.constant 0 : index
    %c0_199 = arith.constant 0 : index
    %343 = vector.load %arg6[%c3_196, %c0_197, %c0_198, %c0_199] : memref<4x3x3x96xbf16, #tpu.memory_space<vmem>>, vector<1x1x3x96xbf16>
    %344 = vector.shape_cast %343 : vector<1x1x3x96xbf16> to vector<3x96xbf16>
    %cst_200 = arith.constant dense<0.000000e+00> : vector<3x768xf32>
    %345 = tpu.matmul %344, %342, %cst_200 {dimension_numbers = #tpu.dot_dimension_numbers<[1], [0], [0], [1], [0, 0, 1, 1], [], []>} : vector<3x96xbf16>, vector<96x768xbf16>, vector<3x768xf32> -> vector<3x768xf32>
    %c18_i32_201 = arith.constant 18 : i32
    %346 = tpu.dynamic_rotate %345 by %c18_i32_201 dim 1 : vector<3x768xf32>, i32 -> vector<3x768xf32>
    %c3_202 = arith.constant 3 : index
    %c1_203 = arith.constant 1 : index
    %c0_204 = arith.constant 0 : index
    %c0_205 = arith.constant 0 : index
    %347 = vector.load %arg6[%c3_202, %c1_203, %c0_204, %c0_205] : memref<4x3x3x96xbf16, #tpu.memory_space<vmem>>, vector<1x1x3x96xbf16>
    %348 = vector.shape_cast %347 : vector<1x1x3x96xbf16> to vector<3x96xbf16>
    %cst_206 = arith.constant dense<0.000000e+00> : vector<3x768xf32>
    %349 = tpu.matmul %348, %342, %cst_206 {dimension_numbers = #tpu.dot_dimension_numbers<[1], [0], [0], [1], [0, 0, 1, 1], [], []>} : vector<3x96xbf16>, vector<96x768xbf16>, vector<3x768xf32> -> vector<3x768xf32>
    %350 = arith.addf %346, %349 : vector<3x768xf32>
    %c3_207 = arith.constant 3 : index
    %c2_208 = arith.constant 2 : index
    %c0_209 = arith.constant 0 : index
    %c0_210 = arith.constant 0 : index
    %351 = vector.load %arg6[%c3_207, %c2_208, %c0_209, %c0_210] : memref<4x3x3x96xbf16, #tpu.memory_space<vmem>>, vector<1x1x3x96xbf16>
    %352 = vector.shape_cast %351 : vector<1x1x3x96xbf16> to vector<3x96xbf16>
    %cst_211 = arith.constant dense<0.000000e+00> : vector<3x768xf32>
    %353 = tpu.matmul %352, %342, %cst_211 {dimension_numbers = #tpu.dot_dimension_numbers<[1], [0], [0], [1], [0, 0, 1, 1], [], []>} : vector<3x96xbf16>, vector<96x768xbf16>, vector<3x768xf32> -> vector<3x768xf32>
    %c750_i32_212 = arith.constant 750 : i32
    %354 = tpu.dynamic_rotate %353 by %c750_i32_212 dim 1 : vector<3x768xf32>, i32 -> vector<3x768xf32>
    %355 = arith.addf %350, %354 : vector<3x768xf32>
    %c3_213 = arith.constant 3 : index
    %c0_214 = arith.constant 0 : index
    %c0_215 = arith.constant 0 : index
    %356 = vector.load %arg7[%c3_213, %c0_214, %c0_215] : memref<4x3x1xf32, #tpu.memory_space<vmem>>, vector<1x3x1xf32>
    %357 = vector.shape_cast %356 : vector<1x3x1xf32> to vector<3x1xf32>
    %c3_216 = arith.constant 3 : index
    %c0_217 = arith.constant 0 : index
    %c0_218 = arith.constant 0 : index
    %358 = vector.load %arg8[%c3_216, %c0_217, %c0_218] : memref<4x3x1xf32, #tpu.memory_space<vmem>>, vector<1x3x1xf32>
    %359 = vector.shape_cast %358 : vector<1x3x1xf32> to vector<3x1xf32>
    %cst_219 = arith.constant dense<0.000000e+00> : vector<3x128xf32>
    %360 = tpu.matmul %355, %1, %cst_219 {dimension_numbers = #tpu.dot_dimension_numbers<[1], [0], [0], [1], [0, 0, 1, 1], [], []>} : vector<3x768xf32>, vector<768x128xf32>, vector<3x128xf32> -> vector<3x128xf32>
    %361 = vector.extract_strided_slice %360 {offsets = [0, 0], sizes = [3, 1], strides = [1, 1]} : vector<3x128xf32> to vector<3x1xf32>
    %362 = arith.mulf %355, %355 : vector<3x768xf32>
    %cst_220 = arith.constant dense<0.000000e+00> : vector<3x128xf32>
    %363 = tpu.matmul %362, %1, %cst_220 {dimension_numbers = #tpu.dot_dimension_numbers<[1], [0], [0], [1], [0, 0, 1, 1], [], []>} : vector<3x768xf32>, vector<768x128xf32>, vector<3x128xf32> -> vector<3x128xf32>
    %364 = vector.extract_strided_slice %363 {offsets = [0, 0], sizes = [3, 1], strides = [1, 1]} : vector<3x128xf32> to vector<3x1xf32>
    %cst_221 = arith.constant 0.001953125 : f32
    %365 = vector.broadcast %cst_221 : f32 to vector<3x1xf32>
    %366 = arith.mulf %361, %365 : vector<3x1xf32>
    %cst_222 = arith.constant 0.001953125 : f32
    %367 = vector.broadcast %cst_222 : f32 to vector<3x1xf32>
    %368 = arith.mulf %364, %367 : vector<3x1xf32>
    %369 = arith.mulf %366, %366 : vector<3x1xf32>
    %370 = arith.subf %368, %369 : vector<3x1xf32>
    %cst_223 = arith.constant 0.000000e+00 : f32
    %371 = vector.broadcast %cst_223 : f32 to vector<3x1xf32>
    %372 = arith.maximumf %370, %371 : vector<3x1xf32>
    %cst_224 = arith.constant 9.99999974E-6 : f32
    %373 = vector.broadcast %cst_224 : f32 to vector<3x1xf32>
    %374 = arith.addf %372, %373 : vector<3x1xf32>
    %375 = math.rsqrt %374 : vector<3x1xf32>
    %376 = arith.mulf %375, %357 : vector<3x1xf32>
    %377 = vector.broadcast %366 : vector<3x1xf32> to vector<3x768xf32>
    %378 = arith.subf %355, %377 : vector<3x768xf32>
    %379 = vector.broadcast %376 : vector<3x1xf32> to vector<3x768xf32>
    %380 = arith.mulf %378, %379 : vector<3x768xf32>
    %381 = vector.broadcast %359 : vector<3x1xf32> to vector<3x768xf32>
    %382 = arith.addf %380, %381 : vector<3x768xf32>
    %cst_225 = arith.constant 0.000000e+00 : f32
    %383 = vector.broadcast %cst_225 : f32 to vector<3x768xf32>
    %384 = arith.maximumf %382, %383 : vector<3x768xf32>
    %385 = vector.broadcast %0 : vector<1x768xf32> to vector<3x768xf32>
    %386 = arith.mulf %384, %385 : vector<3x768xf32>
    %cst_226 = arith.constant 2.000000e+00 : f32
    %387 = vector.broadcast %cst_226 : f32 to vector<3x768xf32>
    %388 = arith.mulf %387, %386 : vector<3x768xf32>
    %389 = vector.broadcast %3 : vector<1x768xf32> to vector<3x768xf32>
    %390 = arith.addf %388, %389 : vector<3x768xf32>
    %cst_227 = arith.constant 2.000000e+00 : f32
    %391 = vector.broadcast %cst_227 : f32 to vector<3x768xf32>
    %392 = arith.mulf %390, %391 : vector<3x768xf32>
    %c0_228 = arith.constant 0 : index
    %c0_229 = arith.constant 0 : index
    %393 = vector.load %arg9[%c0_228, %c0_229] : memref<3x768xf32, #tpu.memory_space<vmem>>, vector<3x768xf32>
    tpu.vector_store %arg9[%c0_228, %c0_229], %392 {strides = array<i32>} : memref<3x768xf32, #tpu.memory_space<vmem>>, vector<3x768xf32>,
    return
  }
}

</mosaic_0001>

<bundles_post_ra>
// kernel: run.1
= control target key start
LH: loop header
LB: loop body
LE: loop exit
PB: predicated region body
PF: predicated region fallthrough
CT: control target
= control target key end

     0   :  { %s14170_s15 = smov 18   ;;  %s14171_s16 = smov 17   ;;  %v20122_v10 = vmov 0   ;;  %v20121_v13 = vlaneseq  ;;  %vm20271_vm3 = vcmask 1040384   ;;  %vm435_vm4 = vcmask 1043456   ;;  %s20111_s0 = inlined_call_operand.vmem [shape: f32[3,768], index: 0, kind: input, shape index: {}]   ;;  %s20112_s3 = inlined_call_operand.vmem [shape: bf16[4,32,27], index: 3, kind: input, shape index: {}]   ;;  %s20113_s2 = inlined_call_operand.vmem [shape: f32[768,128], index: 2, kind: input, shape index: {}]   ;;  %s20114_s5 = inlined_call_operand.vmem [shape: f32[4,32,1], index: 5, kind: input, shape index: {}]   ;;  %s20115_s4 = inlined_call_operand.vmem [shape: f32[4,32,1], index: 4, kind: input, shape index: {}]   ;;  %s20116_s1 = inlined_call_operand.vmem [shape: f32[1,768], index: 1, kind: input, shape index: {}]   ;;  %s20117_s6 = inlined_call_operand.vmem [shape: bf16[4,3,3,96], index: 6, kind: input, shape index: {}]   ;;  %s20118_s8 = inlined_call_operand.vmem [shape: f32[4,3,1], index: 8, kind: input, shape index: {}]   ;;  %s20119_s7 = inlined_call_operand.vmem [shape: f32[4,3,1], index: 7, kind: input, shape index: {}]   ;;  %s20120_s9 = inlined_call_operand.vmem [shape: f32[3,768], index: 9, kind: output, shape index: {}]  }
   0x1   :  { %v14233_v0 = vld [vmem:[%s20111_s0] sm:$0x77]  ;;  %v14238_v1 = vld [vmem:[%s20111_s0 + $0x10] sm:$0x77]  ;;  %v14247_v4 = vld [vmem:[%s20111_s0 + $0x8] sm:$0x77]  ;;  %544 = vmatprep.mubr.bf16.mxu0 %v20122_v10  ;;  %597 = vmatprep.mubr.bf16.mxu1 %v20122_v10 }
   0x2   :  { %v140_v2 = vcombine.high %v14233_v0, %v14233_v0  ;;  %v142_v3 = vcombine.high %v14238_v1, %v14238_v1  ;;  %s14172_s17 = smov 1   ;;  %v141_v7 = vcombine.high %v14247_v4, %v14247_v4  ;;  %s14173_s0 = smov 19   ;;  %13395 = vset.pattern.permute.xlu0 %v20122_v10  ;;  %13394 = vset.pattern.permute.xlu1 %v20122_v10  ;;  %v14308_v16 = vand.u32 127, %v20121_v13 }
   0x3   :  { %s14174_s18 = smov 127   ;;  %s14175_s19 = smov 111   ;;  %vm414_vm7 = vcmask 1042432   ;;  %vm421_vm8 = vcmask 1045504   ;;  %vm442_vm9 = vcmask 1046528   ;;  %vm20272_vm12 = vcmask 1041408  }
   0x4   :  { %v13324_v5 = vpack.i.bf16 %v140_v2, %v14233_v0  ;;  %v13329_v6 = vpack.i.bf16 %v14247_v4, %v142_v3  ;;  %v13344_v8 = vpack.i.bf16 %v14247_v4, %v140_v2  ;;  %v13354_v9 = vpack.i.bf16 %v141_v7, %v14233_v0  ;;  %s14176_s20 = smov 110   ;;  %s14177_s21 = smov 109   ;;  %20551 = vst [vmem:[#allocation2_spill] sm:$0xff] %v14308_v16 }
   0x5   :  { %vm217_vm0 = vcmp.lt.s32.totalorder %v14308_v16, 1  ;;  %vm198_vm1 = vcmp.lt.s32.totalorder %v14308_v16, 17  ;;  %vm179_vm2 = vcmp.lt.s32.totalorder %v14308_v16, 18  ;;  %vm160_vm5 = vcmp.lt.s32.totalorder %v14308_v16, 19 }
   0x6   :  { %13325 = vrot.lane.b32.xlu1 %v13324_v5, %s14170_s15  ;;  %13315 = vrot.lane.b32.xlu0 %v13324_v5, %s14171_s16  ;;  %vm236_vm6 = vcmp.lt.s32.totalorder %v14308_v16, 127  ;;  %vm255_vm10 = vcmp.lt.s32.totalorder %v14308_v16, 111  ;;  %vm274_vm11 = vcmp.lt.s32.totalorder %v14308_v16, 110  ;;  %vm456_vm13 = vcmask 1044480  }
   0x7   :  { %vm293_vm14 = vcmp.lt.s32.totalorder %v14308_v16, 109  ;;  %vm20220_vm15 = vcmask 220160  }
   0xa   :  { %13330 = vrot.lane.b32.xlu1 %v13329_v6, %s14171_s16  ;;  %13320 = vrot.lane.b32.xlu0 %v13324_v5, %s14172_s17 }
   0xe   :  { %13340 = vrot.lane.b32.xlu1 %v13329_v6, %s14170_s15  ;;  %13335 = vrot.lane.b32.xlu0 %v13329_v6, %s14172_s17 }
  0x12   :  { %211 = vrot.lane.b32.xlu1 %v141_v7, %s14172_s17  ;;  %192 = vrot.lane.b32.xlu0 %v141_v7, %s14171_s16 }
  0x16   :  { %13350 = vrot.lane.b32.xlu1 %v13324_v5, %s14173_s0  ;;  %13345 = vrot.lane.b32.xlu0 %v13344_v8, %s14174_s18 }
  0x1a   :  { %13355 = vrot.lane.b32.xlu1 %v13354_v9, %s14174_s18  ;;  %173 = vrot.lane.b32.xlu0 %v141_v7, %s14170_s15 }
  0x1e   :  { %13365 = vrot.lane.b32.xlu1 %v13329_v6, %s14173_s0  ;;  %13360 = vrot.lane.b32.xlu0 %v13344_v8, %s14175_s19 }
  0x22   :  { %13370 = vrot.lane.b32.xlu1 %v13354_v9, %s14175_s19  ;;  %232 = vrot.lane.b32.xlu0 %v14238_v1, %s14174_s18 }
  0x26   :  { %152 = vrot.lane.b32.xlu1 %v141_v7, %s14173_s0  ;;  %13375 = vrot.lane.b32.xlu0 %v13344_v8, %s14176_s20 }
  0x2a   :  { %13380 = vrot.lane.b32.xlu1 %v13354_v9, %s14176_s20  ;;  %251 = vrot.lane.b32.xlu0 %v14238_v1, %s14175_s19 }
  0x2e   :  { %13385 = vrot.lane.b32.xlu1 %v13344_v8, %s14177_s21  ;;  %270 = vrot.lane.b32.xlu0 %v14238_v1, %s14176_s20  ;;  %v354_v8 = vcombine.low %v14233_v0, %v14233_v0 }
  0x32   :  { %289 = vrot.lane.b32.xlu1 %v14238_v1, %s14177_s21  ;;  %13390 = vrot.lane.b32.xlu0 %v13354_v9, %s14177_s21 }
  0x36   :  { %213 = vrot.lane.b32.xlu1 %v14238_v1, %s14172_s17  ;;  %194 = vrot.lane.b32.xlu0 %v14238_v1, %s14171_s16 }
  0x3a   :  { %234 = vrot.lane.b32.xlu1 %v142_v3, %s14174_s18  ;;  %175 = vrot.lane.b32.xlu0 %v14238_v1, %s14170_s15 }
  0x3e   :  { %253 = vrot.lane.b32.xlu1 %v142_v3, %s14175_s19  ;;  %154 = vrot.lane.b32.xlu0 %v14238_v1, %s14173_s0 }
  0x42   :  { %291 = vrot.lane.b32.xlu1 %v142_v3, %s14177_s21  ;;  %272 = vrot.lane.b32.xlu0 %v142_v3, %s14176_s20 }
  0x78   :  { %v14299_v11 = vpop.permute.xlu1 %13325  ;;  %v14301_v12 = vpop.permute.xlu0 %13315 }
  0x79   :  { %v13318_v21 = vunpack.i.h.bf16 %v14301_v12  ;;  %v13317_v22 = vunpack.i.l.bf16 %v14301_v12  ;;  %v13328_v23 = vunpack.i.h.bf16 %v14299_v11  ;;  %v13327_v24 = vunpack.i.l.bf16 %v14299_v11 }
  0x7b   :  { %v203_v29 = vsel %vm198_vm1, %v13317_v22, %v13318_v21  ;;  %v184_v32 = vsel %vm179_vm2, %v13327_v24, %v13328_v23 }
  0x7c   :  { %v14303_v14 = vpop.permute.xlu1 %13330  ;;  %v14305_v15 = vpop.permute.xlu0 %13320  ;;  %v325_v36 = vrot.slane %v203_v29, 2  ;;  %v307_v42 = vrot.slane %v184_v32, 5 }
  0x7d   :  { %v13323_v17 = vunpack.i.h.bf16 %v14305_v15  ;;  %v13322_v18 = vunpack.i.l.bf16 %v14305_v15  ;;  %v13332_v31 = vunpack.i.l.bf16 %v14303_v14  ;;  %v13333_v54 = vunpack.i.h.bf16 %v14303_v14 }
  0x7f   :  { %v222_v25 = vsel %vm217_vm0, %v13322_v18, %v13323_v17  ;;  %v204_v47 = vsel %vm198_vm1, %v13332_v31, %v13317_v22  ;;  %v202_v32 = vsel %vm198_vm1, %v13318_v21, %v13333_v54 }
  0x80   :  { %v14313_v19 = vpop.permute.xlu1 %13340  ;;  %v14315_v20 = vpop.permute.xlu0 %13335  ;;  %v343_v30 = vrot.slane %v222_v25, 7  ;;  %v324_v60 = vrot.slane %v204_v47, 2  ;;  %v355_v25 = vcombine.low %v14247_v4, %v14247_v4 }
  0x81   :  { %v13337_v26 = vunpack.i.l.bf16 %v14315_v20  ;;  %v13342_v41 = vunpack.i.l.bf16 %v14313_v19  ;;  %v13343_v44 = vunpack.i.h.bf16 %v14313_v19  ;;  %v13338_v48 = vunpack.i.h.bf16 %v14315_v20  ;;  %v50_v20 = vld [vmem:[%s20113_s2 + $0x80] sm:$0xff] }
  0x82   :  { %v430_v43 = vsel %vm20271_vm3, %v325_v36, %v343_v30 }
  0x83   :  { %v223_v33 = vsel %vm217_vm0, %v13337_v26, %v13322_v18  ;;  %v437_v57 = vsel %vm435_vm4, %v430_v43, %v14233_v0  ;;  %v185_v58 = vsel %vm179_vm2, %v13342_v41, %v13327_v24  ;;  %v183_v3 = vsel %vm179_vm2, %v13328_v23, %v13343_v44 }
  0x84   :  { %v14326_v27 = vpop.permute.xlu1 %211  ;;  %v14328_v28 = vpop.permute.xlu0 %192  ;;  %v342_v49 = vrot.slane %v223_v33, 7  ;;  %v221_v5 = vsel %vm217_vm0, %v13323_v17, %v13338_v48  ;;  %v306_v23 = vrot.slane %v185_v58, 5  ;;  %v308_v29 = vrot.slane %v183_v3, 5 }
  0x85   :  { %v220_v61 = vsel %vm217_vm0, %v13338_v48, %v14326_v27  ;;  %v201_v62 = vsel %vm198_vm1, %v13333_v54, %v14328_v28  ;;  %v344_v30 = vrot.slane %v221_v5, 7 }
  0x86   :  { %v429_v9 = vsel %vm20271_vm3, %v324_v60, %v342_v49  ;;  %v345_v17 = vrot.slane %v220_v61, 7  ;;  %v327_v24 = vrot.slane %v201_v62, 2 }
  0x88   :  { %v13351_v34 = vpop.permute.xlu1 %13350  ;;  %v14343_v35 = vpop.permute.xlu0 %13345 }
  0x89   :  { %v13353_v37 = vunpack.i.h.bf16 %v13351_v34  ;;  %v13352_v38 = vunpack.i.l.bf16 %v13351_v34  ;;  %v13348_v39 = vunpack.i.h.bf16 %v14343_v35  ;;  %v13347_v40 = vunpack.i.l.bf16 %v14343_v35 }
  0x8b   :  { %v165_v45 = vsel %vm160_vm5, %v13352_v38, %v13353_v37  ;;  %v14354_v46 = vsel %vm236_vm6, %v13347_v40, %v13348_v39 }
  0x8c   :  { %v14361_v50 = vpop.permute.xlu1 %13355  ;;  %v14363_v51 = vpop.permute.xlu0 %173  ;;  %v367_v52 = vrot.slane %v14354_v46, 1  ;;  %v416_v53 = vsel %vm414_vm7, %v165_v45, %v307_v42  ;;  %v326_v45 = vrot.slane %v202_v32, 2 }
  0x8d   :  { %v13357_v55 = vunpack.i.l.bf16 %v14361_v50  ;;  %v423_v56 = vsel %vm421_vm8, %v416_v53, %v325_v36  ;;  %v13358_v11 = vunpack.i.h.bf16 %v14361_v50  ;;  %v182_v33 = vsel %vm179_vm2, %v13343_v44, %v14363_v51 }
  0x8e   :  { %v444_v59 = vsel %vm442_vm9, %v437_v57, %v367_v52  ;;  %v309_v54 = vrot.slane %v182_v33, 5  ;;  %v431_v58 = vsel %vm20271_vm3, %v326_v45, %v344_v30 }
  0x8f   :  { %v464_v63 = vpack.c.bf16 %v444_v59, %v423_v56  ;;  %v14389_v2 = vsel %vm236_vm6, %v13357_v55, %v13347_v40  ;;  %v436_v40 = vsel %vm435_vm4, %v429_v9, %v354_v8  ;;  %v14438_v43 = vsel %vm236_vm6, %v13348_v39, %v13358_v11 }
  0x90   :  { %v14395_v6 = vpop.permute.xlu1 %13365  ;;  %v14397_v7 = vpop.permute.xlu0 %13360  ;;  %v366_v22 = vrot.slane %v14389_v2, 1  ;;  %v368_v57 = vrot.slane %v14438_v43, 1 }
  0x91   :  { %v13368_v15 = vunpack.i.h.bf16 %v14395_v6  ;;  %v13367_v18 = vunpack.i.l.bf16 %v14395_v6  ;;  %512 = vmatprep.subr.bf16.mxu0 %v464_v63  ;;  %v13363_v47 = vunpack.i.h.bf16 %v14397_v7  ;;  %v13362_v48 = vunpack.i.l.bf16 %v14397_v7 }
  0x92   :  { %v443_v42 = vsel %vm442_vm9, %v436_v40, %v366_v22 }
  0x93   :  { %v166_v0 = vsel %vm160_vm5, %v13367_v18, %v13352_v38  ;;  %v164_v38 = vsel %vm160_vm5, %v13353_v37, %v13368_v15  ;;  %v432_v37 = vsel %vm20271_vm3, %v327_v24, %v345_v17  ;;  %v259_v8 = vsel %vm255_vm10, %v13362_v48, %v13363_v47 }
  0x94   :  { %v14419_v34 = vpop.permute.xlu1 %13370  ;;  %v14421_v35 = vpop.permute.xlu0 %232  ;;  %v415_v36 = vsel %vm414_vm7, %v166_v0, %v306_v23  ;;  %v417_v53 = vsel %vm414_vm7, %v164_v38, %v308_v29  ;;  %v439_v5 = vsel %vm435_vm4, %v432_v37, %v14247_v4  ;;  %v385_v33 = vrot.slane %v259_v8, 6 }
  0x95   :  { %v14430_v12 = vsel %vm236_vm6, %v13358_v11, %v14421_v35  ;;  %v422_v21 = vsel %vm421_vm8, %v415_v36, %v324_v60  ;;  %v13372_v59 = vunpack.i.l.bf16 %v14419_v34  ;;  %v13373_v63 = vunpack.i.h.bf16 %v14419_v34  ;;  %v55_v34 = vld [vmem:[%s20113_s2 + $0xa8] sm:$0xff] }
  0x96   :  { %v463_v44 = vpack.c.bf16 %v443_v42, %v422_v21  ;;  %v369_v49 = vrot.slane %v14430_v12, 1  ;;  %v424_v7 = vsel %vm421_vm8, %v417_v53, %v326_v45  ;;  %v14179_v45 = vmov 65535  }
  0x97   :  { %v258_v36 = vsel %vm255_vm10, %v13363_v47, %v13373_v63  ;;  %v492_v47 = vsel %vm456_vm13, 4294967295, %v14179_v45 }
  0x98   :  { %v14447_v56 = vpop.permute.xlu1 %152  ;;  %v13376_v39 = vpop.permute.xlu0 %13375  ;;  %513 = vmatpush1.bf16.msra.mxu0 %v463_v44  ;;  %v446_v11 = vsel %vm442_vm9, %v439_v5, %v369_v49 }
  0x99   :  { %v163_v60 = vsel %vm160_vm5, %v13368_v15, %v14447_v56  ;;  %v13378_v61 = vunpack.i.h.bf16 %v13376_v39  ;;  %v13377_v62 = vunpack.i.l.bf16 %v13376_v39  ;;  %v438_v15 = vsel %vm435_vm4, %v431_v58, %v355_v25 }
  0x9a   :  { %v418_v3 = vsel %vm414_vm7, %v163_v60, %v309_v54  ;;  %v445_v30 = vsel %vm442_vm9, %v438_v15, %v368_v57 }
  0x9b   :  { %v425_v9 = vsel %vm421_vm8, %v418_v3, %v327_v24  ;;  %v278_v23 = vsel %vm274_vm11, %v13377_v62, %v13378_v61  ;;  %v260_v24 = vsel %vm255_vm10, %v13372_v59, %v13362_v48  ;;  %v465_v25 = vpack.c.bf16 %v445_v30, %v424_v7 }
  0x9c   :  { %v14469_v17 = vpop.permute.xlu1 %13380  ;;  %v14471_v29 = vpop.permute.xlu0 %251  ;;  %v466_v4 = vpack.c.bf16 %v446_v11, %v425_v9  ;;  %v403_v40 = vrot.slane %v278_v23, 3  ;;  %v384_v43 = vrot.slane %v260_v24, 6  ;;  %v386_v48 = vrot.slane %v258_v36, 6 }
  0x9d   :  { %v13383_v0 = vunpack.i.h.bf16 %v14469_v17  ;;  %v13382_v32 = vunpack.i.l.bf16 %v14469_v17  ;;  %v257_v42 = vsel %vm255_vm10, %v13373_v63, %v14471_v29  ;;  %v14505_v7 = vsel %vm421_vm8, %v492_v47, 0 }
  0x9e   :  { %565 = vmatprep.subr.bf16.mxu1 %v466_v4  ;;  %20552 = vst [vmem:[#allocation3_spill] sm:$0xff] %v14505_v7  ;;  %v452_v23 = vsel %vm20272_vm12, %v368_v57, %v386_v48 }
  0x9f   :  { %v277_v38 = vsel %vm274_vm11, %v13378_v61, %v13383_v0  ;;  %v279_v21 = vsel %vm274_vm11, %v13382_v32, %v13377_v62  ;;  %566 = vmatpush1.bf16.msra.mxu1 %v465_v25  ;;  %v387_v61 = vrot.slane %v257_v42, 6  ;;  %v451_v62 = vsel %vm20272_vm12, %v367_v52, %v385_v33 }
  0xa0   :  { %v13386_v44 = vpop.permute.xlu1 %13385  ;;  %v14491_v37 = vpop.permute.xlu0 %270  ;;  %v402_v58 = vrot.slane %v279_v21, 3  ;;  %v404_v60 = vrot.slane %v277_v38, 3  ;;  %v458_v5 = vsel %vm456_vm13, %v451_v62, %v403_v40  ;;  %v450_v52 = vsel %vm20272_vm12, %v366_v22, %v384_v43 }
  0xa1   :  { %v13388_v53 = vunpack.i.h.bf16 %v13386_v44  ;;  %v13387_v54 = vunpack.i.l.bf16 %v13386_v44  ;;  %v276_v39 = vsel %vm274_vm11, %v13383_v0, %v14491_v37  ;;  %v453_v4 = vsel %vm20272_vm12, %v369_v49, %v387_v61 }
  0xa2   :  { %v405_v63 = vrot.slane %v276_v39, 3  ;;  %v457_v24 = vsel %vm456_vm13, %v450_v52, %v402_v58  ;;  %v459_v0 = vsel %vm456_vm13, %v452_v23, %v404_v60  ;;  %v52_v39 = vld [vmem:[%s20113_s2 + $0x90] sm:$0xff]  ;;  %v356_v60 = vcombine.low %v14238_v1, %v14238_v1 }
  0xa3   :  { %v297_v3 = vsel %vm293_vm14, %v13387_v54, %v13388_v53 }
  0xa4   :  { %v14507_v8 = vpop.permute.xlu1 %289  ;;  %v14509_v9 = vpop.permute.xlu0 %13390  ;;  %v470_v11 = vpack.c.bf16 %v297_v3, %v458_v5  ;;  %v460_v22 = vsel %vm456_vm13, %v453_v4, %v405_v63  ;;  %v53_v3 = vld [vmem:[%s20113_s2 + $0x98] sm:$0xff]  ;;  %v36_v5 = vld [vmem:[%s20113_s2 + $0x10] sm:$0xff] }
  0xa5   :  { %v13393_v15 = vunpack.i.h.bf16 %v14509_v9  ;;  %v13392_v46 = vunpack.i.l.bf16 %v14509_v9  ;;  %v14604_v50 = vpack.c.bf16 %v53_v3, %v52_v39  ;;  %v40_v9 = vld [vmem:[%s20113_s2 + $0x30] sm:$0xff] }
  0xa6   :  { %v498_v30 = vand.u32 %v14505_v7, %v470_v11  ;;  %v37_v11 = vld [vmem:[%s20113_s2 + $0x18] sm:$0xff] }
  0xa7   :  { %v298_v25 = vsel %vm293_vm14, %v13392_v46, %v13387_v54  ;;  %v295_v2 = vsel %vm293_vm14, %v13393_v15, %v14507_v8  ;;  %v296_v12 = vsel %vm293_vm14, %v13388_v53, %v13393_v15  ;;  %v34_v53 = vld [vmem:[%s20113_s2] sm:$0xff]  ;;  %v35_v54 = vld [vmem:[%s20113_s2 + $0x8] sm:$0xff]  ;;  %20555 = vst [vmem:[#allocation6_spill] sm:$0xff] %v14604_v50 }
  0xa8   :  { %v214_v49 = vpop.permute.xlu1 %213  ;;  %v195_v57 = vpop.permute.xlu0 %194  ;;  %514 = vmatprep.subr.bf16.mxu0 %v498_v30  ;;  %v469_v33 = vpack.c.bf16 %v298_v25, %v457_v24  ;;  %v472_v36 = vpack.c.bf16 %v295_v2, %v460_v22  ;;  %v471_v40 = vpack.c.bf16 %v296_v12, %v459_v0  ;;  %v14606_v25 = vpack.c.bf16 %v37_v11, %v36_v5 }
  0xa9   :  { %v218_v38 = vsel %vm217_vm0, %v214_v49, %v13337_v26  ;;  %v219_v21 = vsel %vm217_vm0, %v14326_v27, %v214_v49  ;;  %v14544_v42 = vsel %vm198_vm1, %v195_v57, %v13332_v31  ;;  %v200_v43 = vsel %vm198_vm1, %v14328_v28, %v195_v57  ;;  %v51_v26 = vld [vmem:[%s20113_s2 + $0x88] sm:$0xff]  ;;  %v14559_v31 = vld [vmem:[%s20112_s3] sm:$0xff]  }
  0xaa   :  { %v346_v44 = vrot.slane %v219_v21, 7  ;;  %v347_v27 = vrot.slane %v218_v38, 7  ;;  %v328_v45 = vrot.slane %v200_v43, 2  ;;  %v329_v14 = vrot.slane %v14544_v42, 2  ;;  %20556 = vst [vmem:[#allocation7_spill] sm:$0xff] %v14606_v25  ;;  %v39_v42 = vld [vmem:[%s20113_s2 + $0x28] sm:$0xff] }
  0xab   :  { %v495_v28 = vand.u32 %v14505_v7, %v469_v33  ;;  %v504_v47 = vand.u32 %v14505_v7, %v472_v36  ;;  %v501_v48 = vand.u32 %v14505_v7, %v471_v40  ;;  %v14576_v63 = vpack.c.bf16 %v51_v26, %v50_v20  ;;  %v38_v33 = vld [vmem:[%s20113_s2 + $0x20] sm:$0xff]  ;;  %v56_v43 = vld [vmem:[%s20113_s2 + $0xb0] sm:$0xff]  ;;  %v57_v20 = vld [vmem:[%s20113_s2 + $0xb8] sm:$0xff] }
  0xac   :  { %v433_v58 = vsel %vm20271_vm3, %v328_v45, %v346_v44  ;;  %v235_v61 = vpop.permute.xlu1 %234  ;;  %v176_v62 = vpop.permute.xlu0 %175  ;;  %v434_v15 = vsel %vm20271_vm3, %v329_v14, %v347_v27  ;;  %v14672_v39 = vpack.c.bf16 %v39_v42, %v38_v33  ;;  %v44_v33 = vld [vmem:[%s20113_s2 + $0x50] sm:$0xff] }
  0xad   :  { %20553 = vst [vmem:[#allocation4_spill] sm:$0xff] %v14576_v63  ;;  %v237_v52 = vsel %vm236_vm6, %v14421_v35, %v235_v61  ;;  %v242_v23 = vsel %vm236_vm6, %v235_v61, %v13357_v55  ;;  %v180_v4 = vsel %vm179_vm2, %v176_v62, %v13342_v41  ;;  %515 = vmatpush1.bf16.msra.mxu0 %v495_v28 }
  0xae   :  { %v370_v30 = vrot.slane %v237_v52, 1  ;;  %v371_v24 = vrot.slane %v242_v23, 1  ;;  %v181_v0 = vsel %vm179_vm2, %v14363_v51, %v176_v62  ;;  %567 = vmatprep.subr.bf16.mxu1 %v504_v47  ;;  %v14602_v35 = vpack.c.bf16 %v35_v54, %v34_v53  ;;  %v14670_v54 = vld [vmem:[%s20112_s3 + $0x8] sm:$0xff]   ;;  %20558 = vst [vmem:[#allocation9_spill] sm:$0xff] %v14672_v39 }
  0xaf   :  { %568 = vmatpush1.bf16.msra.mxu1 %v501_v48  ;;  %v440_v19 = vsel %vm435_vm4, %v433_v58, %v356_v60  ;;  %v310_v55 = vrot.slane %v181_v0, 5  ;;  %v311_v2 = vrot.slane %v180_v4, 5  ;;  %v441_v51 = vsel %vm435_vm4, %v434_v15, %v14238_v1  ;;  %v58_v15 = vld [vmem:[%s20113_s2 + $0xc0] sm:$0xff]  ;;  %v59_v52 = vld [vmem:[%s20113_s2 + $0xc8] sm:$0xff] }
  0xb0   :  { %20554 = vst [vmem:[#allocation5_spill] sm:$0xff] %v14602_v35  ;;  %9749 = vmatmul.mubr.msk.bf16.vlgmr.msra.gmra.mrb[0].mxu0 %vm20220_vm15, %v14559_v31  ;;  %v254_v41 = vpop.permute.xlu1 %253  ;;  %v155_v22 = vpop.permute.xlu0 %154  ;;  %11765 = vmatprep.subr.bf16.mxu1 %v14576_v63  ;;  %v14674_v58 = vpack.c.bf16 %v57_v20, %v56_v43  ;;  %v67_v0 = vld [vmem:[%s20113_s2 + $0x108] sm:$0xff]  ;;  %v88_v20 = vld [vmem:[%s20113_s2 + $0x1b0] sm:$0xff] }
  0xb1   :  { %v256_v12 = vsel %vm255_vm10, %v14471_v29, %v254_v41  ;;  %v261_v49 = vsel %vm255_vm10, %v254_v41, %v13372_v59  ;;  %v161_v57 = vsel %vm160_vm5, %v155_v22, %v13367_v18  ;;  %v162_v1 = vsel %vm160_vm5, %v14447_v56, %v155_v22  ;;  %554 = vmatprep.mubr.bf16.mxu0 %v20122_v10  ;;  %v54_v29 = vld [vmem:[%s20113_s2 + $0xa0] sm:$0xff]  ;;  %v71_v43 = vld [vmem:[%s20113_s2 + $0x128] sm:$0xff] }
  0xb2   :  { %v447_v59 = vsel %vm442_vm9, %v440_v19, %v370_v30  ;;  %v419_v6 = vsel %vm414_vm7, %v162_v1, %v310_v55  ;;  %v420_v18 = vsel %vm414_vm7, %v161_v57, %v311_v2  ;;  %9751 = vmatmul.mubr.msk.bf16.vlgmr.msra.gmra.mrb[0].mxu1 %vm20220_vm15, %v14559_v31  ;;  %v448_v56 = vsel %vm442_vm9, %v441_v51, %v371_v24  ;;  %v84_v19 = vld [vmem:[%s20113_s2 + $0x190] sm:$0xff]  ;;  %v85_v2 = vld [vmem:[%s20113_s2 + $0x198] sm:$0xff]  ;;  %v42_v22 = vld [vmem:[%s20113_s2 + $0x40] sm:$0xff] }
  0xb3   :  { %v388_v36 = vrot.slane %v256_v12, 6  ;;  %v389_v40 = vrot.slane %v261_v49, 6  ;;  %v426_v38 = vsel %vm421_vm8, %v419_v6, %v328_v45  ;;  %v427_v21 = vsel %vm421_vm8, %v420_v18, %v329_v14  ;;  %607 = vmatprep.mubr.bf16.mxu1 %v20122_v10  ;;  %11767 = vmatpush3.bf16.msra.mxu1 %v14602_v35  ;;  %20559 = vst [vmem:[#allocation10_spill] sm:$0xff] %v14674_v58  ;;  %v43_v51 = vld [vmem:[%s20113_s2 + $0x48] sm:$0xff]  ;;  %v60_v12 = vld [vmem:[%s20113_s2 + $0xd0] sm:$0xff]  ;;  %v61_v49 = vld [vmem:[%s20113_s2 + $0xd8] sm:$0xff] }
  0xb4   :  { %v292_v26 = vpop.permute.xlu1 %291  ;;  %v273_v44 = vpop.permute.xlu0 %272  ;;  %v468_v27 = vpack.c.bf16 %v448_v56, %v427_v21  ;;  %v467_v45 = vpack.c.bf16 %v447_v59, %v426_v38  ;;  %11769 = vmatprep.subr.bf16.mxu1 %v14604_v50  ;;  %v14658_v14 = vpack.c.bf16 %v55_v34, %v54_v29  ;;  %v14732_v41 = vpack.c.bf16 %v59_v52, %v58_v15  ;;  %v68_v29 = vld [vmem:[%s20113_s2 + $0x110] sm:$0xff]  ;;  %v69_v34 = vld [vmem:[%s20113_s2 + $0x118] sm:$0xff]  ;;  %v86_v59 = vld [vmem:[%s20113_s2 + $0x1a0] sm:$0xff] }
  0xb5   :  { %v275_v28 = vsel %vm274_vm11, %v14491_v37, %v273_v44  ;;  %v280_v47 = vsel %vm274_vm11, %v273_v44, %v13382_v32  ;;  %v454_v60 = vsel %vm20272_vm12, %v370_v30, %v388_v36  ;;  %v455_v37 = vsel %vm20272_vm12, %v371_v24, %v389_v40  ;;  %v82_v32 = vld [vmem:[%s20113_s2 + $0x180] sm:$0xff]  ;;  %v87_v18 = vld [vmem:[%s20113_s2 + $0x1a8] sm:$0xff]  ;;  %v45_v36 = vld [vmem:[%s20113_s2 + $0x58] sm:$0xff] }
  0xb6   :  { %20557 = vst [vmem:[#allocation8_spill] sm:$0xff] %v14658_v14  ;;  %v406_v48 = vrot.slane %v275_v28, 3  ;;  %v407_v53 = vrot.slane %v280_v47, 3  ;;  %618 = vmatprep.subr.bf16.mxu0 %v468_v27  ;;  %v294_v17 = vsel %vm293_vm14, %v14507_v8, %v292_v26  ;;  %v299_v61 = vsel %vm293_vm14, %v292_v26, %v13392_v46  ;;  %v83_v8 = vld [vmem:[%s20113_s2 + $0x188] sm:$0xff]  ;;  %v41_v46 = vld [vmem:[%s20113_s2 + $0x38] sm:$0xff]  ;;  %v66_v24 = vld [vmem:[%s20113_s2 + $0x100] sm:$0xff] }
  0xb7   :  { %619 = vmatpush1.bf16.msra.mxu0 %v467_v45  ;;  %11771 = vmatpush3.bf16.msra.mxu1 %v14606_v25  ;;  %v14714_v30 = vpack.c.bf16 %v83_v8, %v82_v32  ;;  %v14726_v55 = vpack.c.bf16 %v41_v46, %v40_v9  ;;  %20561 = vst [vmem:[#allocation12_spill] sm:$0xff] %v14732_v41  ;;  %v62_v40 = vld [vmem:[%s20113_s2 + $0xe0] sm:$0xff]  ;;  %v63_v38 = vld [vmem:[%s20113_s2 + $0xe8] sm:$0xff]  ;;  %v89_v44 = vld [vmem:[%s20113_s2 + $0x1b8] sm:$0xff] }
  0xb8   :  { %v461_v62 = vsel %vm456_vm13, %v454_v60, %v406_v48  ;;  %v462_v3 = vsel %vm456_vm13, %v455_v37, %v407_v53  ;;  %9750 = vmatmul.mubr.msk.bf16.gmra.mrb[4].mxu0 %vm20220_vm15, %v14670_v54  ;;  %11773 = vmatprep.subr.bf16.mxu1 %v14658_v14  ;;  %v14746_v57 = vpack.c.bf16 %v67_v0, %v66_v24  ;;  %v46_v45 = vld [vmem:[%s20113_s2 + $0x60] sm:$0xff]  ;;  %v47_v28 = vld [vmem:[%s20113_s2 + $0x68] sm:$0xff]  ;;  %v64_v47 = vld [vmem:[%s20113_s2 + $0xf0] sm:$0xff] }
  0xb9   :  { %v473_v5 = vpack.c.bf16 %v294_v17, %v461_v62  ;;  %v474_v11 = vpack.c.bf16 %v299_v61, %v462_v3  ;;  %650 = vmatprep.mubr.bf16.mxu0 %v20122_v10  ;;  %20560 = vst [vmem:[#allocation11_spill] sm:$0xff] %v14726_v55  ;;  %v14749_v1 = vpack.c.bf16 %v85_v2, %v84_v19  ;;  %v65_v48 = vld [vmem:[%s20113_s2 + $0xf8] sm:$0xff]  ;;  %v72_v37 = vld [vmem:[%s20113_s2 + $0x130] sm:$0xff]  ;;  %v90_v32 = vld [vmem:[%s20113_s2 + $0x1c0] sm:$0xff] }
  0xba   :  { %9752 = vmatmul.mubr.msk.bf16.gmra.mrb[4].mxu1 %vm20220_vm15, %v14670_v54  ;;  %v14761_v6 = vpack.c.bf16 %v43_v51, %v42_v22  ;;  %v14767_v56 = vpack.c.bf16 %v61_v49, %v60_v12  ;;  %v14785_v21 = vpack.c.bf16 %v69_v34, %v68_v29  ;;  %v14788_v42 = vpack.c.bf16 %v87_v18, %v86_v59  ;;  %v73_v17 = vld [vmem:[%s20113_s2 + $0x138] sm:$0xff]  ;;  %v91_v62 = vld [vmem:[%s20113_s2 + $0x1c8] sm:$0xff]  ;;  %v48_v8 = vld [vmem:[%s20113_s2 + $0x70] sm:$0xff] }
  0xbb   :  { %v510_v23 = vand.u32 %v14505_v7, %v474_v11  ;;  %v507_v4 = vand.u32 %v14505_v7, %v473_v5  ;;  %11775 = vmatpush3.bf16.msra.mxu1 %v14672_v39  ;;  %v14800_v26 = vpack.c.bf16 %v45_v36, %v44_v33  ;;  %v14806_v27 = vpack.c.bf16 %v63_v38, %v62_v40  ;;  %v49_v9 = vld [vmem:[%s20113_s2 + $0x78] sm:$0xff]  ;;  %v74_v11 = vld [vmem:[%s20113_s2 + $0x140] sm:$0xff]  ;;  %v75_v15 = vld [vmem:[%s20113_s2 + $0x148] sm:$0xff] }
  0xbc   :  { %11777 = vmatprep.subr.bf16.mxu1 %v14674_v58  ;;  %20562 = vst [vmem:[#allocation13_spill] sm:$0xff] %v14761_v6  ;;  %20563 = vst [vmem:[#allocation14_spill] sm:$0xff] %v14767_v56  ;;  %v14824_v60 = vpack.c.bf16 %v89_v44, %v88_v20  ;;  %v14836_v61 = vpack.c.bf16 %v47_v28, %v46_v45  ;;  %v14842_v3 = vpack.c.bf16 %v65_v48, %v64_v47  ;;  %v76_v0 = vld [vmem:[%s20113_s2 + $0x150] sm:$0xff]  ;;  %v77_v19 = vld [vmem:[%s20113_s2 + $0x158] sm:$0xff] }
  0xbd   :  { %620 = vmatprep.subr.bf16.mxu0 %v510_v23  ;;  %20564 = vst [vmem:[#allocation15_spill] sm:$0xff] %v14800_v26  ;;  %20565 = vst [vmem:[#allocation16_spill] sm:$0xff] %v14806_v27  ;;  %v14853_v46 = vpack.c.bf16 %v73_v17, %v72_v37  ;;  %v14856_v5 = vpack.c.bf16 %v91_v62, %v90_v32  ;;  %v14865_v52 = vpack.c.bf16 %v49_v9, %v48_v8  ;;  %v93_v23 = vld [vmem:[%s20113_s2 + $0x1d8] sm:$0xff]  ;;  %v94_v2 = vld [vmem:[%s20113_s2 + $0x1e0] sm:$0xff] }
  0xbe   :  { %621 = vmatpush1.bf16.msra.mxu0 %v507_v4  ;;  %20567 = vst [vmem:[#allocation18_spill] sm:$0xff] %v14824_v60  ;;  %20568 = vst [vmem:[#allocation19_spill] sm:$0xff] %v14836_v61  ;;  %v14875_v4 = vpack.c.bf16 %v75_v15, %v74_v11  ;;  %v95_v22 = vld [vmem:[%s20113_s2 + $0x1e8] sm:$0xff]  ;;  %v14894_v51 = vpack.c.bf16 %v77_v19, %v76_v0  ;;  %v78_v49 = vld [vmem:[%s20113_s2 + $0x160] sm:$0xff] }
  0xbf   :  { %11797 = vmatprep.subr.bf16.mxu0 %v14714_v30  ;;  %11779 = vmatpush3.bf16.msra.mxu1 %v14726_v55  ;;  %20569 = vst [vmem:[#allocation20_spill] sm:$0xff] %v14842_v3  ;;  %20570 = vst [vmem:[#allocation21_spill] sm:$0xff] %v14853_v46  ;;  %v14897_v12 = vpack.c.bf16 %v95_v22, %v94_v2  ;;  %v79_v29 = vld [vmem:[%s20113_s2 + $0x168] sm:$0xff]  ;;  %v96_v34 = vld [vmem:[%s20113_s2 + $0x1f0] sm:$0xff] }
  0xc0   :  { %11781 = vmatprep.subr.bf16.mxu1 %v14732_v41  ;;  %20571 = vst [vmem:[#allocation22_spill] sm:$0xff] %v14856_v5  ;;  %20572 = vst [vmem:[#allocation23_spill] sm:$0xff] %v14865_v52  ;;  %v97_v59 = vld [vmem:[%s20113_s2 + $0x1f8] sm:$0xff]  ;;  %v14912_v18 = vpack.c.bf16 %v79_v29, %v78_v49  ;;  %v80_v36 = vld [vmem:[%s20113_s2 + $0x170] sm:$0xff] }
  0xc1   :  { %9753 = vmatmul.mubr.msk.bf16.vlgmr.msra.gmra.mrb[8].mxu0 %vm20220_vm15, %v14559_v31  ;;  %v70_v31 = vld [vmem:[%s20113_s2 + $0x120] sm:$0xff]  ;;  %20573 = vst [vmem:[#allocation24_spill] sm:$0xff] %v14875_v4  ;;  %20575 = vst [vmem:[#allocation26_spill] sm:$0xff] %v14894_v51  ;;  %v14915_v33 = vpack.c.bf16 %v97_v59, %v96_v34  ;;  %v81_v40 = vld [vmem:[%s20113_s2 + $0x178] sm:$0xff] }
  0xc2   :  { %660 = vmatprep.mubr.bf16.mxu0 %v20122_v10  ;;  %11799 = vmatpush3.bf16.msra.mxu0 %v14746_v57  ;;  %v14821_v53 = vpack.c.bf16 %v71_v43, %v70_v31  ;;  %20576 = vst [vmem:[#allocation27_spill] sm:$0xff] %v14897_v12  ;;  %20577 = vst [vmem:[#allocation28_spill] sm:$0xff] %v14912_v18  ;;  %v14925_v38 = vpack.c.bf16 %v81_v40, %v80_v36  ;;  %v114_v31 = vld [vmem:[%s20113_s2 + $0x280] sm:$0xff]  ;;  %v115_v43 = vld [vmem:[%s20113_s2 + $0x288] sm:$0xff] }
  0xc3   :  { %11801 = vmatprep.subr.bf16.mxu0 %v14749_v1  ;;  %11783 = vmatpush3.bf16.msra.mxu1 %v14761_v6  ;;  %20578 = vst [vmem:[#allocation29_spill] sm:$0xff] %v14915_v33  ;;  %v14934_v20 = vpack.c.bf16 %v115_v43, %v114_v31  ;;  %v98_v44 = vld [vmem:[%s20113_s2 + $0x200] sm:$0xff]  ;;  %v99_v45 = vld [vmem:[%s20113_s2 + $0x208] sm:$0xff]  ;;  %v116_v48 = vld [vmem:[%s20113_s2 + $0x290] sm:$0xff] }
  0xc4   :  { %11785 = vmatprep.subr.bf16.mxu1 %v14767_v56  ;;  %20566 = vst [vmem:[#allocation17_spill] sm:$0xff] %v14821_v53  ;;  %20579 = vst [vmem:[#allocation30_spill] sm:$0xff] %v14925_v38  ;;  %v14946_v47 = vpack.c.bf16 %v99_v45, %v98_v44  ;;  %v117_v37 = vld [vmem:[%s20113_s2 + $0x298] sm:$0xff]  ;;  %v100_v32 = vld [vmem:[%s20113_s2 + $0x210] sm:$0xff] }
  0xc5   :  { %20580 = vst [vmem:[#allocation31_spill] sm:$0xff] %v14934_v20  ;;  %v101_v62 = vld [vmem:[%s20113_s2 + $0x218] sm:$0xff]  ;;  %v118_v11 = vld [vmem:[%s20113_s2 + $0x2a0] sm:$0xff]  ;;  %v119_v15 = vld [vmem:[%s20113_s2 + $0x2a8] sm:$0xff]  ;;  %v14978_v0 = vpack.c.bf16 %v117_v37, %v116_v48 }
  0xc6   :  { %11803 = vmatpush3.bf16.msra.mxu0 %v14785_v21  ;;  %20581 = vst [vmem:[#allocation32_spill] sm:$0xff] %v14946_v47  ;;  %v14984_v2 = vpack.c.bf16 %v101_v62, %v100_v32  ;;  %v14990_v49 = vpack.c.bf16 %v119_v15, %v118_v11  ;;  %v102_v29 = vld [vmem:[%s20113_s2 + $0x220] sm:$0xff]  ;;  %v103_v34 = vld [vmem:[%s20113_s2 + $0x228] sm:$0xff]  ;;  %v120_v59 = vld [vmem:[%s20113_s2 + $0x2b0] sm:$0xff] }
  0xc7   :  { %11805 = vmatprep.subr.bf16.mxu0 %v14788_v42  ;;  %11787 = vmatpush3.bf16.msra.mxu1 %v14800_v26  ;;  %20582 = vst [vmem:[#allocation33_spill] sm:$0xff] %v14978_v0  ;;  %v121_v36 = vld [vmem:[%s20113_s2 + $0x2b8] sm:$0xff]  ;;  %v15010_v40 = vpack.c.bf16 %v103_v34, %v102_v29  ;;  %v104_v44 = vld [vmem:[%s20113_s2 + $0x230] sm:$0xff]  ;;  %v122_v32 = vld [vmem:[%s20113_s2 + $0x2c0] sm:$0xff] }
  0xc8   :  { %11789 = vmatprep.subr.bf16.mxu1 %v14806_v27  ;;  %20583 = vst [vmem:[#allocation34_spill] sm:$0xff] %v14984_v2  ;;  %20584 = vst [vmem:[#allocation35_spill] sm:$0xff] %v14990_v49  ;;  %v15016_v43 = vpack.c.bf16 %v121_v36, %v120_v59  ;;  %v105_v45 = vld [vmem:[%s20113_s2 + $0x238] sm:$0xff]  ;;  %v123_v62 = vld [vmem:[%s20113_s2 + $0x2c8] sm:$0xff] }
  0xc9   :  { %9754 = vmatmul.mubr.msk.bf16.gmra.mrb[12].mxu0 %vm20220_vm15, %v14670_v54  ;;  %v92_v54 = vld [vmem:[%s20113_s2 + $0x1d0] sm:$0xff]  ;;  %20585 = vst [vmem:[#allocation36_spill] sm:$0xff] %v15010_v40  ;;  %v15048_v59 = vpack.c.bf16 %v105_v45, %v104_v44  ;;  %v15054_v13 = vpack.c.bf16 %v123_v62, %v122_v32  ;;  %v106_v10 = vld [vmem:[%s20113_s2 + $0x240] sm:$0xff]  ;;  %v107_v7 = vld [vmem:[%s20113_s2 + $0x248] sm:$0xff]  ;;  %vm20382_vm15 = vcmask 785408  }
  0xca   :  { %11807 = vmatpush3.bf16.msra.mxu0 %v14821_v53  ;;  %v14878_v24 = vpack.c.bf16 %v93_v23, %v92_v54  ;;  %20586 = vst [vmem:[#allocation37_spill] sm:$0xff] %v15016_v43  ;;  %v124_v44 = vld [vmem:[%s20113_s2 + $0x2d0] sm:$0xff]  ;;  %v125_v45 = vld [vmem:[%s20113_s2 + $0x2d8] sm:$0xff]  ;;  %v15075_v62 = vpack.c.bf16 %v107_v7, %v106_v10  ;;  %v126_v10 = vld [vmem:[%s20113_s2 + $0x2e0] sm:$0xff] }
  0xcb   :  { %11809 = vmatprep.subr.bf16.mxu0 %v14824_v60  ;;  %11791 = vmatpush3.bf16.msra.mxu1 %v14836_v61  ;;  %20587 = vst [vmem:[#allocation38_spill] sm:$0xff] %v15048_v59  ;;  %20588 = vst [vmem:[#allocation39_spill] sm:$0xff] %v15054_v13  ;;  %v127_v7 = vld [vmem:[%s20113_s2 + $0x2e8] sm:$0xff] }
  0xcc   :  { %11793 = vmatprep.subr.bf16.mxu1 %v14842_v3  ;;  %20574 = vst [vmem:[#allocation25_spill] sm:$0xff] %v14878_v24  ;;  %20589 = vst [vmem:[#allocation40_spill] sm:$0xff] %v15075_v62 }
  0xce   :  { %11811 = vmatpush3.bf16.msra.mxu0 %v14853_v46 }
  0xcf   :  { %11813 = vmatprep.subr.bf16.mxu0 %v14856_v5  ;;  %11795 = vmatpush3.bf16.msra.mxu1 %v14865_v52 }
  0xd0   :  { %11829 = vmatprep.subr.bf16.mxu1 %v14934_v20 }
  0xd2   :  { %11815 = vmatpush3.bf16.msra.mxu0 %v14875_v4 }
  0xd3   :  { %11817 = vmatprep.subr.bf16.mxu0 %v14878_v24 }
  0xd6   :  { %11819 = vmatpush3.bf16.msra.mxu0 %v14894_v51 }
  0xd7   :  { %11821 = vmatprep.subr.bf16.mxu0 %v14897_v12 }
  0xda   :  { %11823 = vmatpush3.bf16.msra.mxu0 %v14912_v18 }
  0xdb   :  { %11825 = vmatprep.subr.bf16.mxu0 %v14915_v33 }
  0xde   :  { %11827 = vmatpush3.bf16.msra.mxu0 %v14925_v38 }
  0xdf   :  { %11861 = vmatprep.subr.bf16.mxu0 %v14576_v63  ;;  %v113_v63 = vld [vmem:[%s20113_s2 + $0x278] sm:$0xff] }
 0x183   :  { %v14944_v28 = vpop.f32.mrb[0].mxu0 }
 0x184   :  { %v14954_v17 = vpop.f32.mrb[1].mxu0 }
 0x185   :  { %v14962_v8 = vpop.f32.mrb[0].mxu1  ;;  %v14964_v9 = vpop.f32.mrb[2].mxu0  ;;  %743 = vmatprep.mubr.f32.mxu1 %v14954_v17  ;;  %v935_v32 = vmul.f32 %v14954_v17, %v14954_v17 }
 0x186   :  { %v14973_v54 = vpop.f32.mrb[1].mxu1  ;;  %v14975_v23 = vpop.f32.mrb[3].mxu0  ;;  %744 = vmatmul.mubr.f32.vlgmr.msra.gmra.mrb[8].mxu1 %v14944_v28 }
 0x187   :  { %v14980_v19 = vpop.f32.mrb[2].mxu1  ;;  %828 = vmatprep.mubr.f32.mxu0 %v14973_v54  ;;  %11831 = vmatpush3.bf16.msra.mxu1 %v14946_v47 }
 0x188   :  { %v14986_v22 = vpop.f32.mrb[3].mxu1  ;;  %748 = vmatprep.mubr.f32.mxu1 %v14975_v23  ;;  %829 = vmatmul.mubr.f32.vlgmr.msra.gmra.mrb[16].mxu0 %v14962_v8 }
 0x189   :  { %11863 = vmatpush3.bf16.msra.mxu0 %v14602_v35  ;;  %833 = vmatprep.mubr.f32.mxu0 %v14986_v22  ;;  %v111_v35 = vld [vmem:[%s20113_s2 + $0x268] sm:$0xff] }
 0x18a   :  { %11833 = vmatprep.subr.bf16.mxu1 %v14978_v0  ;;  %749 = vmatmul.mubr.f32.gmra.mrb[10].mxu1 %v14964_v9 }
 0x18b   :  { %11835 = vmatpush3.bf16.msra.mxu1 %v14984_v2  ;;  %11865 = vmatprep.subr.bf16.mxu0 %v14604_v50  ;;  %v15012_v31 = vpop.f32.mrb[4].mxu0  ;;  %v15109_v50 = vpack.c.bf16 %v127_v7, %v126_v10 }
 0x18c   :  { %834 = vmatmul.mubr.f32.gmra.mrb[18].mxu0 %v14980_v19  ;;  %11837 = vmatprep.subr.bf16.mxu1 %v14990_v49  ;;  %v15024_v48 = vpop.f32.mrb[5].mxu0 }
 0x18d   :  { %11867 = vmatpush3.bf16.msra.mxu0 %v14606_v25  ;;  %v15027_v37 = vpop.f32.mrb[4].mxu1  ;;  %753 = vmatprep.mubr.f32.mxu1 %v15024_v48  ;;  %v15036_v11 = vpop.f32.mrb[6].mxu0  ;;  %20592 = vst [vmem:[#allocation43_spill] sm:$0xff] %v15109_v50 }
 0x18e   :  { %v15038_v15 = vpop.f32.mrb[5].mxu1  ;;  %11869 = vmatprep.subr.bf16.mxu0 %v14658_v14  ;;  %754 = vmatmul.mubr.f32.gmra.mrb[12].mxu1 %v15012_v31  ;;  %v15042_v29 = vpop.f32.mrb[7].mxu0  ;;  %v108_v14 = vld [vmem:[%s20113_s2 + $0x250] sm:$0xff] }
 0x18f   :  { %838 = vmatprep.mubr.f32.mxu0 %v15038_v15  ;;  %11839 = vmatpush3.bf16.msra.mxu1 %v15010_v40  ;;  %v15046_v34 = vpop.f32.mrb[6].mxu1 }
 0x190   :  { %839 = vmatmul.mubr.f32.gmra.mrb[20].mxu0 %v15027_v37  ;;  %v15051_v36 = vpop.f32.mrb[7].mxu1  ;;  %11841 = vmatprep.subr.bf16.mxu1 %v15016_v43 }
 0x191   :  { %11871 = vmatpush3.bf16.msra.mxu0 %v14672_v39  ;;  %843 = vmatprep.mubr.f32.mxu0 %v15051_v36  ;;  %v15079_v39 = vpack.c.bf16 %v125_v45, %v124_v44 }
 0x192   :  { %11873 = vmatprep.subr.bf16.mxu0 %v14674_v58  ;;  %758 = vmatprep.mubr.f32.mxu1 %v15042_v29  ;;  %v109_v58 = vld [vmem:[%s20113_s2 + $0x258] sm:$0xff] }
 0x193   :  { %11843 = vmatpush3.bf16.msra.mxu1 %v15048_v59  ;;  %20590 = vst [vmem:[#allocation41_spill] sm:$0xff] %v15079_v39 }
 0x194   :  { %844 = vmatmul.mubr.f32.gmra.mrb[22].mxu0 %v15046_v34  ;;  %11845 = vmatprep.subr.bf16.mxu1 %v15054_v13  ;;  %v15087_v25 = vpop.f32.mrb[8].mxu0 }
 0x195   :  { %11875 = vmatpush3.bf16.msra.mxu0 %v14726_v55  ;;  %1022 = vmatprep.mubr.f32.mxu0 %v935_v32  ;;  %v15096_v44 = vpop.f32.mrb[9].mxu0  ;;  %v15103_v55 = vpack.c.bf16 %v109_v58, %v108_v14  ;;  %v128_v14 = vld [vmem:[%s20113_s2 + $0x2f0] sm:$0xff]  ;;  %v129_v58 = vld [vmem:[%s20113_s2 + $0x2f8] sm:$0xff] }
 0x196   :  { %11877 = vmatprep.subr.bf16.mxu0 %v14732_v41  ;;  %759 = vmatmul.mubr.f32.gmra.mrb[14].mxu1 %v15036_v11  ;;  %v15100_v45 = vpop.f32.mrb[10].mxu0  ;;  %v110_v41 = vld [vmem:[%s20113_s2 + $0x260] sm:$0xff]  ;;  %v15129_v7 = vpack.c.bf16 %v129_v58, %v128_v14  ;;  %v934_v58 = vmul.f32 %v14944_v28, %v14944_v28 }
 0x197   :  { %11847 = vmatpush3.bf16.msra.mxu1 %v15075_v62  ;;  %20591 = vst [vmem:[#allocation42_spill] sm:$0xff] %v15103_v55  ;;  %v15105_v32 = vpop.f32.mrb[11].mxu0  ;;  %913 = vmatprep.mubr.f32.mxu1 %v15096_v44  ;;  %v15126_v10 = vpack.c.bf16 %v111_v35, %v110_v41 }
 0x198   :  { %11849 = vmatprep.subr.bf16.mxu1 %v15079_v39  ;;  %20594 = vst [vmem:[#allocation45_spill] sm:$0xff] %v15129_v7 }
 0x199   :  { %11879 = vmatpush3.bf16.msra.mxu0 %v14761_v6  ;;  %20593 = vst [vmem:[#allocation44_spill] sm:$0xff] %v15126_v10  ;;  %v112_v6 = vld [vmem:[%s20113_s2 + $0x270] sm:$0xff] }
 0x19a   :  { %11881 = vmatprep.subr.bf16.mxu0 %v14767_v56  ;;  %v15146_v41 = vpack.c.bf16 %v113_v63, %v112_v6  ;;  %v941_v63 = vmul.f32 %v14975_v23, %v14975_v23  ;;  %v940_v6 = vmul.f32 %v14964_v9, %v14964_v9 }
 0x19b   :  { %11851 = vmatpush3.bf16.msra.mxu1 %v15103_v55 }
 0x19c   :  { %11853 = vmatprep.subr.bf16.mxu1 %v15109_v50  ;;  %v15137_v16 = vpop.f32.mrb[12].mxu0  ;;  %20595 = vst [vmem:[#allocation46_spill] sm:$0xff] %v15146_v41 }
 0x19d   :  { %11883 = vmatpush3.bf16.msra.mxu0 %v14800_v26  ;;  %v15140_v56 = vpop.f32.mrb[13].mxu0 }
 0x19e   :  { %11885 = vmatprep.subr.bf16.mxu0 %v14806_v27  ;;  %v15143_v35 = vpop.f32.mrb[14].mxu0 }
 0x19f   :  { %11855 = vmatpush3.bf16.msra.mxu1 %v15126_v10  ;;  %v15148_v14 = vpop.f32.mrb[15].mxu0 }
 0x1a0   :  { %11857 = vmatprep.subr.bf16.mxu1 %v15129_v7 }
 0x1a1   :  { %11887 = vmatpush3.bf16.msra.mxu0 %v14836_v61 }
 0x1a2   :  { %11889 = vmatprep.subr.bf16.mxu0 %v14842_v3 }
 0x1a3   :  { %11859 = vmatpush3.bf16.msra.mxu1 %v15146_v41 }
 0x1a4   :  { %11893 = vmatprep.subr.bf16.mxu1 %v14714_v30 }
 0x1a5   :  { %11891 = vmatpush3.bf16.msra.mxu0 %v14865_v52 }
 0x1a6   :  { %914 = vmatmul.mubr.f32.vlgmr.msra.gmra.mrb[16].mxu1 %v15087_v25  ;;  %11925 = vmatprep.subr.bf16.mxu0 %v14934_v20  ;;  %v947_v20 = vmul.f32 %v15024_v48, %v15024_v48 }
 0x1a7   :  { %918 = vmatprep.mubr.f32.mxu1 %v15105_v32  ;;  %11895 = vmatpush3.bf16.msra.mxu1 %v14746_v57 }
 0x1a8   :  { %1023 = vmatmul.mubr.f32.vlgmr.msra.gmra.mrb[24].mxu0 %v934_v58  ;;  %11897 = vmatprep.subr.bf16.mxu1 %v14749_v1  ;;  %v946_v58 = vmul.f32 %v15012_v31, %v15012_v31 }
 0x1a9   :  { %1027 = vmatprep.mubr.f32.mxu0 %v941_v63  ;;  %11927 = vmatpush3.bf16.msra.mxu0 %v14946_v47  ;;  %v953_v63 = vmul.f32 %v15042_v29, %v15042_v29 }
 0x1aa   :  { %919 = vmatmul.mubr.f32.gmra.mrb[18].mxu1 %v15100_v45  ;;  %11929 = vmatprep.subr.bf16.mxu0 %v14978_v0 }
 0x1ab   :  { %11899 = vmatpush3.bf16.msra.mxu1 %v14785_v21  ;;  %923 = vmatprep.mubr.f32.mxu1 %v15140_v56 }
 0x1ac   :  { %1028 = vmatmul.mubr.f32.gmra.mrb[26].mxu0 %v940_v6  ;;  %11901 = vmatprep.subr.bf16.mxu1 %v14788_v42  ;;  %v952_v6 = vmul.f32 %v15036_v11, %v15036_v11 }
 0x1ad   :  { %1032 = vmatprep.mubr.f32.mxu0 %v947_v20  ;;  %11931 = vmatpush3.bf16.msra.mxu0 %v14984_v2  ;;  %v937_v20 = vmul.f32 %v14973_v54, %v14973_v54 }
 0x1ae   :  { %924 = vmatmul.mubr.f32.gmra.mrb[20].mxu1 %v15137_v16  ;;  %11933 = vmatprep.subr.bf16.mxu0 %v14990_v49  ;;  %v939_v49 = vmul.f32 %v15096_v44, %v15096_v44 }
 0x1af   :  { %11903 = vmatpush3.bf16.msra.mxu1 %v14821_v53  ;;  %928 = vmatprep.mubr.f32.mxu1 %v15148_v14 }
 0x1b0   :  { %1033 = vmatmul.mubr.f32.gmra.mrb[28].mxu0 %v946_v58  ;;  %11905 = vmatprep.subr.bf16.mxu1 %v14824_v60  ;;  %v943_v58 = vmul.f32 %v14986_v22, %v14986_v22 }
 0x1b1   :  { %1037 = vmatprep.mubr.f32.mxu0 %v953_v63  ;;  %11935 = vmatpush3.bf16.msra.mxu0 %v15010_v40  ;;  %v938_v63 = vmul.f32 %v15087_v25, %v15087_v25 }
 0x1b2   :  { %929 = vmatmul.mubr.f32.gmra.mrb[22].mxu1 %v15143_v35  ;;  %11937 = vmatprep.subr.bf16.mxu0 %v15016_v43 }
 0x1b3   :  { %11907 = vmatpush3.bf16.msra.mxu1 %v14853_v46  ;;  %1107 = vmatprep.mubr.f32.mxu1 %v937_v20  ;;  %v945_v20 = vmul.f32 %v15105_v32, %v15105_v32 }
 0x1b4   :  { %1038 = vmatmul.mubr.f32.gmra.mrb[30].mxu0 %v952_v6  ;;  %11909 = vmatprep.subr.bf16.mxu1 %v14856_v5  ;;  %v942_v6 = vmul.f32 %v14980_v19, %v14980_v19 }
 0x1b5   :  { %11939 = vmatpush3.bf16.msra.mxu0 %v15048_v59  ;;  %1192 = vmatprep.mubr.f32.mxu0 %v939_v49  ;;  %v936_v49 = vmul.f32 %v14962_v8, %v14962_v8 }
 0x1b6   :  { %11941 = vmatprep.subr.bf16.mxu0 %v15054_v13 }
 0x1b7   :  { %11911 = vmatpush3.bf16.msra.mxu1 %v14875_v4 }
 0x1b8   :  { %11913 = vmatprep.subr.bf16.mxu1 %v14878_v24 }
 0x1b9   :  { %11943 = vmatpush3.bf16.msra.mxu0 %v15075_v62 }
 0x1ba   :  { %11945 = vmatprep.subr.bf16.mxu0 %v15079_v39 }
 0x1bb   :  { %11915 = vmatpush3.bf16.msra.mxu1 %v14894_v51 }
 0x1bc   :  { %11917 = vmatprep.subr.bf16.mxu1 %v14897_v12 }
 0x1bd   :  { %11947 = vmatpush3.bf16.msra.mxu0 %v15103_v55 }
 0x1be   :  { %11949 = vmatprep.subr.bf16.mxu0 %v15109_v50 }
 0x1bf   :  { %11919 = vmatpush3.bf16.msra.mxu1 %v14912_v18 }
 0x1c0   :  { %11921 = vmatprep.subr.bf16.mxu1 %v14915_v33 }
 0x1c1   :  { %11951 = vmatpush3.bf16.msra.mxu0 %v15126_v10  ;;  %v944_v10 = vmul.f32 %v15100_v45, %v15100_v45 }
 0x1c2   :  { %11953 = vmatprep.subr.bf16.mxu0 %v15129_v7  ;;  %v949_v7 = vmul.f32 %v15038_v15, %v15038_v15 }
 0x1c3   :  { %11923 = vmatpush3.bf16.msra.mxu1 %v14925_v38 }
 0x1c5   :  { %11955 = vmatpush3.bf16.msra.mxu0 %v15146_v41  ;;  %v951_v41 = vmul.f32 %v15140_v56, %v15140_v56 }
 0x1c6   :  { %1108 = vmatmul.mubr.f32.vlgmr.msra.gmra.mrb[24].mxu1 %v936_v49  ;;  %v948_v49 = vmul.f32 %v15027_v37, %v15027_v37 }
 0x1c7   :  { %1112 = vmatprep.mubr.f32.mxu1 %v943_v58  ;;  %v955_v58 = vmul.f32 %v15051_v36, %v15051_v36 }
 0x1c8   :  { %1193 = vmatmul.mubr.f32.vlgmr.msra.gmra.mrb[32].mxu0 %v938_v63  ;;  %v950_v63 = vmul.f32 %v15137_v16, %v15137_v16 }
 0x1c9   :  { %1197 = vmatprep.mubr.f32.mxu0 %v945_v20  ;;  %v957_v20 = vmul.f32 %v15148_v14, %v15148_v14 }
 0x1ca   :  { %1113 = vmatmul.mubr.f32.gmra.mrb[26].mxu1 %v942_v6  ;;  %v954_v6 = vmul.f32 %v15046_v34, %v15046_v34 }
 0x1cb   :  { %1117 = vmatprep.mubr.f32.mxu1 %v949_v7  ;;  %v20596_v7 = vmov 0  }
 0x1cc   :  { %1198 = vmatmul.mubr.f32.gmra.mrb[34].mxu0 %v944_v10  ;;  %v956_v10 = vmul.f32 %v15143_v35, %v15143_v35 }
 0x1cd   :  { %1202 = vmatprep.mubr.f32.mxu0 %v951_v41  ;;  %v676_v41 = vld [vmem:[%s20114_s5 + $0x8] sm:$0xff] }
 0x1ce   :  { %1118 = vmatmul.mubr.f32.gmra.mrb[28].mxu1 %v948_v49  ;;  %1340 = vperm.xlu0 %13395, %v676_v41   ;;  %v675_v49 = vld [vmem:[%s20114_s5] sm:$0xff] }
 0x1cf   :  { %1122 = vmatprep.mubr.f32.mxu1 %v955_v58  ;;  %1335 = vperm.xlu1 %13394, %v675_v49  }
 0x1d0   :  { %1203 = vmatmul.mubr.f32.gmra.mrb[36].mxu0 %v950_v63 }
 0x1d1   :  { %1207 = vmatprep.mubr.f32.mxu0 %v957_v20 }
 0x1d2   :  { %1123 = vmatmul.mubr.f32.gmra.mrb[30].mxu1 %v954_v6 }
 0x1d3   :  { %1673 = vmatprep.mubr.bf16.mxu1 %v20596_v7 }
 0x1d4   :  { %1208 = vmatmul.mubr.f32.gmra.mrb[38].mxu0 %v956_v10 }
 0x1d5   :  { %1714 = vmatprep.mubr.bf16.mxu0 %v20596_v7 }
 0x259   :  { %v9900_v58 = vpop.f32.mrb[8].mxu1 }
 0x25a   :  { %v9901_v63 = vpop.f32.mrb[9].mxu1 }
 0x25b   :  { %v9902_v20 = vadd.f32 %v9901_v63, %v9900_v58  ;;  %v9944_v50 = vpop.f32.mrb[16].mxu0 }
 0x25c   :  { %v9945_v6 = vpop.f32.mrb[17].mxu0 }
 0x25d   :  { %v9946_v55 = vadd.f32 %v9945_v6, %v9944_v50  ;;  %v9903_v39 = vpop.f32.mrb[10].mxu1 }
 0x25e   :  { %v9904_v10 = vpop.f32.mrb[11].mxu1 }
 0x25f   :  { %v831_v62 = vadd.f32 %v9946_v55, %v9902_v20  ;;  %v9905_v13 = vadd.f32 %v9904_v10, %v9903_v39  ;;  %v9947_v59 = vpop.f32.mrb[18].mxu0 }
 0x260   :  { %v9948_v43 = vpop.f32.mrb[19].mxu0 }
 0x261   :  { %v9949_v40 = vadd.f32 %v9948_v43, %v9947_v59  ;;  %v9906_v2 = vpop.f32.mrb[12].mxu1 }
 0x262   :  { %v9907_v41 = vpop.f32.mrb[13].mxu1 }
 0x263   :  { %v836_v0 = vadd.f32 %v9949_v40, %v9905_v13  ;;  %v9950_v47 = vpop.f32.mrb[20].mxu0  ;;  %v9908_v38 = vadd.f32 %v9907_v41, %v9906_v2 }
 0x264   :  { %v9951_v33 = vpop.f32.mrb[21].mxu0 }
 0x265   :  { %v9952_v49 = vadd.f32 %v9951_v33, %v9950_v47 }
 0x267   :  { %v841_v18 = vadd.f32 %v9952_v49, %v9908_v38  ;;  %v9953_v52 = vpop.f32.mrb[22].mxu0 }
 0x268   :  { %v9954_v58 = vpop.f32.mrb[23].mxu0 }
 0x269   :  { %v9909_v63 = vpop.f32.mrb[14].mxu1  ;;  %v9955_v12 = vadd.f32 %v9954_v58, %v9953_v52 }
 0x26a   :  { %v9910_v50 = vpop.f32.mrb[15].mxu1 }
 0x26b   :  { %v9911_v6 = vadd.f32 %v9910_v50, %v9909_v63 }
 0x26d   :  { %v846_v51 = vadd.f32 %v9955_v12, %v9911_v6 }
 0x279   :  { %v9988_v55 = vpop.f32.mrb[16].mxu1 }
 0x27a   :  { %v9989_v39 = vpop.f32.mrb[17].mxu1 }
 0x27b   :  { %v9990_v20 = vadd.f32 %v9989_v39, %v9988_v55  ;;  %v10032_v10 = vpop.f32.mrb[24].mxu0 }
 0x27c   :  { %v10033_v43 = vpop.f32.mrb[25].mxu0 }
 0x27d   :  { %v916_v59 = vadd.f32 %v9990_v20, %v831_v62  ;;  %v10034_v3 = vadd.f32 %v10033_v43, %v10032_v10  ;;  %v9991_v13 = vpop.f32.mrb[18].mxu1 }
 0x27e   :  { %v9992_v40 = vpop.f32.mrb[19].mxu1 }
 0x27f   :  { %v1213_v2 = vmul.f32 0.001953125, %v916_v59  ;;  %v9993_v41 = vadd.f32 %v9992_v40, %v9991_v13  ;;  %v10035_v33 = vpop.f32.mrb[26].mxu0 }
 0x280   :  { %v10036_v38 = vpop.f32.mrb[27].mxu0 }
 0x281   :  { %v921_v47 = vadd.f32 %v9993_v41, %v836_v0  ;;  %v10037_v49 = vadd.f32 %v10036_v38, %v10035_v33  ;;  %v9994_v61 = vpop.f32.mrb[20].mxu1  ;;  %1247 = vperm.xlu0 %13395, %v1213_v2  }
 0x282   :  { %v9995_v52 = vpop.f32.mrb[21].mxu1 }
 0x283   :  { %v1214_v58 = vmul.f32 0.001953125, %v921_v47  ;;  %v9996_v12 = vadd.f32 %v9995_v52, %v9994_v61  ;;  %v10038_v63 = vpop.f32.mrb[28].mxu0 }
 0x284   :  { %v10039_v50 = vpop.f32.mrb[29].mxu0 }
 0x285   :  { %v926_v6 = vadd.f32 %v9996_v12, %v841_v18  ;;  %v10040_v55 = vadd.f32 %v10039_v50, %v10038_v63  ;;  %v9997_v39 = vpop.f32.mrb[22].mxu1  ;;  %1252 = vperm.xlu1 %13394, %v1214_v58  }
 0x286   :  { %v9998_v62 = vpop.f32.mrb[23].mxu1 }
 0x287   :  { %v1215_v20 = vmul.f32 0.001953125, %v926_v6  ;;  %v9999_v10 = vadd.f32 %v9998_v62, %v9997_v39  ;;  %v10041_v43 = vpop.f32.mrb[30].mxu0  ;;  %v1221_v62 = vmul.f32 %v1213_v2, %v1213_v2 }
 0x288   :  { %v10042_v59 = vpop.f32.mrb[31].mxu0 }
 0x289   :  { %v931_v13 = vadd.f32 %v9999_v10, %v846_v51  ;;  %v10043_v40 = vadd.f32 %v10042_v59, %v10041_v43  ;;  %1257 = vperm.xlu1 %13394, %v1215_v20  }
 0x28b   :  { %v1216_v0 = vmul.f32 0.001953125, %v931_v13 }
 0x28d   :  { %1262 = vperm.xlu0 %13395, %v1216_v0  }
 0x299   :  { %v10076_v41 = vpop.f32.mrb[24].mxu1 }
 0x29a   :  { %v10077_v33 = vpop.f32.mrb[25].mxu1 }
 0x29b   :  { %v10078_v38 = vadd.f32 %v10077_v33, %v10076_v41  ;;  %v10120_v61 = vpop.f32.mrb[32].mxu0  ;;  %v1222_v33 = vmul.f32 %v1214_v58, %v1214_v58 }
 0x29c   :  { %v10121_v47 = vpop.f32.mrb[33].mxu0 }
 0x29d   :  { %v1110_v52 = vadd.f32 %v10078_v38, %v10034_v3  ;;  %v10122_v18 = vadd.f32 %v10121_v47, %v10120_v61  ;;  %v10079_v12 = vpop.f32.mrb[26].mxu1 }
 0x29e   :  { %v10080_v63 = vpop.f32.mrb[27].mxu1 }
 0x29f   :  { %v1195_v50 = vadd.f32 %v10122_v18, %v1110_v52  ;;  %v10081_v24 = vadd.f32 %v10080_v63, %v10079_v12  ;;  %v10123_v6 = vpop.f32.mrb[34].mxu0 }
 0x2a0   :  { %v10124_v39 = vpop.f32.mrb[35].mxu0 }
 0x2a1   :  { %v1217_v4 = vmul.f32 0.001953125, %v1195_v50  ;;  %v1115_v51 = vadd.f32 %v10081_v24, %v10037_v49  ;;  %v10125_v10 = vadd.f32 %v10124_v39, %v10123_v6  ;;  %v10082_v43 = vpop.f32.mrb[28].mxu1  ;;  %v1223_v49 = vmul.f32 %v1215_v20, %v1215_v20  ;;  %v671_v20 = vld [vmem:[%s20115_s4] sm:$0xff] }
 0x2a2   :  { %v10083_v59 = vpop.f32.mrb[29].mxu1 }
 0x2a3   :  { %v1225_v13 = vsub.f32 %v1217_v4, %v1221_v62  ;;  %v1200_v27 = vadd.f32 %v10125_v10, %v1115_v51  ;;  %v10084_v26 = vadd.f32 %v10083_v59, %v10082_v43  ;;  %v10126_v41 = vpop.f32.mrb[36].mxu0 }
 0x2a4   :  { %v10127_v5 = vpop.f32.mrb[37].mxu0 }
 0x2a5   :  { %v1229_v3 = vmax.f32 %v1225_v13, 0.0  ;;  %v1218_v38 = vmul.f32 0.001953125, %v1200_v27  ;;  %v1120_v61 = vadd.f32 %v10084_v26, %v10040_v55  ;;  %v10128_v47 = vadd.f32 %v10127_v5, %v10126_v41  ;;  %v10085_v52 = vpop.f32.mrb[30].mxu1 }
 0x2a6   :  { %v10086_v18 = vpop.f32.mrb[31].mxu1  ;;  %v1224_v27 = vmul.f32 %v1216_v0, %v1216_v0 }
 0x2a7   :  { %v1233_v12 = vadd.f32 1e-05, %v1229_v3  ;;  %v1226_v63 = vsub.f32 %v1218_v38, %v1222_v33  ;;  %v1205_v2 = vadd.f32 %v10128_v47, %v1120_v61  ;;  %v10087_v50 = vadd.f32 %v10086_v18, %v10085_v52  ;;  %v10129_v24 = vpop.f32.mrb[38].mxu0  ;;  %v673_v61 = vld [vmem:[%s20115_s4 + $0x10] sm:$0xff]  ;;  %v674_v18 = vld [vmem:[%s20115_s4 + $0x18] sm:$0xff] }
 0x2a8   :  { %v10130_v6 = vpop.f32.mrb[39].mxu0 }
 0x2a9   :  { %14130 = vrsqrt.f32 %v1233_v12  ;;  %v1230_v4 = vmax.f32 %v1226_v63, 0.0  ;;  %v1219_v39 = vmul.f32 0.001953125, %v1205_v2  ;;  %v1125_v62 = vadd.f32 %v10087_v50, %v10043_v40  ;;  %v672_v40 = vld [vmem:[%s20115_s4 + $0x8] sm:$0xff]  ;;  %v677_v12 = vld [vmem:[%s20114_s5 + $0x10] sm:$0xff]  ;;  %v678_v50 = vld [vmem:[%s20114_s5 + $0x18] sm:$0xff] }
 0x2aa   :  { %v10131_v51 = vadd.f32 %v10130_v6, %v10129_v24  ;;  %v1336_v24 = vpop.permute.xlu1 %1335 }
 0x2ab   :  { %v1234_v58 = vadd.f32 1e-05, %v1230_v4  ;;  %v1227_v10 = vsub.f32 %v1219_v39, %v1223_v49  ;;  %v20597_v49 = vlaneseq  ;;  %v15267_v4 = vpop.permute.xlu0 %1340 }
 0x2ac   :  { %v1210_v43 = vadd.f32 %v10131_v51, %v1125_v62 }
 0x2ad   :  { %14132 = vrsqrt.f32 %v1234_v58  ;;  %v1231_v26 = vmax.f32 %v1227_v10, 0.0  ;;  %v1403_v6 = vshrl.u32 %v20597_v49, 7  ;;  %v33_v58 = vld [vmem:[%s20116_s1] sm:$0x3f] }
 0x2ae   :  { %v1220_v5 = vmul.f32 0.001953125, %v1210_v43 }
 0x2af   :  { %v1235_v55 = vadd.f32 1e-05, %v1231_v26  ;;  %v1404_v39 = vsub.s32 0, %v1403_v6  ;;  %v1408_v62 = vsub.s32 1, %v1403_v6  ;;  %v1412_v10 = vsub.s32 2, %v1403_v6 }
 0x2b0   :  { %v1228_v59 = vsub.f32 %v1220_v5, %v1224_v27  ;;  %v1416_v43 = vsub.s32 3, %v1403_v6  ;;  %v1420_v26 = vsub.s32 4, %v1403_v6  ;;  %v1424_v27 = vsub.s32 5, %v1403_v6 }
 0x2b1   :  { %14134 = vrsqrt.f32 %v1235_v55  ;;  %v15274_v55 = vrot.slane %v33_v58, %v1404_v39 }
 0x2b2   :  { %v1232_v13 = vmax.f32 %v1228_v59, 0.0  ;;  %v15276_v59 = vrot.slane %v33_v58, %v1408_v62 }
 0x2b3   :  { %v14131_v41 = vpop.eup %14130  ;;  %20598 = vst [vmem:[#allocation47_spill] sm:$0xff] %v15274_v55 }
 0x2b4   :  { %v1236_v33 = vadd.f32 1e-05, %v1232_v13  ;;  %v1241_v3 = vmul.f32 %v14131_v41, %v671_v20  ;;  %20599 = vst [vmem:[#allocation48_spill] sm:$0xff] %v15276_v59  ;;  %v15278_v20 = vrot.slane %v33_v58, %v1412_v10  ;;  %v15280_v13 = vrot.slane %v33_v58, %v1416_v43 }
 0x2b5   :  { %v15282_v41 = vrot.slane %v33_v58, %v1420_v26 }
 0x2b6   :  { %14136 = vrsqrt.f32 %v1236_v33  ;;  %1291 = vperm.xlu1 %13394, %v1241_v3   ;;  %20600 = vst [vmem:[#allocation49_spill] sm:$0xff] %v15278_v20  ;;  %20601 = vst [vmem:[#allocation50_spill] sm:$0xff] %v15280_v13  ;;  %v15284_v33 = vrot.slane %v33_v58, %v1424_v27 }
 0x2b7   :  { %v14133_v38 = vpop.eup %14132  ;;  %20602 = vst [vmem:[#allocation51_spill] sm:$0xff] %v15282_v41 }
 0x2b8   :  { %v1242_v0 = vmul.f32 %v14133_v38, %v672_v40  ;;  %20603 = vst [vmem:[#allocation52_spill] sm:$0xff] %v15284_v33 }
 0x2ba   :  { %1296 = vperm.xlu0 %13395, %v1242_v0  }
 0x2bb   :  { %v14135_v47 = vpop.eup %14134 }
 0x2bc   :  { %v1243_v52 = vmul.f32 %v14135_v47, %v673_v61 }
 0x2be   :  { %1301 = vperm.xlu1 %13394, %v1243_v52  }
 0x2c0   :  { %v14137_v63 = vpop.eup %14136 }
 0x2c1   :  { %v1244_v2 = vmul.f32 %v14137_v63, %v674_v18 }
 0x2c2   :  { %1345 = vperm.xlu1 %13394, %v677_v12  }
 0x2c3   :  { %1306 = vperm.xlu0 %13395, %v1244_v2  }
 0x2c7   :  { %1350 = vperm.xlu0 %13395, %v678_v50  }
 0x300   :  { %v1248_v5 = vpop.permute.xlu0 %1247 }
 0x301   :  { %v1266_v40 = vsub.f32 %v14954_v17, %v1248_v5  ;;  %v1265_v38 = vsub.f32 %v14944_v28, %v1248_v5  ;;  %v1270_v0 = vsub.f32 %v15096_v44, %v1248_v5  ;;  %v1267_v61 = vsub.f32 %v14962_v8, %v1248_v5 }
 0x302   :  { %v1268_v12 = vsub.f32 %v14973_v54, %v1248_v5  ;;  %v1269_v63 = vsub.f32 %v15087_v25, %v1248_v5 }
 0x304   :  { %v15269_v51 = vpop.permute.xlu1 %1252 }
 0x305   :  { %v1272_v52 = vsub.f32 %v14975_v23, %v15269_v51  ;;  %v1271_v18 = vsub.f32 %v14964_v9, %v15269_v51  ;;  %v1276_v17 = vsub.f32 %v15105_v32, %v15269_v51  ;;  %v1273_v28 = vsub.f32 %v14980_v19, %v15269_v51 }
 0x306   :  { %v1274_v8 = vsub.f32 %v14986_v22, %v15269_v51  ;;  %v1275_v44 = vsub.f32 %v15100_v45, %v15269_v51 }
 0x308   :  { %v15286_v3 = vpop.permute.xlu1 %1257 }
 0x309   :  { %v1278_v23 = vsub.f32 %v15024_v48, %v15286_v3  ;;  %v1277_v9 = vsub.f32 %v15012_v31, %v15286_v3  ;;  %v1282_v25 = vsub.f32 %v15140_v56, %v15286_v3  ;;  %v1279_v54 = vsub.f32 %v15027_v37, %v15286_v3 }
 0x30c   :  { %v15292_v47 = vpop.permute.xlu0 %1262 }
 0x30d   :  { %v1284_v19 = vsub.f32 %v15042_v29, %v15292_v47  ;;  %v1283_v22 = vsub.f32 %v15036_v11, %v15292_v47  ;;  %v1288_v37 = vsub.f32 %v15148_v14, %v15292_v47  ;;  %v1285_v29 = vsub.f32 %v15046_v34, %v15292_v47 }
 0x335   :  { %v1292_v32 = vpop.permute.xlu1 %1291 }
 0x336   :  { %v1310_v31 = vmul.f32 %v1292_v32, %v1266_v40  ;;  %v1309_v2 = vmul.f32 %v1292_v32, %v1265_v38  ;;  %v1314_v50 = vmul.f32 %v1292_v32, %v1270_v0  ;;  %v1311_v56 = vmul.f32 %v1292_v32, %v1267_v61 }
 0x337   :  { %v1312_v49 = vmul.f32 %v1292_v32, %v1268_v12  ;;  %v1313_v6 = vmul.f32 %v1292_v32, %v1269_v63 }
 0x338   :  { %v1354_v39 = vadd.f32 %v1336_v24, %v1310_v31  ;;  %v1353_v11 = vadd.f32 %v1336_v24, %v1309_v2  ;;  %v1358_v62 = vadd.f32 %v1336_v24, %v1314_v50  ;;  %v1355_v51 = vadd.f32 %v1336_v24, %v1311_v56 }
 0x339   :  { %v1297_v58 = vpop.permute.xlu0 %1296  ;;  %v1356_v10 = vadd.f32 %v1336_v24, %v1312_v49  ;;  %v15328_v43 = vadd.f32 %v1336_v24, %v1313_v6 }
 0x33a   :  { %v1316_v14 = vmul.f32 %v1297_v58, %v1272_v52  ;;  %v1378_v5 = vmax.f32 %v1354_v39, 0.0  ;;  %v1315_v40 = vmul.f32 %v1297_v58, %v1271_v18  ;;  %v1377_v38 = vmax.f32 %v1353_v11, 0.0 }
 0x33b   :  { %v1320_v0 = vmul.f32 %v1297_v58, %v1276_v17  ;;  %v1382_v61 = vmax.f32 %v1358_v62, 0.0  ;;  %v1317_v12 = vmul.f32 %v1297_v58, %v1273_v28  ;;  %v1379_v63 = vmax.f32 %v1355_v51, 0.0 }
 0x33c   :  { %v1360_v32 = vadd.f32 %v15267_v4, %v1316_v14  ;;  %v15336_v31 = vmul.f32 %v15276_v59, %v1378_v5  ;;  %v1359_v24 = vadd.f32 %v15267_v4, %v1315_v40  ;;  %v15340_v2 = vmul.f32 %v15274_v55, %v1377_v38 }
 0x33d   :  { %v15342_v50 = vpop.permute.xlu1 %1301  ;;  %v1364_v52 = vadd.f32 %v15267_v4, %v1320_v0  ;;  %v15346_v18 = vmul.f32 %v15284_v33, %v1382_v61  ;;  %v1361_v17 = vadd.f32 %v15267_v4, %v1317_v12  ;;  %v15350_v28 = vmul.f32 %v15278_v20, %v1379_v63 }
 0x33e   :  { %v1384_v56 = vmax.f32 %v1360_v32, 0.0  ;;  %v1383_v49 = vmax.f32 %v1359_v24, 0.0  ;;  %v1322_v6 = vmul.f32 %v15342_v50, %v1278_v23  ;;  %v1321_v39 = vmul.f32 %v15342_v50, %v1277_v9 }
 0x33f   :  { %v1388_v11 = vmax.f32 %v1364_v52, 0.0  ;;  %v1326_v62 = vmul.f32 %v15342_v50, %v1282_v25  ;;  %v1385_v51 = vmax.f32 %v1361_v17, 0.0  ;;  %v1318_v14 = vmul.f32 %v1297_v58, %v1274_v8 }
 0x340   :  { %v15356_v5 = vmul.f32 %v15276_v59, %v1384_v56  ;;  %v15359_v40 = vmul.f32 %v15274_v55, %v1383_v49  ;;  %v1380_v38 = vmax.f32 %v1356_v10, 0.0  ;;  %v1323_v0 = vmul.f32 %v15342_v50, %v1279_v54 }
 0x341   :  { %v15362_v61 = vpop.permute.xlu1 %1345  ;;  %v15365_v23 = vmul.f32 %v15284_v33, %v1388_v11  ;;  %v15368_v9 = vmul.f32 %v15278_v20, %v1385_v51  ;;  %v1362_v25 = vadd.f32 %v15267_v4, %v1318_v14  ;;  %v1319_v8 = vmul.f32 %v1297_v58, %v1275_v44 }
 0x342   :  { %v1307_v12 = vpop.permute.xlu0 %1306  ;;  %v15373_v63 = vpack.i.bf16 %v15356_v5, %v15336_v31  ;;  %v15377_v10 = vpack.i.bf16 %v15359_v40, %v15340_v2  ;;  %v1366_v54 = vadd.f32 %v15362_v61, %v1322_v6  ;;  %v1365_v32 = vadd.f32 %v15362_v61, %v1321_v39 }
 0x343   :  { %v15383_v24 = vpack.i.bf16 %v15365_v23, %v15346_v18  ;;  %v1328_v52 = vmul.f32 %v1307_v12, %v1284_v19  ;;  %v1327_v17 = vmul.f32 %v1307_v12, %v1283_v22  ;;  %v1332_v56 = vmul.f32 %v1307_v12, %v1288_v37 }
 0x344   :  { %13402 = vrot.lane.b32.xlu0 %v15373_v63, %s14172_s17  ;;  %13397 = vrot.lane.b32.xlu1 %v15377_v10, %s14172_s17  ;;  %v1390_v44 = vmax.f32 %v1366_v54, 0.0  ;;  %v1389_v58 = vmax.f32 %v1365_v32, 0.0  ;;  %v1370_v49 = vadd.f32 %v15362_v61, %v1326_v62  ;;  %v15392_v6 = vpack.i.bf16 %v15368_v9, %v15350_v28 }
 0x345   :  { %v1386_v39 = vmax.f32 %v1362_v25, 0.0  ;;  %v1435_v14 = vmul.f32 %v15280_v13, %v1380_v38  ;;  %v1329_v25 = vmul.f32 %v1307_v12, %v1285_v29  ;;  %v1367_v32 = vadd.f32 %v15362_v61, %v1323_v0 }
 0x346   :  { %v1351_v11 = vpop.permute.xlu0 %1350  ;;  %v1445_v19 = vmul.f32 %v15276_v59, %v1390_v44  ;;  %v1444_v22 = vmul.f32 %v15274_v55, %v1389_v58  ;;  %v1394_v51 = vmax.f32 %v1370_v49, 0.0  ;;  %v1363_v44 = vadd.f32 %v15267_v4, %v1319_v8 }
 0x347   :  { %v1372_v27 = vadd.f32 %v1351_v11, %v1328_v52  ;;  %v1371_v48 = vadd.f32 %v1351_v11, %v1327_v17  ;;  %v1376_v54 = vadd.f32 %v1351_v11, %v1332_v56  ;;  %v1441_v37 = vmul.f32 %v15280_v13, %v1386_v39 }
 0x348   :  { %13407 = vrot.lane.b32.xlu1 %v15383_v24, %s14172_s17  ;;  %v1449_v62 = vmul.f32 %v15284_v33, %v1394_v51  ;;  %v1373_v56 = vadd.f32 %v1351_v11, %v1329_v25  ;;  %v1391_v49 = vmax.f32 %v1367_v32, 0.0  ;;  %v1381_v39 = vmax.f32 %v15328_v43, 0.0 }
 0x349   :  { %v1396_v58 = vmax.f32 %v1372_v27, 0.0  ;;  %v1395_v38 = vmax.f32 %v1371_v48, 0.0  ;;  %v1400_v52 = vmax.f32 %v1376_v54, 0.0  ;;  %v13446_v17 = vpack.i.bf16 %v1441_v37, %v1435_v14 }
 0x34a   :  { %v1387_v26 = vmax.f32 %v1363_v44, 0.0  ;;  %v20604_v29 = vsub.f32 %v15038_v15, %v15286_v3  ;;  %v1397_v27 = vmax.f32 %v1373_v56, 0.0  ;;  %v1446_v48 = vmul.f32 %v15278_v20, %v1391_v49 }
 0x34b   :  { %v1451_v45 = vmul.f32 %v15276_v59, %v1396_v58  ;;  %v1450_v51 = vmul.f32 %v15274_v55, %v1395_v38  ;;  %v1455_v34 = vmul.f32 %v15284_v33, %v1400_v52  ;;  %v1436_v0 = vmul.f32 %v15282_v41, %v1381_v39 }
 0x34c   :  { %v1324_v4 = vmul.f32 %v15342_v50, %v20604_v29  ;;  %v1442_v8 = vmul.f32 %v15282_v41, %v1387_v26  ;;  %v1452_v32 = vmul.f32 %v15278_v20, %v1397_v27  ;;  %v20605_v58 = vsub.f32 %v15051_v36, %v15292_v47 }
 0x34d   :  { %v13416_v43 = vpack.i.bf16 %v1451_v45, %v1445_v19  ;;  %v13411_v54 = vpack.i.bf16 %v1450_v51, %v1444_v22  ;;  %v13426_v25 = vpack.i.bf16 %v1455_v34, %v1449_v62  ;;  %v20606_v52 = vsub.f32 %v15137_v16, %v15286_v3 }
 0x34e   :  { %v13461_v44 = vpack.i.bf16 %v1442_v8, %v1436_v0  ;;  %v1330_v38 = vmul.f32 %v1307_v12, %v20605_v58  ;;  %v1368_v15 = vadd.f32 %v15362_v61, %v1324_v4  ;;  %v13456_v56 = vpack.i.bf16 %v1452_v32, %v1446_v48 }
 0x34f   :  { %13417 = vrot.lane.b32.xlu1 %v13416_v43, %s14172_s17  ;;  %13412 = vrot.lane.b32.xlu0 %v13411_v54, %s14172_s17  ;;  %v1325_v26 = vmul.f32 %v15342_v50, %v20606_v52  ;;  %v20607_v39 = vsub.f32 %v15143_v35, %v15292_v47  ;;  %v15434_v20 = vpack.c.bf16 %v15356_v5, %v15336_v31 }
 0x350   :  { %v1374_v49 = vadd.f32 %v1351_v11, %v1330_v38  ;;  %v1392_v27 = vmax.f32 %v1368_v15, 0.0  ;;  %v15442_v35 = vpack.c.bf16 %v15359_v40, %v15340_v2  ;;  %v15444_v47 = vpack.c.bf16 %v1451_v45, %v1445_v19 }
 0x351   :  { %v1331_v29 = vmul.f32 %v1307_v12, %v20607_v39  ;;  %v1369_v36 = vadd.f32 %v15362_v61, %v1325_v26  ;;  %v15447_v12 = vpack.c.bf16 %v1450_v51, %v1444_v22  ;;  %v15449_v31 = vpack.c.bf16 %v1441_v37, %v1435_v14 }
 0x352   :  { %v1398_v58 = vmax.f32 %v1374_v49, 0.0  ;;  %v1447_v16 = vmul.f32 %v15280_v13, %v1392_v27  ;;  %v15460_v2 = vpack.c.bf16 %v1452_v32, %v1446_v48  ;;  %v15469_v19 = vpack.c.bf16 %v1442_v8, %v1436_v0 }
 0x353   :  { %v1375_v33 = vadd.f32 %v1351_v11, %v1331_v29  ;;  %13422 = vrot.lane.b32.xlu1 %v15373_v63, %s14174_s18  ;;  %13427 = vrot.lane.b32.xlu0 %v13426_v25, %s14172_s17  ;;  %v1393_v3 = vmax.f32 %v1369_v36, 0.0  ;;  %v15454_v63 = vpack.c.bf16 %v15368_v9, %v15350_v28  ;;  %v15458_v11 = vpack.c.bf16 %v15365_v23, %v15346_v18 }
 0x354   :  { %v1453_v50 = vmul.f32 %v15280_v13, %v1398_v58  ;;  %v15471_v28 = vpack.c.bf16 %v1455_v34, %v1449_v62 }
 0x355   :  { %v1399_v61 = vmax.f32 %v1375_v33, 0.0  ;;  %v1448_v5 = vmul.f32 %v15282_v41, %v1393_v3 }
 0x356   :  { %v13476_v45 = vpack.i.bf16 %v1453_v50, %v1447_v16  ;;  %v15463_v33 = vpack.c.bf16 %v1453_v50, %v1447_v16 }
 0x357   :  { %v1454_v40 = vmul.f32 %v15282_v41, %v1399_v61  ;;  %13437 = vrot.lane.b32.xlu1 %v15377_v10, %s14174_s18  ;;  %13432 = vrot.lane.b32.xlu0 %v15392_v6, %s14174_s18 }
 0x359   :  { %v13481_v9 = vpack.i.bf16 %v1454_v40, %v1448_v5  ;;  %v15473_v18 = vpack.c.bf16 %v1454_v40, %v1448_v5 }
 0x35b   :  { %13442 = vrot.lane.b32.xlu1 %v15392_v6, %s14172_s17  ;;  %13447 = vrot.lane.b32.xlu0 %v13446_v17, %s14172_s17 }
 0x35f   :  { %13457 = vrot.lane.b32.xlu1 %v13456_v56, %s14174_s18  ;;  %13452 = vrot.lane.b32.xlu0 %v13416_v43, %s14174_s18 }
 0x363   :  { %13462 = vrot.lane.b32.xlu1 %v13461_v44, %s14172_s17  ;;  %13467 = vrot.lane.b32.xlu0 %v13411_v54, %s14174_s18 }
 0x367   :  { %13477 = vrot.lane.b32.xlu1 %v13476_v45, %s14172_s17  ;;  %13472 = vrot.lane.b32.xlu0 %v13456_v56, %s14172_s17 }
 0x36b   :  { %13487 = vrot.lane.b32.xlu1 %v13446_v17, %s14174_s18  ;;  %13482 = vrot.lane.b32.xlu0 %v13481_v9, %s14172_s17 }
 0x36f   :  { %13497 = vrot.lane.b32.xlu1 %v15383_v24, %s14174_s18  ;;  %13492 = vrot.lane.b32.xlu0 %v13461_v44, %s14174_s18 }
 0x373   :  { %13507 = vrot.lane.b32.xlu1 %v13481_v9, %s14174_s18  ;;  %13502 = vrot.lane.b32.xlu0 %v13476_v45, %s14174_s18 }
 0x377   :  { %13512 = vrot.lane.b32.xlu0 %v13426_v25, %s14174_s18 }
 0x3b6   :  { %v13403_v23 = vpop.permute.xlu0 %13402  ;;  %v13398_v10 = vpop.permute.xlu1 %13397 }
 0x3b7   :  { %v13405_v6 = vunpack.i.h.bf16 %v13403_v23  ;;  %v13404_v22 = vunpack.i.l.bf16 %v13403_v23  ;;  %v13400_v14 = vunpack.i.h.bf16 %v13398_v10  ;;  %v13399_v37 = vunpack.i.l.bf16 %v13398_v10 }
 0x3b9   :  { %v1520_v17 = vsel %vm217_vm0, %v13399_v37, %v13404_v22  ;;  %v1521_v24 = vsel %vm217_vm0, %v13400_v14, %v13405_v6 }
 0x3ba   :  { %v15496_v51 = vpop.permute.xlu1 %13407  ;;  %v15498_v34 = vpack.c.bf16 %v1521_v24, %v1520_v17 }
 0x3bb   :  { %v13410_v4 = vunpack.i.h.bf16 %v15496_v51  ;;  %v13409_v48 = vunpack.i.l.bf16 %v15496_v51 }
 0x3bc   :  { %1641 = vmatprep.subr.bf16.mxu1 %v15498_v34 }
 0x3bd   :  { %v1524_v0 = vsel %vm217_vm0, %v13409_v48, %v13399_v37  ;;  %v1525_v8 = vsel %vm217_vm0, %v13410_v4, %v13400_v14 }
 0x3be   :  { %v15511_v43 = vpack.c.bf16 %v1525_v8, %v1524_v0 }
 0x3c0   :  { %1642 = vmatpush1.bf16.msra.mxu1 %v15511_v43 }
 0x3c1   :  { %v13413_v54 = vpop.permute.xlu0 %13412  ;;  %v15514_v25 = vpop.permute.xlu1 %13417 }
 0x3c2   :  { %v13415_v32 = vunpack.i.h.bf16 %v13413_v54  ;;  %v13414_v44 = vunpack.i.l.bf16 %v13413_v54  ;;  %v13420_v38 = vunpack.i.h.bf16 %v15514_v25  ;;  %v13419_v15 = vunpack.i.l.bf16 %v15514_v25 }
 0x3c4   :  { %v1522_v52 = vsel %vm217_vm0, %v13414_v44, %v13419_v15  ;;  %v1523_v26 = vsel %vm217_vm0, %v13415_v32, %v13420_v38 }
 0x3c5   :  { %v15526_v56 = vpop.permute.xlu0 %13427  ;;  %v13423_v49 = vpop.permute.xlu1 %13422  ;;  %v15528_v39 = vpack.c.bf16 %v1523_v26, %v1522_v52 }
 0x3c6   :  { %v13430_v29 = vunpack.i.h.bf16 %v15526_v56  ;;  %v13429_v27 = vunpack.i.l.bf16 %v15526_v56  ;;  %v13425_v45 = vunpack.i.h.bf16 %v13423_v49  ;;  %v13424_v40 = vunpack.i.l.bf16 %v13423_v49 }
 0x3c7   :  { %1643 = vmatprep.subr.bf16.mxu1 %v15528_v39 }
 0x3c8   :  { %v1526_v36 = vsel %vm217_vm0, %v13429_v27, %v13414_v44  ;;  %v1527_v58 = vsel %vm217_vm0, %v13430_v29, %v13415_v32 }
 0x3c9   :  { %v15541_v16 = vpop.permute.xlu0 %13432  ;;  %v15543_v3 = vpop.permute.xlu1 %13437  ;;  %v15545_v50 = vpack.c.bf16 %v1527_v58, %v1526_v36 }
 0x3ca   :  { %v20219_v61 = vunpack.i.h.bf16 %v15541_v16  ;;  %v20214_v5 = vunpack.i.l.bf16 %v15541_v16  ;;  %v20212_v9 = vunpack.i.l.bf16 %v15543_v3  ;;  %v20213_v23 = vunpack.i.h.bf16 %v15543_v3 }
 0x3cb   :  { %1644 = vmatpush1.bf16.msra.mxu1 %v15545_v50  ;;  %v20609_v56 = vunpack.i.h.bf16 %v15541_v16 }
 0x3cc   :  { %1645 = vmatprep.subr.bf16.mxu1 %v15434_v20  ;;  %v1588_v37 = vsel %vm236_vm6, %v13424_v40, %v20214_v5  ;;  %v1589_v17 = vsel %vm236_vm6, %v13425_v45, %v20219_v61  ;;  %v1592_v32 = vsel %vm236_vm6, %v20212_v9, %v13424_v40  ;;  %v1593_v36 = vsel %vm236_vm6, %v20213_v23, %v13425_v45 }
 0x3cd   :  { %v13448_v10 = vpop.permute.xlu0 %13447  ;;  %v13443_v14 = vpop.permute.xlu1 %13442 }
 0x3ce   :  { %v13450_v24 = vunpack.i.h.bf16 %v13448_v10  ;;  %v13449_v0 = vunpack.i.l.bf16 %v13448_v10  ;;  %v13445_v8 = vunpack.i.h.bf16 %v13443_v14  ;;  %v13444_v54 = vunpack.i.l.bf16 %v13443_v14 }
 0x3cf   :  { %1646 = vmatpush1.bf16.msra.mxu1 %v15442_v35  ;;  %v15583_v10 = vpack.c.bf16 %v1589_v17, %v1588_v37 }
 0x3d0   :  { %v1517_v44 = vsel %vm217_vm0, %v13405_v6, %v13445_v8  ;;  %v1516_v52 = vsel %vm217_vm0, %v13404_v22, %v13444_v54  ;;  %1647 = vmatprep.subr.bf16.mxu1 %v15444_v47  ;;  %v1512_v26 = vsel %vm217_vm0, %v13444_v54, %v13449_v0  ;;  %v1513_v49 = vsel %vm217_vm0, %v13445_v8, %v13450_v24 }
 0x3d1   :  { %v13453_v58 = vpop.permute.xlu0 %13452  ;;  %v15579_v40 = vpop.permute.xlu1 %13457  ;;  %v15581_v6 = vpack.c.bf16 %v1513_v49, %v1512_v26  ;;  %v15585_v22 = vpack.c.bf16 %v1517_v44, %v1516_v52  ;;  %v15603_v52 = vpack.c.bf16 %v1593_v36, %v1592_v32 }
 0x3d2   :  { %v13455_v14 = vunpack.i.h.bf16 %v13453_v58  ;;  %v13454_v9 = vunpack.i.l.bf16 %v13453_v58  ;;  %v20215_v54 = vunpack.i.h.bf16 %v15579_v40  ;;  %v20216_v8 = vunpack.i.l.bf16 %v15579_v40 }
 0x3d3   :  { %1648 = vmatpush1.bf16.msra.mxu1 %v15447_v12  ;;  %1682 = vmatprep.subr.bf16.mxu0 %v15581_v6  ;;  %v20613_v55 = vunpack.i.l.bf16 %v15579_v40 }
 0x3d4   :  { %1649 = vmatprep.subr.bf16.mxu1 %v15583_v10  ;;  %1683 = vmatpush1.bf16.msra.mxu0 %v15585_v22  ;;  %v1590_v45 = vsel %vm236_vm6, %v13454_v9, %v20216_v8  ;;  %v1591_v37 = vsel %vm236_vm6, %v13455_v14, %v20215_v54 }
 0x3d5   :  { %v15601_v17 = vpop.permute.xlu0 %13467  ;;  %v13463_v44 = vpop.permute.xlu1 %13462  ;;  %v15605_v26 = vpack.c.bf16 %v1591_v37, %v1590_v45 }
 0x3d6   :  { %v20217_v49 = vunpack.i.h.bf16 %v15601_v17  ;;  %v20218_v58 = vunpack.i.l.bf16 %v15601_v17  ;;  %v13465_v23 = vunpack.i.h.bf16 %v13463_v44  ;;  %v13464_v5 = vunpack.i.l.bf16 %v13463_v44 }
 0x3d7   :  { %1650 = vmatpush1.bf16.msra.mxu1 %v15603_v52 }
 0x3d8   :  { %v1594_v54 = vsel %vm236_vm6, %v20218_v58, %v13454_v9  ;;  %v1595_v32 = vsel %vm236_vm6, %v20217_v49, %v13455_v14  ;;  %v1509_v36 = vsel %vm217_vm0, %v13450_v24, %v13465_v23  ;;  %1651 = vmatprep.subr.bf16.mxu1 %v15605_v26  ;;  %v1508_v45 = vsel %vm217_vm0, %v13449_v0, %v13464_v5 }
 0x3d9   :  { %v13473_v37 = vpop.permute.xlu0 %13472  ;;  %v13478_v44 = vpop.permute.xlu1 %13477  ;;  %v15623_v8 = vpack.c.bf16 %v1595_v32, %v1594_v54  ;;  %v1504_v9 = vsel %vm217_vm0, %v13464_v5, %v13409_v48  ;;  %v1505_v14 = vsel %vm217_vm0, %v13465_v23, %v13410_v4  ;;  %v15639_v54 = vld [vmem:[%s20117_s6] sm:$0x3] }
 0x3da   :  { %v13475_v24 = vunpack.i.h.bf16 %v13473_v37  ;;  %v13474_v49 = vunpack.i.l.bf16 %v13473_v37  ;;  %v13480_v58 = vunpack.i.h.bf16 %v13478_v44  ;;  %v13479_v61 = vunpack.i.l.bf16 %v13478_v44 }
 0x3db   :  { %1652 = vmatpush1.bf16.msra.mxu1 %v15623_v8  ;;  %v15634_v0 = vpack.c.bf16 %v1505_v14, %v1504_v9  ;;  %v15656_v44 = vpack.c.bf16 %v1509_v36, %v1508_v45 }
 0x3dc   :  { %v1518_v51 = vsel %vm217_vm0, %v13419_v15, %v13474_v49  ;;  %v1519_v4 = vsel %vm217_vm0, %v13420_v38, %v13475_v24  ;;  %v1514_v48 = vsel %vm217_vm0, %v13474_v49, %v13479_v61  ;;  %v1515_v5 = vsel %vm217_vm0, %v13475_v24, %v13480_v58 }
 0x3dd   :  { %1723 = vmatprep.subr.bf16.mxu1 %v15634_v0  ;;  %v13483_v23 = vpop.permute.xlu0 %13482  ;;  %v13488_v32 = vpop.permute.xlu1 %13487  ;;  %v15654_v37 = vpack.c.bf16 %v1515_v5, %v1514_v48  ;;  %v15658_v15 = vpack.c.bf16 %v1519_v4, %v1518_v51 }
 0x3de   :  { %v13485_v25 = vunpack.i.h.bf16 %v13483_v23  ;;  %v13484_v9 = vunpack.i.l.bf16 %v13483_v23  ;;  %9755 = vmatmul.mubr.msk.bf16.vlgmr.msra.gmra.mrb[32].mxu1 %vm20382_vm15, %v15639_v54  ;;  %v13490_v36 = vunpack.i.h.bf16 %v13488_v32  ;;  %v13489_v45 = vunpack.i.l.bf16 %v13488_v32 }
 0x3df   :  { %1684 = vmatprep.subr.bf16.mxu0 %v15654_v37  ;;  %1724 = vmatpush1.bf16.msra.mxu1 %v15656_v44  ;;  %v20610_v32 = vunpack.i.l.bf16 %v15541_v16 }
 0x3e0   :  { %v1510_v38 = vsel %vm217_vm0, %v13479_v61, %v13484_v9  ;;  %v1511_v49 = vsel %vm217_vm0, %v13480_v58, %v13485_v25  ;;  %1685 = vmatpush1.bf16.msra.mxu0 %v15658_v15  ;;  %v1506_v51 = vsel %vm217_vm0, %v13484_v9, %v13429_v27  ;;  %v1507_v61 = vsel %vm217_vm0, %v13485_v25, %v13430_v29 }
 0x3e1   :  { %v13493_v14 = vpop.permute.xlu0 %13492  ;;  %v13498_v24 = vpop.permute.xlu1 %13497  ;;  %1686 = vmatprep.subr.bf16.mxu0 %v15449_v31  ;;  %v15678_v48 = vpack.c.bf16 %v1511_v49, %v1510_v38  ;;  %1755 = vmatprep.mubr.bf16.mxu1 %v20596_v7  ;;  %v15681_v5 = vpack.c.bf16 %v1507_v61, %v1506_v51  ;;  %v1585_v29 = vsel %vm236_vm6, %v20609_v56, %v13490_v36 }
 0x3e2   :  { %v13495_v4 = vunpack.i.h.bf16 %v13493_v14  ;;  %v13494_v58 = vunpack.i.l.bf16 %v13493_v14  ;;  %v1584_v25 = vsel %vm236_vm6, %v20610_v32, %v13489_v45  ;;  %v13500_v9 = vunpack.i.h.bf16 %v13498_v24 }
 0x3e3   :  { %v13499_v38 = vunpack.i.l.bf16 %v13498_v24  ;;  %1725 = vmatprep.subr.bf16.mxu1 %v15681_v5  ;;  %v15708_v56 = vpack.c.bf16 %v1585_v29, %v1584_v25  ;;  %v20614_v25 = vunpack.i.h.bf16 %v15579_v40 }
 0x3e4   :  { %1687 = vmatpush1.bf16.msra.mxu0 %v15454_v63  ;;  %v1580_v23 = vsel %vm236_vm6, %v13489_v45, %v13494_v58  ;;  %v1581_v27 = vsel %vm236_vm6, %v13490_v36, %v13495_v4  ;;  %1726 = vmatpush1.bf16.msra.mxu1 %v15678_v48 }
 0x3e5   :  { %v13503_v49 = vpop.permute.xlu0 %13502  ;;  %v13508_v14 = vpop.permute.xlu1 %13507  ;;  %1688 = vmatprep.subr.bf16.mxu0 %v15463_v33  ;;  %1727 = vmatprep.subr.bf16.mxu1 %v15458_v11  ;;  %v15700_v16 = vpack.c.bf16 %v1581_v27, %v1580_v23  ;;  %v20611_v23 = vunpack.i.l.bf16 %v15543_v3 }
 0x3e6   :  { %v13505_v51 = vunpack.i.h.bf16 %v13503_v49  ;;  %v13504_v61 = vunpack.i.l.bf16 %v13503_v49  ;;  %v13510_v41 = vunpack.i.h.bf16 %v13508_v14  ;;  %v13509_v13 = vunpack.i.l.bf16 %v13508_v14 }
 0x3e7   :  { %v1596_v27 = vsel %vm236_vm6, %v13499_v38, %v20611_v23  ;;  %v20612_v14 = vunpack.i.h.bf16 %v15543_v3  ;;  %v1577_v3 = vsel %vm236_vm6, %v13495_v4, %v13500_v9  ;;  %v1576_v23 = vsel %vm236_vm6, %v13494_v58, %v13499_v38 }
 0x3e8   :  { %1689 = vmatpush1.bf16.msra.mxu0 %v15460_v2  ;;  %v1582_v36 = vsel %vm236_vm6, %v13504_v61, %v13509_v13  ;;  %v1583_v45 = vsel %vm236_vm6, %v13505_v51, %v13510_v41  ;;  %1728 = vmatpush1.bf16.msra.mxu1 %v15469_v19  ;;  %v1586_v29 = vsel %vm236_vm6, %v20613_v55, %v13504_v61 }
 0x3e9   :  { %v13513_v24 = vpop.permute.xlu0 %13512  ;;  %1690 = vmatprep.subr.bf16.mxu0 %v15700_v16  ;;  %v1597_v59 = vsel %vm236_vm6, %v13500_v9, %v20612_v14  ;;  %1729 = vmatprep.subr.bf16.mxu1 %v15471_v28  ;;  %v15728_v46 = vpack.c.bf16 %v1583_v45, %v1582_v36  ;;  %v20616_v36 = vunpack.i.h.bf16 %v15601_v17 }
 0x3ea   :  { %v13515_v32 = vunpack.i.h.bf16 %v13513_v24  ;;  %v13514_v49 = vunpack.i.l.bf16 %v13513_v24  ;;  %v1587_v24 = vsel %vm236_vm6, %v20614_v25, %v13505_v51  ;;  %v15736_v55 = vpack.c.bf16 %v1597_v59, %v1596_v27 }
 0x3eb   :  { %v15739_v40 = vpack.c.bf16 %v1587_v24, %v1586_v29  ;;  %v20615_v51 = vunpack.i.l.bf16 %v15601_v17  ;;  %v15751_v59 = vpack.c.bf16 %v1577_v3, %v1576_v23 }
 0x3ec   :  { %1691 = vmatpush1.bf16.msra.mxu0 %v15708_v56  ;;  %1730 = vmatpush1.bf16.msra.mxu1 %v15473_v18  ;;  %v1599_v4 = vsel %vm236_vm6, %v13515_v32, %v20616_v36  ;;  %v1578_v58 = vsel %vm236_vm6, %v13509_v13, %v13514_v49  ;;  %v1579_v9 = vsel %vm236_vm6, %v13510_v41, %v13515_v32  ;;  %v9758_v13 = vld [vmem:[%s20117_s6 + $0x2] sm:$0x3]  ;;  %v20617_v41 = vld [vmem:[#allocation4_spill] sm:$0xff] }
 0x3ed   :  { %1692 = vmatprep.subr.bf16.mxu0 %v15728_v46  ;;  %v1598_v61 = vsel %vm236_vm6, %v13514_v49, %v20615_v51  ;;  %1731 = vmatprep.subr.bf16.mxu1 %v15736_v55  ;;  %v15764_v17 = vpack.c.bf16 %v1579_v9, %v1578_v58 }
 0x3ee   :  { %v15757_v38 = vpack.c.bf16 %v1599_v4, %v1598_v61 }
 0x3f0   :  { %1693 = vmatpush1.bf16.msra.mxu0 %v15739_v40  ;;  %1732 = vmatpush1.bf16.msra.mxu1 %v15751_v59 }
 0x3f1   :  { %1787 = vmatprep.subr.bf16.mxu0 %v15498_v34  ;;  %1733 = vmatprep.subr.bf16.mxu1 %v15757_v38 }
 0x3f3   :  { %9756 = vmatmul.mubr.msk.bf16.vlgmr.msra.gmra.mrb[40].mxu0 %vm20382_vm15, %v15639_v54 }
 0x3f4   :  { %1788 = vmatpush1.bf16.msra.mxu0 %v15511_v43  ;;  %1819 = vmatprep.mubr.bf16.mxu0 %v20596_v7 }
 0x3f5   :  { %1789 = vmatprep.subr.bf16.mxu0 %v15528_v39  ;;  %1734 = vmatpush1.bf16.msra.mxu1 %v15764_v17 }
 0x3f6   :  { %1828 = vmatprep.subr.bf16.mxu1 %v15581_v6 }
 0x3f8   :  { %1790 = vmatpush1.bf16.msra.mxu0 %v15545_v50  ;;  %9757 = vmatmul.mubr.msk.bf16.vlgmr.msra.gmra.mrb[36].mxu1 %vm20382_vm15, %v15639_v54  ;;  %v20641_v54 = vld [vmem:[#allocation29_spill] sm:$0xff] }
 0x3f9   :  { %1791 = vmatprep.subr.bf16.mxu0 %v15434_v20  ;;  %1829 = vmatpush1.bf16.msra.mxu1 %v15585_v22 }
 0x3fa   :  { %1860 = vmatprep.mubr.bf16.mxu1 %v20596_v7  ;;  %1830 = vmatprep.subr.bf16.mxu1 %v15654_v37 }
 0x3fc   :  { %1792 = vmatpush1.bf16.msra.mxu0 %v15442_v35 }
 0x3fd   :  { %1793 = vmatprep.subr.bf16.mxu0 %v15444_v47  ;;  %1831 = vmatpush1.bf16.msra.mxu1 %v15658_v15 }
 0x3fe   :  { %1832 = vmatprep.subr.bf16.mxu1 %v15449_v31 }
 0x400   :  { %1794 = vmatpush1.bf16.msra.mxu0 %v15447_v12 }
 0x401   :  { %1795 = vmatprep.subr.bf16.mxu0 %v15583_v10  ;;  %1833 = vmatpush1.bf16.msra.mxu1 %v15454_v63 }
 0x402   :  { %1834 = vmatprep.subr.bf16.mxu1 %v15463_v33 }
 0x404   :  { %1796 = vmatpush1.bf16.msra.mxu0 %v15603_v52 }
 0x405   :  { %1797 = vmatprep.subr.bf16.mxu0 %v15605_v26  ;;  %1835 = vmatpush1.bf16.msra.mxu1 %v15460_v2 }
 0x406   :  { %1836 = vmatprep.subr.bf16.mxu1 %v15700_v16 }
 0x408   :  { %1798 = vmatpush1.bf16.msra.mxu0 %v15623_v8 }
 0x409   :  { %1869 = vmatprep.subr.bf16.mxu0 %v15634_v0  ;;  %1837 = vmatpush1.bf16.msra.mxu1 %v15708_v56 }
 0x40a   :  { %1838 = vmatprep.subr.bf16.mxu1 %v15728_v46 }
 0x40b   :  { %9759 = vmatmul.mubr.msk.bf16.vlgmr.msra.gmra.mrb[44].mxu0 %vm20382_vm15, %v9758_v13 }
 0x40c   :  { %1870 = vmatpush1.bf16.msra.mxu0 %v15656_v44  ;;  %1901 = vmatprep.mubr.bf16.mxu0 %v20596_v7 }
 0x40d   :  { %1871 = vmatprep.subr.bf16.mxu0 %v15681_v5  ;;  %1839 = vmatpush1.bf16.msra.mxu1 %v15739_v40 }
 0x40e   :  { %1921 = vmatprep.subr.bf16.mxu1 %v15498_v34  ;;  %v20630_v34 = vld [vmem:[#allocation15_spill] sm:$0xff] }
 0x410   :  { %1872 = vmatpush1.bf16.msra.mxu0 %v15678_v48  ;;  %9760 = vmatmul.mubr.msk.bf16.vlgmr.msra.gmra.mrb[40].mxu1 %vm20382_vm15, %v9758_v13 }
 0x411   :  { %1873 = vmatprep.subr.bf16.mxu0 %v15458_v11  ;;  %1922 = vmatpush1.bf16.msra.mxu1 %v15511_v43  ;;  %v20631_v43 = vld [vmem:[#allocation16_spill] sm:$0xff] }
 0x412   :  { %1953 = vmatprep.mubr.bf16.mxu1 %v20596_v7  ;;  %1923 = vmatprep.subr.bf16.mxu1 %v15528_v39  ;;  %v20632_v39 = vld [vmem:[#allocation24_spill] sm:$0xff] }
 0x414   :  { %1874 = vmatpush1.bf16.msra.mxu0 %v15469_v19 }
 0x415   :  { %1875 = vmatprep.subr.bf16.mxu0 %v15471_v28  ;;  %1924 = vmatpush1.bf16.msra.mxu1 %v15545_v50  ;;  %v20633_v50 = vld [vmem:[#allocation25_spill] sm:$0xff] }
 0x416   :  { %1925 = vmatprep.subr.bf16.mxu1 %v15434_v20  ;;  %v9762_v20 = vld [vmem:[%s20117_s6 + $0x4] sm:$0x3] }
 0x418   :  { %1876 = vmatpush1.bf16.msra.mxu0 %v15473_v18 }
 0x419   :  { %1877 = vmatprep.subr.bf16.mxu0 %v15736_v55  ;;  %1926 = vmatpush1.bf16.msra.mxu1 %v15442_v35  ;;  %v20618_v35 = vld [vmem:[#allocation5_spill] sm:$0xff] }
 0x41a   :  { %1927 = vmatprep.subr.bf16.mxu1 %v15444_v47  ;;  %v20619_v47 = vld [vmem:[#allocation6_spill] sm:$0xff] }
 0x41c   :  { %1878 = vmatpush1.bf16.msra.mxu0 %v15751_v59 }
 0x41d   :  { %1879 = vmatprep.subr.bf16.mxu0 %v15757_v38  ;;  %1928 = vmatpush1.bf16.msra.mxu1 %v15447_v12  ;;  %v20621_v12 = vld [vmem:[#allocation8_spill] sm:$0xff] }
 0x41e   :  { %1929 = vmatprep.subr.bf16.mxu1 %v15583_v10  ;;  %v20635_v10 = vld [vmem:[#allocation20_spill] sm:$0xff] }
 0x420   :  { %1880 = vmatpush1.bf16.msra.mxu0 %v15764_v17 }
 0x421   :  { %1962 = vmatprep.subr.bf16.mxu0 %v15581_v6  ;;  %1930 = vmatpush1.bf16.msra.mxu1 %v15603_v52  ;;  %v20634_v6 = vld [vmem:[#allocation19_spill] sm:$0xff] }
 0x422   :  { %1931 = vmatprep.subr.bf16.mxu1 %v15605_v26  ;;  %v20638_v52 = vld [vmem:[#allocation23_spill] sm:$0xff] }
 0x423   :  { %9761 = vmatmul.mubr.msk.bf16.vlgmr.msra.gmra.mrb[48].mxu0 %vm20382_vm15, %v9758_v13  ;;  %v20639_v26 = vld [vmem:[#allocation31_spill] sm:$0xff] }
 0x424   :  { %1963 = vmatpush1.bf16.msra.mxu0 %v15585_v22  ;;  %1994 = vmatprep.mubr.bf16.mxu0 %v20596_v7  ;;  %v20636_v22 = vld [vmem:[#allocation26_spill] sm:$0xff] }
 0x425   :  { %1964 = vmatprep.subr.bf16.mxu0 %v15654_v37  ;;  %1932 = vmatpush1.bf16.msra.mxu1 %v15623_v8  ;;  %v20637_v8 = vld [vmem:[#allocation27_spill] sm:$0xff]  ;;  %v20642_v37 = vld [vmem:[#allocation30_spill] sm:$0xff] }
 0x426   :  { %2003 = vmatprep.subr.bf16.mxu1 %v15634_v0  ;;  %v20640_v0 = vld [vmem:[#allocation28_spill] sm:$0xff] }
 0x428   :  { %1965 = vmatpush1.bf16.msra.mxu0 %v15658_v15  ;;  %9763 = vmatmul.mubr.msk.bf16.vlgmr.msra.gmra.mrb[44].mxu1 %vm20382_vm15, %v9762_v20 }
 0x429   :  { %1966 = vmatprep.subr.bf16.mxu0 %v15449_v31  ;;  %2004 = vmatpush1.bf16.msra.mxu1 %v15656_v44  ;;  %v20622_v31 = vld [vmem:[#allocation9_spill] sm:$0xff] }
 0x42a   :  { %2035 = vmatprep.mubr.bf16.mxu1 %v20596_v7  ;;  %2005 = vmatprep.subr.bf16.mxu1 %v15681_v5 }
 0x42c   :  { %1967 = vmatpush1.bf16.msra.mxu0 %v15454_v63  ;;  %v20623_v63 = vld [vmem:[#allocation10_spill] sm:$0xff] }
 0x42d   :  { %1968 = vmatprep.subr.bf16.mxu0 %v15463_v33  ;;  %2006 = vmatpush1.bf16.msra.mxu1 %v15678_v48  ;;  %v20626_v33 = vld [vmem:[#allocation13_spill] sm:$0xff] }
 0x42e   :  { %2007 = vmatprep.subr.bf16.mxu1 %v15458_v11  ;;  %v20624_v11 = vld [vmem:[#allocation11_spill] sm:$0xff] }
 0x430   :  { %1969 = vmatpush1.bf16.msra.mxu0 %v15460_v2  ;;  %v20625_v2 = vld [vmem:[#allocation12_spill] sm:$0xff] }
 0x431   :  { %1970 = vmatprep.subr.bf16.mxu0 %v15700_v16  ;;  %2008 = vmatpush1.bf16.msra.mxu1 %v15469_v19  ;;  %v20627_v19 = vld [vmem:[#allocation14_spill] sm:$0xff] }
 0x432   :  { %2009 = vmatprep.subr.bf16.mxu1 %v15471_v28  ;;  %v20628_v28 = vld [vmem:[#allocation21_spill] sm:$0xff] }
 0x434   :  { %1971 = vmatpush1.bf16.msra.mxu0 %v15708_v56 }
 0x435   :  { %1972 = vmatprep.subr.bf16.mxu0 %v15728_v46  ;;  %2010 = vmatpush1.bf16.msra.mxu1 %v15473_v18  ;;  %v20620_v46 = vld [vmem:[#allocation7_spill] sm:$0xff]  ;;  %v20629_v18 = vld [vmem:[#allocation22_spill] sm:$0xff] }
 0x436   :  { %2011 = vmatprep.subr.bf16.mxu1 %v15736_v55 }
 0x438   :  { %1973 = vmatpush1.bf16.msra.mxu0 %v15739_v40 }
 0x439   :  { %11957 = vmatprep.subr.bf16.mxu0 %v20617_v41  ;;  %2012 = vmatpush1.bf16.msra.mxu1 %v15751_v59 }
 0x43a   :  { %2013 = vmatprep.subr.bf16.mxu1 %v15757_v38 }
 0x43b   :  { %9764 = vmatmul.mubr.msk.bf16.vlgmr.msra.gmra.mrb[52].mxu0 %vm20382_vm15, %v9762_v20 }
 0x43c   :  { %11959 = vmatpush3.bf16.msra.mxu0 %v20618_v35 }
 0x43d   :  { %11961 = vmatprep.subr.bf16.mxu0 %v20619_v47  ;;  %2014 = vmatpush1.bf16.msra.mxu1 %v15764_v17 }
 0x43e   :  { %11989 = vmatprep.subr.bf16.mxu1 %v14714_v30 }
 0x440   :  { %11963 = vmatpush3.bf16.msra.mxu0 %v20620_v46  ;;  %9765 = vmatmul.mubr.msk.bf16.vlgmr.msra.gmra.mrb[48].mxu1 %vm20382_vm15, %v9762_v20 }
 0x441   :  { %11965 = vmatprep.subr.bf16.mxu0 %v20621_v12  ;;  %11991 = vmatpush3.bf16.msra.mxu1 %v14746_v57 }
 0x442   :  { %11993 = vmatprep.subr.bf16.mxu1 %v14749_v1 }
 0x444   :  { %11967 = vmatpush3.bf16.msra.mxu0 %v20622_v31 }
 0x445   :  { %11969 = vmatprep.subr.bf16.mxu0 %v20623_v63  ;;  %11995 = vmatpush3.bf16.msra.mxu1 %v14785_v21 }
 0x446   :  { %11997 = vmatprep.subr.bf16.mxu1 %v14788_v42 }
 0x448   :  { %11971 = vmatpush3.bf16.msra.mxu0 %v20624_v11 }
 0x449   :  { %11973 = vmatprep.subr.bf16.mxu0 %v20625_v2  ;;  %11999 = vmatpush3.bf16.msra.mxu1 %v14821_v53 }
 0x44a   :  { %12001 = vmatprep.subr.bf16.mxu1 %v14824_v60 }
 0x44c   :  { %11975 = vmatpush3.bf16.msra.mxu0 %v20626_v33 }
 0x44d   :  { %11977 = vmatprep.subr.bf16.mxu0 %v20627_v19  ;;  %12003 = vmatpush3.bf16.msra.mxu1 %v20628_v28 }
 0x44e   :  { %12005 = vmatprep.subr.bf16.mxu1 %v20629_v18 }
 0x450   :  { %11979 = vmatpush3.bf16.msra.mxu0 %v20630_v34 }
 0x451   :  { %11981 = vmatprep.subr.bf16.mxu0 %v20631_v43  ;;  %12007 = vmatpush3.bf16.msra.mxu1 %v20632_v39 }
 0x452   :  { %12009 = vmatprep.subr.bf16.mxu1 %v20633_v50 }
 0x454   :  { %11983 = vmatpush3.bf16.msra.mxu0 %v20634_v6 }
 0x455   :  { %11985 = vmatprep.subr.bf16.mxu0 %v20635_v10  ;;  %12011 = vmatpush3.bf16.msra.mxu1 %v20636_v22 }
 0x456   :  { %12013 = vmatprep.subr.bf16.mxu1 %v20637_v8 }
 0x458   :  { %11987 = vmatpush3.bf16.msra.mxu0 %v20638_v52 }
 0x459   :  { %12021 = vmatprep.subr.bf16.mxu0 %v20639_v26  ;;  %12015 = vmatpush3.bf16.msra.mxu1 %v20640_v0 }
 0x45a   :  { %12017 = vmatprep.subr.bf16.mxu1 %v20641_v54 }
 0x45d   :  { %12019 = vmatpush3.bf16.msra.mxu1 %v20642_v37 }
 0x45e   :  { %12053 = vmatprep.subr.bf16.mxu1 %v20617_v41 }
 0x4b1   :  { %v1675_v44 = vpop.f32.mrb[32].mxu1 }
 0x4b2   :  { %v1677_v15 = vpop.f32.mrb[33].mxu1  ;;  %1764 = vrot.lane.b32.xlu1 %v1675_v44, %s14170_s15 }
 0x4b3   :  { %v1679_v48 = vpop.f32.mrb[34].mxu1 }
 0x4b4   :  { %v1680_v5 = vpop.f32.mrb[35].mxu1 }
 0x4c6   :  { %v1716_v16 = vpop.f32.mrb[40].mxu0 }
 0x4c7   :  { %1768 = vrot.lane.b32.xlu0 %v1716_v16, %s14170_s15  ;;  %v1718_v45 = vpop.f32.mrb[41].mxu0 }
 0x4c8   :  { %v1720_v56 = vpop.f32.mrb[42].mxu0  ;;  %1770 = vrot.lane.b32.xlu1 %v1718_v45, %s14170_s15 }
 0x4c9   :  { %v1721_v32 = vpop.f32.mrb[43].mxu0 }
 0x4cb   :  { %1766 = vrot.lane.b32.xlu0 %v1677_v15, %s14170_s15  ;;  %v1757_v49 = vpop.f32.mrb[36].mxu1 }
 0x4cc   :  { %v1759_v27 = vpop.f32.mrb[37].mxu1 }
 0x4cd   :  { %1774 = vrot.lane.b32.xlu1 %v1759_v27, %s14170_s15  ;;  %v1761_v14 = vpop.f32.mrb[38].mxu1 }
 0x4ce   :  { %v1762_v29 = vpop.f32.mrb[39].mxu1 }
 0x4de   :  { %v1821_v25 = vpop.f32.mrb[44].mxu0 }
 0x4df   :  { %v1823_v24 = vpop.f32.mrb[45].mxu0 }
 0x4e0   :  { %v1825_v3 = vpop.f32.mrb[46].mxu0 }
 0x4e1   :  { %v1826_v23 = vpop.f32.mrb[47].mxu0 }
 0x4e3   :  { %v1862_v55 = vpop.f32.mrb[40].mxu1 }
 0x4e4   :  { %v1864_v40 = vpop.f32.mrb[41].mxu1 }
 0x4e5   :  { %v1866_v51 = vpop.f32.mrb[42].mxu1 }
 0x4e6   :  { %v1867_v61 = vpop.f32.mrb[43].mxu1 }
 0x4f6   :  { %v15897_v36 = vpop.f32.mrb[48].mxu0 }
 0x4f7   :  { %v1905_v4 = vpop.f32.mrb[49].mxu0 }
 0x4f8   :  { %v1907_v59 = vpop.f32.mrb[50].mxu0 }
 0x4f9   :  { %v1908_v58 = vpop.f32.mrb[51].mxu0 }
 0x4fb   :  { %v1955_v9 = vpop.f32.mrb[44].mxu1 }
 0x4fc   :  { %2044 = vrot.lane.b32.xlu0 %v1955_v9, %s14176_s20  ;;  %v1957_v38 = vpop.f32.mrb[45].mxu1 }
 0x4fd   :  { %v1959_v17 = vpop.f32.mrb[46].mxu1 }
 0x4fe   :  { %v1960_v13 = vpop.f32.mrb[47].mxu1 }
 0x500   :  { %2046 = vrot.lane.b32.xlu0 %v1957_v38, %s14176_s20 }
 0x50e   :  { %v1996_v20 = vpop.f32.mrb[52].mxu0 }
 0x50f   :  { %v1998_v44 = vpop.f32.mrb[53].mxu0  ;;  %2048 = vrot.lane.b32.xlu1 %v1996_v20, %s14176_s20 }
 0x510   :  { %v2000_v15 = vpop.f32.mrb[54].mxu0 }
 0x511   :  { %v2001_v48 = vpop.f32.mrb[55].mxu0 }
 0x513   :  { %2050 = vrot.lane.b32.xlu1 %v1998_v44, %s14176_s20  ;;  %v2037_v5 = vpop.f32.mrb[48].mxu1 }
 0x514   :  { %2052 = vrot.lane.b32.xlu0 %v2037_v5, %s14176_s20  ;;  %v2039_v16 = vpop.f32.mrb[49].mxu1 }
 0x515   :  { %v2041_v45 = vpop.f32.mrb[50].mxu1 }
 0x516   :  { %v2042_v56 = vpop.f32.mrb[51].mxu1  ;;  %v20643_v45 = vld [vmem:[#allocation32_spill] sm:$0xff] }
 0x517   :  { %1772 = vrot.lane.b32.xlu1 %v1757_v49, %s14170_s15 }
 0x518   :  { %2054 = vrot.lane.b32.xlu0 %v2039_v16, %s14176_s20 }
 0x524   :  { %v1765_v27 = vpop.permute.xlu1 %1764 }
 0x539   :  { %v1769_v32 = vpop.permute.xlu0 %1768 }
 0x53a   :  { %v1771_v29 = vpop.permute.xlu1 %1770 }
 0x53b   :  { %v1778_v44 = vsel %vm179_vm2, %v1769_v32, %v1771_v29 }
 0x53c   :  { %v1913_v5 = vadd.f32 %v1864_v40, %v1778_v44  ;;  %v20652_v44 = vld [vmem:[#allocation41_spill] sm:$0xff] }
 0x53d   :  { %v1767_v14 = vpop.permute.xlu0 %1766 }
 0x53e   :  { %v1780_v51 = vsel %vm179_vm2, %v1765_v27, %v1767_v14  ;;  %v1779_v13 = vsel %vm179_vm2, %v1767_v14, %v1769_v32 }
 0x53f   :  { %v1775_v23 = vpop.permute.xlu1 %1774  ;;  %v1911_v58 = vadd.f32 %v1823_v24, %v1780_v51  ;;  %v1912_v24 = vadd.f32 %v1862_v55, %v1779_v13  ;;  %v20651_v13 = vld [vmem:[#allocation40_spill] sm:$0xff] }
 0x540   :  { %v1781_v59 = vsel %vm179_vm2, %v1775_v23, %v1765_v27  ;;  %v20644_v27 = vld [vmem:[#allocation33_spill] sm:$0xff] }
 0x541   :  { %v1910_v38 = vadd.f32 %v1821_v25, %v1781_v59  ;;  %v20645_v59 = vld [vmem:[#allocation34_spill] sm:$0xff] }
 0x56e   :  { %v2045_v3 = vpop.permute.xlu0 %2044 }
 0x572   :  { %v2047_v61 = vpop.permute.xlu0 %2046 }
 0x573   :  { %v2060_v9 = vsel %vm274_vm11, %v2045_v3, %v2047_v61 }
 0x574   :  { %v15920_v15 = vadd.f32 %v2060_v9, %v1910_v38  ;;  %v20648_v38 = vld [vmem:[#allocation37_spill] sm:$0xff] }
 0x581   :  { %v2049_v49 = vpop.permute.xlu1 %2048 }
 0x582   :  { %v2059_v17 = vsel %vm274_vm11, %v2047_v61, %v2049_v49 }
 0x583   :  { %v15916_v20 = vadd.f32 %v2059_v17, %v1911_v58  ;;  %v20650_v17 = vld [vmem:[#allocation39_spill] sm:$0xff] }
 0x585   :  { %v2051_v48 = vpop.permute.xlu1 %2050  ;;  %2134 = vmatprep.mubr.f32.mxu0 %v15916_v20  ;;  %v2281_v58 = vmul.f32 %v15916_v20, %v15916_v20 }
 0x586   :  { %v2058_v25 = vsel %vm274_vm11, %v2049_v49, %v2051_v48  ;;  %2135 = vmatmul.mubr.f32.vlgmr.msra.gmra.mrb[56].mxu0 %v15920_v15  ;;  %v2053_v16 = vpop.permute.xlu0 %2052  ;;  %v20646_v49 = vld [vmem:[#allocation35_spill] sm:$0xff] }
 0x587   :  { %12023 = vmatpush3.bf16.msra.mxu0 %v20643_v45  ;;  %v15927_v56 = vadd.f32 %v2058_v25, %v1912_v24  ;;  %v2057_v32 = vsel %vm274_vm11, %v2051_v48, %v2053_v16  ;;  %v20653_v48 = vld [vmem:[#allocation42_spill] sm:$0xff]  ;;  %v20654_v24 = vld [vmem:[#allocation43_spill] sm:$0xff] }
 0x588   :  { %12025 = vmatprep.subr.bf16.mxu0 %v20644_v27  ;;  %v15932_v51 = vadd.f32 %v2057_v32, %v1913_v5  ;;  %v20655_v5 = vld [vmem:[#allocation44_spill] sm:$0xff] }
 0x589   :  { %v1773_v14 = vpop.permute.xlu1 %1772 }
 0x58a   :  { %v1776_v55 = vsel %vm179_vm2, %v1773_v14, %v1775_v23  ;;  %2204 = vmatprep.mubr.f32.mxu1 %v15932_v51  ;;  %v2055_v40 = vpop.permute.xlu0 %2054  ;;  %v1777_v25 = vsel %vm179_vm2, %v1771_v29, %v1773_v14 }
 0x58b   :  { %v1915_v61 = vadd.f32 %v1905_v4, %v1776_v55  ;;  %12027 = vmatpush3.bf16.msra.mxu0 %v20645_v59  ;;  %v2061_v9 = vsel %vm274_vm11, %v2055_v40, %v2045_v3  ;;  %2205 = vmatmul.mubr.f32.vlgmr.msra.gmra.mrb[52].mxu1 %v15927_v56  ;;  %v20647_v4 = vld [vmem:[#allocation36_spill] sm:$0xff]  ;;  %v20649_v3 = vld [vmem:[#allocation38_spill] sm:$0xff]  ;;  %v1914_v32 = vadd.f32 %v15897_v36, %v1777_v25  ;;  %v20656_v55 = vld [vmem:[#allocation45_spill] sm:$0xff] }
 0x58c   :  { %12029 = vmatprep.subr.bf16.mxu0 %v20646_v49  ;;  %12055 = vmatpush3.bf16.msra.mxu1 %v20618_v35  ;;  %v2283_v36 = vmul.f32 %v15932_v51, %v15932_v51 }
 0x58d   :  { %2350 = vmatprep.mubr.f32.mxu1 %v2281_v58  ;;  %v15945_v23 = vadd.f32 %v2061_v9, %v1915_v61  ;;  %12057 = vmatprep.subr.bf16.mxu1 %v20619_v47  ;;  %v2056_v61 = vsel %vm274_vm11, %v2053_v16, %v2055_v40  ;;  %v20657_v58 = vld [vmem:[#allocation46_spill] sm:$0xff]  ;;  %v2280_v16 = vmul.f32 %v15920_v15, %v15920_v15 }
 0x58e   :  { %v15975_v29 = vadd.f32 %v2056_v61, %v1914_v32  ;;  %v2282_v40 = vmul.f32 %v15927_v56, %v15927_v56 }
 0x58f   :  { %12031 = vmatpush3.bf16.msra.mxu0 %v20647_v4  ;;  %2274 = vmatprep.mubr.f32.mxu0 %v15945_v23  ;;  %v2285_v14 = vmul.f32 %v15945_v23, %v15945_v23 }
 0x590   :  { %12033 = vmatprep.subr.bf16.mxu0 %v20648_v38  ;;  %12059 = vmatpush3.bf16.msra.mxu1 %v20620_v46  ;;  %v2284_v9 = vmul.f32 %v15975_v29, %v15975_v29 }
 0x591   :  { %12061 = vmatprep.subr.bf16.mxu1 %v20621_v12 }
 0x593   :  { %12035 = vmatpush3.bf16.msra.mxu0 %v20649_v3 }
 0x594   :  { %12037 = vmatprep.subr.bf16.mxu0 %v20650_v17  ;;  %12063 = vmatpush3.bf16.msra.mxu1 %v20622_v31 }
 0x595   :  { %12065 = vmatprep.subr.bf16.mxu1 %v20623_v63 }
 0x597   :  { %12039 = vmatpush3.bf16.msra.mxu0 %v20651_v13 }
 0x598   :  { %12041 = vmatprep.subr.bf16.mxu0 %v20652_v44  ;;  %12067 = vmatpush3.bf16.msra.mxu1 %v20624_v11 }
 0x599   :  { %12069 = vmatprep.subr.bf16.mxu1 %v20625_v2 }
 0x59b   :  { %12043 = vmatpush3.bf16.msra.mxu0 %v20653_v48 }
 0x59c   :  { %12045 = vmatprep.subr.bf16.mxu0 %v20654_v24  ;;  %12071 = vmatpush3.bf16.msra.mxu1 %v20626_v33 }
 0x59d   :  { %12073 = vmatprep.subr.bf16.mxu1 %v20627_v19 }
 0x59f   :  { %12047 = vmatpush3.bf16.msra.mxu0 %v20655_v5 }
 0x5a0   :  { %12049 = vmatprep.subr.bf16.mxu0 %v20656_v55  ;;  %12075 = vmatpush3.bf16.msra.mxu1 %v20630_v34 }
 0x5a1   :  { %12077 = vmatprep.subr.bf16.mxu1 %v20631_v43 }
 0x5a3   :  { %12051 = vmatpush3.bf16.msra.mxu0 %v20657_v58 }
 0x5a4   :  { %12085 = vmatprep.subr.bf16.mxu0 %v14714_v30  ;;  %12079 = vmatpush3.bf16.msra.mxu1 %v20634_v6 }
 0x5a5   :  { %12081 = vmatprep.subr.bf16.mxu1 %v20635_v10 }
 0x5a6   :  { %2275 = vmatmul.mubr.f32.vlgmr.msra.gmra.mrb[58].mxu0 %v15975_v29 }
 0x5a7   :  { %12087 = vmatpush3.bf16.msra.mxu0 %v14746_v57  ;;  %2420 = vmatprep.mubr.f32.mxu0 %v2283_v36 }
 0x5a8   :  { %12089 = vmatprep.subr.bf16.mxu0 %v14749_v1  ;;  %12083 = vmatpush3.bf16.msra.mxu1 %v20638_v52 }
 0x5a9   :  { %12117 = vmatprep.subr.bf16.mxu1 %v20639_v26 }
 0x5ab   :  { %12091 = vmatpush3.bf16.msra.mxu0 %v14785_v21  ;;  %2351 = vmatmul.mubr.f32.vlgmr.msra.gmra.mrb[54].mxu1 %v2280_v16 }
 0x5ac   :  { %12093 = vmatprep.subr.bf16.mxu0 %v14788_v42  ;;  %12119 = vmatpush3.bf16.msra.mxu1 %v20643_v45 }
 0x5ad   :  { %2490 = vmatprep.mubr.f32.mxu1 %v2285_v14  ;;  %12121 = vmatprep.subr.bf16.mxu1 %v20644_v27  ;;  %v20661_v27 = vld [vmem:[#allocation52_spill] sm:$0xff] }
 0x5af   :  { %12095 = vmatpush3.bf16.msra.mxu0 %v14821_v53 }
 0x5b0   :  { %12097 = vmatprep.subr.bf16.mxu0 %v14824_v60  ;;  %12123 = vmatpush3.bf16.msra.mxu1 %v20645_v59 }
 0x5b1   :  { %12125 = vmatprep.subr.bf16.mxu1 %v20646_v49 }
 0x5b3   :  { %12099 = vmatpush3.bf16.msra.mxu0 %v20628_v28 }
 0x5b4   :  { %12101 = vmatprep.subr.bf16.mxu0 %v20629_v18  ;;  %12127 = vmatpush3.bf16.msra.mxu1 %v20647_v4 }
 0x5b5   :  { %12129 = vmatprep.subr.bf16.mxu1 %v20648_v38 }
 0x5b7   :  { %12103 = vmatpush3.bf16.msra.mxu0 %v20632_v39 }
 0x5b8   :  { %12105 = vmatprep.subr.bf16.mxu0 %v20633_v50  ;;  %12131 = vmatpush3.bf16.msra.mxu1 %v20649_v3 }
 0x5b9   :  { %12133 = vmatprep.subr.bf16.mxu1 %v20650_v17 }
 0x5bb   :  { %12107 = vmatpush3.bf16.msra.mxu0 %v20636_v22 }
 0x5bc   :  { %12109 = vmatprep.subr.bf16.mxu0 %v20637_v8  ;;  %12135 = vmatpush3.bf16.msra.mxu1 %v20651_v13 }
 0x5bd   :  { %12137 = vmatprep.subr.bf16.mxu1 %v20652_v44 }
 0x5bf   :  { %12111 = vmatpush3.bf16.msra.mxu0 %v20640_v0 }
 0x5c0   :  { %12113 = vmatprep.subr.bf16.mxu0 %v20641_v54  ;;  %12139 = vmatpush3.bf16.msra.mxu1 %v20653_v48 }
 0x5c1   :  { %12141 = vmatprep.subr.bf16.mxu1 %v20654_v24 }
 0x5c3   :  { %12115 = vmatpush3.bf16.msra.mxu0 %v20642_v37 }
 0x5c4   :  { %12143 = vmatpush3.bf16.msra.mxu1 %v20655_v5 }
 0x5c5   :  { %12145 = vmatprep.subr.bf16.mxu1 %v20656_v55 }
 0x5c6   :  { %2421 = vmatmul.mubr.f32.vlgmr.msra.gmra.mrb[60].mxu0 %v2282_v40 }
 0x5c7   :  { %2956 = vmatprep.mubr.bf16.mxu0 %v20596_v7 }
 0x5c8   :  { %12147 = vmatpush3.bf16.msra.mxu1 %v20657_v58 }
 0x5cb   :  { %2491 = vmatmul.mubr.f32.vlgmr.msra.gmra.mrb[56].mxu1 %v2284_v9  ;;  %v2069_v9 = vld [vmem:[%s20118_s8] sm:$0x7] }
 0x5cc   :  { %3009 = vmatprep.mubr.bf16.mxu1 %v20596_v7 }
 0x659   :  { %v10164_v25 = vpop.f32.mrb[56].mxu0 }
 0x65a   :  { %v10165_v32 = vpop.f32.mrb[57].mxu0 }
 0x65b   :  { %v10166_v61 = vadd.f32 %v10165_v32, %v10164_v25 }
 0x65e   :  { %v10199_v36 = vpop.f32.mrb[52].mxu1 }
 0x65f   :  { %v10200_v16 = vpop.f32.mrb[53].mxu1 }
 0x660   :  { %v10201_v14 = vadd.f32 %v10200_v16, %v10199_v36 }
 0x662   :  { %v2207_v5 = vadd.f32 %v10201_v14, %v10166_v61 }
 0x679   :  { %v10234_v40 = vpop.f32.mrb[58].mxu0 }
 0x67a   :  { %v10235_v24 = vpop.f32.mrb[59].mxu0 }
 0x67b   :  { %v10236_v55 = vadd.f32 %v10235_v24, %v10234_v40 }
 0x67d   :  { %v2277_v48 = vadd.f32 %v10236_v55, %v2207_v5 }
 0x67e   :  { %v10269_v13 = vpop.f32.mrb[54].mxu1 }
 0x67f   :  { %v2496_v44 = vmul.f32 0.001953125, %v2277_v48  ;;  %v10270_v58 = vpop.f32.mrb[55].mxu1 }
 0x680   :  { %v10271_v17 = vadd.f32 %v10270_v58, %v10269_v13  ;;  %v2068_v13 = vld [vmem:[%s20119_s7] sm:$0x7] }
 0x681   :  { %2506 = vperm.xlu1 %13394, %v2496_v44   ;;  %v2498_v24 = vmul.f32 %v2496_v44, %v2496_v44 }
 0x685   :  { %2528 = vperm.xlu1 %13394, %v2069_v9  }
 0x699   :  { %v10304_v3 = vpop.f32.mrb[60].mxu0 }
 0x69a   :  { %v10305_v25 = vpop.f32.mrb[61].mxu0 }
 0x69b   :  { %v10306_v32 = vadd.f32 %v10305_v25, %v10304_v3 }
 0x69d   :  { %v2423_v38 = vadd.f32 %v10306_v32, %v10271_v17 }
 0x69e   :  { %v10339_v36 = vpop.f32.mrb[56].mxu1 }
 0x69f   :  { %v10340_v61 = vpop.f32.mrb[57].mxu1 }
 0x6a0   :  { %v10341_v16 = vadd.f32 %v10340_v61, %v10339_v36 }
 0x6a2   :  { %v2493_v14 = vadd.f32 %v10341_v16, %v2423_v38 }
 0x6a4   :  { %v2497_v5 = vmul.f32 0.001953125, %v2493_v14 }
 0x6a6   :  { %v2499_v48 = vsub.f32 %v2497_v5, %v2498_v24 }
 0x6a8   :  { %v2500_v55 = vmax.f32 %v2499_v48, 0.0 }
 0x6aa   :  { %v2501_v40 = vadd.f32 1e-05, %v2500_v55 }
 0x6ac   :  { %14138 = vrsqrt.f32 %v2501_v40 }
 0x6b6   :  { %v14139_v58 = vpop.eup %14138 }
 0x6b7   :  { %v2503_v9 = vmul.f32 %v14139_v58, %v2068_v13 }
 0x6b9   :  { %2517 = vperm.xlu0 %13395, %v2503_v9  }
 0x700   :  { %v2507_v4 = vpop.permute.xlu1 %2506 }
 0x701   :  { %v2509_v3 = vsub.f32 %v15920_v15, %v2507_v4  ;;  %v2510_v17 = vsub.f32 %v15916_v20, %v2507_v4  ;;  %v2511_v38 = vsub.f32 %v15927_v56, %v2507_v4  ;;  %v2514_v44 = vsub.f32 %v15945_v23, %v2507_v4  ;;  %v20658_v56 = vld [vmem:[#allocation47_spill] sm:$0xff]  ;;  %v20659_v23 = vld [vmem:[#allocation48_spill] sm:$0xff] }
 0x702   :  { %v2512_v16 = vsub.f32 %v15932_v51, %v2507_v4 }
 0x704   :  { %v2529_v14 = vpop.permute.xlu1 %2528 }
 0x738   :  { %v2518_v25 = vpop.permute.xlu0 %2517 }
 0x739   :  { %v2520_v32 = vmul.f32 %v2518_v25, %v2509_v3  ;;  %v2521_v36 = vmul.f32 %v2518_v25, %v2510_v17  ;;  %v2522_v61 = vmul.f32 %v2518_v25, %v2511_v38  ;;  %v2525_v24 = vmul.f32 %v2518_v25, %v2514_v44  ;;  %v20660_v3 = vld [vmem:[#allocation49_spill] sm:$0xff] }
 0x73a   :  { %v2523_v40 = vmul.f32 %v2518_v25, %v2512_v16 }
 0x73b   :  { %v2531_v5 = vadd.f32 %v2529_v14, %v2520_v32  ;;  %v2532_v48 = vadd.f32 %v2529_v14, %v2521_v36  ;;  %v2533_v55 = vadd.f32 %v2529_v14, %v2522_v61  ;;  %v2536_v13 = vadd.f32 %v2529_v14, %v2525_v24 }
 0x73c   :  { %v2534_v38 = vadd.f32 %v2529_v14, %v2523_v40  ;;  %v2513_v40 = vsub.f32 %v15975_v29, %v2507_v4 }
 0x73d   :  { %v2537_v15 = vmax.f32 %v2531_v5, 0.0  ;;  %v2538_v58 = vmax.f32 %v2532_v48, 0.0  ;;  %v2539_v20 = vmax.f32 %v2533_v55, 0.0  ;;  %v2542_v9 = vmax.f32 %v2536_v13, 0.0 }
 0x73e   :  { %v2540_v24 = vmax.f32 %v2534_v38, 0.0  ;;  %v2524_v13 = vmul.f32 %v2518_v25, %v2513_v40  ;;  %v20663_v25 = vld [vmem:[#allocation51_spill] sm:$0xff] }
 0x73f   :  { %v2543_v49 = vmul.f32 %v2537_v15, %v20658_v56  ;;  %v2544_v59 = vmul.f32 %v2538_v58, %v20659_v23  ;;  %v2545_v17 = vmul.f32 %v2539_v20, %v20660_v3  ;;  %v2548_v51 = vmul.f32 %v2542_v9, %v20661_v27 }
 0x740   :  { %v2535_v58 = vadd.f32 %v2529_v14, %v2524_v13 }
 0x741   :  { %v2549_v45 = vmul.f32 2.0, %v2543_v49  ;;  %v2550_v44 = vmul.f32 2.0, %v2544_v59  ;;  %v2551_v32 = vmul.f32 2.0, %v2545_v17  ;;  %v2554_v36 = vmul.f32 2.0, %v2548_v51  ;;  %v20662_v59 = vld [vmem:[#allocation50_spill] sm:$0xff]  ;;  %v9783_v51 = vld [vmem:[%s20114_s5 + $0x28] sm:$0xff] }
 0x742   :  { %v2541_v4 = vmax.f32 %v2535_v58, 0.0 }
 0x743   :  { %v16041_v61 = vadd.f32 %v2549_v45, %v20658_v56  ;;  %v16044_v16 = vadd.f32 %v2550_v44, %v20659_v23  ;;  %v16047_v5 = vadd.f32 %v2551_v32, %v20660_v3  ;;  %v16050_v48 = vadd.f32 %v2554_v36, %v20661_v27  ;;  %v9782_v44 = vld [vmem:[%s20114_s5 + $0x20] sm:$0xff] }
 0x744   :  { %v2546_v45 = vmul.f32 %v2540_v24, %v20662_v59  ;;  %v2547_v9 = vmul.f32 %v2541_v4, %v20663_v25 }
 0x745   :  { %v13521_v55 = vpack.i.bf16 %v16044_v16, %v16041_v61  ;;  %v13531_v49 = vpack.i.bf16 %v16047_v5, %v16050_v48  ;;  %v13546_v29 = vpack.i.bf16 %v16047_v5, %v16044_v16 }
 0x746   :  { %v2552_v15 = vmul.f32 2.0, %v2546_v45  ;;  %v2553_v17 = vmul.f32 2.0, %v2547_v9 }
 0x747   :  { %13522 = vrot.lane.b32.xlu1 %v13521_v55, %s14172_s17  ;;  %13517 = vrot.lane.b32.xlu0 %v13521_v55, %s14171_s16 }
 0x748   :  { %v16065_v20 = vadd.f32 %v2552_v15, %v20662_v59  ;;  %v16084_v38 = vadd.f32 %v2553_v17, %v20663_v25 }
 0x74a   :  { %v13556_v14 = vpack.i.bf16 %v16065_v20, %v16041_v61 }
 0x74b   :  { %13532 = vrot.lane.b32.xlu1 %v13531_v49, %s14171_s16  ;;  %13527 = vrot.lane.b32.xlu0 %v13521_v55, %s14170_s15 }
 0x74f   :  { %13542 = vrot.lane.b32.xlu1 %v13531_v49, %s14170_s15  ;;  %13537 = vrot.lane.b32.xlu0 %v13531_v49, %s14172_s17 }
 0x753   :  { %2626 = vrot.lane.b32.xlu1 %v16065_v20, %s14172_s17  ;;  %2608 = vrot.lane.b32.xlu0 %v16065_v20, %s14171_s16 }
 0x757   :  { %13552 = vrot.lane.b32.xlu1 %v13521_v55, %s14173_s0  ;;  %13547 = vrot.lane.b32.xlu0 %v13546_v29, %s14174_s18 }
 0x75b   :  { %13557 = vrot.lane.b32.xlu1 %v13556_v14, %s14174_s18  ;;  %2590 = vrot.lane.b32.xlu0 %v16065_v20, %s14170_s15 }
 0x75f   :  { %13567 = vrot.lane.b32.xlu1 %v13531_v49, %s14173_s0  ;;  %13562 = vrot.lane.b32.xlu0 %v13546_v29, %s14175_s19 }
 0x763   :  { %13572 = vrot.lane.b32.xlu1 %v13556_v14, %s14175_s19  ;;  %2646 = vrot.lane.b32.xlu0 %v16084_v38, %s14174_s18 }
 0x767   :  { %2572 = vrot.lane.b32.xlu1 %v16065_v20, %s14173_s0  ;;  %13577 = vrot.lane.b32.xlu0 %v13546_v29, %s14176_s20 }
 0x76b   :  { %13582 = vrot.lane.b32.xlu1 %v13556_v14, %s14176_s20  ;;  %2664 = vrot.lane.b32.xlu0 %v16084_v38, %s14175_s19 }
 0x76f   :  { %13587 = vrot.lane.b32.xlu1 %v13546_v29, %s14177_s21  ;;  %2682 = vrot.lane.b32.xlu0 %v16084_v38, %s14176_s20 }
 0x773   :  { %2700 = vrot.lane.b32.xlu1 %v16084_v38, %s14177_s21  ;;  %13592 = vrot.lane.b32.xlu0 %v13556_v14, %s14177_s21 }
 0x777   :  { %2628 = vrot.lane.b32.xlu1 %v16084_v38, %s14172_s17  ;;  %2610 = vrot.lane.b32.xlu0 %v16084_v38, %s14171_s16 }
 0x77b   :  { %2648 = vrot.lane.b32.xlu1 %v16050_v48, %s14174_s18  ;;  %2592 = vrot.lane.b32.xlu0 %v16084_v38, %s14170_s15 }
 0x77f   :  { %2666 = vrot.lane.b32.xlu1 %v16050_v48, %s14175_s19  ;;  %2574 = vrot.lane.b32.xlu0 %v16084_v38, %s14173_s0 }
 0x783   :  { %2702 = vrot.lane.b32.xlu1 %v16050_v48, %s14177_s21  ;;  %2684 = vrot.lane.b32.xlu0 %v16050_v48, %s14176_s20 }
 0x787   :  { %3754 = vperm.xlu1 %13394, %v9783_v51   ;;  %3749 = vperm.xlu0 %13395, %v9782_v44  }
 0x7b9   :  { %v13523_v32 = vpop.permute.xlu1 %13522  ;;  %v16123_v36 = vpop.permute.xlu0 %13517 }
 0x7ba   :  { %v13525_v45 = vunpack.i.h.bf16 %v13523_v32  ;;  %v13524_v49 = vunpack.i.l.bf16 %v13523_v32  ;;  %v13520_v40 = vunpack.i.h.bf16 %v16123_v36  ;;  %v13519_v13 = vunpack.i.l.bf16 %v16123_v36 }
 0x7bc   :  { %v2636_v4 = vsel %vm217_vm0, %v13524_v49, %v13525_v45  ;;  %v2618_v29 = vsel %vm198_vm1, %v13519_v13, %v13520_v40 }
 0x7bd   :  { %v16125_v24 = vpop.permute.xlu1 %13532  ;;  %v13528_v55 = vpop.permute.xlu0 %13527  ;;  %v2753_v32 = vrot.slane %v2636_v4, 7  ;;  %v2735_v36 = vrot.slane %v2618_v29, 2  ;;  %v2771_v29 = vrot.slane %v16044_v16, 4 }
 0x7be   :  { %v13530_v9 = vunpack.i.h.bf16 %v13528_v55  ;;  %v13529_v14 = vunpack.i.l.bf16 %v13528_v55  ;;  %v20664_v8 = vunpack.i.l.bf16 %v16125_v24 }
 0x7bf   :  { %v2849_v25 = vsel %vm20271_vm3, %v2735_v36, %v2753_v32 }
 0x7c0   :  { %v2600_v59 = vsel %vm179_vm2, %v13529_v14, %v13530_v9  ;;  %v2619_v22 = vsel %vm198_vm1, %v20664_v8, %v13519_v13  ;;  %v13535_v13 = vunpack.i.h.bf16 %v16125_v24  ;;  %v2855_v26 = vsel %vm435_vm4, %v2849_v25, %v2771_v29 }
 0x7c1   :  { %v16129_v15 = vpop.permute.xlu1 %13542  ;;  %v16131_v58 = vpop.permute.xlu0 %13537  ;;  %v2717_v0 = vrot.slane %v2600_v59, 5  ;;  %v2734_v52 = vrot.slane %v2619_v22, 2 }
 0x7c2   :  { %v20257_v17 = vunpack.i.l.bf16 %v16131_v58  ;;  %v13540_v59 = vunpack.i.h.bf16 %v16131_v58  ;;  %v20665_v18 = vunpack.i.l.bf16 %v16129_v15 }
 0x7c4   :  { %v2637_v3 = vsel %vm217_vm0, %v20257_v17, %v13524_v49  ;;  %v13545_v49 = vunpack.i.h.bf16 %v16129_v15 }
 0x7c5   :  { %v16138_v51 = vpop.permute.xlu1 %2626  ;;  %v16140_v44 = vpop.permute.xlu0 %2608 }
 0x7c9   :  { %v13553_v27 = vpop.permute.xlu1 %13552  ;;  %v13548_v55 = vpop.permute.xlu0 %13547 }
 0x7ca   :  { %v13555_v56 = vunpack.i.h.bf16 %v13553_v27  ;;  %v13554_v23 = vunpack.i.l.bf16 %v13553_v27  ;;  %v13550_v37 = vunpack.i.h.bf16 %v13548_v55  ;;  %v13549_v54 = vunpack.i.l.bf16 %v13548_v55 }
 0x7cb   :  { %v2752_v55 = vrot.slane %v2637_v3, 7  ;;  %v2601_v3 = vsel %vm179_vm2, %v20665_v18, %v13529_v14  ;;  %v2599_v18 = vsel %vm179_vm2, %v13530_v9, %v13545_v49 }
 0x7cc   :  { %v2582_v17 = vsel %vm160_vm5, %v13554_v23, %v13555_v56  ;;  %v16161_v27 = vsel %vm236_vm6, %v13549_v54, %v13550_v37 }
 0x7cd   :  { %v20264_v16 = vrot.slane %v16161_v27, 1  ;;  %v16165_v32 = vpop.permute.xlu1 %13557  ;;  %v16167_v4 = vpop.permute.xlu0 %2590  ;;  %v2837_v8 = vsel %vm414_vm7, %v2582_v17, %v2717_v0  ;;  %v2634_v0 = vsel %vm217_vm0, %v13540_v59, %v16138_v51  ;;  %v2616_v17 = vsel %vm198_vm1, %v13535_v13, %v16140_v44 }
 0x7ce   :  { %v20265_v50 = vunpack.i.l.bf16 %v16165_v32  ;;  %v2843_v39 = vsel %vm421_vm8, %v2837_v8, %v2735_v36  ;;  %v2848_v14 = vsel %vm20271_vm3, %v2734_v52, %v2752_v55  ;;  %v13560_v8 = vunpack.i.h.bf16 %v16165_v32 }
 0x7cf   :  { %v2861_v28 = vsel %vm442_vm9, %v2855_v26, %v20264_v16  ;;  %v2635_v26 = vsel %vm217_vm0, %v13525_v45, %v13540_v59  ;;  %v2755_v9 = vrot.slane %v2634_v0, 7  ;;  %v2770_v45 = vrot.slane %v16041_v61, 4 }
 0x7d0   :  { %v16191_v22 = vsel %vm236_vm6, %v20265_v50, %v13549_v54  ;;  %v2879_v25 = vpack.c.bf16 %v2861_v28, %v2843_v39  ;;  %v2716_v39 = vrot.slane %v2601_v3, 5  ;;  %v2737_v50 = vrot.slane %v2616_v17, 2 }
 0x7d1   :  { %v16198_v36 = vpop.permute.xlu1 %13567  ;;  %v16200_v29 = vpop.permute.xlu0 %13562  ;;  %v2617_v59 = vsel %vm198_vm1, %v13520_v40, %v13535_v13  ;;  %v2718_v55 = vrot.slane %v2599_v18, 5  ;;  %v2754_v10 = vrot.slane %v2635_v26, 7  ;;  %v2598_v6 = vsel %vm179_vm2, %v13545_v49, %v16167_v4 }
 0x7d2   :  { %v13570_v54 = vunpack.i.h.bf16 %v16198_v36  ;;  %v20268_v28 = vunpack.i.l.bf16 %v16198_v36  ;;  %2924 = vmatprep.subr.bf16.mxu0 %v2879_v25  ;;  %v2854_v40 = vsel %vm435_vm4, %v2848_v14, %v2770_v45  ;;  %v16226_v13 = vsel %vm236_vm6, %v13550_v37, %v13560_v8 }
 0x7d3   :  { %v2736_v25 = vrot.slane %v2617_v59, 2  ;;  %v2851_v18 = vsel %vm20271_vm3, %v2737_v50, %v2755_v9  ;;  %v2773_v14 = vrot.slane %v16065_v20, 4  ;;  %v13564_v45 = vunpack.i.l.bf16 %v16200_v29 }
 0x7d4   :  { %v2583_v16 = vsel %vm160_vm5, %v20268_v28, %v13554_v23  ;;  %v2581_v3 = vsel %vm160_vm5, %v13555_v56, %v13570_v54  ;;  %v20666_v56 = vrot.slane %v16191_v22, 1  ;;  %v2719_v28 = vrot.slane %v2598_v6, 5 }
 0x7d5   :  { %v2836_v0 = vsel %vm414_vm7, %v2583_v16, %v2716_v39  ;;  %v16219_v61 = vpop.permute.xlu1 %13572  ;;  %v16221_v17 = vpop.permute.xlu0 %2646  ;;  %v2838_v37 = vsel %vm414_vm7, %v2581_v3, %v2718_v55  ;;  %v13565_v39 = vunpack.i.h.bf16 %v16200_v29  ;;  %v2772_v9 = vrot.slane %v16047_v5, 4 }
 0x7d6   :  { %v16231_v23 = vsel %vm236_vm6, %v13560_v8, %v16221_v17  ;;  %v2842_v49 = vsel %vm421_vm8, %v2836_v0, %v2734_v52  ;;  %v2860_v16 = vsel %vm442_vm9, %v2854_v40, %v20666_v56  ;;  %v2850_v52 = vsel %vm20271_vm3, %v2736_v25, %v2754_v10 }
 0x7d7   :  { %v2878_v26 = vpack.c.bf16 %v2860_v16, %v2842_v49  ;;  %v2791_v8 = vrot.slane %v16231_v23, 1  ;;  %v2790_v0 = vrot.slane %v16226_v13, 1  ;;  %v20270_v20 = vunpack.i.l.bf16 %v16219_v61 }
 0x7d8   :  { %v13575_v23 = vunpack.i.h.bf16 %v16219_v61  ;;  %v2857_v6 = vsel %vm435_vm4, %v2851_v18, %v2773_v14  ;;  %v2844_v13 = vsel %vm421_vm8, %v2838_v37, %v2736_v25  ;;  %v2671_v49 = vsel %vm255_vm10, %v13564_v45, %v13565_v39 }
 0x7d9   :  { %v16245_v40 = vpop.permute.xlu1 %2572  ;;  %v13578_v59 = vpop.permute.xlu0 %13577  ;;  %2925 = vmatpush1.bf16.msra.mxu0 %v2878_v26  ;;  %v2863_v56 = vsel %vm442_vm9, %v2857_v6, %v2791_v8  ;;  %v2856_v16 = vsel %vm435_vm4, %v2850_v52, %v2772_v9  ;;  %v2672_v25 = vsel %vm255_vm10, %v20270_v20, %v13564_v45  ;;  %v2807_v52 = vrot.slane %v2671_v49, 6 }
 0x7da   :  { %v2580_v55 = vsel %vm160_vm5, %v13570_v54, %v16245_v40  ;;  %v13580_v29 = vunpack.i.h.bf16 %v13578_v59  ;;  %v13579_v3 = vunpack.i.l.bf16 %v13578_v59  ;;  %v2862_v18 = vsel %vm442_vm9, %v2856_v16, %v2790_v0 }
 0x7db   :  { %v2839_v10 = vsel %vm414_vm7, %v2580_v55, %v2719_v28  ;;  %v2880_v37 = vpack.c.bf16 %v2862_v18, %v2844_v13  ;;  %v2670_v9 = vsel %vm255_vm10, %v13565_v39, %v13575_v23  ;;  %v2806_v13 = vrot.slane %v2672_v25, 6 }
 0x7dc   :  { %v2845_v5 = vsel %vm421_vm8, %v2839_v10, %v2737_v50  ;;  %v2689_v54 = vsel %vm274_vm11, %v13579_v3, %v13580_v29  ;;  %v2808_v39 = vrot.slane %v2670_v9, 6 }
 0x7dd   :  { %v16263_v26 = vpop.permute.xlu1 %13582  ;;  %v16265_v59 = vpop.permute.xlu0 %2664  ;;  %v2881_v28 = vpack.c.bf16 %v2863_v56, %v2845_v5  ;;  %v2825_v55 = vrot.slane %v2689_v54, 3 }
 0x7de   :  { %v13585_v50 = vunpack.i.h.bf16 %v16263_v26  ;;  %v20269_v14 = vunpack.i.l.bf16 %v16263_v26  ;;  %v2669_v45 = vsel %vm255_vm10, %v13575_v23, %v16265_v59 }
 0x7df   :  { %2977 = vmatprep.subr.bf16.mxu1 %v2881_v28  ;;  %v2809_v18 = vrot.slane %v2669_v45, 6 }
 0x7e0   :  { %v2688_v10 = vsel %vm274_vm11, %v13580_v29, %v13585_v50  ;;  %v2690_v6 = vsel %vm274_vm11, %v20269_v14, %v13579_v3  ;;  %2978 = vmatpush1.bf16.msra.mxu1 %v2880_v37  ;;  %v20667_v3 = vrot.slane %v16161_v27, 1 }
 0x7e1   :  { %v13588_v49 = vpop.permute.xlu1 %13587  ;;  %v16285_v5 = vpop.permute.xlu0 %2682  ;;  %v2824_v54 = vrot.slane %v2690_v6, 3  ;;  %v2826_v28 = vrot.slane %v2688_v10, 3  ;;  %v20668_v6 = vrot.slane %v16191_v22, 1  ;;  %v2869_v45 = vsel %vm20272_vm12, %v2791_v8, %v2809_v18 }
 0x7e2   :  { %v13590_v56 = vunpack.i.h.bf16 %v13588_v49  ;;  %v13589_v16 = vunpack.i.l.bf16 %v13588_v49  ;;  %v2687_v29 = vsel %vm274_vm11, %v13585_v50, %v16285_v5  ;;  %v2867_v14 = vsel %vm20272_vm12, %v20667_v3, %v2807_v52 }
 0x7e3   :  { %v2827_v23 = vrot.slane %v2687_v29, 3  ;;  %v2873_v37 = vsel %vm456_vm13, %v2867_v14, %v2825_v55  ;;  %v2866_v27 = vsel %vm20272_vm12, %v20668_v6, %v2806_v13  ;;  %v2868_v52 = vsel %vm20272_vm12, %v2790_v0, %v2808_v39  ;;  %v20669_v55 = vld [vmem:[#allocation3_spill] sm:$0xff] }
 0x7e4   :  { %v2707_v25 = vsel %vm293_vm14, %v13589_v16, %v13590_v56  ;;  %v2872_v29 = vsel %vm456_vm13, %v2866_v27, %v2824_v54  ;;  %v2874_v14 = vsel %vm456_vm13, %v2868_v52, %v2826_v28  ;;  %v20670_v18 = vunpack.i.l.bf16 %v16131_v58 }
 0x7e5   :  { %v16296_v9 = vpop.permute.xlu1 %2700  ;;  %v16298_v49 = vpop.permute.xlu0 %13592  ;;  %v2885_v20 = vpack.c.bf16 %v2707_v25, %v2873_v37  ;;  %v2875_v8 = vsel %vm456_vm13, %v2869_v45, %v2827_v23  ;;  %v20671_v37 = vunpack.i.l.bf16 %v16125_v24  ;;  %v2774_v24 = vrot.slane %v16084_v38, 4 }
 0x7e6   :  { %v13595_v50 = vunpack.i.h.bf16 %v16298_v49  ;;  %v13594_v10 = vunpack.i.l.bf16 %v16298_v49  ;;  %v20673_v38 = vunpack.i.l.bf16 %v16129_v15 }
 0x7e7   :  { %v2910_v3 = vand.u32 %v2885_v20, %v20669_v55 }
 0x7e8   :  { %v2706_v25 = vsel %vm293_vm14, %v13590_v56, %v13595_v50  ;;  %v2708_v22 = vsel %vm293_vm14, %v13594_v10, %v13589_v16  ;;  %v2705_v0 = vsel %vm293_vm14, %v13595_v50, %v16296_v9 }
 0x7e9   :  { %v2884_v13 = vpack.c.bf16 %v2708_v22, %v2872_v29  ;;  %v2886_v39 = vpack.c.bf16 %v2706_v25, %v2874_v14  ;;  %v2629_v54 = vpop.permute.xlu1 %2628  ;;  %v2611_v28 = vpop.permute.xlu0 %2610  ;;  %2926 = vmatprep.subr.bf16.mxu0 %v2910_v3  ;;  %v2887_v20 = vpack.c.bf16 %v2705_v0, %v2875_v8  ;;  %v20672_v8 = vunpack.i.l.bf16 %v16165_v32 }
 0x7ea   :  { %v2632_v56 = vsel %vm217_vm0, %v2629_v54, %v20670_v18  ;;  %v2633_v16 = vsel %vm217_vm0, %v16138_v51, %v2629_v54  ;;  %v2614_v23 = vsel %vm198_vm1, %v2611_v28, %v20671_v37  ;;  %v2615_v50 = vsel %vm198_vm1, %v16140_v44, %v2611_v28  ;;  %v16342_v44 = vld [vmem:[%s20112_s3 + $0x10] sm:$0xff]  }
 0x7eb   :  { %v2756_v6 = vrot.slane %v2633_v16, 7  ;;  %v2757_v27 = vrot.slane %v2632_v56, 7  ;;  %v2738_v52 = vrot.slane %v2615_v50, 2  ;;  %v2739_v58 = vrot.slane %v2614_v23, 2 }
 0x7ec   :  { %v2907_v45 = vand.u32 %v2884_v13, %v20669_v55  ;;  %v2916_v29 = vand.u32 %v2887_v20, %v20669_v55  ;;  %v2913_v14 = vand.u32 %v2886_v39, %v20669_v55  ;;  %v20676_v50 = vunpack.i.l.bf16 %v16198_v36 }
 0x7ed   :  { %v2852_v51 = vsel %vm20271_vm3, %v2738_v52, %v2756_v6  ;;  %v2649_v3 = vpop.permute.xlu1 %2648  ;;  %v2593_v25 = vpop.permute.xlu0 %2592  ;;  %v2853_v22 = vsel %vm20271_vm3, %v2739_v58, %v2757_v27  ;;  %vm20674_vm3 = vcmask 220160  }
 0x7ee   :  { %v2650_v0 = vsel %vm236_vm6, %v16221_v17, %v2649_v3  ;;  %v2655_v13 = vsel %vm236_vm6, %v2649_v3, %v20672_v8  ;;  %v2596_v39 = vsel %vm179_vm2, %v2593_v25, %v20673_v38  ;;  %2927 = vmatpush1.bf16.msra.mxu0 %v2907_v45  ;;  %v2597_v20 = vsel %vm179_vm2, %v16167_v4, %v2593_v25  ;;  %v14125_v38 = vld [vmem:[%s20112_s3 + $0x18] sm:$0xff]  }
 0x7ef   :  { %v2792_v54 = vrot.slane %v2650_v0, 1  ;;  %v2793_v28 = vrot.slane %v2655_v13, 1  ;;  %2979 = vmatprep.subr.bf16.mxu1 %v2916_v29  ;;  %v2775_v17 = vrot.slane %v16050_v48, 4  ;;  %v2858_v32 = vsel %vm435_vm4, %v2852_v51, %v2774_v24 }
 0x7f0   :  { %2980 = vmatpush1.bf16.msra.mxu1 %v2913_v14  ;;  %v2720_v18 = vrot.slane %v2597_v20, 5  ;;  %v2721_v56 = vrot.slane %v2596_v39, 5  ;;  %v20675_v48 = vunpack.i.l.bf16 %v16219_v61  ;;  %v20677_v8 = vunpack.i.l.bf16 %v16263_v26 }
 0x7f1   :  { %9772 = vmatmul.mubr.msk.bf16.vlgmr.msra.gmra.mrb[64].mxu0 %vm20674_vm3, %v16342_v44  ;;  %v2667_v15 = vpop.permute.xlu1 %2666  ;;  %v2575_v16 = vpop.permute.xlu0 %2574  ;;  %v2859_v37 = vsel %vm435_vm4, %v2853_v22, %v2775_v17  ;;  %12149 = vmatprep.subr.bf16.mxu1 %v20617_v41  ;;  %v2864_v45 = vsel %vm442_vm9, %v2858_v32, %v2792_v54 }
 0x7f2   :  { %v2668_v4 = vsel %vm255_vm10, %v16265_v59, %v2667_v15  ;;  %v2673_v23 = vsel %vm255_vm10, %v2667_v15, %v20675_v48  ;;  %v2578_v6 = vsel %vm160_vm5, %v2575_v16, %v20676_v50  ;;  %v2579_v27 = vsel %vm160_vm5, %v16245_v40, %v2575_v16  ;;  %2966 = vmatprep.mubr.bf16.mxu0 %v20596_v7  ;;  %v20684_v15 = vld [vmem:[#allocation23_spill] sm:$0xff]  ;;  %v20688_v48 = vld [vmem:[#allocation26_spill] sm:$0xff]  ;;  %v20690_v50 = vld [vmem:[#allocation28_spill] sm:$0xff] }
 0x7f3   :  { %v2840_v59 = vsel %vm414_vm7, %v2579_v27, %v2720_v18  ;;  %v2841_v61 = vsel %vm414_vm7, %v2578_v6, %v2721_v56  ;;  %9774 = vmatmul.mubr.msk.bf16.vlgmr.msra.gmra.mrb[60].mxu1 %vm20674_vm3, %v16342_v44  ;;  %v2865_v36 = vsel %vm442_vm9, %v2859_v37, %v2793_v28  ;;  %v2810_v29 = vrot.slane %v2668_v4, 6  ;;  %v20682_v18 = vld [vmem:[#allocation21_spill] sm:$0xff]  ;;  %v20683_v56 = vld [vmem:[#allocation22_spill] sm:$0xff]  ;;  %v20685_v16 = vld [vmem:[#allocation31_spill] sm:$0xff] }
 0x7f4   :  { %v2811_v14 = vrot.slane %v2673_v23, 6  ;;  %v2846_v51 = vsel %vm421_vm8, %v2840_v59, %v2738_v52  ;;  %v2847_v24 = vsel %vm421_vm8, %v2841_v61, %v2739_v58  ;;  %3019 = vmatprep.mubr.bf16.mxu1 %v20596_v7  ;;  %12151 = vmatpush3.bf16.msra.mxu1 %v20618_v35  ;;  %v20686_v37 = vld [vmem:[#allocation24_spill] sm:$0xff]  ;;  %v20687_v4 = vld [vmem:[#allocation25_spill] sm:$0xff]  ;;  %v20689_v23 = vld [vmem:[#allocation27_spill] sm:$0xff] }
 0x7f5   :  { %v2703_v40 = vpop.permute.xlu1 %2702  ;;  %v2685_v3 = vpop.permute.xlu0 %2684  ;;  %v2883_v25 = vpack.c.bf16 %v2865_v36, %v2847_v24  ;;  %v2882_v22 = vpack.c.bf16 %v2864_v45, %v2846_v51  ;;  %12153 = vmatprep.subr.bf16.mxu1 %v20619_v47  ;;  %v2870_v39 = vsel %vm20272_vm12, %v2792_v54, %v2810_v29  ;;  %v20691_v6 = vld [vmem:[#allocation29_spill] sm:$0xff]  ;;  %v20692_v27 = vld [vmem:[#allocation30_spill] sm:$0xff]  ;;  %v20693_v24 = vld [vmem:[#allocation32_spill] sm:$0xff] }
 0x7f6   :  { %v2686_v0 = vsel %vm274_vm11, %v16285_v5, %v2685_v3  ;;  %v2691_v52 = vsel %vm274_vm11, %v2685_v3, %v20677_v8  ;;  %v2871_v20 = vsel %vm20272_vm12, %v2793_v28, %v2811_v14  ;;  %v2704_v5 = vsel %vm293_vm14, %v16296_v9, %v2703_v40  ;;  %vm20678_vm12 = vmmov %vm20674_vm3  ;;  %v20694_v3 = vld [vmem:[#allocation33_spill] sm:$0xff] }
 0x7f7   :  { %v2828_v58 = vrot.slane %v2686_v0, 3  ;;  %v2829_v13 = vrot.slane %v2691_v52, 3  ;;  %3030 = vmatprep.subr.bf16.mxu0 %v2883_v25  ;;  %v2709_v26 = vsel %vm293_vm14, %v2703_v40, %v13594_v10  ;;  %v20680_v10 = vld [vmem:[#allocation19_spill] sm:$0xff]  ;;  %v20695_v25 = vld [vmem:[#allocation34_spill] sm:$0xff] }
 0x7f8   :  { %3031 = vmatpush1.bf16.msra.mxu0 %v2882_v22  ;;  %12155 = vmatpush3.bf16.msra.mxu1 %v20620_v46  ;;  %v20696_v0 = vld [vmem:[#allocation35_spill] sm:$0xff] }
 0x7f9   :  { %v2876_v17 = vsel %vm456_vm13, %v2870_v39, %v2828_v58  ;;  %v2877_v32 = vsel %vm456_vm13, %v2871_v20, %v2829_v13  ;;  %9773 = vmatmul.mubr.msk.bf16.gmra.mrb[68].mxu0 %vm20674_vm3, %v14125_v38  ;;  %12157 = vmatprep.subr.bf16.mxu1 %v20621_v12  ;;  %v20697_v39 = vld [vmem:[#allocation36_spill] sm:$0xff] }
 0x7fa   :  { %v2888_v54 = vpack.c.bf16 %v2704_v5, %v2876_v17  ;;  %v2889_v28 = vpack.c.bf16 %v2709_v26, %v2877_v32  ;;  %3062 = vmatprep.mubr.bf16.mxu0 %v20596_v7  ;;  %v20698_v26 = vld [vmem:[#allocation37_spill] sm:$0xff]  ;;  %v20699_v32 = vld [vmem:[#allocation38_spill] sm:$0xff] }
 0x7fb   :  { %9775 = vmatmul.mubr.msk.bf16.gmra.mrb[64].mxu1 %vm20678_vm12, %v14125_v38  ;;  %vm20679_vm12 = vmmov %vm20674_vm3 }
 0x7fc   :  { %v2922_v9 = vand.u32 %v2889_v28, %v20669_v55  ;;  %v2919_v49 = vand.u32 %v2888_v54, %v20669_v55  ;;  %12159 = vmatpush3.bf16.msra.mxu1 %v20622_v31  ;;  %v20700_v54 = vld [vmem:[#allocation39_spill] sm:$0xff]  ;;  %v20701_v55 = vld [vmem:[#allocation40_spill] sm:$0xff] }
 0x7fd   :  { %12161 = vmatprep.subr.bf16.mxu1 %v20623_v63 }
 0x7fe   :  { %3032 = vmatprep.subr.bf16.mxu0 %v2922_v9 }
 0x7ff   :  { %3033 = vmatpush1.bf16.msra.mxu0 %v2919_v49 }
 0x800   :  { %12181 = vmatprep.subr.bf16.mxu0 %v14714_v30  ;;  %12163 = vmatpush3.bf16.msra.mxu1 %v20624_v11 }
 0x801   :  { %12165 = vmatprep.subr.bf16.mxu1 %v20625_v2 }
 0x802   :  { %9776 = vmatmul.mubr.msk.bf16.vlgmr.msra.gmra.mrb[72].mxu0 %vm20674_vm3, %v16342_v44  ;;  %v20681_v44 = vld [vmem:[#allocation20_spill] sm:$0xff]  ;;  %vm20770_vm3 = vcmask 1040384  }
 0x803   :  { %3072 = vmatprep.mubr.bf16.mxu0 %v20596_v7  ;;  %12183 = vmatpush3.bf16.msra.mxu0 %v14746_v57 }
 0x804   :  { %12185 = vmatprep.subr.bf16.mxu0 %v14749_v1  ;;  %12167 = vmatpush3.bf16.msra.mxu1 %v20626_v33 }
 0x805   :  { %12169 = vmatprep.subr.bf16.mxu1 %v20627_v19 }
 0x807   :  { %12187 = vmatpush3.bf16.msra.mxu0 %v14785_v21 }
 0x808   :  { %12189 = vmatprep.subr.bf16.mxu0 %v14788_v42  ;;  %12171 = vmatpush3.bf16.msra.mxu1 %v20630_v34 }
 0x809   :  { %12173 = vmatprep.subr.bf16.mxu1 %v20631_v43 }
 0x80a   :  { %9777 = vmatmul.mubr.msk.bf16.gmra.mrb[76].mxu0 %vm20679_vm12, %v14125_v38  ;;  %vm20773_vm12 = vmmov %vm20770_vm3 }
 0x80b   :  { %12191 = vmatpush3.bf16.msra.mxu0 %v14821_v53 }
 0x80c   :  { %12193 = vmatprep.subr.bf16.mxu0 %v14824_v60  ;;  %12175 = vmatpush3.bf16.msra.mxu1 %v20680_v10 }
 0x80d   :  { %12177 = vmatprep.subr.bf16.mxu1 %v20681_v44 }
 0x80f   :  { %12195 = vmatpush3.bf16.msra.mxu0 %v20682_v18 }
 0x810   :  { %12197 = vmatprep.subr.bf16.mxu0 %v20683_v56  ;;  %12179 = vmatpush3.bf16.msra.mxu1 %v20684_v15 }
 0x811   :  { %12213 = vmatprep.subr.bf16.mxu1 %v20685_v16 }
 0x813   :  { %12199 = vmatpush3.bf16.msra.mxu0 %v20686_v37 }
 0x814   :  { %12201 = vmatprep.subr.bf16.mxu0 %v20687_v4 }
 0x817   :  { %12203 = vmatpush3.bf16.msra.mxu0 %v20688_v48 }
 0x818   :  { %12205 = vmatprep.subr.bf16.mxu0 %v20689_v23 }
 0x81b   :  { %12207 = vmatpush3.bf16.msra.mxu0 %v20690_v50 }
 0x81c   :  { %12209 = vmatprep.subr.bf16.mxu0 %v20691_v6 }
 0x81f   :  { %12211 = vmatpush3.bf16.msra.mxu0 %v20692_v27 }
 0x820   :  { %12245 = vmatprep.subr.bf16.mxu0 %v20617_v41 }
 0x8c4   :  { %v16452_v45 = vpop.f32.mrb[64].mxu0 }
 0x8c5   :  { %v16454_v59 = vpop.f32.mrb[65].mxu0 }
 0x8c6   :  { %v16456_v61 = vpop.f32.mrb[60].mxu1  ;;  %v16458_v36 = vpop.f32.mrb[66].mxu0  ;;  %3157 = vmatprep.mubr.f32.mxu1 %v16454_v59  ;;  %v3349_v17 = vmul.f32 %v16454_v59, %v16454_v59 }
 0x8c7   :  { %v16461_v29 = vpop.f32.mrb[61].mxu1  ;;  %v16463_v14 = vpop.f32.mrb[67].mxu0  ;;  %3158 = vmatmul.mubr.f32.vlgmr.msra.gmra.mrb[58].mxu1 %v16452_v45 }
 0x8c8   :  { %v16466_v51 = vpop.f32.mrb[62].mxu1  ;;  %3242 = vmatprep.mubr.f32.mxu0 %v16461_v29  ;;  %12215 = vmatpush3.bf16.msra.mxu1 %v20693_v24 }
 0x8c9   :  { %v16470_v40 = vpop.f32.mrb[63].mxu1  ;;  %3162 = vmatprep.mubr.f32.mxu1 %v16463_v14  ;;  %3243 = vmatmul.mubr.f32.vlgmr.msra.gmra.mrb[62].mxu0 %v16456_v61 }
 0x8ca   :  { %12247 = vmatpush3.bf16.msra.mxu0 %v20618_v35  ;;  %3247 = vmatprep.mubr.f32.mxu0 %v16470_v40 }
 0x8cb   :  { %12217 = vmatprep.subr.bf16.mxu1 %v20694_v3  ;;  %3163 = vmatmul.mubr.f32.gmra.mrb[68].mxu1 %v16458_v36 }
 0x8cc   :  { %12219 = vmatpush3.bf16.msra.mxu1 %v20695_v25  ;;  %12249 = vmatprep.subr.bf16.mxu0 %v20619_v47  ;;  %v16480_v22 = vpop.f32.mrb[68].mxu0  ;;  %v20705_v47 = vld [vmem:[#allocation44_spill] sm:$0xff] }
 0x8cd   :  { %3248 = vmatmul.mubr.f32.gmra.mrb[80].mxu0 %v16466_v51  ;;  %12221 = vmatprep.subr.bf16.mxu1 %v20696_v0  ;;  %v16484_v8 = vpop.f32.mrb[69].mxu0 }
 0x8ce   :  { %12251 = vmatpush3.bf16.msra.mxu0 %v20620_v46  ;;  %v16487_v52 = vpop.f32.mrb[64].mxu1  ;;  %3167 = vmatprep.mubr.f32.mxu1 %v16484_v8  ;;  %v16490_v58 = vpop.f32.mrb[70].mxu0 }
 0x8cf   :  { %v16492_v13 = vpop.f32.mrb[65].mxu1  ;;  %12253 = vmatprep.subr.bf16.mxu0 %v20621_v12  ;;  %3168 = vmatmul.mubr.f32.gmra.mrb[70].mxu1 %v16480_v22  ;;  %v16496_v38 = vpop.f32.mrb[71].mxu0 }
 0x8d0   :  { %3252 = vmatprep.mubr.f32.mxu0 %v16492_v13  ;;  %12223 = vmatpush3.bf16.msra.mxu1 %v20697_v39  ;;  %v16500_v20 = vpop.f32.mrb[66].mxu1 }
 0x8d1   :  { %3253 = vmatmul.mubr.f32.gmra.mrb[82].mxu0 %v16487_v52  ;;  %v16503_v5 = vpop.f32.mrb[67].mxu1  ;;  %12225 = vmatprep.subr.bf16.mxu1 %v20698_v26 }
 0x8d2   :  { %12255 = vmatpush3.bf16.msra.mxu0 %v20622_v31  ;;  %3257 = vmatprep.mubr.f32.mxu0 %v16503_v5  ;;  %v20702_v31 = vld [vmem:[#allocation41_spill] sm:$0xff] }
 0x8d3   :  { %12257 = vmatprep.subr.bf16.mxu0 %v20623_v63  ;;  %3172 = vmatprep.mubr.f32.mxu1 %v16496_v38 }
 0x8d4   :  { %12227 = vmatpush3.bf16.msra.mxu1 %v20699_v32 }
 0x8d5   :  { %3258 = vmatmul.mubr.f32.gmra.mrb[84].mxu0 %v16500_v20  ;;  %12229 = vmatprep.subr.bf16.mxu1 %v20700_v54  ;;  %v16515_v28 = vpop.f32.mrb[72].mxu0 }
 0x8d6   :  { %12259 = vmatpush3.bf16.msra.mxu0 %v20624_v11  ;;  %3436 = vmatprep.mubr.f32.mxu0 %v3349_v17  ;;  %v16518_v9 = vpop.f32.mrb[73].mxu0  ;;  %v20703_v17 = vld [vmem:[#allocation42_spill] sm:$0xff]  ;;  %v20704_v11 = vld [vmem:[#allocation43_spill] sm:$0xff] }
 0x8d7   :  { %12261 = vmatprep.subr.bf16.mxu0 %v20625_v2  ;;  %3173 = vmatmul.mubr.f32.gmra.mrb[72].mxu1 %v16490_v58  ;;  %v16522_v49 = vpop.f32.mrb[74].mxu0 }
 0x8d8   :  { %12231 = vmatpush3.bf16.msra.mxu1 %v20701_v55  ;;  %v16525_v63 = vpop.f32.mrb[75].mxu0  ;;  %3327 = vmatprep.mubr.f32.mxu1 %v16518_v9 }
 0x8d9   :  { %12233 = vmatprep.subr.bf16.mxu1 %v20702_v31 }
 0x8da   :  { %12263 = vmatpush3.bf16.msra.mxu0 %v20626_v33  ;;  %v20706_v33 = vld [vmem:[#allocation45_spill] sm:$0xff] }
 0x8db   :  { %12265 = vmatprep.subr.bf16.mxu0 %v20627_v19  ;;  %v20707_v19 = vld [vmem:[#allocation46_spill] sm:$0xff] }
 0x8dc   :  { %12235 = vmatpush3.bf16.msra.mxu1 %v20703_v17 }
 0x8dd   :  { %12237 = vmatprep.subr.bf16.mxu1 %v20704_v11  ;;  %v16533_v2 = vpop.f32.mrb[76].mxu0 }
 0x8de   :  { %12267 = vmatpush3.bf16.msra.mxu0 %v20630_v34  ;;  %v16536_v12 = vpop.f32.mrb[77].mxu0  ;;  %v3355_v34 = vmul.f32 %v16463_v14, %v16463_v14 }
 0x8df   :  { %12269 = vmatprep.subr.bf16.mxu0 %v20631_v43  ;;  %v16539_v46 = vpop.f32.mrb[78].mxu0  ;;  %v3348_v43 = vmul.f32 %v16452_v45, %v16452_v45 }
 0x8e0   :  { %12239 = vmatpush3.bf16.msra.mxu1 %v20705_v47  ;;  %v16542_v35 = vpop.f32.mrb[79].mxu0 }
 0x8e1   :  { %12241 = vmatprep.subr.bf16.mxu1 %v20706_v33 }
 0x8e2   :  { %12271 = vmatpush3.bf16.msra.mxu0 %v20680_v10 }
 0x8e3   :  { %12273 = vmatprep.subr.bf16.mxu0 %v20681_v44 }
 0x8e4   :  { %12243 = vmatpush3.bf16.msra.mxu1 %v20707_v19 }
 0x8e5   :  { %12277 = vmatprep.subr.bf16.mxu1 %v14714_v30 }
 0x8e6   :  { %12275 = vmatpush3.bf16.msra.mxu0 %v20684_v15  ;;  %v3354_v15 = vmul.f32 %v16458_v36, %v16458_v36 }
 0x8e7   :  { %3328 = vmatmul.mubr.f32.vlgmr.msra.gmra.mrb[74].mxu1 %v16515_v28  ;;  %12309 = vmatprep.subr.bf16.mxu0 %v20685_v16  ;;  %v3361_v16 = vmul.f32 %v16484_v8, %v16484_v8 }
 0x8e8   :  { %3332 = vmatprep.mubr.f32.mxu1 %v16525_v63  ;;  %12279 = vmatpush3.bf16.msra.mxu1 %v14746_v57 }
 0x8e9   :  { %3437 = vmatmul.mubr.f32.vlgmr.msra.gmra.mrb[86].mxu0 %v3348_v43  ;;  %12281 = vmatprep.subr.bf16.mxu1 %v14749_v1  ;;  %v3367_v43 = vmul.f32 %v16496_v38, %v16496_v38 }
 0x8ea   :  { %3441 = vmatprep.mubr.f32.mxu0 %v3355_v34  ;;  %12311 = vmatpush3.bf16.msra.mxu0 %v20693_v24  ;;  %v3360_v34 = vmul.f32 %v16480_v22, %v16480_v22 }
 0x8eb   :  { %3333 = vmatmul.mubr.f32.gmra.mrb[76].mxu1 %v16522_v49  ;;  %12313 = vmatprep.subr.bf16.mxu0 %v20694_v3 }
 0x8ec   :  { %12283 = vmatpush3.bf16.msra.mxu1 %v14785_v21  ;;  %3337 = vmatprep.mubr.f32.mxu1 %v16536_v12 }
 0x8ed   :  { %3442 = vmatmul.mubr.f32.gmra.mrb[88].mxu0 %v3354_v15  ;;  %12285 = vmatprep.subr.bf16.mxu1 %v14788_v42  ;;  %v3351_v15 = vmul.f32 %v16461_v29, %v16461_v29 }
 0x8ee   :  { %3446 = vmatprep.mubr.f32.mxu0 %v3361_v16  ;;  %12315 = vmatpush3.bf16.msra.mxu0 %v20695_v25  ;;  %v3366_v16 = vmul.f32 %v16490_v58, %v16490_v58 }
 0x8ef   :  { %3338 = vmatmul.mubr.f32.gmra.mrb[78].mxu1 %v16533_v2  ;;  %12317 = vmatprep.subr.bf16.mxu0 %v20696_v0  ;;  %v3353_v0 = vmul.f32 %v16518_v9, %v16518_v9 }
 0x8f0   :  { %12287 = vmatpush3.bf16.msra.mxu1 %v14821_v53  ;;  %3342 = vmatprep.mubr.f32.mxu1 %v16542_v35 }
 0x8f1   :  { %3447 = vmatmul.mubr.f32.gmra.mrb[90].mxu0 %v3360_v34  ;;  %12289 = vmatprep.subr.bf16.mxu1 %v14824_v60  ;;  %v3357_v34 = vmul.f32 %v16470_v40, %v16470_v40 }
 0x8f2   :  { %3451 = vmatprep.mubr.f32.mxu0 %v3367_v43  ;;  %12319 = vmatpush3.bf16.msra.mxu0 %v20697_v39  ;;  %v3352_v43 = vmul.f32 %v16515_v28, %v16515_v28 }
 0x8f3   :  { %3343 = vmatmul.mubr.f32.gmra.mrb[80].mxu1 %v16539_v46  ;;  %12321 = vmatprep.subr.bf16.mxu0 %v20698_v26 }
 0x8f4   :  { %12291 = vmatpush3.bf16.msra.mxu1 %v20682_v18  ;;  %3521 = vmatprep.mubr.f32.mxu1 %v3351_v15  ;;  %v3359_v15 = vmul.f32 %v16525_v63, %v16525_v63 }
 0x8f5   :  { %3452 = vmatmul.mubr.f32.gmra.mrb[92].mxu0 %v3366_v16  ;;  %12293 = vmatprep.subr.bf16.mxu1 %v20683_v56  ;;  %v3356_v16 = vmul.f32 %v16466_v51, %v16466_v51 }
 0x8f6   :  { %12323 = vmatpush3.bf16.msra.mxu0 %v20699_v32  ;;  %3606 = vmatprep.mubr.f32.mxu0 %v3353_v0  ;;  %v3350_v0 = vmul.f32 %v16456_v61, %v16456_v61 }
 0x8f7   :  { %12325 = vmatprep.subr.bf16.mxu0 %v20700_v54 }
 0x8f8   :  { %12295 = vmatpush3.bf16.msra.mxu1 %v20686_v37 }
 0x8f9   :  { %12297 = vmatprep.subr.bf16.mxu1 %v20687_v4 }
 0x8fa   :  { %12327 = vmatpush3.bf16.msra.mxu0 %v20701_v55 }
 0x8fb   :  { %12329 = vmatprep.subr.bf16.mxu0 %v20702_v31 }
 0x8fc   :  { %12299 = vmatpush3.bf16.msra.mxu1 %v20688_v48 }
 0x8fd   :  { %12301 = vmatprep.subr.bf16.mxu1 %v20689_v23 }
 0x8fe   :  { %12331 = vmatpush3.bf16.msra.mxu0 %v20703_v17 }
 0x8ff   :  { %12333 = vmatprep.subr.bf16.mxu0 %v20704_v11 }
 0x900   :  { %12303 = vmatpush3.bf16.msra.mxu1 %v20690_v50 }
 0x901   :  { %12305 = vmatprep.subr.bf16.mxu1 %v20691_v6 }
 0x902   :  { %12335 = vmatpush3.bf16.msra.mxu0 %v20705_v47  ;;  %v3358_v47 = vmul.f32 %v16522_v49, %v16522_v49 }
 0x903   :  { %12337 = vmatprep.subr.bf16.mxu0 %v20706_v33  ;;  %v3363_v33 = vmul.f32 %v16492_v13, %v16492_v13 }
 0x904   :  { %12307 = vmatpush3.bf16.msra.mxu1 %v20692_v27 }
 0x906   :  { %12339 = vmatpush3.bf16.msra.mxu0 %v20707_v19  ;;  %v3365_v19 = vmul.f32 %v16536_v12, %v16536_v12 }
 0x907   :  { %3522 = vmatmul.mubr.f32.vlgmr.msra.gmra.mrb[82].mxu1 %v3350_v0  ;;  %v3362_v0 = vmul.f32 %v16487_v52, %v16487_v52 }
 0x908   :  { %3526 = vmatprep.mubr.f32.mxu1 %v3357_v34  ;;  %v3369_v34 = vmul.f32 %v16503_v5, %v16503_v5 }
 0x909   :  { %3607 = vmatmul.mubr.f32.vlgmr.msra.gmra.mrb[94].mxu0 %v3352_v43  ;;  %v3364_v43 = vmul.f32 %v16533_v2, %v16533_v2 }
 0x90a   :  { %3611 = vmatprep.mubr.f32.mxu0 %v3359_v15  ;;  %v3371_v15 = vmul.f32 %v16542_v35, %v16542_v35 }
 0x90b   :  { %3527 = vmatmul.mubr.f32.gmra.mrb[84].mxu1 %v3356_v16  ;;  %v3368_v16 = vmul.f32 %v16500_v20, %v16500_v20 }
 0x90c   :  { %3531 = vmatprep.mubr.f32.mxu1 %v3363_v33 }
 0x90d   :  { %3612 = vmatmul.mubr.f32.gmra.mrb[96].mxu0 %v3358_v47  ;;  %v3370_v47 = vmul.f32 %v16539_v46, %v16539_v46 }
 0x90e   :  { %3616 = vmatprep.mubr.f32.mxu0 %v3365_v19 }
 0x90f   :  { %3532 = vmatmul.mubr.f32.gmra.mrb[86].mxu1 %v3362_v0 }
 0x910   :  { %3536 = vmatprep.mubr.f32.mxu1 %v3369_v34 }
 0x911   :  { %3617 = vmatmul.mubr.f32.gmra.mrb[98].mxu0 %v3364_v43 }
 0x912   :  { %3621 = vmatprep.mubr.f32.mxu0 %v3371_v15 }
 0x913   :  { %3537 = vmatmul.mubr.f32.gmra.mrb[88].mxu1 %v3368_v16 }
 0x914   :  { %4056 = vmatprep.mubr.bf16.mxu1 %v20596_v7 }
 0x915   :  { %3622 = vmatmul.mubr.f32.gmra.mrb[100].mxu0 %v3370_v47 }
 0x916   :  { %4097 = vmatprep.mubr.bf16.mxu0 %v20596_v7 }
 0x99a   :  { %v10374_v33 = vpop.f32.mrb[58].mxu1 }
 0x99b   :  { %v10375_v19 = vpop.f32.mrb[59].mxu1 }
 0x99c   :  { %v10376_v0 = vadd.f32 %v10375_v19, %v10374_v33  ;;  %v10418_v11 = vpop.f32.mrb[62].mxu0 }
 0x99d   :  { %v10419_v17 = vpop.f32.mrb[63].mxu0 }
 0x99e   :  { %v10420_v34 = vadd.f32 %v10419_v17, %v10418_v11  ;;  %v10377_v31 = vpop.f32.mrb[68].mxu1 }
 0x99f   :  { %v10378_v55 = vpop.f32.mrb[69].mxu1 }
 0x9a0   :  { %v3245_v54 = vadd.f32 %v10420_v34, %v10376_v0  ;;  %v10379_v43 = vadd.f32 %v10378_v55, %v10377_v31  ;;  %v10421_v15 = vpop.f32.mrb[80].mxu0 }
 0x9a1   :  { %v10422_v32 = vpop.f32.mrb[81].mxu0 }
 0x9a2   :  { %v10423_v26 = vadd.f32 %v10422_v32, %v10421_v15  ;;  %v10380_v39 = vpop.f32.mrb[70].mxu1 }
 0x9a3   :  { %v10381_v16 = vpop.f32.mrb[71].mxu1 }
 0x9a4   :  { %v3250_v25 = vadd.f32 %v10423_v26, %v10379_v43  ;;  %v10424_v3 = vpop.f32.mrb[82].mxu0  ;;  %v10382_v47 = vadd.f32 %v10381_v16, %v10380_v39 }
 0x9a5   :  { %v10425_v24 = vpop.f32.mrb[83].mxu0 }
 0x9a6   :  { %v10426_v27 = vadd.f32 %v10425_v24, %v10424_v3 }
 0x9a8   :  { %v3255_v6 = vadd.f32 %v10426_v27, %v10382_v47  ;;  %v10427_v50 = vpop.f32.mrb[84].mxu0 }
 0x9a9   :  { %v10428_v33 = vpop.f32.mrb[85].mxu0 }
 0x9aa   :  { %v10383_v19 = vpop.f32.mrb[72].mxu1  ;;  %v10429_v23 = vadd.f32 %v10428_v33, %v10427_v50 }
 0x9ab   :  { %v10384_v11 = vpop.f32.mrb[73].mxu1 }
 0x9ac   :  { %v10385_v17 = vadd.f32 %v10384_v11, %v10383_v19 }
 0x9ae   :  { %v3260_v48 = vadd.f32 %v10429_v23, %v10385_v17 }
 0x9ba   :  { %v10462_v0 = vpop.f32.mrb[74].mxu1 }
 0x9bb   :  { %v10463_v31 = vpop.f32.mrb[75].mxu1 }
 0x9bc   :  { %v10464_v55 = vadd.f32 %v10463_v31, %v10462_v0  ;;  %v10506_v34 = vpop.f32.mrb[86].mxu0 }
 0x9bd   :  { %v10507_v32 = vpop.f32.mrb[87].mxu0 }
 0x9be   :  { %v3330_v15 = vadd.f32 %v10464_v55, %v3245_v54  ;;  %v10508_v44 = vadd.f32 %v10507_v32, %v10506_v34  ;;  %v10465_v26 = vpop.f32.mrb[76].mxu1 }
 0x9bf   :  { %v10466_v43 = vpop.f32.mrb[77].mxu1 }
 0x9c0   :  { %v3627_v39 = vmul.f32 0.001953125, %v3330_v15  ;;  %v10467_v16 = vadd.f32 %v10466_v43, %v10465_v26  ;;  %v10509_v24 = vpop.f32.mrb[88].mxu0 }
 0x9c1   :  { %v10510_v27 = vpop.f32.mrb[89].mxu0 }
 0x9c2   :  { %v3335_v3 = vadd.f32 %v10467_v16, %v3250_v25  ;;  %v10511_v47 = vadd.f32 %v10510_v27, %v10509_v24  ;;  %v10468_v10 = vpop.f32.mrb[78].mxu1  ;;  %3661 = vperm.xlu0 %13395, %v3627_v39  }
 0x9c3   :  { %v10469_v50 = vpop.f32.mrb[79].mxu1 }
 0x9c4   :  { %v3628_v33 = vmul.f32 0.001953125, %v3335_v3  ;;  %v10470_v23 = vadd.f32 %v10469_v50, %v10468_v10  ;;  %v10512_v19 = vpop.f32.mrb[90].mxu0 }
 0x9c5   :  { %v10513_v11 = vpop.f32.mrb[91].mxu0 }
 0x9c6   :  { %v3340_v17 = vadd.f32 %v10470_v23, %v3255_v6  ;;  %v10514_v0 = vadd.f32 %v10513_v11, %v10512_v19  ;;  %v10471_v31 = vpop.f32.mrb[80].mxu1  ;;  %3666 = vperm.xlu1 %13394, %v3628_v33  }
 0x9c7   :  { %v10472_v54 = vpop.f32.mrb[81].mxu1 }
 0x9c8   :  { %v3629_v55 = vmul.f32 0.001953125, %v3340_v17  ;;  %v10473_v34 = vadd.f32 %v10472_v54, %v10471_v31  ;;  %v10515_v32 = vpop.f32.mrb[92].mxu0  ;;  %v3635_v54 = vmul.f32 %v3627_v39, %v3627_v39 }
 0x9c9   :  { %v10516_v15 = vpop.f32.mrb[93].mxu0 }
 0x9ca   :  { %v3345_v26 = vadd.f32 %v10473_v34, %v3260_v48  ;;  %v10517_v43 = vadd.f32 %v10516_v15, %v10515_v32  ;;  %3671 = vperm.xlu0 %13395, %v3629_v55  }
 0x9cc   :  { %v3630_v25 = vmul.f32 0.001953125, %v3345_v26 }
 0x9ce   :  { %3676 = vperm.xlu1 %13394, %v3630_v25  }
 0x9da   :  { %v10550_v16 = vpop.f32.mrb[82].mxu1 }
 0x9db   :  { %v10551_v24 = vpop.f32.mrb[83].mxu1 }
 0x9dc   :  { %v10552_v27 = vadd.f32 %v10551_v24, %v10550_v16  ;;  %v10594_v10 = vpop.f32.mrb[94].mxu0  ;;  %v3636_v24 = vmul.f32 %v3628_v33, %v3628_v33 }
 0x9dd   :  { %v10595_v3 = vpop.f32.mrb[95].mxu0 }
 0x9de   :  { %v3524_v50 = vadd.f32 %v10552_v27, %v10508_v44  ;;  %v10596_v6 = vadd.f32 %v10595_v3, %v10594_v10  ;;  %v10553_v23 = vpop.f32.mrb[84].mxu1 }
 0x9df   :  { %v10554_v19 = vpop.f32.mrb[85].mxu1 }
 0x9e0   :  { %v3609_v11 = vadd.f32 %v10596_v6, %v3524_v50  ;;  %v10555_v4 = vadd.f32 %v10554_v19, %v10553_v23  ;;  %v10597_v17 = vpop.f32.mrb[96].mxu0 }
 0x9e1   :  { %v10598_v31 = vpop.f32.mrb[97].mxu0 }
 0x9e2   :  { %v3631_v37 = vmul.f32 0.001953125, %v3609_v11  ;;  %v3529_v48 = vadd.f32 %v10555_v4, %v10511_v47  ;;  %v10599_v34 = vadd.f32 %v10598_v31, %v10597_v17  ;;  %v10556_v32 = vpop.f32.mrb[86].mxu1  ;;  %v3637_v47 = vmul.f32 %v3629_v55, %v3629_v55  ;;  %v9778_v55 = vld [vmem:[%s20115_s4 + $0x20] sm:$0xff] }
 0x9e3   :  { %v10557_v15 = vpop.f32.mrb[87].mxu1 }
 0x9e4   :  { %v3639_v26 = vsub.f32 %v3631_v37, %v3635_v54  ;;  %v3614_v56 = vadd.f32 %v10599_v34, %v3529_v48  ;;  %v10558_v18 = vadd.f32 %v10557_v15, %v10556_v32  ;;  %v10600_v16 = vpop.f32.mrb[98].mxu0 }
 0x9e5   :  { %v10601_v60 = vpop.f32.mrb[99].mxu0 }
 0x9e6   :  { %v3643_v44 = vmax.f32 %v3639_v26, 0.0  ;;  %v3632_v27 = vmul.f32 0.001953125, %v3614_v56  ;;  %v3534_v10 = vadd.f32 %v10558_v18, %v10514_v0  ;;  %v10602_v3 = vadd.f32 %v10601_v60, %v10600_v16  ;;  %v10559_v50 = vpop.f32.mrb[88].mxu1 }
 0x9e7   :  { %v10560_v6 = vpop.f32.mrb[89].mxu1  ;;  %v3638_v60 = vmul.f32 %v3630_v25, %v3630_v25 }
 0x9e8   :  { %v3647_v23 = vadd.f32 1e-05, %v3643_v44  ;;  %v3640_v19 = vsub.f32 %v3632_v27, %v3636_v24  ;;  %v3619_v39 = vadd.f32 %v10602_v3, %v3534_v10  ;;  %v10561_v11 = vadd.f32 %v10560_v6, %v10559_v50  ;;  %v10603_v4 = vpop.f32.mrb[100].mxu0  ;;  %v9780_v10 = vld [vmem:[%s20115_s4 + $0x30] sm:$0xff]  ;;  %v9781_v6 = vld [vmem:[%s20115_s4 + $0x38] sm:$0xff] }
 0x9e9   :  { %v10604_v17 = vpop.f32.mrb[101].mxu0 }
 0x9ea   :  { %14140 = vrsqrt.f32 %v3647_v23  ;;  %v3644_v37 = vmax.f32 %v3640_v19, 0.0  ;;  %v3633_v31 = vmul.f32 0.001953125, %v3619_v39  ;;  %v3539_v54 = vadd.f32 %v10561_v11, %v10517_v43  ;;  %v9779_v43 = vld [vmem:[%s20115_s4 + $0x28] sm:$0xff]  ;;  %v9784_v23 = vld [vmem:[%s20114_s5 + $0x30] sm:$0xff]  ;;  %v9785_v11 = vld [vmem:[%s20114_s5 + $0x38] sm:$0xff] }
 0x9eb   :  { %v10605_v48 = vadd.f32 %v10604_v17, %v10603_v4  ;;  %v3750_v4 = vpop.permute.xlu0 %3749 }
 0x9ec   :  { %v3648_v33 = vadd.f32 1e-05, %v3644_v37  ;;  %v3641_v34 = vsub.f32 %v3633_v31, %v3637_v47  ;;  %v16654_v47 = vpop.permute.xlu1 %3754 }
 0x9ed   :  { %v3624_v32 = vadd.f32 %v10605_v48, %v3539_v54 }
 0x9ee   :  { %14142 = vrsqrt.f32 %v3648_v33  ;;  %v3645_v18 = vmax.f32 %v3641_v34, 0.0 }
 0x9ef   :  { %v3634_v56 = vmul.f32 0.001953125, %v3624_v32 }
 0x9f0   :  { %v3649_v0 = vadd.f32 1e-05, %v3645_v18 }
 0x9f1   :  { %v3642_v15 = vsub.f32 %v3634_v56, %v3638_v60 }
 0x9f2   :  { %14144 = vrsqrt.f32 %v3649_v0 }
 0x9f3   :  { %v3646_v26 = vmax.f32 %v3642_v15, 0.0 }
 0x9f4   :  { %v14141_v16 = vpop.eup %14140 }
 0x9f5   :  { %v3650_v24 = vadd.f32 1e-05, %v3646_v26  ;;  %v3655_v44 = vmul.f32 %v14141_v16, %v9778_v55 }
 0x9f7   :  { %14146 = vrsqrt.f32 %v3650_v24  ;;  %3705 = vperm.xlu0 %13395, %v3655_v44  }
 0x9f8   :  { %v14143_v27 = vpop.eup %14142 }
 0x9f9   :  { %v3656_v25 = vmul.f32 %v14143_v27, %v9779_v43 }
 0x9fb   :  { %3710 = vperm.xlu1 %13394, %v3656_v25  }
 0x9fc   :  { %v14145_v3 = vpop.eup %14144 }
 0x9fd   :  { %v3657_v50 = vmul.f32 %v14145_v3, %v9780_v10 }
 0x9ff   :  { %3715 = vperm.xlu0 %13395, %v3657_v50  }
 0xa01   :  { %v14147_v19 = vpop.eup %14146 }
 0xa02   :  { %v3658_v39 = vmul.f32 %v14147_v19, %v9781_v6 }
 0xa03   :  { %3759 = vperm.xlu0 %13395, %v9784_v23  }
 0xa04   :  { %3720 = vperm.xlu1 %13394, %v3658_v39  }
 0xa08   :  { %3764 = vperm.xlu1 %13394, %v9785_v11  }
 0xa41   :  { %v3662_v17 = vpop.permute.xlu0 %3661 }
 0xa42   :  { %v3679_v31 = vsub.f32 %v16452_v45, %v3662_v17  ;;  %v3680_v54 = vsub.f32 %v16454_v59, %v3662_v17  ;;  %v3681_v48 = vsub.f32 %v16456_v61, %v3662_v17  ;;  %v3682_v33 = vsub.f32 %v16461_v29, %v3662_v17 }
 0xa43   :  { %v3683_v32 = vsub.f32 %v16515_v28, %v3662_v17  ;;  %v3684_v18 = vsub.f32 %v16518_v9, %v3662_v17 }
 0xa45   :  { %v3667_v37 = vpop.permute.xlu1 %3666 }
 0xa46   :  { %v3685_v60 = vsub.f32 %v16458_v36, %v3667_v37  ;;  %v3686_v56 = vsub.f32 %v16463_v14, %v3667_v37  ;;  %v3687_v15 = vsub.f32 %v16466_v51, %v3667_v37  ;;  %v3688_v45 = vsub.f32 %v16470_v40, %v3667_v37 }
 0xa47   :  { %v3689_v59 = vsub.f32 %v16522_v49, %v3667_v37  ;;  %v3690_v61 = vsub.f32 %v16525_v63, %v3667_v37 }
 0xa49   :  { %v3672_v34 = vpop.permute.xlu0 %3671 }
 0xa4a   :  { %v3691_v29 = vsub.f32 %v16480_v22, %v3672_v34  ;;  %v3692_v28 = vsub.f32 %v16484_v8, %v3672_v34  ;;  %v3693_v9 = vsub.f32 %v16487_v52, %v3672_v34  ;;  %v3694_v36 = vsub.f32 %v16492_v13, %v3672_v34 }
 0xa4b   :  { %v3695_v14 = vsub.f32 %v16533_v2, %v3672_v34  ;;  %v3696_v55 = vsub.f32 %v16536_v12, %v3672_v34 }
 0xa4d   :  { %v16664_v0 = vpop.permute.xlu1 %3676 }
 0xa4e   :  { %v3697_v51 = vsub.f32 %v16490_v58, %v16664_v0  ;;  %v3698_v40 = vsub.f32 %v16496_v38, %v16664_v0  ;;  %v3699_v8 = vsub.f32 %v16500_v20, %v16664_v0  ;;  %v3700_v52 = vsub.f32 %v16503_v5, %v16664_v0 }
 0xa4f   :  { %v3701_v12 = vsub.f32 %v16539_v46, %v16664_v0  ;;  %v3702_v58 = vsub.f32 %v16542_v35, %v16664_v0 }
 0xa76   :  { %v3706_v49 = vpop.permute.xlu0 %3705 }
 0xa77   :  { %v3723_v63 = vmul.f32 %v3706_v49, %v3679_v31  ;;  %v3724_v26 = vmul.f32 %v3706_v49, %v3680_v54  ;;  %v3725_v22 = vmul.f32 %v3706_v49, %v3681_v48  ;;  %v3726_v16 = vmul.f32 %v3706_v49, %v3682_v33  ;;  %v20708_v31 = vld [vmem:[#allocation48_spill] sm:$0xff]  ;;  %v20709_v54 = vld [vmem:[#allocation47_spill] sm:$0xff] }
 0xa78   :  { %v3727_v2 = vmul.f32 %v3706_v49, %v3683_v32  ;;  %v3728_v13 = vmul.f32 %v3706_v49, %v3684_v18  ;;  %v20710_v49 = vld [vmem:[#allocation52_spill] sm:$0xff] }
 0xa79   :  { %v3768_v38 = vadd.f32 %v3750_v4, %v3724_v26  ;;  %v3767_v24 = vadd.f32 %v3750_v4, %v3723_v63  ;;  %v3769_v27 = vadd.f32 %v3750_v4, %v3725_v22  ;;  %v16688_v25 = vadd.f32 %v3750_v4, %v3726_v16  ;;  %v20711_v22 = vld [vmem:[#allocation49_spill] sm:$0xff] }
 0xa7a   :  { %v3711_v44 = vpop.permute.xlu1 %3710  ;;  %v3772_v43 = vadd.f32 %v3750_v4, %v3728_v13  ;;  %v16690_v10 = vadd.f32 %v3750_v4, %v3727_v2 }
 0xa7b   :  { %v3729_v20 = vmul.f32 %v3711_v44, %v3685_v60  ;;  %v3730_v3 = vmul.f32 %v3711_v44, %v3686_v56  ;;  %v3731_v5 = vmul.f32 %v3711_v44, %v3687_v15  ;;  %v3732_v50 = vmul.f32 %v3711_v44, %v3688_v45 }
 0xa7c   :  { %v16692_v6 = vmul.f32 %v3711_v44, %v3689_v59  ;;  %v3734_v23 = vmul.f32 %v3711_v44, %v3690_v61  ;;  %v3792_v46 = vmax.f32 %v3768_v38, 0.0  ;;  %v3791_v19 = vmax.f32 %v3767_v24, 0.0 }
 0xa7d   :  { %v3774_v35 = vadd.f32 %v16654_v47, %v3730_v3  ;;  %v3773_v39 = vadd.f32 %v16654_v47, %v3729_v20  ;;  %v3796_v11 = vmax.f32 %v3772_v43, 0.0  ;;  %v3775_v17 = vadd.f32 %v16654_v47, %v3731_v5 }
 0xa7e   :  { %v3716_v37 = vpop.permute.xlu0 %3715  ;;  %v16698_v4 = vmul.f32 %v3792_v46, %v20708_v31  ;;  %v16701_v48 = vmul.f32 %v3791_v19, %v20709_v54  ;;  %v3778_v33 = vadd.f32 %v16654_v47, %v3734_v23  ;;  %v3793_v34 = vmax.f32 %v3769_v27, 0.0 }
 0xa7f   :  { %v3735_v32 = vmul.f32 %v3716_v37, %v3691_v29  ;;  %v3736_v18 = vmul.f32 %v3716_v37, %v3692_v28  ;;  %v3737_v60 = vmul.f32 %v3716_v37, %v3693_v9  ;;  %v16704_v56 = vmul.f32 %v3716_v37, %v3694_v36 }
 0xa80   :  { %v16706_v0 = vmul.f32 %v3716_v37, %v3695_v14  ;;  %v3740_v15 = vmul.f32 %v3716_v37, %v3696_v55  ;;  %v3798_v45 = vmax.f32 %v3774_v35, 0.0  ;;  %v3797_v59 = vmax.f32 %v3773_v39, 0.0 }
 0xa81   :  { %v3802_v61 = vmax.f32 %v3778_v33, 0.0  ;;  %v16709_v63 = vmul.f32 %v3796_v11, %v20710_v49  ;;  %v3799_v26 = vmax.f32 %v3775_v17, 0.0  ;;  %v16712_v16 = vmul.f32 %v3793_v34, %v20711_v22 }
 0xa82   :  { %v16714_v2 = vpop.permute.xlu0 %3759  ;;  %v16717_v29 = vmul.f32 %v3798_v45, %v20708_v31  ;;  %v16720_v28 = vmul.f32 %v3797_v59, %v20709_v54  ;;  %v3776_v9 = vadd.f32 %v16654_v47, %v3732_v50  ;;  %v3794_v36 = vmax.f32 %v16688_v25, 0.0 }
 0xa83   :  { %v3721_v14 = vpop.permute.xlu1 %3720  ;;  %v16725_v55 = vmul.f32 %v3802_v61, %v20710_v49  ;;  %v3780_v13 = vadd.f32 %v16714_v2, %v3736_v18  ;;  %v3779_v38 = vadd.f32 %v16714_v2, %v3735_v32  ;;  %v3784_v24 = vadd.f32 %v16714_v2, %v3740_v15  ;;  %v20712_v32 = vld [vmem:[#allocation50_spill] sm:$0xff] }
 0xa84   :  { %v3741_v44 = vmul.f32 %v3721_v14, %v3697_v51  ;;  %v3742_v43 = vmul.f32 %v3721_v14, %v3698_v40  ;;  %v3743_v27 = vmul.f32 %v3721_v14, %v3699_v8  ;;  %v3744_v20 = vmul.f32 %v3721_v14, %v3700_v52 }
 0xa85   :  { %v3745_v3 = vmul.f32 %v3721_v14, %v3701_v12  ;;  %v3746_v5 = vmul.f32 %v3721_v14, %v3702_v58  ;;  %v13601_v50 = vpack.i.bf16 %v16717_v29, %v16698_v4  ;;  %v16734_v25 = vpack.i.bf16 %v16720_v28, %v16701_v48 }
 0xa86   :  { %v16738_v23 = vpack.i.bf16 %v16725_v55, %v16709_v63  ;;  %v3804_v46 = vmax.f32 %v3780_v13, 0.0  ;;  %v3803_v19 = vmax.f32 %v3779_v38, 0.0  ;;  %v3808_v40 = vmax.f32 %v3784_v24, 0.0 }
 0xa87   :  { %13602 = vrot.lane.b32.xlu1 %v13601_v50, %s14172_s17  ;;  %13597 = vrot.lane.b32.xlu0 %v16734_v25, %s14172_s17  ;;  %v3765_v51 = vpop.permute.xlu1 %3764  ;;  %v3823_v8 = vmul.f32 %v3799_v26, %v20711_v22  ;;  %v3800_v52 = vmax.f32 %v3776_v9, 0.0  ;;  %v3818_v18 = vmul.f32 %v3794_v36, %v20712_v32  ;;  %v3781_v59 = vadd.f32 %v16714_v2, %v3737_v60 }
 0xa88   :  { %v3786_v12 = vadd.f32 %v3765_v51, %v3742_v43  ;;  %v3828_v58 = vmul.f32 %v3804_v46, %v20708_v31  ;;  %v3785_v35 = vadd.f32 %v3765_v51, %v3741_v44  ;;  %v3827_v39 = vmul.f32 %v3803_v19, %v20709_v54  ;;  %v20713_v19 = vld [vmem:[#allocation51_spill] sm:$0xff] }
 0xa89   :  { %v3790_v11 = vadd.f32 %v3765_v51, %v3746_v5  ;;  %v3832_v17 = vmul.f32 %v3808_v40, %v20710_v49  ;;  %v13631_v37 = vpack.i.bf16 %v3823_v8, %v16712_v16  ;;  %v3824_v15 = vmul.f32 %v3800_v52, %v20712_v32 }
 0xa8a   :  { %v3810_v33 = vmax.f32 %v3786_v12, 0.0  ;;  %v3809_v34 = vmax.f32 %v3785_v35, 0.0  ;;  %v3787_v61 = vadd.f32 %v3765_v51, %v3743_v27  ;;  %v3777_v26 = vadd.f32 %v16654_v47, %v16692_v6 }
 0xa8b   :  { %13607 = vrot.lane.b32.xlu0 %v16738_v23, %s14172_s17  ;;  %v3814_v45 = vmax.f32 %v3790_v11, 0.0  ;;  %v13646_v13 = vpack.i.bf16 %v3824_v15, %v3818_v18  ;;  %v3795_v38 = vmax.f32 %v16690_v10, 0.0  ;;  %v3805_v24 = vmax.f32 %v3781_v59, 0.0 }
 0xa8c   :  { %v3834_v9 = vmul.f32 %v3810_v33, %v20708_v31  ;;  %v3833_v14 = vmul.f32 %v3809_v34, %v20709_v54  ;;  %v3811_v44 = vmax.f32 %v3787_v61, 0.0  ;;  %v3801_v43 = vmax.f32 %v3777_v26, 0.0 }
 0xa8d   :  { %v3838_v36 = vmul.f32 %v3814_v45, %v20710_v49  ;;  %v3819_v60 = vmul.f32 %v3795_v38, %v20713_v19  ;;  %v3829_v40 = vmul.f32 %v3805_v24, %v20711_v22  ;;  %v3782_v10 = vadd.f32 %v16714_v2, %v16704_v56 }
 0xa8e   :  { %v13616_v5 = vpack.i.bf16 %v3834_v9, %v3828_v58  ;;  %v13611_v46 = vpack.i.bf16 %v3833_v14, %v3827_v39  ;;  %v3835_v47 = vmul.f32 %v3811_v44, %v20711_v22  ;;  %v3825_v6 = vmul.f32 %v3801_v43, %v20713_v19 }
 0xa8f   :  { %v13626_v27 = vpack.i.bf16 %v3838_v36, %v3832_v17  ;;  %v3788_v52 = vadd.f32 %v3765_v51, %v3744_v20  ;;  %v3806_v11 = vmax.f32 %v3782_v10, 0.0  ;;  %v3783_v34 = vadd.f32 %v16714_v2, %v16706_v0 }
 0xa90   :  { %13617 = vrot.lane.b32.xlu0 %v13616_v5, %s14172_s17  ;;  %13612 = vrot.lane.b32.xlu1 %v13611_v46, %s14172_s17  ;;  %v13656_v12 = vpack.i.bf16 %v3835_v47, %v3829_v40  ;;  %v13661_v35 = vpack.i.bf16 %v3825_v6, %v3819_v60  ;;  %v3789_v45 = vadd.f32 %v3765_v51, %v3745_v3 }
 0xa91   :  { %v3812_v33 = vmax.f32 %v3788_v52, 0.0  ;;  %v16771_v59 = vpack.c.bf16 %v16717_v29, %v16698_v4  ;;  %v3830_v61 = vmul.f32 %v3806_v11, %v20712_v32  ;;  %v3807_v20 = vmax.f32 %v3783_v34, 0.0 }
 0xa92   :  { %v3813_v26 = vmax.f32 %v3789_v45, 0.0  ;;  %v16779_v38 = vpack.c.bf16 %v16720_v28, %v16701_v48  ;;  %v16781_v0 = vpack.c.bf16 %v3834_v9, %v3828_v58  ;;  %v16783_v2 = vpack.c.bf16 %v3833_v14, %v3827_v39 }
 0xa93   :  { %v3836_v56 = vmul.f32 %v3812_v33, %v20712_v32  ;;  %v16785_v4 = vpack.c.bf16 %v3824_v15, %v3818_v18  ;;  %v3831_v3 = vmul.f32 %v3807_v20, %v20713_v19  ;;  %v16790_v51 = vpack.c.bf16 %v3823_v8, %v16712_v16 }
 0xa94   :  { %13622 = vrot.lane.b32.xlu0 %v13601_v50, %s14174_s18  ;;  %13627 = vrot.lane.b32.xlu1 %v13626_v27, %s14172_s17  ;;  %v3837_v50 = vmul.f32 %v3813_v26, %v20713_v19  ;;  %v16796_v48 = vpack.c.bf16 %v16725_v55, %v16709_v63  ;;  %v16798_v28 = vpack.c.bf16 %v3835_v47, %v3829_v40 }
 0xa95   :  { %v13676_v29 = vpack.i.bf16 %v3836_v56, %v3830_v61  ;;  %v16792_v24 = vpack.c.bf16 %v3836_v56, %v3830_v61  ;;  %v16803_v39 = vpack.c.bf16 %v3825_v6, %v3819_v60  ;;  %v16805_v18 = vpack.c.bf16 %v3838_v36, %v3832_v17 }
 0xa96   :  { %v13681_v58 = vpack.i.bf16 %v3837_v50, %v3831_v3  ;;  %v16807_v16 = vpack.c.bf16 %v3837_v50, %v3831_v3 }
 0xa98   :  { %13637 = vrot.lane.b32.xlu0 %v16734_v25, %s14174_s18  ;;  %13632 = vrot.lane.b32.xlu1 %v13631_v37, %s14174_s18 }
 0xa9c   :  { %13642 = vrot.lane.b32.xlu0 %v13631_v37, %s14172_s17  ;;  %13647 = vrot.lane.b32.xlu1 %v13646_v13, %s14172_s17 }
 0xaa0   :  { %13657 = vrot.lane.b32.xlu0 %v13656_v12, %s14174_s18  ;;  %13652 = vrot.lane.b32.xlu1 %v13616_v5, %s14174_s18 }
 0xaa4   :  { %13662 = vrot.lane.b32.xlu0 %v13661_v35, %s14172_s17  ;;  %13667 = vrot.lane.b32.xlu1 %v13611_v46, %s14174_s18 }
 0xaa8   :  { %13677 = vrot.lane.b32.xlu0 %v13676_v29, %s14172_s17  ;;  %13672 = vrot.lane.b32.xlu1 %v13656_v12, %s14172_s17 }
 0xaac   :  { %13687 = vrot.lane.b32.xlu0 %v13646_v13, %s14174_s18  ;;  %13682 = vrot.lane.b32.xlu1 %v13681_v58, %s14172_s17 }
 0xab0   :  { %13697 = vrot.lane.b32.xlu0 %v16738_v23, %s14174_s18  ;;  %13692 = vrot.lane.b32.xlu1 %v13661_v35, %s14174_s18 }
 0xab4   :  { %13707 = vrot.lane.b32.xlu0 %v13681_v58, %s14174_s18  ;;  %13702 = vrot.lane.b32.xlu1 %v13676_v29, %s14174_s18 }
 0xab8   :  { %13712 = vrot.lane.b32.xlu1 %v13626_v27, %s14174_s18 }
 0xaf9   :  { %v13603_v63 = vpop.permute.xlu1 %13602  ;;  %v13598_v55 = vpop.permute.xlu0 %13597 }
 0xafa   :  { %v13605_v25 = vunpack.i.h.bf16 %v13603_v63  ;;  %v13604_v8 = vunpack.i.l.bf16 %v13603_v63  ;;  %v13600_v17 = vunpack.i.h.bf16 %v13598_v55  ;;  %v13599_v37 = vunpack.i.l.bf16 %v13598_v55 }
 0xafc   :  { %v3903_v15 = vsel %vm217_vm0, %v13599_v37, %v13604_v8  ;;  %v3904_v23 = vsel %vm217_vm0, %v13600_v17, %v13605_v25 }
 0xafd   :  { %v16829_v9 = vpop.permute.xlu0 %13607  ;;  %v16831_v14 = vpack.c.bf16 %v3904_v23, %v3903_v15 }
 0xafe   :  { %v13610_v13 = vunpack.i.h.bf16 %v16829_v9  ;;  %v13609_v36 = vunpack.i.l.bf16 %v16829_v9 }
 0xaff   :  { %4024 = vmatprep.subr.bf16.mxu1 %v16831_v14 }
 0xb00   :  { %v3907_v44 = vsel %vm217_vm0, %v13609_v36, %v13599_v37  ;;  %v3908_v43 = vsel %vm217_vm0, %v13610_v13, %v13600_v17 }
 0xb01   :  { %v16844_v5 = vpack.c.bf16 %v3908_v43, %v3907_v44 }
 0xb02   :  { %v13613_v46 = vpop.permute.xlu1 %13612  ;;  %v16846_v60 = vpop.permute.xlu0 %13617 }
 0xb03   :  { %v13615_v27 = vunpack.i.h.bf16 %v13613_v46  ;;  %v13614_v40 = vunpack.i.l.bf16 %v13613_v46  ;;  %v13620_v47 = vunpack.i.h.bf16 %v16846_v60  ;;  %v13619_v6 = vunpack.i.l.bf16 %v16846_v60  ;;  %4025 = vmatpush1.bf16.msra.mxu1 %v16844_v5 }
 0xb05   :  { %v3905_v10 = vsel %vm217_vm0, %v13614_v40, %v13619_v6  ;;  %v3906_v52 = vsel %vm217_vm0, %v13615_v27, %v13620_v47 }
 0xb06   :  { %v16859_v12 = vpop.permute.xlu1 %13627  ;;  %v13623_v35 = vpop.permute.xlu0 %13622  ;;  %v16861_v11 = vpack.c.bf16 %v3906_v52, %v3905_v10 }
 0xb07   :  { %v20324_v33 = vunpack.i.h.bf16 %v16859_v12  ;;  %v13629_v34 = vunpack.i.l.bf16 %v16859_v12  ;;  %v13625_v50 = vunpack.i.h.bf16 %v13623_v35  ;;  %v13624_v58 = vunpack.i.l.bf16 %v13623_v35 }
 0xb08   :  { %4026 = vmatprep.subr.bf16.mxu1 %v16861_v11 }
 0xb09   :  { %v3909_v45 = vsel %vm217_vm0, %v13629_v34, %v13614_v40  ;;  %v3910_v61 = vsel %vm217_vm0, %v20324_v33, %v13615_v27 }
 0xb0a   :  { %v16874_v56 = vpop.permute.xlu1 %13632  ;;  %v16876_v20 = vpop.permute.xlu0 %13637  ;;  %v16878_v26 = vpack.c.bf16 %v3910_v61, %v3909_v45 }
 0xb0b   :  { %v20319_v29 = vunpack.i.h.bf16 %v16874_v56  ;;  %v20317_v3 = vunpack.i.l.bf16 %v16874_v56  ;;  %v20316_v63 = vunpack.i.l.bf16 %v16876_v20  ;;  %v20318_v55 = vunpack.i.h.bf16 %v16876_v20 }
 0xb0c   :  { %4027 = vmatpush1.bf16.msra.mxu1 %v16878_v26 }
 0xb0d   :  { %4028 = vmatprep.subr.bf16.mxu1 %v16771_v59  ;;  %v3971_v15 = vsel %vm236_vm6, %v13624_v58, %v20317_v3  ;;  %v3972_v23 = vsel %vm236_vm6, %v13625_v50, %v20319_v29  ;;  %v3975_v40 = vsel %vm236_vm6, %v20316_v63, %v13624_v58  ;;  %v3976_v61 = vsel %vm236_vm6, %v20318_v55, %v13625_v50 }
 0xb0e   :  { %v13648_v17 = vpop.permute.xlu1 %13647  ;;  %v13643_v37 = vpop.permute.xlu0 %13642 }
 0xb0f   :  { %v13650_v44 = vunpack.i.h.bf16 %v13648_v17  ;;  %v13649_v43 = vunpack.i.l.bf16 %v13648_v17  ;;  %v13645_v46 = vunpack.i.h.bf16 %v13643_v37  ;;  %v13644_v27 = vunpack.i.l.bf16 %v13643_v37 }
 0xb10   :  { %4029 = vmatpush1.bf16.msra.mxu1 %v16779_v38  ;;  %v16916_v37 = vpack.c.bf16 %v3972_v23, %v3971_v15 }
 0xb11   :  { %v3900_v10 = vsel %vm217_vm0, %v13605_v25, %v13645_v46  ;;  %v3899_v52 = vsel %vm217_vm0, %v13604_v8, %v13644_v27  ;;  %4030 = vmatprep.subr.bf16.mxu1 %v16781_v0  ;;  %v3895_v35 = vsel %vm217_vm0, %v13644_v27, %v13649_v43  ;;  %v3896_v45 = vsel %vm217_vm0, %v13645_v46, %v13650_v44 }
 0xb12   :  { %v13653_v58 = vpop.permute.xlu1 %13652  ;;  %v16912_v17 = vpop.permute.xlu0 %13657  ;;  %v16914_v25 = vpack.c.bf16 %v3896_v45, %v3895_v35  ;;  %v16918_v8 = vpack.c.bf16 %v3900_v10, %v3899_v52  ;;  %v16936_v52 = vpack.c.bf16 %v3976_v61, %v3975_v40 }
 0xb13   :  { %v13655_v63 = vunpack.i.h.bf16 %v13653_v58  ;;  %v13654_v3 = vunpack.i.l.bf16 %v13653_v58  ;;  %v20320_v27 = vunpack.i.h.bf16 %v16912_v17  ;;  %v20321_v46 = vunpack.i.l.bf16 %v16912_v17 }
 0xb14   :  { %4031 = vmatpush1.bf16.msra.mxu1 %v16783_v2  ;;  %4065 = vmatprep.subr.bf16.mxu0 %v16914_v25  ;;  %v20719_v31 = vunpack.i.l.bf16 %v16912_v17 }
 0xb15   :  { %4032 = vmatprep.subr.bf16.mxu1 %v16916_v37  ;;  %4066 = vmatpush1.bf16.msra.mxu0 %v16918_v8  ;;  %v3973_v50 = vsel %vm236_vm6, %v13654_v3, %v20321_v46  ;;  %v3974_v15 = vsel %vm236_vm6, %v13655_v63, %v20320_v27 }
 0xb16   :  { %v16934_v23 = vpop.permute.xlu1 %13667  ;;  %v13663_v10 = vpop.permute.xlu0 %13662  ;;  %v16938_v35 = vpack.c.bf16 %v3974_v15, %v3973_v50 }
 0xb17   :  { %v20322_v45 = vunpack.i.h.bf16 %v16934_v23  ;;  %v20323_v58 = vunpack.i.l.bf16 %v16934_v23  ;;  %v13665_v55 = vunpack.i.h.bf16 %v13663_v10  ;;  %v13664_v29 = vunpack.i.l.bf16 %v13663_v10 }
 0xb18   :  { %4033 = vmatpush1.bf16.msra.mxu1 %v16936_v52 }
 0xb19   :  { %v3977_v27 = vsel %vm236_vm6, %v20323_v58, %v13654_v3  ;;  %v3978_v40 = vsel %vm236_vm6, %v20322_v45, %v13655_v63  ;;  %v3892_v61 = vsel %vm217_vm0, %v13650_v44, %v13665_v55  ;;  %4034 = vmatprep.subr.bf16.mxu1 %v16938_v35  ;;  %v3891_v50 = vsel %vm217_vm0, %v13649_v43, %v13664_v29 }
 0xb1a   :  { %v13673_v15 = vpop.permute.xlu1 %13672  ;;  %v13678_v10 = vpop.permute.xlu0 %13677  ;;  %v16956_v46 = vpack.c.bf16 %v3978_v40, %v3977_v27  ;;  %v3887_v3 = vsel %vm217_vm0, %v13664_v29, %v13609_v36  ;;  %v3888_v63 = vsel %vm217_vm0, %v13665_v55, %v13610_v13  ;;  %v16972_v27 = vld [vmem:[%s20117_s6 + $0x6] sm:$0x3] }
 0xb1b   :  { %v13675_v44 = vunpack.i.h.bf16 %v13673_v15  ;;  %v13674_v45 = vunpack.i.l.bf16 %v13673_v15  ;;  %v13680_v58 = vunpack.i.h.bf16 %v13678_v10  ;;  %v13679_v33 = vunpack.i.l.bf16 %v13678_v10 }
 0xb1c   :  { %4035 = vmatpush1.bf16.msra.mxu1 %v16956_v46  ;;  %v16967_v43 = vpack.c.bf16 %v3888_v63, %v3887_v3  ;;  %v16989_v10 = vpack.c.bf16 %v3892_v61, %v3891_v50 }
 0xb1d   :  { %v3901_v9 = vsel %vm217_vm0, %v13619_v6, %v13674_v45  ;;  %v3902_v13 = vsel %vm217_vm0, %v13620_v47, %v13675_v44  ;;  %v3897_v36 = vsel %vm217_vm0, %v13674_v45, %v13679_v33  ;;  %v3898_v29 = vsel %vm217_vm0, %v13675_v44, %v13680_v58 }
 0xb1e   :  { %4106 = vmatprep.subr.bf16.mxu1 %v16967_v43  ;;  %v13683_v55 = vpop.permute.xlu1 %13682  ;;  %v13688_v40 = vpop.permute.xlu0 %13687  ;;  %v16987_v15 = vpack.c.bf16 %v3898_v29, %v3897_v36  ;;  %v16991_v6 = vpack.c.bf16 %v3902_v13, %v3901_v9  ;;  %v20714_v13 = vunpack.i.h.bf16 %v16859_v12  ;;  %v20715_v12 = vunpack.i.h.bf16 %v16874_v56 }
 0xb1f   :  { %v13685_v60 = vunpack.i.h.bf16 %v13683_v55  ;;  %v13684_v3 = vunpack.i.l.bf16 %v13683_v55  ;;  %9787 = vmatmul.mubr.msk.bf16.vlgmr.msra.gmra.mrb[92].mxu1 %vm20382_vm15, %v16972_v27  ;;  %v13690_v61 = vunpack.i.h.bf16 %v13688_v40  ;;  %v13689_v50 = vunpack.i.l.bf16 %v13688_v40 }
 0xb20   :  { %4067 = vmatprep.subr.bf16.mxu0 %v16987_v15  ;;  %4107 = vmatpush1.bf16.msra.mxu1 %v16989_v10 }
 0xb21   :  { %v3893_v47 = vsel %vm217_vm0, %v13679_v33, %v13684_v3  ;;  %v3894_v45 = vsel %vm217_vm0, %v13680_v58, %v13685_v60  ;;  %4068 = vmatpush1.bf16.msra.mxu0 %v16991_v6  ;;  %v3889_v9 = vsel %vm217_vm0, %v13684_v3, %v13629_v34  ;;  %v3890_v33 = vsel %vm217_vm0, %v13685_v60, %v20714_v13 }
 0xb22   :  { %v13693_v63 = vpop.permute.xlu1 %13692  ;;  %v13698_v44 = vpop.permute.xlu0 %13697  ;;  %4069 = vmatprep.subr.bf16.mxu0 %v16785_v4  ;;  %v17011_v29 = vpack.c.bf16 %v3894_v45, %v3893_v47  ;;  %4138 = vmatprep.mubr.bf16.mxu1 %v20596_v7  ;;  %v17014_v55 = vpack.c.bf16 %v3890_v33, %v3889_v9  ;;  %v3968_v60 = vsel %vm236_vm6, %v20715_v12, %v13690_v61  ;;  %v20716_v3 = vunpack.i.l.bf16 %v16874_v56 }
 0xb23   :  { %v13695_v36 = vunpack.i.h.bf16 %v13693_v63  ;;  %v13694_v58 = vunpack.i.l.bf16 %v13693_v63  ;;  %v13700_v45 = vunpack.i.h.bf16 %v13698_v44  ;;  %v13699_v63 = vunpack.i.l.bf16 %v13698_v44 }
 0xb24   :  { %v3967_v47 = vsel %vm236_vm6, %v20716_v3, %v13689_v50  ;;  %4108 = vmatprep.subr.bf16.mxu1 %v17014_v55 }
 0xb25   :  { %4070 = vmatpush1.bf16.msra.mxu0 %v16790_v51  ;;  %v3963_v40 = vsel %vm236_vm6, %v13689_v50, %v13694_v58  ;;  %v3964_v34 = vsel %vm236_vm6, %v13690_v61, %v13695_v36  ;;  %4109 = vmatpush1.bf16.msra.mxu1 %v17011_v29  ;;  %v17041_v12 = vpack.c.bf16 %v3968_v60, %v3967_v47  ;;  %v20720_v47 = vunpack.i.h.bf16 %v16912_v17 }
 0xb26   :  { %v13703_v9 = vpop.permute.xlu1 %13702  ;;  %v13708_v13 = vpop.permute.xlu0 %13707  ;;  %4071 = vmatprep.subr.bf16.mxu0 %v16792_v24  ;;  %4110 = vmatprep.subr.bf16.mxu1 %v16796_v48  ;;  %v17033_v56 = vpack.c.bf16 %v3964_v34, %v3963_v40  ;;  %v20717_v40 = vunpack.i.l.bf16 %v16876_v20  ;;  %v20721_v17 = vunpack.i.l.bf16 %v16934_v23 }
 0xb27   :  { %v13705_v33 = vunpack.i.h.bf16 %v13703_v9  ;;  %v13704_v19 = vunpack.i.l.bf16 %v13703_v9  ;;  %v13710_v32 = vunpack.i.h.bf16 %v13708_v13  ;;  %v13709_v49 = vunpack.i.l.bf16 %v13708_v13 }
 0xb28   :  { %v3979_v34 = vsel %vm236_vm6, %v13699_v63, %v20717_v40  ;;  %v20718_v13 = vunpack.i.h.bf16 %v16876_v20  ;;  %v3960_v20 = vsel %vm236_vm6, %v13695_v36, %v13700_v45  ;;  %v3959_v40 = vsel %vm236_vm6, %v13694_v58, %v13699_v63 }
 0xb29   :  { %4072 = vmatpush1.bf16.msra.mxu0 %v16798_v28  ;;  %v3965_v61 = vsel %vm236_vm6, %v13704_v19, %v13709_v49  ;;  %v3966_v50 = vsel %vm236_vm6, %v13705_v33, %v13710_v32  ;;  %4111 = vmatpush1.bf16.msra.mxu1 %v16803_v39  ;;  %v3969_v60 = vsel %vm236_vm6, %v20719_v31, %v13704_v19 }
 0xb2a   :  { %v13713_v44 = vpop.permute.xlu1 %13712  ;;  %4073 = vmatprep.subr.bf16.mxu0 %v17033_v56  ;;  %v3980_v22 = vsel %vm236_vm6, %v13700_v45, %v20718_v13  ;;  %4112 = vmatprep.subr.bf16.mxu1 %v16805_v18  ;;  %v17061_v54 = vpack.c.bf16 %v3966_v50, %v3965_v61  ;;  %v20722_v61 = vunpack.i.h.bf16 %v16934_v23 }
 0xb2b   :  { %v13715_v3 = vunpack.i.h.bf16 %v13713_v44  ;;  %v13714_v9 = vunpack.i.l.bf16 %v13713_v44  ;;  %v3970_v44 = vsel %vm236_vm6, %v20720_v47, %v13705_v33  ;;  %v17069_v31 = vpack.c.bf16 %v3980_v22, %v3979_v34 }
 0xb2c   :  { %v17072_v19 = vpack.c.bf16 %v3970_v44, %v3969_v60  ;;  %v17084_v22 = vpack.c.bf16 %v3960_v20, %v3959_v40 }
 0xb2d   :  { %4074 = vmatpush1.bf16.msra.mxu0 %v17041_v12  ;;  %4113 = vmatpush1.bf16.msra.mxu1 %v16807_v16  ;;  %v3981_v33 = vsel %vm236_vm6, %v13714_v9, %v20721_v17  ;;  %v3982_v36 = vsel %vm236_vm6, %v13715_v3, %v20722_v61  ;;  %v3961_v58 = vsel %vm236_vm6, %v13709_v49, %v13714_v9  ;;  %v9790_v49 = vld [vmem:[%s20117_s6 + $0x8] sm:$0x3] }
 0xb2e   :  { %4075 = vmatprep.subr.bf16.mxu0 %v17061_v54  ;;  %4114 = vmatprep.subr.bf16.mxu1 %v17069_v31  ;;  %v3962_v45 = vsel %vm236_vm6, %v13710_v32, %v13715_v3  ;;  %v17090_v63 = vpack.c.bf16 %v3982_v36, %v3981_v33  ;;  %v9794_v32 = vld [vmem:[%s20117_s6 + $0xa] sm:$0x3] }
 0xb2f   :  { %v17097_v23 = vpack.c.bf16 %v3962_v45, %v3961_v58 }
 0xb31   :  { %4076 = vmatpush1.bf16.msra.mxu0 %v17072_v19  ;;  %4115 = vmatpush1.bf16.msra.mxu1 %v17084_v22 }
 0xb32   :  { %4170 = vmatprep.subr.bf16.mxu0 %v16831_v14  ;;  %4116 = vmatprep.subr.bf16.mxu1 %v17090_v63 }
 0xb34   :  { %9788 = vmatmul.mubr.msk.bf16.vlgmr.msra.gmra.mrb[104].mxu0 %vm20382_vm15, %v16972_v27 }
 0xb35   :  { %4171 = vmatpush1.bf16.msra.mxu0 %v16844_v5  ;;  %4202 = vmatprep.mubr.bf16.mxu0 %v20596_v7 }
 0xb36   :  { %4172 = vmatprep.subr.bf16.mxu0 %v16861_v11  ;;  %4117 = vmatpush1.bf16.msra.mxu1 %v17097_v23 }
 0xb37   :  { %4211 = vmatprep.subr.bf16.mxu1 %v16914_v25 }
 0xb39   :  { %4173 = vmatpush1.bf16.msra.mxu0 %v16878_v26  ;;  %9789 = vmatmul.mubr.msk.bf16.vlgmr.msra.gmra.mrb[96].mxu1 %vm20382_vm15, %v16972_v27  ;;  %v20747_v27 = vld [vmem:[#allocation29_spill] sm:$0xff] }
 0xb3a   :  { %4174 = vmatprep.subr.bf16.mxu0 %v16771_v59  ;;  %4212 = vmatpush1.bf16.msra.mxu1 %v16918_v8 }
 0xb3b   :  { %4243 = vmatprep.mubr.bf16.mxu1 %v20596_v7  ;;  %4213 = vmatprep.subr.bf16.mxu1 %v16987_v15 }
 0xb3d   :  { %4175 = vmatpush1.bf16.msra.mxu0 %v16779_v38 }
 0xb3e   :  { %4176 = vmatprep.subr.bf16.mxu0 %v16781_v0  ;;  %4214 = vmatpush1.bf16.msra.mxu1 %v16991_v6 }
 0xb3f   :  { %4215 = vmatprep.subr.bf16.mxu1 %v16785_v4 }
 0xb41   :  { %4177 = vmatpush1.bf16.msra.mxu0 %v16783_v2 }
 0xb42   :  { %4178 = vmatprep.subr.bf16.mxu0 %v16916_v37  ;;  %4216 = vmatpush1.bf16.msra.mxu1 %v16790_v51 }
 0xb43   :  { %4217 = vmatprep.subr.bf16.mxu1 %v16792_v24 }
 0xb45   :  { %4179 = vmatpush1.bf16.msra.mxu0 %v16936_v52 }
 0xb46   :  { %4180 = vmatprep.subr.bf16.mxu0 %v16938_v35  ;;  %4218 = vmatpush1.bf16.msra.mxu1 %v16798_v28 }
 0xb47   :  { %4219 = vmatprep.subr.bf16.mxu1 %v17033_v56 }
 0xb49   :  { %4181 = vmatpush1.bf16.msra.mxu0 %v16956_v46 }
 0xb4a   :  { %4252 = vmatprep.subr.bf16.mxu0 %v16967_v43  ;;  %4220 = vmatpush1.bf16.msra.mxu1 %v17041_v12 }
 0xb4b   :  { %4221 = vmatprep.subr.bf16.mxu1 %v17061_v54 }
 0xb4c   :  { %9791 = vmatmul.mubr.msk.bf16.vlgmr.msra.gmra.mrb[108].mxu0 %vm20382_vm15, %v9790_v49 }
 0xb4d   :  { %4253 = vmatpush1.bf16.msra.mxu0 %v16989_v10  ;;  %4284 = vmatprep.mubr.bf16.mxu0 %v20596_v7 }
 0xb4e   :  { %4254 = vmatprep.subr.bf16.mxu0 %v17014_v55  ;;  %4222 = vmatpush1.bf16.msra.mxu1 %v17072_v19 }
 0xb4f   :  { %4304 = vmatprep.subr.bf16.mxu1 %v16831_v14  ;;  %v20736_v14 = vld [vmem:[#allocation15_spill] sm:$0xff] }
 0xb51   :  { %4255 = vmatpush1.bf16.msra.mxu0 %v17011_v29  ;;  %9792 = vmatmul.mubr.msk.bf16.vlgmr.msra.gmra.mrb[100].mxu1 %vm20382_vm15, %v9790_v49 }
 0xb52   :  { %4256 = vmatprep.subr.bf16.mxu0 %v16796_v48  ;;  %4305 = vmatpush1.bf16.msra.mxu1 %v16844_v5  ;;  %v20737_v5 = vld [vmem:[#allocation16_spill] sm:$0xff] }
 0xb53   :  { %4336 = vmatprep.mubr.bf16.mxu1 %v20596_v7  ;;  %4306 = vmatprep.subr.bf16.mxu1 %v16861_v11  ;;  %v20738_v11 = vld [vmem:[#allocation24_spill] sm:$0xff] }
 0xb55   :  { %4257 = vmatpush1.bf16.msra.mxu0 %v16803_v39 }
 0xb56   :  { %4258 = vmatprep.subr.bf16.mxu0 %v16805_v18  ;;  %4307 = vmatpush1.bf16.msra.mxu1 %v16878_v26  ;;  %v20739_v26 = vld [vmem:[#allocation25_spill] sm:$0xff] }
 0xb57   :  { %4308 = vmatprep.subr.bf16.mxu1 %v16771_v59  ;;  %v20723_v59 = vld [vmem:[#allocation5_spill] sm:$0xff] }
 0xb59   :  { %4259 = vmatpush1.bf16.msra.mxu0 %v16807_v16 }
 0xb5a   :  { %4260 = vmatprep.subr.bf16.mxu0 %v17069_v31  ;;  %4309 = vmatpush1.bf16.msra.mxu1 %v16779_v38  ;;  %v20724_v38 = vld [vmem:[#allocation6_spill] sm:$0xff] }
 0xb5b   :  { %4310 = vmatprep.subr.bf16.mxu1 %v16781_v0  ;;  %v20726_v0 = vld [vmem:[#allocation8_spill] sm:$0xff] }
 0xb5d   :  { %4261 = vmatpush1.bf16.msra.mxu0 %v17084_v22 }
 0xb5e   :  { %4262 = vmatprep.subr.bf16.mxu0 %v17090_v63  ;;  %4311 = vmatpush1.bf16.msra.mxu1 %v16783_v2  ;;  %v20727_v2 = vld [vmem:[#allocation9_spill] sm:$0xff] }
 0xb5f   :  { %4312 = vmatprep.subr.bf16.mxu1 %v16916_v37  ;;  %v20741_v37 = vld [vmem:[#allocation20_spill] sm:$0xff] }
 0xb61   :  { %4263 = vmatpush1.bf16.msra.mxu0 %v17097_v23 }
 0xb62   :  { %4345 = vmatprep.subr.bf16.mxu0 %v16914_v25  ;;  %4313 = vmatpush1.bf16.msra.mxu1 %v16936_v52  ;;  %v20740_v25 = vld [vmem:[#allocation19_spill] sm:$0xff] }
 0xb63   :  { %4314 = vmatprep.subr.bf16.mxu1 %v16938_v35  ;;  %v20744_v52 = vld [vmem:[#allocation23_spill] sm:$0xff] }
 0xb64   :  { %9793 = vmatmul.mubr.msk.bf16.vlgmr.msra.gmra.mrb[112].mxu0 %vm20382_vm15, %v9790_v49  ;;  %v20745_v35 = vld [vmem:[#allocation31_spill] sm:$0xff] }
 0xb65   :  { %4346 = vmatpush1.bf16.msra.mxu0 %v16918_v8  ;;  %4377 = vmatprep.mubr.bf16.mxu0 %v20596_v7  ;;  %v20742_v8 = vld [vmem:[#allocation26_spill] sm:$0xff] }
 0xb66   :  { %4347 = vmatprep.subr.bf16.mxu0 %v16987_v15  ;;  %4315 = vmatpush1.bf16.msra.mxu1 %v16956_v46  ;;  %v20743_v46 = vld [vmem:[#allocation27_spill] sm:$0xff]  ;;  %v20748_v15 = vld [vmem:[#allocation30_spill] sm:$0xff] }
 0xb67   :  { %4386 = vmatprep.subr.bf16.mxu1 %v16967_v43  ;;  %v20746_v43 = vld [vmem:[#allocation28_spill] sm:$0xff] }
 0xb69   :  { %4348 = vmatpush1.bf16.msra.mxu0 %v16991_v6  ;;  %9795 = vmatmul.mubr.msk.bf16.vlgmr.msra.gmra.mrb[104].mxu1 %vm20382_vm15, %v9794_v32 }
 0xb6a   :  { %4349 = vmatprep.subr.bf16.mxu0 %v16785_v4  ;;  %4387 = vmatpush1.bf16.msra.mxu1 %v16989_v10  ;;  %v20728_v4 = vld [vmem:[#allocation10_spill] sm:$0xff] }
 0xb6b   :  { %4418 = vmatprep.mubr.bf16.mxu1 %v20596_v7  ;;  %4388 = vmatprep.subr.bf16.mxu1 %v17014_v55 }
 0xb6d   :  { %4350 = vmatpush1.bf16.msra.mxu0 %v16790_v51  ;;  %v20729_v51 = vld [vmem:[#allocation11_spill] sm:$0xff] }
 0xb6e   :  { %4351 = vmatprep.subr.bf16.mxu0 %v16792_v24  ;;  %4389 = vmatpush1.bf16.msra.mxu1 %v17011_v29  ;;  %v20730_v24 = vld [vmem:[#allocation12_spill] sm:$0xff] }
 0xb6f   :  { %4390 = vmatprep.subr.bf16.mxu1 %v16796_v48  ;;  %v20731_v48 = vld [vmem:[#allocation18_spill] sm:$0xff] }
 0xb71   :  { %4352 = vmatpush1.bf16.msra.mxu0 %v16798_v28  ;;  %v20732_v28 = vld [vmem:[#allocation13_spill] sm:$0xff] }
 0xb72   :  { %4353 = vmatprep.subr.bf16.mxu0 %v17033_v56  ;;  %4391 = vmatpush1.bf16.msra.mxu1 %v16803_v39  ;;  %v20733_v39 = vld [vmem:[#allocation14_spill] sm:$0xff] }
 0xb73   :  { %4392 = vmatprep.subr.bf16.mxu1 %v16805_v18  ;;  %v20734_v18 = vld [vmem:[#allocation21_spill] sm:$0xff] }
 0xb75   :  { %4354 = vmatpush1.bf16.msra.mxu0 %v17041_v12 }
 0xb76   :  { %4355 = vmatprep.subr.bf16.mxu0 %v17061_v54  ;;  %4393 = vmatpush1.bf16.msra.mxu1 %v16807_v16  ;;  %v20725_v54 = vld [vmem:[#allocation7_spill] sm:$0xff]  ;;  %v20735_v16 = vld [vmem:[#allocation22_spill] sm:$0xff] }
 0xb77   :  { %4394 = vmatprep.subr.bf16.mxu1 %v17069_v31 }
 0xb79   :  { %4356 = vmatpush1.bf16.msra.mxu0 %v17072_v19 }
 0xb7a   :  { %12341 = vmatprep.subr.bf16.mxu0 %v20617_v41  ;;  %4395 = vmatpush1.bf16.msra.mxu1 %v17084_v22 }
 0xb7b   :  { %4396 = vmatprep.subr.bf16.mxu1 %v17090_v63 }
 0xb7c   :  { %9796 = vmatmul.mubr.msk.bf16.vlgmr.msra.gmra.mrb[116].mxu0 %vm20382_vm15, %v9794_v32 }
 0xb7d   :  { %12343 = vmatpush3.bf16.msra.mxu0 %v20723_v59 }
 0xb7e   :  { %12345 = vmatprep.subr.bf16.mxu0 %v20724_v38  ;;  %4397 = vmatpush1.bf16.msra.mxu1 %v17097_v23 }
 0xb7f   :  { %12373 = vmatprep.subr.bf16.mxu1 %v14714_v30 }
 0xb81   :  { %12347 = vmatpush3.bf16.msra.mxu0 %v20725_v54  ;;  %9797 = vmatmul.mubr.msk.bf16.vlgmr.msra.gmra.mrb[108].mxu1 %vm20382_vm15, %v9794_v32 }
 0xb82   :  { %12349 = vmatprep.subr.bf16.mxu0 %v20726_v0  ;;  %12375 = vmatpush3.bf16.msra.mxu1 %v14746_v57 }
 0xb83   :  { %12377 = vmatprep.subr.bf16.mxu1 %v14749_v1 }
 0xb85   :  { %12351 = vmatpush3.bf16.msra.mxu0 %v20727_v2 }
 0xb86   :  { %12353 = vmatprep.subr.bf16.mxu0 %v20728_v4  ;;  %12379 = vmatpush3.bf16.msra.mxu1 %v14785_v21 }
 0xb87   :  { %12381 = vmatprep.subr.bf16.mxu1 %v14788_v42 }
 0xb89   :  { %12355 = vmatpush3.bf16.msra.mxu0 %v20729_v51 }
 0xb8a   :  { %12357 = vmatprep.subr.bf16.mxu0 %v20730_v24  ;;  %12383 = vmatpush3.bf16.msra.mxu1 %v14821_v53 }
 0xb8b   :  { %12385 = vmatprep.subr.bf16.mxu1 %v20731_v48 }
 0xb8d   :  { %12359 = vmatpush3.bf16.msra.mxu0 %v20732_v28 }
 0xb8e   :  { %12361 = vmatprep.subr.bf16.mxu0 %v20733_v39  ;;  %12387 = vmatpush3.bf16.msra.mxu1 %v20734_v18 }
 0xb8f   :  { %12389 = vmatprep.subr.bf16.mxu1 %v20735_v16 }
 0xb91   :  { %12363 = vmatpush3.bf16.msra.mxu0 %v20736_v14 }
 0xb92   :  { %12365 = vmatprep.subr.bf16.mxu0 %v20737_v5  ;;  %12391 = vmatpush3.bf16.msra.mxu1 %v20738_v11 }
 0xb93   :  { %12393 = vmatprep.subr.bf16.mxu1 %v20739_v26 }
 0xb95   :  { %12367 = vmatpush3.bf16.msra.mxu0 %v20740_v25 }
 0xb96   :  { %12369 = vmatprep.subr.bf16.mxu0 %v20741_v37  ;;  %12395 = vmatpush3.bf16.msra.mxu1 %v20742_v8 }
 0xb97   :  { %12397 = vmatprep.subr.bf16.mxu1 %v20743_v46 }
 0xb99   :  { %12371 = vmatpush3.bf16.msra.mxu0 %v20744_v52 }
 0xb9a   :  { %12405 = vmatprep.subr.bf16.mxu0 %v20745_v35  ;;  %12399 = vmatpush3.bf16.msra.mxu1 %v20746_v43 }
 0xb9b   :  { %12401 = vmatprep.subr.bf16.mxu1 %v20747_v27 }
 0xb9e   :  { %12403 = vmatpush3.bf16.msra.mxu1 %v20748_v15 }
 0xb9f   :  { %12437 = vmatprep.subr.bf16.mxu1 %v20617_v41 }
 0xbf2   :  { %v4058_v10 = vpop.f32.mrb[92].mxu1 }
 0xbf3   :  { %v4060_v6 = vpop.f32.mrb[93].mxu1  ;;  %4147 = vrot.lane.b32.xlu0 %v4058_v10, %s14170_s15 }
 0xbf4   :  { %v4062_v29 = vpop.f32.mrb[94].mxu1 }
 0xbf5   :  { %v4063_v55 = vpop.f32.mrb[95].mxu1 }
 0xc07   :  { %v4099_v56 = vpop.f32.mrb[104].mxu0 }
 0xc08   :  { %4151 = vrot.lane.b32.xlu1 %v4099_v56, %s14170_s15  ;;  %v4101_v50 = vpop.f32.mrb[105].mxu0 }
 0xc09   :  { %v4103_v12 = vpop.f32.mrb[106].mxu0  ;;  %4153 = vrot.lane.b32.xlu0 %v4101_v50, %s14170_s15 }
 0xc0a   :  { %v4104_v3 = vpop.f32.mrb[107].mxu0 }
 0xc0c   :  { %4149 = vrot.lane.b32.xlu1 %v4060_v6, %s14170_s15  ;;  %v4140_v9 = vpop.f32.mrb[96].mxu1 }
 0xc0d   :  { %v4142_v34 = vpop.f32.mrb[97].mxu1 }
 0xc0e   :  { %4157 = vrot.lane.b32.xlu0 %v4142_v34, %s14170_s15  ;;  %v4144_v13 = vpop.f32.mrb[98].mxu1 }
 0xc0f   :  { %v4145_v60 = vpop.f32.mrb[99].mxu1 }
 0xc1f   :  { %v4204_v47 = vpop.f32.mrb[108].mxu0 }
 0xc20   :  { %v4206_v44 = vpop.f32.mrb[109].mxu0 }
 0xc21   :  { %v4208_v20 = vpop.f32.mrb[110].mxu0 }
 0xc22   :  { %v4209_v40 = vpop.f32.mrb[111].mxu0 }
 0xc24   :  { %v4245_v31 = vpop.f32.mrb[100].mxu1 }
 0xc25   :  { %v4247_v19 = vpop.f32.mrb[101].mxu1 }
 0xc26   :  { %v4249_v17 = vpop.f32.mrb[102].mxu1 }
 0xc27   :  { %v4250_v33 = vpop.f32.mrb[103].mxu1 }
 0xc37   :  { %v17230_v61 = vpop.f32.mrb[112].mxu0 }
 0xc38   :  { %v4288_v36 = vpop.f32.mrb[113].mxu0 }
 0xc39   :  { %v4290_v22 = vpop.f32.mrb[114].mxu0 }
 0xc3a   :  { %v4291_v58 = vpop.f32.mrb[115].mxu0 }
 0xc3c   :  { %v4338_v45 = vpop.f32.mrb[104].mxu1 }
 0xc3d   :  { %4427 = vrot.lane.b32.xlu1 %v4338_v45, %s14176_s20  ;;  %v4340_v63 = vpop.f32.mrb[105].mxu1 }
 0xc3e   :  { %v4342_v23 = vpop.f32.mrb[106].mxu1 }
 0xc3f   :  { %v4343_v49 = vpop.f32.mrb[107].mxu1 }
 0xc41   :  { %4429 = vrot.lane.b32.xlu1 %v4340_v63, %s14176_s20 }
 0xc4f   :  { %v4379_v32 = vpop.f32.mrb[116].mxu0 }
 0xc50   :  { %v4381_v10 = vpop.f32.mrb[117].mxu0  ;;  %4431 = vrot.lane.b32.xlu0 %v4379_v32, %s14176_s20 }
 0xc51   :  { %v4383_v6 = vpop.f32.mrb[118].mxu0 }
 0xc52   :  { %v4384_v29 = vpop.f32.mrb[119].mxu0 }
 0xc54   :  { %4433 = vrot.lane.b32.xlu0 %v4381_v10, %s14176_s20  ;;  %v4420_v55 = vpop.f32.mrb[108].mxu1 }
 0xc55   :  { %4435 = vrot.lane.b32.xlu1 %v4420_v55, %s14176_s20  ;;  %v4422_v56 = vpop.f32.mrb[109].mxu1 }
 0xc56   :  { %v4424_v50 = vpop.f32.mrb[110].mxu1 }
 0xc57   :  { %v4425_v12 = vpop.f32.mrb[111].mxu1  ;;  %v20749_v50 = vld [vmem:[#allocation32_spill] sm:$0xff] }
 0xc58   :  { %4155 = vrot.lane.b32.xlu0 %v4140_v9, %s14170_s15 }
 0xc59   :  { %4437 = vrot.lane.b32.xlu1 %v4422_v56, %s14176_s20 }
 0xc65   :  { %v4148_v34 = vpop.permute.xlu0 %4147 }
 0xc7a   :  { %v4152_v3 = vpop.permute.xlu1 %4151 }
 0xc7b   :  { %v4154_v60 = vpop.permute.xlu0 %4153 }
 0xc7c   :  { %v4161_v10 = vsel %vm179_vm2, %v4152_v3, %v4154_v60 }
 0xc7d   :  { %v4296_v55 = vadd.f32 %v4247_v19, %v4161_v10  ;;  %v20758_v10 = vld [vmem:[#allocation41_spill] sm:$0xff] }
 0xc7e   :  { %v4150_v13 = vpop.permute.xlu1 %4149 }
 0xc7f   :  { %v4163_v17 = vsel %vm179_vm2, %v4148_v34, %v4150_v13  ;;  %v4162_v49 = vsel %vm179_vm2, %v4150_v13, %v4152_v3 }
 0xc80   :  { %v4158_v40 = vpop.permute.xlu0 %4157  ;;  %v4294_v58 = vadd.f32 %v4206_v44, %v4163_v17  ;;  %v4295_v44 = vadd.f32 %v4245_v31, %v4162_v49  ;;  %v20757_v49 = vld [vmem:[#allocation40_spill] sm:$0xff] }
 0xc81   :  { %v4164_v22 = vsel %vm179_vm2, %v4158_v40, %v4148_v34  ;;  %v20750_v34 = vld [vmem:[#allocation33_spill] sm:$0xff] }
 0xc82   :  { %v4293_v63 = vadd.f32 %v4204_v47, %v4164_v22  ;;  %v20751_v22 = vld [vmem:[#allocation34_spill] sm:$0xff] }
 0xcaf   :  { %v4428_v20 = vpop.permute.xlu1 %4427 }
 0xcb3   :  { %v4430_v33 = vpop.permute.xlu1 %4429 }
 0xcb4   :  { %v4443_v45 = vsel %vm274_vm11, %v4428_v20, %v4430_v33 }
 0xcb5   :  { %v17253_v6 = vadd.f32 %v4443_v45, %v4293_v63  ;;  %v20754_v63 = vld [vmem:[#allocation37_spill] sm:$0xff] }
 0xcc2   :  { %v4432_v9 = vpop.permute.xlu0 %4431 }
 0xcc3   :  { %v4442_v23 = vsel %vm274_vm11, %v4430_v33, %v4432_v9 }
 0xcc4   :  { %v17249_v32 = vadd.f32 %v4442_v23, %v4294_v58  ;;  %v20756_v23 = vld [vmem:[#allocation39_spill] sm:$0xff] }
 0xcc6   :  { %v4434_v29 = vpop.permute.xlu0 %4433  ;;  %4519 = vmatprep.mubr.f32.mxu0 %v17249_v32  ;;  %v4666_v58 = vmul.f32 %v17249_v32, %v17249_v32 }
 0xcc7   :  { %v4441_v47 = vsel %vm274_vm11, %v4432_v9, %v4434_v29  ;;  %4520 = vmatmul.mubr.f32.vlgmr.msra.gmra.mrb[102].mxu0 %v17253_v6  ;;  %v4436_v56 = vpop.permute.xlu1 %4435  ;;  %v20752_v9 = vld [vmem:[#allocation35_spill] sm:$0xff] }
 0xcc8   :  { %12407 = vmatpush3.bf16.msra.mxu0 %v20749_v50  ;;  %v17260_v12 = vadd.f32 %v4441_v47, %v4295_v44  ;;  %v4440_v3 = vsel %vm274_vm11, %v4434_v29, %v4436_v56  ;;  %v20759_v29 = vld [vmem:[#allocation42_spill] sm:$0xff]  ;;  %v20760_v44 = vld [vmem:[#allocation43_spill] sm:$0xff] }
 0xcc9   :  { %12409 = vmatprep.subr.bf16.mxu0 %v20750_v34  ;;  %v17265_v17 = vadd.f32 %v4440_v3, %v4296_v55  ;;  %v20761_v55 = vld [vmem:[#allocation44_spill] sm:$0xff] }
 0xcca   :  { %v4156_v13 = vpop.permute.xlu0 %4155 }
 0xccb   :  { %v4159_v31 = vsel %vm179_vm2, %v4156_v13, %v4158_v40  ;;  %4589 = vmatprep.mubr.f32.mxu1 %v17265_v17  ;;  %v4438_v19 = vpop.permute.xlu1 %4437  ;;  %v4160_v47 = vsel %vm179_vm2, %v4154_v60, %v4156_v13 }
 0xccc   :  { %v4298_v33 = vadd.f32 %v4288_v36, %v4159_v31  ;;  %12411 = vmatpush3.bf16.msra.mxu0 %v20751_v22  ;;  %v4444_v45 = vsel %vm274_vm11, %v4438_v19, %v4428_v20  ;;  %4590 = vmatmul.mubr.f32.vlgmr.msra.gmra.mrb[90].mxu1 %v17260_v12  ;;  %v20753_v36 = vld [vmem:[#allocation36_spill] sm:$0xff]  ;;  %v20755_v20 = vld [vmem:[#allocation38_spill] sm:$0xff]  ;;  %v4297_v3 = vadd.f32 %v17230_v61, %v4160_v47  ;;  %v20762_v31 = vld [vmem:[#allocation45_spill] sm:$0xff] }
 0xccd   :  { %12413 = vmatprep.subr.bf16.mxu0 %v20752_v9  ;;  %12439 = vmatpush3.bf16.msra.mxu1 %v20723_v59  ;;  %v4668_v61 = vmul.f32 %v17265_v17, %v17265_v17 }
 0xcce   :  { %4735 = vmatprep.mubr.f32.mxu1 %v4666_v58  ;;  %v17278_v40 = vadd.f32 %v4444_v45, %v4298_v33  ;;  %12441 = vmatprep.subr.bf16.mxu1 %v20724_v38  ;;  %v4439_v33 = vsel %vm274_vm11, %v4436_v56, %v4438_v19  ;;  %v20763_v58 = vld [vmem:[#allocation46_spill] sm:$0xff]  ;;  %v4665_v56 = vmul.f32 %v17253_v6, %v17253_v6 }
 0xccf   :  { %v17308_v60 = vadd.f32 %v4439_v33, %v4297_v3  ;;  %v4667_v19 = vmul.f32 %v17260_v12, %v17260_v12 }
 0xcd0   :  { %12415 = vmatpush3.bf16.msra.mxu0 %v20753_v36  ;;  %4659 = vmatprep.mubr.f32.mxu0 %v17278_v40  ;;  %v4670_v13 = vmul.f32 %v17278_v40, %v17278_v40 }
 0xcd1   :  { %12417 = vmatprep.subr.bf16.mxu0 %v20754_v63  ;;  %12443 = vmatpush3.bf16.msra.mxu1 %v20725_v54  ;;  %v4669_v45 = vmul.f32 %v17308_v60, %v17308_v60 }
 0xcd2   :  { %12445 = vmatprep.subr.bf16.mxu1 %v20726_v0 }
 0xcd4   :  { %12419 = vmatpush3.bf16.msra.mxu0 %v20755_v20 }
 0xcd5   :  { %12421 = vmatprep.subr.bf16.mxu0 %v20756_v23  ;;  %12447 = vmatpush3.bf16.msra.mxu1 %v20727_v2 }
 0xcd6   :  { %12449 = vmatprep.subr.bf16.mxu1 %v20728_v4 }
 0xcd8   :  { %12423 = vmatpush3.bf16.msra.mxu0 %v20757_v49 }
 0xcd9   :  { %12425 = vmatprep.subr.bf16.mxu0 %v20758_v10  ;;  %12451 = vmatpush3.bf16.msra.mxu1 %v20729_v51 }
 0xcda   :  { %12453 = vmatprep.subr.bf16.mxu1 %v20730_v24 }
 0xcdc   :  { %12427 = vmatpush3.bf16.msra.mxu0 %v20759_v29 }
 0xcdd   :  { %12429 = vmatprep.subr.bf16.mxu0 %v20760_v44  ;;  %12455 = vmatpush3.bf16.msra.mxu1 %v20732_v28 }
 0xcde   :  { %12457 = vmatprep.subr.bf16.mxu1 %v20733_v39 }
 0xce0   :  { %12431 = vmatpush3.bf16.msra.mxu0 %v20761_v55 }
 0xce1   :  { %12433 = vmatprep.subr.bf16.mxu0 %v20762_v31  ;;  %12459 = vmatpush3.bf16.msra.mxu1 %v20736_v14 }
 0xce2   :  { %12461 = vmatprep.subr.bf16.mxu1 %v20737_v5 }
 0xce4   :  { %12435 = vmatpush3.bf16.msra.mxu0 %v20763_v58 }
 0xce5   :  { %12469 = vmatprep.subr.bf16.mxu0 %v14714_v30  ;;  %12463 = vmatpush3.bf16.msra.mxu1 %v20740_v25 }
 0xce6   :  { %12465 = vmatprep.subr.bf16.mxu1 %v20741_v37 }
 0xce7   :  { %4660 = vmatmul.mubr.f32.vlgmr.msra.gmra.mrb[120].mxu0 %v17308_v60 }
 0xce8   :  { %12471 = vmatpush3.bf16.msra.mxu0 %v14746_v57  ;;  %4805 = vmatprep.mubr.f32.mxu0 %v4668_v61 }
 0xce9   :  { %12473 = vmatprep.subr.bf16.mxu0 %v14749_v1  ;;  %12467 = vmatpush3.bf16.msra.mxu1 %v20744_v52 }
 0xcea   :  { %12501 = vmatprep.subr.bf16.mxu1 %v20745_v35 }
 0xcec   :  { %12475 = vmatpush3.bf16.msra.mxu0 %v14785_v21  ;;  %4736 = vmatmul.mubr.f32.vlgmr.msra.gmra.mrb[112].mxu1 %v4665_v56 }
 0xced   :  { %12477 = vmatprep.subr.bf16.mxu0 %v14788_v42  ;;  %12503 = vmatpush3.bf16.msra.mxu1 %v20749_v50 }
 0xcee   :  { %4875 = vmatprep.mubr.f32.mxu1 %v4670_v13  ;;  %12505 = vmatprep.subr.bf16.mxu1 %v20750_v34  ;;  %v20767_v34 = vld [vmem:[#allocation52_spill] sm:$0xff] }
 0xcf0   :  { %12479 = vmatpush3.bf16.msra.mxu0 %v14821_v53 }
 0xcf1   :  { %12481 = vmatprep.subr.bf16.mxu0 %v20731_v48  ;;  %12507 = vmatpush3.bf16.msra.mxu1 %v20751_v22  ;;  %v20766_v22 = vld [vmem:[#allocation49_spill] sm:$0xff] }
 0xcf2   :  { %12509 = vmatprep.subr.bf16.mxu1 %v20752_v9  ;;  %v20765_v9 = vld [vmem:[#allocation48_spill] sm:$0xff] }
 0xcf4   :  { %12483 = vmatpush3.bf16.msra.mxu0 %v20734_v18 }
 0xcf5   :  { %12485 = vmatprep.subr.bf16.mxu0 %v20735_v16  ;;  %12511 = vmatpush3.bf16.msra.mxu1 %v20753_v36 }
 0xcf6   :  { %12513 = vmatprep.subr.bf16.mxu1 %v20754_v63 }
 0xcf8   :  { %12487 = vmatpush3.bf16.msra.mxu0 %v20738_v11 }
 0xcf9   :  { %12489 = vmatprep.subr.bf16.mxu0 %v20739_v26  ;;  %12515 = vmatpush3.bf16.msra.mxu1 %v20755_v20 }
 0xcfa   :  { %12517 = vmatprep.subr.bf16.mxu1 %v20756_v23 }
 0xcfc   :  { %12491 = vmatpush3.bf16.msra.mxu0 %v20742_v8 }
 0xcfd   :  { %12493 = vmatprep.subr.bf16.mxu0 %v20743_v46  ;;  %12519 = vmatpush3.bf16.msra.mxu1 %v20757_v49 }
 0xcfe   :  { %12521 = vmatprep.subr.bf16.mxu1 %v20758_v10 }
 0xd00   :  { %12495 = vmatpush3.bf16.msra.mxu0 %v20746_v43 }
 0xd01   :  { %12497 = vmatprep.subr.bf16.mxu0 %v20747_v27  ;;  %12523 = vmatpush3.bf16.msra.mxu1 %v20759_v29 }
 0xd02   :  { %12525 = vmatprep.subr.bf16.mxu1 %v20760_v44 }
 0xd04   :  { %12499 = vmatpush3.bf16.msra.mxu0 %v20748_v15 }
 0xd05   :  { %12527 = vmatpush3.bf16.msra.mxu1 %v20761_v55 }
 0xd06   :  { %12529 = vmatprep.subr.bf16.mxu1 %v20762_v31 }
 0xd07   :  { %4806 = vmatmul.mubr.f32.vlgmr.msra.gmra.mrb[122].mxu0 %v4667_v19 }
 0xd08   :  { %5347 = vmatprep.mubr.bf16.mxu0 %v20596_v7 }
 0xd09   :  { %12531 = vmatpush3.bf16.msra.mxu1 %v20763_v58 }
 0xd0c   :  { %4876 = vmatmul.mubr.f32.vlgmr.msra.gmra.mrb[114].mxu1 %v4669_v45  ;;  %v9799_v45 = vld [vmem:[%s20118_s8 + $0x4] sm:$0x7] }
 0xd0d   :  { %5453 = vmatprep.mubr.bf16.mxu1 %v20596_v7 }
 0xd9a   :  { %v10638_v47 = vpop.f32.mrb[102].mxu0 }
 0xd9b   :  { %v10639_v3 = vpop.f32.mrb[103].mxu0 }
 0xd9c   :  { %v10640_v33 = vadd.f32 %v10639_v3, %v10638_v47 }
 0xd9f   :  { %v10673_v61 = vpop.f32.mrb[90].mxu1 }
 0xda0   :  { %v10674_v56 = vpop.f32.mrb[91].mxu1 }
 0xda1   :  { %v10675_v13 = vadd.f32 %v10674_v56, %v10673_v61 }
 0xda3   :  { %v4592_v55 = vadd.f32 %v10675_v13, %v10640_v33 }
 0xdba   :  { %v10708_v19 = vpop.f32.mrb[120].mxu0 }
 0xdbb   :  { %v10709_v44 = vpop.f32.mrb[121].mxu0 }
 0xdbc   :  { %v10710_v31 = vadd.f32 %v10709_v44, %v10708_v19 }
 0xdbe   :  { %v4662_v29 = vadd.f32 %v10710_v31, %v4592_v55 }
 0xdbf   :  { %v10743_v49 = vpop.f32.mrb[112].mxu1 }
 0xdc0   :  { %v4881_v10 = vmul.f32 0.001953125, %v4662_v29  ;;  %v10744_v58 = vpop.f32.mrb[113].mxu1 }
 0xdc1   :  { %v10745_v23 = vadd.f32 %v10744_v58, %v10743_v49  ;;  %v9798_v49 = vld [vmem:[%s20119_s7 + $0x4] sm:$0x7] }
 0xdc2   :  { %4891 = vperm.xlu0 %13395, %v4881_v10   ;;  %v4883_v44 = vmul.f32 %v4881_v10, %v4881_v10 }
 0xdc6   :  { %4913 = vperm.xlu0 %13395, %v9799_v45  }
 0xdda   :  { %v10778_v20 = vpop.f32.mrb[122].mxu0 }
 0xddb   :  { %v10779_v47 = vpop.f32.mrb[123].mxu0 }
 0xddc   :  { %v10780_v3 = vadd.f32 %v10779_v47, %v10778_v20 }
 0xdde   :  { %v4808_v63 = vadd.f32 %v10780_v3, %v10745_v23 }
 0xddf   :  { %v10813_v61 = vpop.f32.mrb[114].mxu1 }
 0xde0   :  { %v10814_v33 = vpop.f32.mrb[115].mxu1 }
 0xde1   :  { %v10815_v56 = vadd.f32 %v10814_v33, %v10813_v61 }
 0xde3   :  { %v4878_v13 = vadd.f32 %v10815_v56, %v4808_v63 }
 0xde5   :  { %v4882_v55 = vmul.f32 0.001953125, %v4878_v13 }
 0xde7   :  { %v4884_v29 = vsub.f32 %v4882_v55, %v4883_v44 }
 0xde9   :  { %v4885_v31 = vmax.f32 %v4884_v29, 0.0 }
 0xdeb   :  { %v4886_v19 = vadd.f32 1e-05, %v4885_v31 }
 0xded   :  { %14148 = vrsqrt.f32 %v4886_v19 }
 0xdf7   :  { %v14149_v58 = vpop.eup %14148 }
 0xdf8   :  { %v4888_v45 = vmul.f32 %v14149_v58, %v9798_v49 }
 0xdfa   :  { %4902 = vperm.xlu1 %13394, %v4888_v45   ;;  %v20764_v45 = vld [vmem:[#allocation47_spill] sm:$0xff] }
 0xe41   :  { %v4892_v36 = vpop.permute.xlu0 %4891 }
 0xe42   :  { %v4894_v20 = vsub.f32 %v17253_v6, %v4892_v36  ;;  %v4895_v23 = vsub.f32 %v17249_v32, %v4892_v36  ;;  %v4896_v63 = vsub.f32 %v17260_v12, %v4892_v36  ;;  %v4899_v10 = vsub.f32 %v17278_v40, %v4892_v36 }
 0xe45   :  { %v4914_v56 = vpop.permute.xlu0 %4913 }
 0xe79   :  { %v4903_v47 = vpop.permute.xlu1 %4902 }
 0xe7a   :  { %v4905_v3 = vmul.f32 %v4903_v47, %v4894_v20  ;;  %v4906_v61 = vmul.f32 %v4903_v47, %v4895_v23  ;;  %v4907_v33 = vmul.f32 %v4903_v47, %v4896_v63  ;;  %v4910_v13 = vmul.f32 %v4903_v47, %v4899_v10 }
 0xe7c   :  { %v4916_v44 = vadd.f32 %v4914_v56, %v4905_v3  ;;  %v4917_v55 = vadd.f32 %v4914_v56, %v4906_v61  ;;  %v4918_v29 = vadd.f32 %v4914_v56, %v4907_v33  ;;  %v4921_v31 = vadd.f32 %v4914_v56, %v4910_v13 }
 0xe7e   :  { %v4922_v19 = vmax.f32 %v4916_v44, 0.0  ;;  %v4923_v49 = vmax.f32 %v4917_v55, 0.0  ;;  %v4924_v58 = vmax.f32 %v4918_v29, 0.0  ;;  %v4927_v6 = vmax.f32 %v4921_v31, 0.0 }
 0xe80   :  { %v4928_v32 = vmul.f32 %v4922_v19, %v20764_v45  ;;  %v4929_v12 = vmul.f32 %v4923_v49, %v20765_v9  ;;  %v4930_v40 = vmul.f32 %v4924_v58, %v20766_v22  ;;  %v4933_v20 = vmul.f32 %v4927_v6, %v20767_v34 }
 0xe81   :  { %v4897_v49 = vsub.f32 %v17265_v17, %v4892_v36  ;;  %v4898_v58 = vsub.f32 %v17308_v60, %v4892_v36  ;;  %v20768_v60 = vld [vmem:[#allocation50_spill] sm:$0xff] }
 0xe82   :  { %v4934_v23 = vmul.f32 2.0, %v4928_v32  ;;  %v4935_v63 = vmul.f32 2.0, %v4929_v12  ;;  %v4936_v50 = vmul.f32 2.0, %v4930_v40  ;;  %v4939_v10 = vmul.f32 2.0, %v4933_v20 }
 0xe83   :  { %v4908_v6 = vmul.f32 %v4903_v47, %v4897_v49  ;;  %v4909_v32 = vmul.f32 %v4903_v47, %v4898_v58  ;;  %v9817_v49 = vld [vmem:[%s20114_s5 + $0x48] sm:$0xff]  ;;  %v9816_v58 = vld [vmem:[%s20114_s5 + $0x40] sm:$0xff] }
 0xe84   :  { %v4940_v3 = vadd.f32 %v4934_v23, %v20764_v45  ;;  %v4941_v61 = vadd.f32 %v4935_v63, %v20765_v9  ;;  %v4942_v33 = vadd.f32 %v4936_v50, %v20766_v22  ;;  %v4945_v13 = vadd.f32 %v4939_v10, %v20767_v34  ;;  %v20769_v23 = vld [vmem:[#allocation51_spill] sm:$0xff] }
 0xe85   :  { %v4919_v12 = vadd.f32 %v4914_v56, %v4908_v6  ;;  %v4920_v40 = vadd.f32 %v4914_v56, %v4909_v32 }
 0xe86   :  { %v17376_v44 = vmul.f32 2.0, %v4940_v3  ;;  %v17378_v55 = vmul.f32 2.0, %v4941_v61  ;;  %v17380_v29 = vmul.f32 2.0, %v4942_v33  ;;  %v17382_v31 = vmul.f32 2.0, %v4945_v13 }
 0xe87   :  { %v4925_v17 = vmax.f32 %v4919_v12, 0.0  ;;  %v4926_v36 = vmax.f32 %v4920_v40, 0.0 }
 0xe88   :  { %v13721_v19 = vpack.i.bf16 %v17378_v55, %v17376_v44  ;;  %v13731_v50 = vpack.i.bf16 %v17380_v29, %v17382_v31  ;;  %v13746_v20 = vpack.i.bf16 %v17380_v29, %v17378_v55  ;;  %v5161_v26 = vrot.slane %v17376_v44, 4 }
 0xe89   :  { %v4931_v47 = vmul.f32 %v4925_v17, %v20768_v60  ;;  %v4932_v63 = vmul.f32 %v4926_v36, %v20769_v23 }
 0xe8a   :  { %13722 = vrot.lane.b32.xlu0 %v13721_v19, %s14172_s17  ;;  %13717 = vrot.lane.b32.xlu1 %v13721_v19, %s14171_s16 }
 0xe8b   :  { %v4937_v56 = vmul.f32 2.0, %v4931_v47  ;;  %v4938_v10 = vmul.f32 2.0, %v4932_v63 }
 0xe8d   :  { %v4943_v3 = vadd.f32 %v4937_v56, %v20768_v60  ;;  %v4944_v61 = vadd.f32 %v4938_v10, %v20769_v23 }
 0xe8e   :  { %13732 = vrot.lane.b32.xlu0 %v13731_v50, %s14171_s16  ;;  %13727 = vrot.lane.b32.xlu1 %v13721_v19, %s14170_s15 }
 0xe8f   :  { %v17417_v33 = vmul.f32 2.0, %v4943_v3  ;;  %v17419_v13 = vmul.f32 2.0, %v4944_v61 }
 0xe92   :  { %13742 = vrot.lane.b32.xlu0 %v13731_v50, %s14170_s15  ;;  %13737 = vrot.lane.b32.xlu1 %v13731_v50, %s14172_s17  ;;  %v13776_v50 = vpack.i.bf16 %v17417_v33, %v17380_v29 }
 0xe96   :  { %13752 = vrot.lane.b32.xlu0 %v13721_v19, %s14173_s0  ;;  %13747 = vrot.lane.b32.xlu1 %v13746_v20, %s14174_s18  ;;  %v13771_v19 = vpack.i.bf16 %v17419_v13, %v17417_v33 }
 0xe9a   :  { %13757 = vrot.lane.b32.xlu0 %v13746_v20, %s14175_s19  ;;  %5029 = vrot.lane.b32.xlu1 %v17376_v44, %s14174_s18 }
 0xe9e   :  { %5047 = vrot.lane.b32.xlu0 %v17376_v44, %s14175_s19  ;;  %4967 = vrot.lane.b32.xlu1 %v17382_v31, %s14173_s0 }
 0xea2   :  { %5065 = vrot.lane.b32.xlu0 %v17376_v44, %s14176_s20  ;;  %13762 = vrot.lane.b32.xlu1 %v13746_v20, %s14176_s20 }
 0xea6   :  { %5083 = vrot.lane.b32.xlu0 %v17376_v44, %s14177_s21  ;;  %13767 = vrot.lane.b32.xlu1 %v13746_v20, %s14177_s21 }
 0xeaa   :  { %5017 = vrot.lane.b32.xlu0 %v17417_v33, %s14172_s17  ;;  %4999 = vrot.lane.b32.xlu1 %v17417_v33, %s14171_s16 }
 0xeae   :  { %13772 = vrot.lane.b32.xlu0 %v13771_v19, %s14174_s18  ;;  %4981 = vrot.lane.b32.xlu1 %v17417_v33, %s14170_s15 }
 0xeb2   :  { %13782 = vrot.lane.b32.xlu0 %v13771_v19, %s14175_s19  ;;  %13777 = vrot.lane.b32.xlu1 %v13776_v50, %s14173_s0 }
 0xeb6   :  { %13792 = vrot.lane.b32.xlu0 %v13771_v19, %s14177_s21  ;;  %13787 = vrot.lane.b32.xlu1 %v13771_v19, %s14176_s20 }
 0xeba   :  { %5019 = vrot.lane.b32.xlu0 %v17419_v13, %s14172_s17  ;;  %5001 = vrot.lane.b32.xlu1 %v17419_v13, %s14171_s16 }
 0xebe   :  { %5039 = vrot.lane.b32.xlu0 %v17382_v31, %s14174_s18  ;;  %4983 = vrot.lane.b32.xlu1 %v17419_v13, %s14170_s15 }
 0xec2   :  { %5057 = vrot.lane.b32.xlu0 %v17382_v31, %s14175_s19  ;;  %4965 = vrot.lane.b32.xlu1 %v17419_v13, %s14173_s0 }
 0xec6   :  { %5093 = vrot.lane.b32.xlu0 %v17382_v31, %s14177_s21  ;;  %5075 = vrot.lane.b32.xlu1 %v17382_v31, %s14176_s20 }
 0xeca   :  { %6145 = vperm.xlu0 %13395, %v9817_v49   ;;  %6140 = vperm.xlu1 %13394, %v9816_v58  }
 0xefc   :  { %v17458_v6 = vpop.permute.xlu0 %13722  ;;  %v17460_v32 = vpop.permute.xlu1 %13717 }
 0xefd   :  { %v20347_v12 = vunpack.i.h.bf16 %v17458_v6  ;;  %v13724_v40 = vunpack.i.l.bf16 %v17458_v6  ;;  %v20348_v20 = vunpack.i.h.bf16 %v17460_v32  ;;  %v13719_v17 = vunpack.i.l.bf16 %v17460_v32 }
 0xefe   :  { %v20776_v52 = vunpack.i.h.bf16 %v17458_v6  ;;  %v20777_v6 = vunpack.i.h.bf16 %v17460_v32 }
 0xeff   :  { %v5027_v63 = vsel %vm217_vm0, %v13724_v40, %v20347_v12  ;;  %v5009_v56 = vsel %vm198_vm1, %v13719_v17, %v20348_v20 }
 0xf00   :  { %v17466_v36 = vpop.permute.xlu0 %13732  ;;  %v17468_v47 = vpop.permute.xlu1 %13727  ;;  %v5144_v61 = vrot.slane %v5027_v63, 7  ;;  %v5126_v19 = vrot.slane %v5009_v56, 2 }
 0xf01   :  { %v20353_v10 = vunpack.i.h.bf16 %v17468_v47  ;;  %v13729_v3 = vunpack.i.l.bf16 %v17468_v47  ;;  %v20771_v20 = vunpack.i.l.bf16 %v17466_v36 }
 0xf02   :  { %v5240_v22 = vsel %vm20770_vm3, %v5126_v19, %v5144_v61  ;;  %vm20774_vm3 = vcmask 1041408  }
 0xf03   :  { %v4991_v12 = vsel %vm179_vm2, %v13729_v3, %v20353_v10  ;;  %v5010_v9 = vsel %vm198_vm1, %v20771_v20, %v13719_v17 }
 0xf04   :  { %v17480_v50 = vpop.permute.xlu0 %13742  ;;  %v17482_v49 = vpop.permute.xlu1 %13737  ;;  %v5125_v20 = vrot.slane %v5010_v9, 2 }
 0xf05   :  { %v20355_v58 = vunpack.i.l.bf16 %v17482_v49  ;;  %v20772_v17 = vunpack.i.l.bf16 %v17480_v50 }
 0xf07   :  { %v5028_v63 = vsel %vm217_vm0, %v20355_v58, %v13724_v40  ;;  %v5108_v40 = vrot.slane %v4991_v12, 5  ;;  %v5162_v58 = vrot.slane %v17378_v55, 4 }
 0xf08   :  { %v17495_v56 = vpop.permute.xlu0 %13752  ;;  %v17497_v60 = vpop.permute.xlu1 %13747  ;;  %v5143_v15 = vrot.slane %v5028_v63, 7  ;;  %v4992_v63 = vsel %vm179_vm2, %v20772_v17, %v13729_v3 }
 0xf09   :  { %v20361_v23 = vunpack.i.h.bf16 %v17495_v56  ;;  %v13754_v34 = vunpack.i.l.bf16 %v17495_v56  ;;  %v20362_v45 = vunpack.i.h.bf16 %v17497_v60  ;;  %v13749_v10 = vunpack.i.l.bf16 %v17497_v60 }
 0xf0a   :  { %v5246_v55 = vsel %vm435_vm4, %v5240_v22, %v5162_v58  ;;  %v5239_v22 = vsel %vm20773_vm12, %v5125_v20, %v5143_v15  ;;  %v5107_v58 = vrot.slane %v4992_v63, 5  ;;  %vm20775_vm12 = vmmov %vm20774_vm3 }
 0xf0b   :  { %v4973_v61 = vsel %vm160_vm5, %v13754_v34, %v20361_v23  ;;  %v5044_v27 = vsel %vm236_vm6, %v13749_v10, %v20362_v45  ;;  %v5245_v15 = vsel %vm435_vm4, %v5239_v22, %v5161_v26 }
 0xf0c   :  { %v5180_v43 = vrot.slane %v5044_v27, 1  ;;  %v17517_v46 = vpop.permute.xlu0 %13757  ;;  %v17519_v8 = vpop.permute.xlu1 %5029  ;;  %v5228_v12 = vsel %vm414_vm7, %v4973_v61, %v5108_v40 }
 0xf0d   :  { %v5045_v23 = vsel %vm236_vm6, %v17519_v8, %v13749_v10  ;;  %v5234_v27 = vsel %vm421_vm8, %v5228_v12, %v5126_v19  ;;  %v20365_v45 = vunpack.i.h.bf16 %v17517_v46  ;;  %v13759_v35 = vunpack.i.l.bf16 %v17517_v46 }
 0xf0e   :  { %v5252_v40 = vsel %vm442_vm9, %v5246_v55, %v5180_v43  ;;  %v5179_v61 = vrot.slane %v5045_v23, 1 }
 0xf0f   :  { %v5270_v9 = vpack.c.bf16 %v5252_v40, %v5234_v27  ;;  %v5062_v23 = vsel %vm255_vm10, %v13759_v35, %v20365_v45 }
 0xf10   :  { %v17536_v3 = vpop.permute.xlu0 %5047  ;;  %v17538_v17 = vpop.permute.xlu1 %4967  ;;  %v5251_v12 = vsel %vm442_vm9, %v5245_v15, %v5179_v61  ;;  %v5198_v40 = vrot.slane %v5062_v23, 6 }
 0xf11   :  { %v4974_v10 = vsel %vm160_vm5, %v17538_v17, %v13754_v34  ;;  %5315 = vmatprep.subr.bf16.mxu0 %v5270_v9  ;;  %v5063_v44 = vsel %vm255_vm10, %v17536_v3, %v13759_v35  ;;  %v13740_v35 = vunpack.i.h.bf16 %v17482_v49 }
 0xf12   :  { %v5227_v19 = vsel %vm414_vm7, %v4974_v10, %v5107_v58  ;;  %v5197_v9 = vrot.slane %v5063_v44, 6  ;;  %v13735_v58 = vunpack.i.h.bf16 %v17466_v36 }
 0xf13   :  { %v5233_v55 = vsel %vm421_vm8, %v5227_v19, %v5125_v20 }
 0xf14   :  { %v17554_v63 = vpop.permute.xlu0 %5065  ;;  %v17556_v34 = vpop.permute.xlu1 %13762  ;;  %v5269_v27 = vpack.c.bf16 %v5251_v12, %v5233_v55  ;;  %v5257_v19 = vsel %vm20774_vm3, %v5179_v61, %v5197_v9  ;;  %vm20780_vm3 = vcmask 1040384  }
 0xf15   :  { %v20366_v45 = vunpack.i.h.bf16 %v17556_v34  ;;  %v13764_v26 = vunpack.i.l.bf16 %v17556_v34 }
 0xf16   :  { %5316 = vmatpush1.bf16.msra.mxu0 %v5269_v27  ;;  %v5258_v27 = vsel %vm20775_vm12, %v5180_v43, %v5198_v40  ;;  %vm20781_vm12 = vmmov %vm20780_vm3 }
 0xf17   :  { %v5080_v22 = vsel %vm274_vm11, %v13764_v26, %v20366_v45  ;;  %v5081_v20 = vsel %vm274_vm11, %v17554_v63, %v13764_v26 }
 0xf18   :  { %v5215_v10 = vrot.slane %v5081_v20, 3  ;;  %v5216_v23 = vrot.slane %v5080_v22, 3  ;;  %v17569_v15 = vpop.permute.xlu0 %5083  ;;  %v17571_v44 = vpop.permute.xlu1 %13767  ;;  %v5026_v22 = vsel %vm217_vm0, %v20776_v52, %v13740_v35  ;;  %v5008_v52 = vsel %vm198_vm1, %v20777_v6, %v13735_v58 }
 0xf19   :  { %v20368_v12 = vunpack.i.h.bf16 %v17571_v44  ;;  %v13769_v55 = vunpack.i.l.bf16 %v17571_v44 }
 0xf1a   :  { %v5263_v45 = vsel %vm456_vm13, %v5257_v19, %v5215_v10  ;;  %v5264_v26 = vsel %vm456_vm13, %v5258_v27, %v5216_v23  ;;  %v20778_v27 = vld [vmem:[#allocation3_spill] sm:$0xff] }
 0xf1b   :  { %v5099_v20 = vsel %vm293_vm14, %v17569_v15, %v13769_v55  ;;  %v5098_v61 = vsel %vm293_vm14, %v13769_v55, %v20368_v12  ;;  %v5145_v55 = vrot.slane %v5026_v22, 7  ;;  %v5127_v12 = vrot.slane %v5008_v52, 2 }
 0xf1c   :  { %v5275_v9 = vpack.c.bf16 %v5099_v20, %v5263_v45  ;;  %v17590_v43 = vpop.permute.xlu0 %5017  ;;  %v17592_v40 = vpop.permute.xlu1 %4999  ;;  %v5276_v10 = vpack.c.bf16 %v5098_v61, %v5264_v26  ;;  %v13745_v45 = vunpack.i.h.bf16 %v17480_v50 }
 0xf1d   :  { %v5025_v23 = vsel %vm217_vm0, %v13740_v35, %v17590_v43  ;;  %v5007_v19 = vsel %vm198_vm1, %v13735_v58, %v17592_v40  ;;  %v17614_v35 = vld [vmem:[%s20112_s3 + $0x20] sm:$0xff]   ;;  %v5241_v52 = vsel %vm20780_vm3, %v5127_v12, %v5145_v55  ;;  %vm20783_vm3 = vcmask 220160  }
 0xf1e   :  { %v5301_v20 = vand.u32 %v5276_v10, %v20778_v27  ;;  %v5298_v26 = vand.u32 %v5275_v9, %v20778_v27  ;;  %v5146_v61 = vrot.slane %v5025_v23, 7  ;;  %v5128_v32 = vrot.slane %v5007_v19, 2 }
 0xf1f   :  { %v20779_v9 = vunpack.i.h.bf16 %v17468_v47 }
 0xf20   :  { %v17607_v11 = vpop.permute.xlu0 %13772  ;;  %v17609_v6 = vpop.permute.xlu1 %4981  ;;  %5317 = vmatprep.subr.bf16.mxu0 %v5301_v20  ;;  %v5242_v23 = vsel %vm20781_vm12, %v5128_v32, %v5146_v61  ;;  %v20782_v20 = vunpack.i.h.bf16 %v17497_v60  ;;  %v5164_v61 = vrot.slane %v17417_v33, 4  ;;  %v5163_v60 = vrot.slane %v17380_v29, 4 }
 0xf21   :  { %v20372_v58 = vunpack.i.h.bf16 %v17607_v11  ;;  %v13774_v22 = vunpack.i.l.bf16 %v17607_v11  ;;  %5318 = vmatpush1.bf16.msra.mxu0 %v5298_v26  ;;  %v4990_v10 = vsel %vm179_vm2, %v20779_v9, %v13745_v45  ;;  %v4989_v47 = vsel %vm179_vm2, %v13745_v45, %v17609_v6 }
 0xf22   :  { %v5109_v45 = vrot.slane %v4990_v10, 5  ;;  %v5248_v25 = vsel %vm435_vm4, %v5242_v23, %v5164_v61  ;;  %v5247_v18 = vsel %vm435_vm4, %v5241_v52, %v5163_v60  ;;  %v20784_v33 = vunpack.i.h.bf16 %v17517_v46 }
 0xf23   :  { %v5042_v19 = vsel %vm236_vm6, %v13774_v22, %v20372_v58  ;;  %v5043_v37 = vsel %vm236_vm6, %v20782_v20, %v13774_v22  ;;  %vm20788_vm12 = vcmask 1041408  }
 0xf24   :  { %v5181_v26 = vrot.slane %v5043_v37, 1  ;;  %v5182_v9 = vrot.slane %v5042_v19, 1  ;;  %v17635_v16 = vpop.permute.xlu0 %13782  ;;  %v17637_v55 = vpop.permute.xlu1 %13777  ;;  %9806 = vmatmul.mubr.msk.bf16.vlgmr.msra.gmra.mrb[124].mxu0 %vm20783_vm3, %v17614_v35  ;;  %v5110_v19 = vrot.slane %v4989_v47, 5  ;;  %v20786_v47 = vunpack.i.h.bf16 %v17495_v56  ;;  %vm20789_vm15 = vmmov %vm20788_vm12 }
 0xf25   :  { %v20376_v58 = vunpack.i.h.bf16 %v17635_v16  ;;  %v13784_v22 = vunpack.i.l.bf16 %v17635_v16  ;;  %v13779_v37 = vunpack.i.l.bf16 %v17637_v55  ;;  %5357 = vmatprep.mubr.bf16.mxu0 %v20596_v7  ;;  %v20785_v5 = vunpack.i.h.bf16 %v17637_v55 }
 0xf27   :  { %v5060_v29 = vsel %vm255_vm10, %v13784_v22, %v20376_v58  ;;  %v5061_v20 = vsel %vm255_vm10, %v20784_v33, %v13784_v22  ;;  %v4971_v10 = vsel %vm160_vm5, %v13779_v37, %v20785_v5  ;;  %v4972_v52 = vsel %vm160_vm5, %v20786_v47, %v13779_v37  ;;  %v17675_v33 = vld [vmem:[%s20112_s3 + $0x28] sm:$0xff]  }
 0xf28   :  { %v5199_v23 = vrot.slane %v5061_v20, 6  ;;  %v5200_v61 = vrot.slane %v5060_v29, 6  ;;  %v5229_v60 = vsel %vm414_vm7, %v4972_v52, %v5109_v45  ;;  %v17667_v58 = vpop.permute.xlu0 %13792  ;;  %v17669_v46 = vpop.permute.xlu1 %13787  ;;  %v5230_v22 = vsel %vm414_vm7, %v4971_v10, %v5110_v19 }
 0xf29   :  { %v13790_v5 = vunpack.i.h.bf16 %v17669_v46  ;;  %v13789_v56 = vunpack.i.l.bf16 %v17669_v46  ;;  %v5254_v20 = vsel %vm442_vm9, %v5248_v25, %v5182_v9  ;;  %v5253_v37 = vsel %vm442_vm9, %v5247_v18, %v5181_v26 }
 0xf2a   :  { %v13794_v29 = vunpack.i.l.bf16 %v17667_v58  ;;  %v5236_v47 = vsel %vm421_vm8, %v5230_v22, %v5128_v32  ;;  %v5235_v19 = vsel %vm421_vm8, %v5229_v60, %v5127_v12  ;;  %v20787_v52 = vunpack.i.h.bf16 %v17556_v34 }
 0xf2b   :  { %v5078_v10 = vsel %vm274_vm11, %v13789_v56, %v13790_v5  ;;  %v5272_v48 = vpack.c.bf16 %v5254_v20, %v5236_v47  ;;  %v5260_v18 = vsel %vm20788_vm12, %v5182_v9, %v5200_v61  ;;  %v5271_v12 = vpack.c.bf16 %v5253_v37, %v5235_v19 }
 0xf2c   :  { %v5079_v25 = vsel %vm274_vm11, %v20787_v52, %v13789_v56  ;;  %v5218_v14 = vrot.slane %v5078_v10, 3  ;;  %v5020_v53 = vpop.permute.xlu0 %5019  ;;  %v5002_v39 = vpop.permute.xlu1 %5001  ;;  %9807 = vmatmul.mubr.msk.bf16.gmra.mrb[128].mxu0 %vm20783_vm3, %v17675_v33  ;;  %v5259_v32 = vsel %vm20789_vm15, %v5181_v26, %v5199_v23  ;;  %v20790_v60 = vunpack.i.l.bf16 %v17482_v49 }
 0xf2d   :  { %v5217_v45 = vrot.slane %v5079_v25, 3  ;;  %v5024_v22 = vsel %vm217_vm0, %v17590_v43, %v5020_v53  ;;  %v20791_v9 = vunpack.i.l.bf16 %v17466_v36  ;;  %v5006_v56 = vsel %vm198_vm1, %v17592_v40, %v5002_v39  ;;  %5368 = vmatprep.subr.bf16.mxu0 %v5272_v48  ;;  %5400 = vmatprep.mubr.bf16.mxu0 %v20596_v7 }
 0xf2e   :  { %v5023_v34 = vsel %vm217_vm0, %v5020_v53, %v20790_v60  ;;  %v5147_v26 = vrot.slane %v5024_v22, 7  ;;  %v5129_v49 = vrot.slane %v5006_v56, 2  ;;  %5369 = vmatpush1.bf16.msra.mxu0 %v5271_v12  ;;  %v20792_v37 = vunpack.i.h.bf16 %v17571_v44 }
 0xf2f   :  { %v5005_v61 = vsel %vm198_vm1, %v5002_v39, %v20791_v9  ;;  %v5148_v23 = vrot.slane %v5023_v34, 7  ;;  %v20793_v36 = vunpack.i.h.bf16 %v17667_v58  ;;  %v5266_v39 = vsel %vm456_vm13, %v5260_v18, %v5218_v14 }
 0xf30   :  { %v5130_v20 = vrot.slane %v5005_v61, 2  ;;  %v5097_v53 = vsel %vm293_vm14, %v20792_v37, %v13794_v29  ;;  %v5265_v48 = vsel %vm456_vm13, %v5259_v32, %v5217_v45  ;;  %vm20794_vm15 = vcmask 1040384   ;;  %v5040_v19 = vpop.permute.xlu0 %5039  ;;  %v4984_v10 = vpop.permute.xlu1 %4983 }
 0xf31   :  { %v5096_v43 = vsel %vm293_vm14, %v13794_v29, %v20793_v36  ;;  %v5243_v40 = vsel %vm20794_vm15, %v5129_v49, %v5147_v26  ;;  %v5165_v47 = vrot.slane %v17419_v13, 4  ;;  %v5277_v44 = vpack.c.bf16 %v5097_v53, %v5265_v48  ;;  %vm20795_vm12 = vmmov %vm20794_vm15 }
 0xf32   :  { %v5278_v52 = vpack.c.bf16 %v5096_v43, %v5266_v39  ;;  %v5244_v25 = vsel %vm20795_vm12, %v5130_v20, %v5148_v23  ;;  %v20796_v12 = vunpack.i.h.bf16 %v17607_v11  ;;  %v5046_v14 = vsel %vm236_vm6, %v5040_v19, %v17519_v8 }
 0xf33   :  { %v20797_v45 = vunpack.i.l.bf16 %v17480_v50  ;;  %v5184_v18 = vrot.slane %v5046_v14, 1  ;;  %v4988_v32 = vsel %vm179_vm2, %v17609_v6, %v4984_v10  ;;  %v5166_v11 = vrot.slane %v17382_v31, 4 }
 0xf34   :  { %v5041_v60 = vsel %vm236_vm6, %v20796_v12, %v5040_v19  ;;  %v5307_v34 = vand.u32 %v5278_v52, %v20778_v27  ;;  %v5304_v22 = vand.u32 %v5277_v44, %v20778_v27  ;;  %v5249_v9 = vsel %vm435_vm4, %v5243_v40, %v5165_v47  ;;  %v5058_v50 = vpop.permute.xlu0 %5057  ;;  %v4966_v56 = vpop.permute.xlu1 %4965 }
 0xf35   :  { %v4987_v13 = vsel %vm179_vm2, %v4984_v10, %v20797_v45  ;;  %v5183_v29 = vrot.slane %v5041_v60, 1  ;;  %v5111_v8 = vrot.slane %v4988_v32, 5  ;;  %v5250_v26 = vsel %vm435_vm4, %v5244_v25, %v5166_v11  ;;  %v20808_v11 = vld [vmem:[#allocation18_spill] sm:$0xff] }
 0xf36   :  { %v5112_v61 = vrot.slane %v4987_v13, 5  ;;  %5370 = vmatprep.subr.bf16.mxu0 %v5307_v34  ;;  %v20798_v23 = vunpack.i.h.bf16 %v17635_v16  ;;  %v5064_v31 = vsel %vm255_vm10, %v5058_v50, %v17536_v3  ;;  %v4969_v37 = vsel %vm160_vm5, %v4966_v56, %v17538_v17  ;;  %v20809_v34 = vld [vmem:[#allocation16_spill] sm:$0xff] }
 0xf37   :  { %v20799_v53 = vunpack.i.h.bf16 %v17637_v55  ;;  %v5255_v43 = vsel %vm442_vm9, %v5249_v9, %v5183_v29  ;;  %5371 = vmatpush1.bf16.msra.mxu0 %v5304_v22  ;;  %v5256_v48 = vsel %vm442_vm9, %v5250_v26, %v5184_v18  ;;  %v5202_v3 = vrot.slane %v5064_v31, 6  ;;  %v20810_v22 = vld [vmem:[#allocation21_spill] sm:$0xff]  ;;  %v20811_v9 = vld [vmem:[#allocation19_spill] sm:$0xff]  ;;  %v20820_v31 = vld [vmem:[#allocation28_spill] sm:$0xff] }
 0xf38   :  { %v5059_v6 = vsel %vm255_vm10, %v20798_v23, %v5058_v50  ;;  %v5232_v39 = vsel %vm414_vm7, %v4969_v37, %v5112_v61  ;;  %12533 = vmatprep.subr.bf16.mxu0 %v20617_v41  ;;  %v5076_v55 = vpop.permute.xlu1 %5075  ;;  %v5094_v52 = vpop.permute.xlu0 %5093  ;;  %vm20800_vm15 = vcmask 1041408   ;;  %v20802_v46 = vunpack.i.h.bf16 %v17667_v58  ;;  %v20807_v58 = vld [vmem:[#allocation15_spill] sm:$0xff]  ;;  %v20813_v61 = vld [vmem:[#allocation20_spill] sm:$0xff]  ;;  %v20818_v23 = vld [vmem:[#allocation26_spill] sm:$0xff] }
 0xf39   :  { %v4970_v36 = vsel %vm160_vm5, %v20799_v53, %v4966_v56  ;;  %v5201_v40 = vrot.slane %v5059_v6, 6  ;;  %v5238_v17 = vsel %vm421_vm8, %v5232_v39, %v5130_v20  ;;  %v5077_v44 = vsel %vm274_vm11, %v13790_v5, %v5076_v55  ;;  %vm20801_vm12 = vmmov %vm20800_vm15  ;;  %v20814_v50 = vld [vmem:[#allocation24_spill] sm:$0xff]  ;;  %v20815_v56 = vld [vmem:[#allocation23_spill] sm:$0xff] }
 0xf3a   :  { %v5231_v16 = vsel %vm414_vm7, %v4970_v36, %v5111_v8  ;;  %v5274_v19 = vpack.c.bf16 %v5256_v48, %v5238_v17  ;;  %9808 = vmatmul.mubr.msk.bf16.vlgmr.msra.gmra.mrb[132].mxu0 %vm20783_vm3, %v17614_v35  ;;  %v5219_v25 = vrot.slane %v5077_v44, 3  ;;  %v5262_v60 = vsel %vm20801_vm12, %v5184_v18, %v5202_v3  ;;  %vm20805_vm12 = vmmov %vm20783_vm3  ;;  %v20812_v8 = vld [vmem:[#allocation22_spill] sm:$0xff]  ;;  %v20817_v26 = vld [vmem:[#allocation31_spill] sm:$0xff] }
 0xf3b   :  { %v5237_v47 = vsel %vm421_vm8, %v5231_v16, %v5129_v49  ;;  %v5082_v49 = vsel %vm274_vm11, %v5076_v55, %v17554_v63  ;;  %5410 = vmatprep.mubr.bf16.mxu0 %v20596_v7  ;;  %v5261_v12 = vsel %vm20800_vm15, %v5183_v29, %v5201_v40  ;;  %12535 = vmatpush3.bf16.msra.mxu0 %v20723_v59  ;;  %vm20803_vm15 = vmmov %vm20783_vm3  ;;  %v20819_v6 = vld [vmem:[#allocation27_spill] sm:$0xff]  ;;  %v20821_v37 = vld [vmem:[#allocation29_spill] sm:$0xff] }
 0xf3c   :  { %v5273_v10 = vpack.c.bf16 %v5255_v43, %v5237_v47  ;;  %v5220_v20 = vrot.slane %v5082_v49, 3  ;;  %5421 = vmatprep.subr.bf16.mxu1 %v5274_v19  ;;  %v5095_v5 = vsel %vm293_vm14, %v20802_v46, %v5094_v52  ;;  %v5100_v63 = vsel %vm293_vm14, %v5094_v52, %v17569_v15  ;;  %12537 = vmatprep.subr.bf16.mxu0 %v20724_v38  ;;  %v20804_v15 = vld [vmem:[#allocation14_spill] sm:$0xff]  ;;  %v20823_v48 = vld [vmem:[#allocation32_spill] sm:$0xff]  ;;  %v20824_v40 = vld [vmem:[#allocation33_spill] sm:$0xff] }
 0xf3d   :  { %v5267_v14 = vsel %vm456_vm13, %v5261_v12, %v5219_v25  ;;  %v20822_v53 = vld [vmem:[#allocation30_spill] sm:$0xff]  ;;  %v20826_v55 = vld [vmem:[#allocation35_spill] sm:$0xff]  ;;  %v20827_v52 = vld [vmem:[#allocation36_spill] sm:$0xff] }
 0xf3e   :  { %5422 = vmatpush1.bf16.msra.mxu1 %v5273_v10  ;;  %v5268_v45 = vsel %vm456_vm13, %v5262_v60, %v5220_v20  ;;  %v5279_v13 = vpack.c.bf16 %v5095_v5, %v5267_v14  ;;  %v20825_v3 = vld [vmem:[#allocation34_spill] sm:$0xff]  ;;  %v20828_v44 = vld [vmem:[#allocation37_spill] sm:$0xff]  ;;  %v20830_v25 = vld [vmem:[#allocation39_spill] sm:$0xff] }
 0xf3f   :  { %v5280_v29 = vpack.c.bf16 %v5100_v63, %v5268_v45  ;;  %12539 = vmatpush3.bf16.msra.mxu0 %v20725_v54  ;;  %v20829_v49 = vld [vmem:[#allocation38_spill] sm:$0xff]  ;;  %v20831_v20 = vld [vmem:[#allocation40_spill] sm:$0xff]  ;;  %v20832_v60 = vld [vmem:[#allocation41_spill] sm:$0xff] }
 0xf40   :  { %v5310_v32 = vand.u32 %v5279_v13, %v20778_v27  ;;  %12541 = vmatprep.subr.bf16.mxu0 %v20726_v0  ;;  %v20833_v14 = vld [vmem:[#allocation42_spill] sm:$0xff]  ;;  %v20834_v45 = vld [vmem:[#allocation43_spill] sm:$0xff]  ;;  %v20835_v13 = vld [vmem:[#allocation44_spill] sm:$0xff] }
 0xf41   :  { %v5313_v18 = vand.u32 %v5280_v29, %v20778_v27 }
 0xf42   :  { %9809 = vmatmul.mubr.msk.bf16.gmra.mrb[136].mxu0 %vm20783_vm3, %v17675_v33  ;;  %vm20846_vm3 = vcmask 785408  }
 0xf43   :  { %5423 = vmatprep.subr.bf16.mxu1 %v5313_v18  ;;  %12543 = vmatpush3.bf16.msra.mxu0 %v20727_v2  ;;  %v20836_v18 = vld [vmem:[#allocation45_spill] sm:$0xff] }
 0xf44   :  { %5424 = vmatpush1.bf16.msra.mxu1 %v5310_v32  ;;  %12545 = vmatprep.subr.bf16.mxu0 %v20728_v4 }
 0xf45   :  { %12565 = vmatprep.subr.bf16.mxu1 %v14714_v30 }
 0xf47   :  { %9810 = vmatmul.mubr.msk.bf16.vlgmr.msra.gmra.mrb[116].mxu1 %vm20803_vm15, %v17614_v35  ;;  %12547 = vmatpush3.bf16.msra.mxu0 %v20729_v51  ;;  %v20806_v35 = vld [vmem:[#allocation17_spill] sm:$0xff]  ;;  %vm20857_vm15 = vmmov %vm20846_vm3 }
 0xf48   :  { %5463 = vmatprep.mubr.bf16.mxu1 %v20596_v7  ;;  %12567 = vmatpush3.bf16.msra.mxu1 %v14746_v57 }
 0xf49   :  { %12569 = vmatprep.subr.bf16.mxu1 %v14749_v1  ;;  %12549 = vmatprep.subr.bf16.mxu0 %v20730_v24 }
 0xf4b   :  { %12551 = vmatpush3.bf16.msra.mxu0 %v20732_v28 }
 0xf4c   :  { %12571 = vmatpush3.bf16.msra.mxu1 %v14785_v21  ;;  %12553 = vmatprep.subr.bf16.mxu0 %v20804_v15 }
 0xf4d   :  { %12573 = vmatprep.subr.bf16.mxu1 %v14788_v42 }
 0xf4f   :  { %9811 = vmatmul.mubr.msk.bf16.gmra.mrb[120].mxu1 %vm20805_vm12, %v17675_v33  ;;  %12555 = vmatpush3.bf16.msra.mxu0 %v20807_v58  ;;  %v20816_v33 = vld [vmem:[#allocation25_spill] sm:$0xff]  ;;  %vm20858_vm12 = vmmov %vm20846_vm3 }
 0xf50   :  { %12575 = vmatpush3.bf16.msra.mxu1 %v20806_v35  ;;  %12557 = vmatprep.subr.bf16.mxu0 %v20809_v34 }
 0xf51   :  { %12577 = vmatprep.subr.bf16.mxu1 %v20808_v11 }
 0xf53   :  { %12559 = vmatpush3.bf16.msra.mxu0 %v20811_v9 }
 0xf54   :  { %12579 = vmatpush3.bf16.msra.mxu1 %v20810_v22  ;;  %12561 = vmatprep.subr.bf16.mxu0 %v20813_v61 }
 0xf55   :  { %12581 = vmatprep.subr.bf16.mxu1 %v20812_v8 }
 0xf57   :  { %12563 = vmatpush3.bf16.msra.mxu0 %v20815_v56 }
 0xf58   :  { %12583 = vmatpush3.bf16.msra.mxu1 %v20814_v50  ;;  %12597 = vmatprep.subr.bf16.mxu0 %v20817_v26 }
 0xf59   :  { %12585 = vmatprep.subr.bf16.mxu1 %v20816_v33 }
 0xf5c   :  { %12587 = vmatpush3.bf16.msra.mxu1 %v20818_v23 }
 0xf5d   :  { %12589 = vmatprep.subr.bf16.mxu1 %v20819_v6 }
 0xf60   :  { %12591 = vmatpush3.bf16.msra.mxu1 %v20820_v31 }
 0xf61   :  { %12593 = vmatprep.subr.bf16.mxu1 %v20821_v37 }
 0xf64   :  { %12595 = vmatpush3.bf16.msra.mxu1 %v20822_v53 }
 0xf65   :  { %12629 = vmatprep.subr.bf16.mxu1 %v20617_v41 }
 0xff7   :  { %v17828_v36 = vpop.f32.mrb[124].mxu0 }
 0xff8   :  { %v17830_v43 = vpop.f32.mrb[125].mxu0 }
 0xff9   :  { %5548 = vmatprep.mubr.f32.mxu0 %v17830_v43  ;;  %v17833_v16 = vpop.f32.mrb[126].mxu0 }
 0xffa   :  { %5549 = vmatmul.mubr.f32.vlgmr.msra.gmra.mrb[140].mxu0 %v17828_v36  ;;  %v17836_v39 = vpop.f32.mrb[127].mxu0 }
 0xffb   :  { %12599 = vmatpush3.bf16.msra.mxu0 %v20823_v48  ;;  %5553 = vmatprep.mubr.f32.mxu0 %v17836_v39 }
 0xffc   :  { %12601 = vmatprep.subr.bf16.mxu0 %v20824_v40 }
 0xffe   :  { %5554 = vmatmul.mubr.f32.gmra.mrb[142].mxu0 %v17833_v16 }
 0xfff   :  { %12603 = vmatpush3.bf16.msra.mxu0 %v20825_v3  ;;  %v17843_v47 = vpop.f32.mrb[128].mxu0 }
0x1000   :  { %v17845_v17 = vpop.f32.mrb[129].mxu0  ;;  %12605 = vmatprep.subr.bf16.mxu0 %v20826_v55 }
0x1001   :  { %5558 = vmatprep.mubr.f32.mxu0 %v17845_v17  ;;  %v17849_v19 = vpop.f32.mrb[130].mxu0 }
0x1002   :  { %5559 = vmatmul.mubr.f32.gmra.mrb[144].mxu0 %v17843_v47  ;;  %v17852_v10 = vpop.f32.mrb[131].mxu0 }
0x1003   :  { %12607 = vmatpush3.bf16.msra.mxu0 %v20827_v52  ;;  %5563 = vmatprep.mubr.f32.mxu0 %v17852_v10 }
0x1004   :  { %12609 = vmatprep.subr.bf16.mxu0 %v20828_v44 }
0x1006   :  { %5564 = vmatmul.mubr.f32.gmra.mrb[146].mxu0 %v17849_v19 }
0x1007   :  { %12611 = vmatpush3.bf16.msra.mxu0 %v20829_v49 }
0x1008   :  { %12613 = vmatprep.subr.bf16.mxu0 %v20830_v25 }
0x100b   :  { %12615 = vmatpush3.bf16.msra.mxu0 %v20831_v20 }
0x100c   :  { %12617 = vmatprep.subr.bf16.mxu0 %v20832_v60 }
0x100d   :  { %v17861_v12 = vpop.f32.mrb[132].mxu0 }
0x100e   :  { %v17864_v46 = vpop.f32.mrb[133].mxu0 }
0x100f   :  { %5633 = vmatprep.mubr.f32.mxu1 %v17864_v46  ;;  %v17867_v5 = vpop.f32.mrb[134].mxu0  ;;  %12619 = vmatpush3.bf16.msra.mxu0 %v20833_v14 }
0x1010   :  { %5634 = vmatmul.mubr.f32.vlgmr.msra.gmra.mrb[124].mxu1 %v17861_v12  ;;  %v17870_v63 = vpop.f32.mrb[135].mxu0  ;;  %12621 = vmatprep.subr.bf16.mxu0 %v20834_v45 }
0x1011   :  { %12631 = vmatpush3.bf16.msra.mxu1 %v20723_v59  ;;  %5638 = vmatprep.mubr.f32.mxu1 %v17870_v63  ;;  %v20837_v59 = vld [vmem:[#allocation46_spill] sm:$0xff] }
0x1012   :  { %12633 = vmatprep.subr.bf16.mxu1 %v20724_v38 }
0x1013   :  { %12623 = vmatpush3.bf16.msra.mxu0 %v20835_v13 }
0x1014   :  { %5639 = vmatmul.mubr.f32.gmra.mrb[126].mxu1 %v17867_v5  ;;  %12625 = vmatprep.subr.bf16.mxu0 %v20836_v18 }
0x1015   :  { %12635 = vmatpush3.bf16.msra.mxu1 %v20725_v54  ;;  %v17880_v29 = vpop.f32.mrb[136].mxu0 }
0x1016   :  { %v17883_v32 = vpop.f32.mrb[137].mxu0  ;;  %12637 = vmatprep.subr.bf16.mxu1 %v20726_v0  ;;  %v5740_v0 = vmul.f32 %v17830_v43, %v17830_v43 }
0x1017   :  { %5643 = vmatprep.mubr.f32.mxu1 %v17883_v32  ;;  %v17887_v27 = vpop.f32.mrb[138].mxu0  ;;  %12627 = vmatpush3.bf16.msra.mxu0 %v20837_v59 }
0x1018   :  { %5644 = vmatmul.mubr.f32.gmra.mrb[128].mxu1 %v17880_v29  ;;  %v17890_v38 = vpop.f32.mrb[139].mxu0  ;;  %12661 = vmatprep.subr.bf16.mxu0 %v14714_v30 }
0x1019   :  { %12639 = vmatpush3.bf16.msra.mxu1 %v20727_v2  ;;  %5648 = vmatprep.mubr.f32.mxu1 %v17890_v38 }
0x101a   :  { %v17894_v54 = vpop.f32.mrb[116].mxu1  ;;  %12641 = vmatprep.subr.bf16.mxu1 %v20728_v4 }
0x101b   :  { %v17898_v41 = vpop.f32.mrb[117].mxu1 }
0x101c   :  { %5718 = vmatprep.mubr.f32.mxu0 %v17898_v41  ;;  %v17904_v62 = vpop.f32.mrb[118].mxu1  ;;  %5649 = vmatmul.mubr.f32.gmra.mrb[130].mxu1 %v17887_v27 }
0x101d   :  { %5719 = vmatmul.mubr.f32.vlgmr.msra.gmra.mrb[148].mxu0 %v17894_v54  ;;  %v17908_v2 = vpop.f32.mrb[119].mxu1  ;;  %12643 = vmatpush3.bf16.msra.mxu1 %v20729_v51 }
0x101e   :  { %5827 = vmatprep.mubr.f32.mxu1 %v5740_v0  ;;  %12663 = vmatpush3.bf16.msra.mxu0 %v14746_v57 }
0x101f   :  { %12645 = vmatprep.subr.bf16.mxu1 %v20730_v24  ;;  %5723 = vmatprep.mubr.f32.mxu0 %v17908_v2 }
0x1020   :  { %12665 = vmatprep.subr.bf16.mxu0 %v14749_v1 }
0x1021   :  { %5724 = vmatmul.mubr.f32.gmra.mrb[150].mxu0 %v17904_v62  ;;  %12647 = vmatpush3.bf16.msra.mxu1 %v20732_v28 }
0x1022   :  { %v17917_v4 = vpop.f32.mrb[120].mxu1  ;;  %12667 = vmatpush3.bf16.msra.mxu0 %v14785_v21  ;;  %12649 = vmatprep.subr.bf16.mxu1 %v20804_v15  ;;  %v5742_v15 = vmul.f32 %v17864_v46, %v17864_v46 }
0x1023   :  { %v17921_v51 = vpop.f32.mrb[121].mxu1  ;;  %12669 = vmatprep.subr.bf16.mxu0 %v14788_v42 }
0x1024   :  { %5728 = vmatprep.mubr.f32.mxu0 %v17921_v51  ;;  %v17925_v0 = vpop.f32.mrb[122].mxu1 }
0x1025   :  { %5729 = vmatmul.mubr.f32.gmra.mrb[152].mxu0 %v17917_v4  ;;  %v17928_v24 = vpop.f32.mrb[123].mxu1  ;;  %12651 = vmatpush3.bf16.msra.mxu1 %v20807_v58  ;;  %v5746_v58 = vmul.f32 %v17836_v39, %v17836_v39 }
0x1026   :  { %5733 = vmatprep.mubr.f32.mxu0 %v17928_v24  ;;  %12671 = vmatpush3.bf16.msra.mxu0 %v20806_v35 }
0x1027   :  { %12653 = vmatprep.subr.bf16.mxu1 %v20809_v34  ;;  %12673 = vmatprep.subr.bf16.mxu0 %v20808_v11  ;;  %v5739_v34 = vmul.f32 %v17828_v36, %v17828_v36 }
0x1029   :  { %5734 = vmatmul.mubr.f32.gmra.mrb[154].mxu0 %v17925_v0  ;;  %12655 = vmatpush3.bf16.msra.mxu1 %v20811_v9 }
0x102a   :  { %5912 = vmatprep.mubr.f32.mxu0 %v5742_v15  ;;  %12675 = vmatpush3.bf16.msra.mxu0 %v20810_v22  ;;  %v5745_v15 = vmul.f32 %v17833_v16, %v17833_v16 }
0x102b   :  { %12657 = vmatprep.subr.bf16.mxu1 %v20813_v61  ;;  %12677 = vmatprep.subr.bf16.mxu0 %v20812_v8 }
0x102d   :  { %12659 = vmatpush3.bf16.msra.mxu1 %v20815_v56  ;;  %v5752_v56 = vmul.f32 %v17845_v17, %v17845_v17 }
0x102e   :  { %12679 = vmatpush3.bf16.msra.mxu0 %v20814_v50  ;;  %12693 = vmatprep.subr.bf16.mxu1 %v20817_v26 }
0x102f   :  { %12681 = vmatprep.subr.bf16.mxu0 %v20816_v33 }
0x1030   :  { %5828 = vmatmul.mubr.f32.vlgmr.msra.gmra.mrb[132].mxu1 %v5739_v34  ;;  %v5758_v34 = vmul.f32 %v17852_v10, %v17852_v10 }
0x1031   :  { %5832 = vmatprep.mubr.f32.mxu1 %v5746_v58  ;;  %12695 = vmatpush3.bf16.msra.mxu1 %v20823_v48  ;;  %v5751_v58 = vmul.f32 %v17843_v47, %v17843_v47 }
0x1032   :  { %12683 = vmatpush3.bf16.msra.mxu0 %v20818_v23  ;;  %12697 = vmatprep.subr.bf16.mxu1 %v20824_v40 }
0x1033   :  { %12685 = vmatprep.subr.bf16.mxu0 %v20819_v6 }
0x1034   :  { %5833 = vmatmul.mubr.f32.gmra.mrb[134].mxu1 %v5745_v15  ;;  %v5744_v15 = vmul.f32 %v17898_v41, %v17898_v41 }
0x1035   :  { %5837 = vmatprep.mubr.f32.mxu1 %v5752_v56  ;;  %12699 = vmatpush3.bf16.msra.mxu1 %v20825_v3  ;;  %v5757_v56 = vmul.f32 %v17849_v19, %v17849_v19 }
0x1036   :  { %12687 = vmatpush3.bf16.msra.mxu0 %v20820_v31  ;;  %12701 = vmatprep.subr.bf16.mxu1 %v20826_v55  ;;  %v5741_v55 = vmul.f32 %v17861_v12, %v17861_v12 }
0x1037   :  { %12689 = vmatprep.subr.bf16.mxu0 %v20821_v37 }
0x1038   :  { %5838 = vmatmul.mubr.f32.gmra.mrb[136].mxu1 %v5751_v58  ;;  %v5748_v58 = vmul.f32 %v17870_v63, %v17870_v63 }
0x1039   :  { %5842 = vmatprep.mubr.f32.mxu1 %v5758_v34  ;;  %12703 = vmatpush3.bf16.msra.mxu1 %v20827_v52  ;;  %v5747_v34 = vmul.f32 %v17867_v5, %v17867_v5 }
0x103a   :  { %12691 = vmatpush3.bf16.msra.mxu0 %v20822_v53  ;;  %12705 = vmatprep.subr.bf16.mxu1 %v20828_v44  ;;  %v5754_v44 = vmul.f32 %v17883_v32, %v17883_v32 }
0x103c   :  { %5843 = vmatmul.mubr.f32.gmra.mrb[138].mxu1 %v5757_v56  ;;  %v5753_v56 = vmul.f32 %v17880_v29, %v17880_v29 }
0x103d   :  { %12707 = vmatpush3.bf16.msra.mxu1 %v20829_v49  ;;  %5997 = vmatprep.mubr.f32.mxu1 %v5744_v15  ;;  %v5759_v15 = vmul.f32 %v17887_v27, %v17887_v27 }
0x103e   :  { %5913 = vmatmul.mubr.f32.vlgmr.msra.gmra.mrb[156].mxu0 %v5741_v55  ;;  %12709 = vmatprep.subr.bf16.mxu1 %v20830_v25  ;;  %v5760_v55 = vmul.f32 %v17890_v38, %v17890_v38 }
0x103f   :  { %5917 = vmatprep.mubr.f32.mxu0 %v5748_v58  ;;  %v5750_v58 = vmul.f32 %v17908_v2, %v17908_v2 }
0x1041   :  { %12711 = vmatpush3.bf16.msra.mxu1 %v20831_v20 }
0x1042   :  { %5918 = vmatmul.mubr.f32.gmra.mrb[158].mxu0 %v5747_v34  ;;  %12713 = vmatprep.subr.bf16.mxu1 %v20832_v60  ;;  %v5749_v34 = vmul.f32 %v17904_v62, %v17904_v62 }
0x1043   :  { %5922 = vmatprep.mubr.f32.mxu0 %v5754_v44  ;;  %v5743_v44 = vmul.f32 %v17894_v54, %v17894_v54 }
0x1045   :  { %12715 = vmatpush3.bf16.msra.mxu1 %v20833_v14 }
0x1046   :  { %5923 = vmatmul.mubr.f32.gmra.mrb[160].mxu0 %v5753_v56  ;;  %12717 = vmatprep.subr.bf16.mxu1 %v20834_v45  ;;  %v5756_v56 = vmul.f32 %v17921_v51, %v17921_v51 }
0x1047   :  { %5927 = vmatprep.mubr.f32.mxu0 %v5760_v55  ;;  %v5755_v55 = vmul.f32 %v17917_v4, %v17917_v4 }
0x1049   :  { %12719 = vmatpush3.bf16.msra.mxu1 %v20835_v13 }
0x104a   :  { %5928 = vmatmul.mubr.f32.gmra.mrb[162].mxu0 %v5759_v15  ;;  %12721 = vmatprep.subr.bf16.mxu1 %v20836_v18  ;;  %v5762_v15 = vmul.f32 %v17928_v24, %v17928_v24 }
0x104b   :  { %6447 = vmatprep.mubr.bf16.mxu0 %v20596_v7 }
0x104d   :  { %12723 = vmatpush3.bf16.msra.mxu1 %v20837_v59 }
0x1050   :  { %5998 = vmatmul.mubr.f32.vlgmr.msra.gmra.mrb[140].mxu1 %v5743_v44  ;;  %v5761_v44 = vmul.f32 %v17925_v0, %v17925_v0 }
0x1051   :  { %6002 = vmatprep.mubr.f32.mxu1 %v5750_v58 }
0x1054   :  { %6003 = vmatmul.mubr.f32.gmra.mrb[142].mxu1 %v5749_v34 }
0x1055   :  { %6007 = vmatprep.mubr.f32.mxu1 %v5756_v56 }
0x1058   :  { %6008 = vmatmul.mubr.f32.gmra.mrb[144].mxu1 %v5755_v55 }
0x1059   :  { %6012 = vmatprep.mubr.f32.mxu1 %v5762_v15 }
0x105c   :  { %6013 = vmatmul.mubr.f32.gmra.mrb[146].mxu1 %v5761_v44 }
0x105d   :  { %6488 = vmatprep.mubr.bf16.mxu1 %v20596_v7 }
0x10cd   :  { %v10848_v58 = vpop.f32.mrb[140].mxu0 }
0x10ce   :  { %v10849_v59 = vpop.f32.mrb[141].mxu0 }
0x10cf   :  { %v10850_v18 = vadd.f32 %v10849_v59, %v10848_v58 }
0x10d1   :  { %v10851_v13 = vpop.f32.mrb[142].mxu0 }
0x10d2   :  { %v10852_v34 = vpop.f32.mrb[143].mxu0 }
0x10d3   :  { %v10853_v56 = vadd.f32 %v10852_v34, %v10851_v13 }
0x10d5   :  { %v10854_v45 = vpop.f32.mrb[144].mxu0 }
0x10d6   :  { %v10855_v14 = vpop.f32.mrb[145].mxu0 }
0x10d7   :  { %v10856_v60 = vadd.f32 %v10855_v14, %v10854_v45 }
0x10d9   :  { %v10857_v20 = vpop.f32.mrb[146].mxu0 }
0x10da   :  { %v10858_v25 = vpop.f32.mrb[147].mxu0 }
0x10db   :  { %v10859_v49 = vadd.f32 %v10858_v25, %v10857_v20 }
0x10e3   :  { %v10892_v55 = vpop.f32.mrb[124].mxu1 }
0x10e4   :  { %v10893_v15 = vpop.f32.mrb[125].mxu1 }
0x10e5   :  { %v10894_v52 = vadd.f32 %v10893_v15, %v10892_v55 }
0x10e7   :  { %v5636_v3 = vadd.f32 %v10894_v52, %v10850_v18  ;;  %v10895_v40 = vpop.f32.mrb[126].mxu1 }
0x10e8   :  { %v10896_v44 = vpop.f32.mrb[127].mxu1 }
0x10e9   :  { %v10897_v48 = vadd.f32 %v10896_v44, %v10895_v40 }
0x10eb   :  { %v5641_v53 = vadd.f32 %v10897_v48, %v10853_v56  ;;  %v10898_v37 = vpop.f32.mrb[128].mxu1 }
0x10ec   :  { %v10899_v31 = vpop.f32.mrb[129].mxu1 }
0x10ed   :  { %v10900_v59 = vadd.f32 %v10899_v31, %v10898_v37 }
0x10ef   :  { %v5646_v58 = vadd.f32 %v10900_v59, %v10856_v60  ;;  %v10901_v26 = vpop.f32.mrb[130].mxu1 }
0x10f0   :  { %v10936_v13 = vpop.f32.mrb[148].mxu0  ;;  %v10902_v34 = vpop.f32.mrb[131].mxu1 }
0x10f1   :  { %v10937_v6 = vpop.f32.mrb[149].mxu0  ;;  %v10903_v14 = vadd.f32 %v10902_v34, %v10901_v26 }
0x10f2   :  { %v10938_v45 = vadd.f32 %v10937_v6, %v10936_v13 }
0x10f3   :  { %v5651_v23 = vadd.f32 %v10903_v14, %v10859_v49 }
0x10f4   :  { %v5721_v25 = vadd.f32 %v10938_v45, %v5636_v3  ;;  %v10939_v20 = vpop.f32.mrb[150].mxu0 }
0x10f5   :  { %v10940_v61 = vpop.f32.mrb[151].mxu0 }
0x10f6   :  { %v6018_v55 = vmul.f32 0.001953125, %v5721_v25  ;;  %v10941_v52 = vadd.f32 %v10940_v61, %v10939_v20 }
0x10f8   :  { %v5726_v18 = vadd.f32 %v10941_v52, %v5641_v53  ;;  %v10942_v15 = vpop.f32.mrb[152].mxu0  ;;  %6052 = vperm.xlu1 %13394, %v6018_v55  }
0x10f9   :  { %v10943_v48 = vpop.f32.mrb[153].mxu0 }
0x10fa   :  { %v6019_v40 = vmul.f32 0.001953125, %v5726_v18  ;;  %v10944_v56 = vadd.f32 %v10943_v48, %v10942_v15 }
0x10fc   :  { %v5731_v31 = vadd.f32 %v10944_v56, %v5646_v58  ;;  %v10945_v37 = vpop.f32.mrb[154].mxu0  ;;  %6057 = vperm.xlu0 %13395, %v6019_v40  }
0x10fd   :  { %v10946_v60 = vpop.f32.mrb[155].mxu0 }
0x10fe   :  { %v6020_v44 = vmul.f32 0.001953125, %v5731_v31  ;;  %v10947_v59 = vadd.f32 %v10946_v60, %v10945_v37 }
0x1100   :  { %v5736_v26 = vadd.f32 %v10947_v59, %v5651_v23  ;;  %6062 = vperm.xlu1 %13394, %v6020_v44  }
0x1102   :  { %v6021_v6 = vmul.f32 0.001953125, %v5736_v26 }
0x1103   :  { %v10980_v3 = vpop.f32.mrb[132].mxu1 }
0x1104   :  { %6067 = vperm.xlu0 %13395, %v6021_v6   ;;  %v10981_v49 = vpop.f32.mrb[133].mxu1 }
0x1105   :  { %v10982_v13 = vadd.f32 %v10981_v49, %v10980_v3 }
0x1107   :  { %v10983_v61 = vpop.f32.mrb[134].mxu1 }
0x1108   :  { %v10984_v53 = vpop.f32.mrb[135].mxu1 }
0x1109   :  { %v10985_v34 = vadd.f32 %v10984_v53, %v10983_v61 }
0x110b   :  { %v10986_v14 = vpop.f32.mrb[136].mxu1 }
0x110c   :  { %v10987_v45 = vpop.f32.mrb[137].mxu1 }
0x110d   :  { %v10988_v25 = vadd.f32 %v10987_v45, %v10986_v14 }
0x110f   :  { %v10989_v20 = vpop.f32.mrb[138].mxu1 }
0x1110   :  { %v10990_v58 = vpop.f32.mrb[139].mxu1 }
0x1111   :  { %v10991_v52 = vadd.f32 %v10990_v58, %v10989_v20  ;;  %v11024_v18 = vpop.f32.mrb[156].mxu0 }
0x1112   :  { %v11025_v15 = vpop.f32.mrb[157].mxu0 }
0x1113   :  { %v11026_v48 = vadd.f32 %v11025_v15, %v11024_v18  ;;  %v6026_v18 = vmul.f32 %v6018_v55, %v6018_v55 }
0x1115   :  { %v5915_v56 = vadd.f32 %v11026_v48, %v10982_v13  ;;  %v11027_v23 = vpop.f32.mrb[158].mxu0 }
0x1116   :  { %v11028_v31 = vpop.f32.mrb[159].mxu0 }
0x1117   :  { %v11029_v37 = vadd.f32 %v11028_v31, %v11027_v23 }
0x1119   :  { %v5920_v60 = vadd.f32 %v11029_v37, %v10985_v34  ;;  %v11030_v59 = vpop.f32.mrb[160].mxu0  ;;  %v6027_v37 = vmul.f32 %v6019_v40, %v6019_v40 }
0x111a   :  { %v11031_v26 = vpop.f32.mrb[161].mxu0 }
0x111b   :  { %v11032_v3 = vadd.f32 %v11031_v26, %v11030_v59 }
0x111d   :  { %v5925_v49 = vadd.f32 %v11032_v3, %v10988_v25  ;;  %v11033_v9 = vpop.f32.mrb[162].mxu0 }
0x111e   :  { %v11034_v61 = vpop.f32.mrb[163].mxu0 }
0x111f   :  { %v11035_v53 = vadd.f32 %v11034_v61, %v11033_v9 }
0x1121   :  { %v5930_v33 = vadd.f32 %v11035_v53, %v10991_v52  ;;  %v6028_v53 = vmul.f32 %v6020_v44, %v6020_v44  ;;  %v9812_v44 = vld [vmem:[%s20115_s4 + $0x40] sm:$0xff] }
0x1123   :  { %v11068_v14 = vpop.f32.mrb[140].mxu1 }
0x1124   :  { %v11069_v45 = vpop.f32.mrb[141].mxu1 }
0x1125   :  { %v11070_v50 = vadd.f32 %v11069_v45, %v11068_v14 }
0x1127   :  { %v6000_v20 = vadd.f32 %v11070_v50, %v5915_v56  ;;  %v11071_v58 = vpop.f32.mrb[142].mxu1 }
0x1128   :  { %v11072_v8 = vpop.f32.mrb[143].mxu1 }
0x1129   :  { %v6022_v13 = vmul.f32 0.001953125, %v6000_v20  ;;  %v11073_v15 = vadd.f32 %v11072_v8, %v11071_v58 }
0x112b   :  { %v6030_v48 = vsub.f32 %v6022_v13, %v6026_v18  ;;  %v6005_v23 = vadd.f32 %v11073_v15, %v5920_v60  ;;  %v11074_v34 = vpop.f32.mrb[144].mxu1  ;;  %v6029_v60 = vmul.f32 %v6021_v6, %v6021_v6 }
0x112c   :  { %v11075_v31 = vpop.f32.mrb[145].mxu1 }
0x112d   :  { %v6034_v59 = vmax.f32 %v6030_v48, 0.0  ;;  %v6023_v25 = vmul.f32 0.001953125, %v6005_v23  ;;  %v11076_v26 = vadd.f32 %v11075_v31, %v11074_v34  ;;  %v9814_v31 = vld [vmem:[%s20115_s4 + $0x50] sm:$0xff] }
0x112f   :  { %v6038_v3 = vadd.f32 1e-05, %v6034_v59  ;;  %v6031_v9 = vsub.f32 %v6023_v25, %v6027_v37  ;;  %v6010_v52 = vadd.f32 %v11076_v26, %v5925_v49  ;;  %v11077_v61 = vpop.f32.mrb[146].mxu1  ;;  %v9815_v25 = vld [vmem:[%s20115_s4 + $0x58] sm:$0xff] }
0x1130   :  { %v11078_v14 = vpop.f32.mrb[147].mxu1 }
0x1131   :  { %14150 = vrsqrt.f32 %v6038_v3  ;;  %v6035_v50 = vmax.f32 %v6031_v9, 0.0  ;;  %v6024_v56 = vmul.f32 0.001953125, %v6010_v52  ;;  %v11079_v55 = vadd.f32 %v11078_v14, %v11077_v61  ;;  %v9818_v3 = vld [vmem:[%s20114_s5 + $0x50] sm:$0xff]  ;;  %v9819_v52 = vld [vmem:[%s20114_s5 + $0x58] sm:$0xff]  ;;  %v6141_v61 = vpop.permute.xlu1 %6140 }
0x1133   :  { %v6039_v45 = vadd.f32 1e-05, %v6035_v50  ;;  %v6032_v8 = vsub.f32 %v6024_v56, %v6028_v53  ;;  %v6015_v20 = vadd.f32 %v11079_v55, %v5930_v33  ;;  %v9813_v33 = vld [vmem:[%s20115_s4 + $0x48] sm:$0xff]  ;;  %v18030_v53 = vpop.permute.xlu0 %6145 }
0x1135   :  { %14152 = vrsqrt.f32 %v6039_v45  ;;  %v6036_v58 = vmax.f32 %v6032_v8, 0.0  ;;  %v6025_v40 = vmul.f32 0.001953125, %v6015_v20 }
0x1137   :  { %v6040_v18 = vadd.f32 1e-05, %v6036_v58  ;;  %v6033_v13 = vsub.f32 %v6025_v40, %v6029_v60 }
0x1139   :  { %14154 = vrsqrt.f32 %v6040_v18  ;;  %v6037_v15 = vmax.f32 %v6033_v13, 0.0 }
0x113b   :  { %v14151_v49 = vpop.eup %14150  ;;  %v6041_v48 = vadd.f32 1e-05, %v6037_v15 }
0x113c   :  { %v6046_v23 = vmul.f32 %v14151_v49, %v9812_v44 }
0x113d   :  { %14156 = vrsqrt.f32 %v6041_v48 }
0x113e   :  { %6096 = vperm.xlu1 %13394, %v6046_v23  }
0x113f   :  { %v14153_v6 = vpop.eup %14152 }
0x1140   :  { %v6047_v34 = vmul.f32 %v14153_v6, %v9813_v33 }
0x1142   :  { %6101 = vperm.xlu0 %13395, %v6047_v34  }
0x1143   :  { %v14155_v37 = vpop.eup %14154 }
0x1144   :  { %v6048_v59 = vmul.f32 %v14155_v37, %v9814_v31 }
0x1146   :  { %6106 = vperm.xlu1 %13394, %v6048_v59  }
0x1147   :  { %v14157_v26 = vpop.eup %14156 }
0x1148   :  { %v6049_v9 = vmul.f32 %v14157_v26, %v9815_v25 }
0x114a   :  { %6111 = vperm.xlu0 %13395, %v6049_v9   ;;  %6150 = vperm.xlu1 %13394, %v9818_v3  }
0x114e   :  { %6155 = vperm.xlu0 %13395, %v9819_v52  }
0x1177   :  { %v6053_v14 = vpop.permute.xlu1 %6052 }
0x1178   :  { %v6070_v56 = vsub.f32 %v17828_v36, %v6053_v14  ;;  %v6071_v55 = vsub.f32 %v17830_v43, %v6053_v14  ;;  %v6072_v45 = vsub.f32 %v17861_v12, %v6053_v14  ;;  %v6073_v8 = vsub.f32 %v17864_v46, %v6053_v14 }
0x1179   :  { %v6074_v60 = vsub.f32 %v17894_v54, %v6053_v14  ;;  %v6075_v58 = vsub.f32 %v17898_v41, %v6053_v14 }
0x117b   :  { %v6058_v50 = vpop.permute.xlu0 %6057 }
0x117c   :  { %v6076_v40 = vsub.f32 %v17833_v16, %v6058_v50  ;;  %v6077_v18 = vsub.f32 %v17836_v39, %v6058_v50  ;;  %v6078_v15 = vsub.f32 %v17867_v5, %v6058_v50  ;;  %v6079_v36 = vsub.f32 %v17870_v63, %v6058_v50 }
0x117d   :  { %v6080_v43 = vsub.f32 %v17904_v62, %v6058_v50  ;;  %v6081_v12 = vsub.f32 %v17908_v2, %v6058_v50 }
0x117f   :  { %v6063_v20 = vpop.permute.xlu1 %6062 }
0x1180   :  { %v6082_v46 = vsub.f32 %v17843_v47, %v6063_v20  ;;  %v6083_v54 = vsub.f32 %v17845_v17, %v6063_v20  ;;  %v6084_v41 = vsub.f32 %v17880_v29, %v6063_v20  ;;  %v6085_v16 = vsub.f32 %v17883_v32, %v6063_v20 }
0x1181   :  { %v6086_v39 = vsub.f32 %v17917_v4, %v6063_v20  ;;  %v6087_v44 = vsub.f32 %v17921_v51, %v6063_v20 }
0x1183   :  { %v18040_v13 = vpop.permute.xlu0 %6067 }
0x1184   :  { %v6088_v5 = vsub.f32 %v17849_v19, %v18040_v13  ;;  %v6089_v62 = vsub.f32 %v17852_v10, %v18040_v13  ;;  %v6090_v17 = vsub.f32 %v17887_v27, %v18040_v13  ;;  %v6091_v29 = vsub.f32 %v17890_v38, %v18040_v13 }
0x1185   :  { %v6092_v51 = vsub.f32 %v17925_v0, %v18040_v13  ;;  %v6093_v19 = vsub.f32 %v17928_v24, %v18040_v13 }
0x11bd   :  { %v6097_v63 = vpop.permute.xlu1 %6096 }
0x11be   :  { %v6114_v2 = vmul.f32 %v6097_v63, %v6070_v56  ;;  %v6115_v49 = vmul.f32 %v6097_v63, %v6071_v55  ;;  %v6116_v47 = vmul.f32 %v6097_v63, %v6072_v45  ;;  %v6117_v48 = vmul.f32 %v6097_v63, %v6073_v8  ;;  %v20838_v55 = vld [vmem:[#allocation48_spill] sm:$0xff]  ;;  %v20839_v45 = vld [vmem:[#allocation47_spill] sm:$0xff] }
0x11bf   :  { %v6118_v4 = vmul.f32 %v6097_v63, %v6074_v60  ;;  %v6119_v32 = vmul.f32 %v6097_v63, %v6075_v58 }
0x11c0   :  { %v6159_v10 = vadd.f32 %v6141_v61, %v6115_v49  ;;  %v6158_v23 = vadd.f32 %v6141_v61, %v6114_v2  ;;  %v6160_v34 = vadd.f32 %v6141_v61, %v6116_v47  ;;  %v18064_v31 = vadd.f32 %v6141_v61, %v6117_v48  ;;  %v20840_v2 = vld [vmem:[#allocation52_spill] sm:$0xff]  ;;  %v20841_v48 = vld [vmem:[#allocation49_spill] sm:$0xff] }
0x11c1   :  { %v6102_v33 = vpop.permute.xlu0 %6101  ;;  %v6163_v6 = vadd.f32 %v6141_v61, %v6119_v32  ;;  %v18066_v37 = vadd.f32 %v6141_v61, %v6118_v4 }
0x11c2   :  { %v6120_v27 = vmul.f32 %v6102_v33, %v6076_v40  ;;  %v6121_v59 = vmul.f32 %v6102_v33, %v6077_v18  ;;  %v6122_v38 = vmul.f32 %v6102_v33, %v6078_v15  ;;  %v6123_v25 = vmul.f32 %v6102_v33, %v6079_v36 }
0x11c3   :  { %v18068_v26 = vmul.f32 %v6102_v33, %v6080_v43  ;;  %v6125_v3 = vmul.f32 %v6102_v33, %v6081_v12  ;;  %v6183_v0 = vmax.f32 %v6159_v10, 0.0  ;;  %v6182_v9 = vmax.f32 %v6158_v23, 0.0 }
0x11c4   :  { %v6165_v24 = vadd.f32 %v18030_v53, %v6121_v59  ;;  %v6164_v52 = vadd.f32 %v18030_v53, %v6120_v27  ;;  %v6187_v14 = vmax.f32 %v6163_v6, 0.0  ;;  %v6166_v50 = vadd.f32 %v18030_v53, %v6122_v38 }
0x11c5   :  { %v6107_v56 = vpop.permute.xlu1 %6106  ;;  %v18074_v61 = vmul.f32 %v6183_v0, %v20838_v55  ;;  %v18077_v8 = vmul.f32 %v6182_v9, %v20839_v45  ;;  %v6169_v20 = vadd.f32 %v18030_v53, %v6125_v3  ;;  %v6184_v60 = vmax.f32 %v6160_v34, 0.0 }
0x11c6   :  { %v6126_v58 = vmul.f32 %v6107_v56, %v6082_v46  ;;  %v6127_v40 = vmul.f32 %v6107_v56, %v6083_v54  ;;  %v6128_v18 = vmul.f32 %v6107_v56, %v6084_v41  ;;  %v18080_v13 = vmul.f32 %v6107_v56, %v6085_v16 }
0x11c7   :  { %v18082_v15 = vmul.f32 %v6107_v56, %v6086_v39  ;;  %v6131_v36 = vmul.f32 %v6107_v56, %v6087_v44  ;;  %v6189_v43 = vmax.f32 %v6165_v24, 0.0  ;;  %v6188_v12 = vmax.f32 %v6164_v52, 0.0 }
0x11c8   :  { %v6193_v63 = vmax.f32 %v6169_v20, 0.0  ;;  %v18085_v49 = vmul.f32 %v6187_v14, %v20840_v2  ;;  %v6190_v47 = vmax.f32 %v6166_v50, 0.0  ;;  %v18088_v4 = vmul.f32 %v6184_v60, %v20841_v48 }
0x11c9   :  { %v6112_v32 = vpop.permute.xlu0 %6111  ;;  %v6151_v10 = vpop.permute.xlu1 %6150  ;;  %v18091_v46 = vmul.f32 %v6189_v43, %v20838_v55  ;;  %v18094_v54 = vmul.f32 %v6188_v12, %v20839_v45  ;;  %v6167_v41 = vadd.f32 %v18030_v53, %v6123_v25  ;;  %v6185_v16 = vmax.f32 %v18064_v31, 0.0 }
0x11ca   :  { %v6132_v39 = vmul.f32 %v6112_v32, %v6088_v5  ;;  %v6133_v44 = vmul.f32 %v6112_v32, %v6089_v62  ;;  %v6134_v23 = vmul.f32 %v6112_v32, %v6090_v17  ;;  %v6135_v33 = vmul.f32 %v6112_v32, %v6091_v29 }
0x11cb   :  { %v6136_v6 = vmul.f32 %v6112_v32, %v6092_v51  ;;  %v6137_v34 = vmul.f32 %v6112_v32, %v6093_v19  ;;  %v13801_v27 = vpack.i.bf16 %v18091_v46, %v18074_v61  ;;  %v18102_v59 = vpack.i.bf16 %v18094_v54, %v18077_v8 }
0x11cc   :  { %v18105_v38 = vmul.f32 %v6193_v63, %v20840_v2  ;;  %v6171_v3 = vadd.f32 %v6151_v10, %v6127_v40  ;;  %v6170_v25 = vadd.f32 %v6151_v10, %v6126_v58  ;;  %v6175_v62 = vadd.f32 %v6151_v10, %v6131_v36  ;;  %v20842_v36 = vld [vmem:[#allocation50_spill] sm:$0xff] }
0x11cd   :  { %13802 = vrot.lane.b32.xlu0 %v13801_v27, %s14172_s17  ;;  %13797 = vrot.lane.b32.xlu1 %v18102_v59, %s14172_s17  ;;  %v6156_v5 = vpop.permute.xlu0 %6155  ;;  %v18111_v17 = vmul.f32 %v6190_v47, %v20841_v48  ;;  %v6191_v29 = vmax.f32 %v6167_v41, 0.0  ;;  %v6209_v43 = vmul.f32 %v6185_v16, %v20842_v36  ;;  %v6172_v32 = vadd.f32 %v6151_v10, %v6128_v18 }
0x11ce   :  { %v18115_v51 = vpack.i.bf16 %v18105_v38, %v18085_v49  ;;  %v6177_v19 = vadd.f32 %v6156_v5, %v6133_v44  ;;  %v6195_v31 = vmax.f32 %v6171_v3, 0.0  ;;  %v6176_v0 = vadd.f32 %v6156_v5, %v6132_v39 }
0x11cf   :  { %v6194_v9 = vmax.f32 %v6170_v25, 0.0  ;;  %v6181_v24 = vadd.f32 %v6156_v5, %v6137_v34  ;;  %v6199_v52 = vmax.f32 %v6175_v62, 0.0  ;;  %v13831_v14 = vpack.i.bf16 %v18111_v17, %v18088_v4 }
0x11d0   :  { %v6201_v50 = vmax.f32 %v6177_v19, 0.0  ;;  %v6219_v56 = vmul.f32 %v6195_v31, %v20838_v55  ;;  %v6200_v20 = vmax.f32 %v6176_v0, 0.0  ;;  %v6215_v47 = vmul.f32 %v6191_v29, %v20842_v36  ;;  %v20843_v29 = vld [vmem:[#allocation51_spill] sm:$0xff] }
0x11d1   :  { %13807 = vrot.lane.b32.xlu1 %v18115_v51, %s14172_s17  ;;  %v6218_v60 = vmul.f32 %v6194_v9, %v20839_v45  ;;  %v6205_v58 = vmax.f32 %v6181_v24, 0.0  ;;  %v6223_v40 = vmul.f32 %v6199_v52, %v20840_v2  ;;  %v6178_v39 = vadd.f32 %v6156_v5, %v6134_v23 }
0x11d2   :  { %v6225_v12 = vmul.f32 %v6201_v50, %v20838_v55  ;;  %v6224_v63 = vmul.f32 %v6200_v20, %v20839_v45  ;;  %v6168_v44 = vadd.f32 %v18030_v53, %v18068_v26  ;;  %v6186_v34 = vmax.f32 %v18066_v37, 0.0 }
0x11d3   :  { %v6229_v41 = vmul.f32 %v6205_v58, %v20840_v2  ;;  %v13846_v62 = vpack.i.bf16 %v6215_v47, %v6209_v43  ;;  %v6196_v19 = vmax.f32 %v6172_v32, 0.0  ;;  %v6202_v31 = vmax.f32 %v6178_v39, 0.0 }
0x11d4   :  { %v13816_v3 = vpack.i.bf16 %v6225_v12, %v6219_v56  ;;  %v13811_v25 = vpack.i.bf16 %v6224_v63, %v6218_v60  ;;  %v6192_v0 = vmax.f32 %v6168_v44, 0.0  ;;  %v6210_v23 = vmul.f32 %v6186_v34, %v20843_v29 }
0x11d5   :  { %v13826_v16 = vpack.i.bf16 %v6229_v41, %v6223_v40  ;;  %v6220_v18 = vmul.f32 %v6196_v19, %v20841_v48  ;;  %v6226_v9 = vmul.f32 %v6202_v31, %v20841_v48  ;;  %v6173_v37 = vadd.f32 %v6151_v10, %v18080_v13 }
0x11d6   :  { %13817 = vrot.lane.b32.xlu1 %v13816_v3, %s14172_s17  ;;  %13812 = vrot.lane.b32.xlu0 %v13811_v25, %s14172_s17  ;;  %v6216_v53 = vmul.f32 %v6192_v0, %v20843_v29  ;;  %v6179_v26 = vadd.f32 %v6156_v5, %v6135_v33  ;;  %v6174_v24 = vadd.f32 %v6151_v10, %v18082_v15 }
0x11d7   :  { %v6180_v52 = vadd.f32 %v6156_v5, %v6136_v6  ;;  %v13856_v50 = vpack.i.bf16 %v6226_v9, %v6220_v18  ;;  %v6197_v58 = vmax.f32 %v6173_v37, 0.0  ;;  %v18146_v13 = vpack.c.bf16 %v18091_v46, %v18074_v61 }
0x11d8   :  { %v13861_v20 = vpack.i.bf16 %v6216_v53, %v6210_v23  ;;  %v6203_v32 = vmax.f32 %v6179_v26, 0.0  ;;  %v6198_v39 = vmax.f32 %v6174_v24, 0.0  ;;  %v18152_v33 = vpack.c.bf16 %v18094_v54, %v18077_v8 }
0x11d9   :  { %v6204_v44 = vmax.f32 %v6180_v52, 0.0  ;;  %v6221_v34 = vmul.f32 %v6197_v58, %v20842_v36  ;;  %v18154_v6 = vpack.c.bf16 %v6225_v12, %v6219_v56  ;;  %v18156_v5 = vpack.c.bf16 %v6224_v63, %v6218_v60 }
0x11da   :  { %13822 = vrot.lane.b32.xlu1 %v13801_v27, %s14174_s18  ;;  %13827 = vrot.lane.b32.xlu0 %v13826_v16, %s14172_s17  ;;  %v6227_v19 = vmul.f32 %v6203_v32, %v20842_v36  ;;  %v6222_v15 = vmul.f32 %v6198_v39, %v20843_v29  ;;  %v18158_v31 = vpack.c.bf16 %v6215_v47, %v6209_v43 }
0x11db   :  { %v6228_v10 = vmul.f32 %v6204_v44, %v20843_v29  ;;  %v18165_v46 = vpack.c.bf16 %v18111_v17, %v18088_v4  ;;  %v18171_v8 = vpack.c.bf16 %v18105_v38, %v18085_v49  ;;  %v18173_v54 = vpack.c.bf16 %v6226_v9, %v6220_v18 }
0x11dc   :  { %v13876_v27 = vpack.i.bf16 %v6227_v19, %v6221_v34  ;;  %v18167_v0 = vpack.c.bf16 %v6227_v19, %v6221_v34  ;;  %v18175_v56 = vpack.c.bf16 %v6216_v53, %v6210_v23  ;;  %v18177_v60 = vpack.c.bf16 %v6229_v41, %v6223_v40 }
0x11dd   :  { %v13881_v61 = vpack.i.bf16 %v6228_v10, %v6222_v15 }
0x11de   :  { %13837 = vrot.lane.b32.xlu1 %v18102_v59, %s14174_s18  ;;  %13832 = vrot.lane.b32.xlu0 %v13831_v14, %s14174_s18  ;;  %v18179_v59 = vpack.c.bf16 %v6228_v10, %v6222_v15 }
0x11e2   :  { %13842 = vrot.lane.b32.xlu1 %v13831_v14, %s14172_s17  ;;  %13847 = vrot.lane.b32.xlu0 %v13846_v62, %s14172_s17 }
0x11e6   :  { %13857 = vrot.lane.b32.xlu1 %v13856_v50, %s14174_s18  ;;  %13852 = vrot.lane.b32.xlu0 %v13816_v3, %s14174_s18 }
0x11ea   :  { %13862 = vrot.lane.b32.xlu1 %v13861_v20, %s14172_s17  ;;  %13867 = vrot.lane.b32.xlu0 %v13811_v25, %s14174_s18 }
0x11ee   :  { %13877 = vrot.lane.b32.xlu1 %v13876_v27, %s14172_s17  ;;  %13872 = vrot.lane.b32.xlu0 %v13856_v50, %s14172_s17 }
0x11f2   :  { %13887 = vrot.lane.b32.xlu1 %v13846_v62, %s14174_s18  ;;  %13882 = vrot.lane.b32.xlu0 %v13881_v61, %s14172_s17 }
0x11f6   :  { %13897 = vrot.lane.b32.xlu1 %v18115_v51, %s14174_s18  ;;  %13892 = vrot.lane.b32.xlu0 %v13861_v20, %s14174_s18 }
0x11fa   :  { %13907 = vrot.lane.b32.xlu1 %v13881_v61, %s14174_s18  ;;  %13902 = vrot.lane.b32.xlu0 %v13876_v27, %s14174_s18 }
0x11fe   :  { %13912 = vrot.lane.b32.xlu0 %v13826_v16, %s14174_s18 }
0x123f   :  { %v13803_v49 = vpop.permute.xlu0 %13802  ;;  %v13798_v4 = vpop.permute.xlu1 %13797 }
0x1240   :  { %v13805_v38 = vunpack.i.h.bf16 %v13803_v49  ;;  %v13804_v17 = vunpack.i.l.bf16 %v13803_v49  ;;  %v13800_v14 = vunpack.i.h.bf16 %v13798_v4  ;;  %v13799_v40 = vunpack.i.l.bf16 %v13798_v4 }
0x1242   :  { %v6294_v12 = vsel %vm217_vm0, %v13799_v40, %v13804_v17  ;;  %v6295_v51 = vsel %vm217_vm0, %v13800_v14, %v13805_v38 }
0x1243   :  { %v18201_v63 = vpop.permute.xlu1 %13807  ;;  %v18203_v47 = vpack.c.bf16 %v6295_v51, %v6294_v12 }
0x1244   :  { %v13810_v41 = vunpack.i.h.bf16 %v18201_v63  ;;  %v13809_v3 = vunpack.i.l.bf16 %v18201_v63 }
0x1245   :  { %6415 = vmatprep.subr.bf16.mxu0 %v18203_v47 }
0x1246   :  { %v6298_v25 = vsel %vm217_vm0, %v13809_v3, %v13799_v40  ;;  %v6299_v62 = vsel %vm217_vm0, %v13810_v41, %v13800_v14 }
0x1247   :  { %v18216_v16 = vpack.c.bf16 %v6299_v62, %v6298_v25 }
0x1248   :  { %v13813_v18 = vpop.permute.xlu0 %13812  ;;  %v18218_v23 = vpop.permute.xlu1 %13817 }
0x1249   :  { %v13815_v9 = vunpack.i.h.bf16 %v13813_v18  ;;  %v13814_v53 = vunpack.i.l.bf16 %v13813_v18  ;;  %v20434_v37 = vunpack.i.h.bf16 %v18218_v23  ;;  %v13819_v26 = vunpack.i.l.bf16 %v18218_v23  ;;  %6416 = vmatpush1.bf16.msra.mxu0 %v18216_v16 }
0x124b   :  { %v6296_v24 = vsel %vm217_vm0, %v13814_v53, %v13819_v26  ;;  %v6297_v52 = vsel %vm217_vm0, %v13815_v9, %v20434_v37 }
0x124c   :  { %v18231_v50 = vpop.permute.xlu0 %13827  ;;  %v13823_v20 = vpop.permute.xlu1 %13822  ;;  %v18233_v58 = vpack.c.bf16 %v6297_v52, %v6296_v24 }
0x124d   :  { %v20427_v32 = vunpack.i.h.bf16 %v18231_v50  ;;  %v20429_v39 = vunpack.i.l.bf16 %v18231_v50  ;;  %v13825_v49 = vunpack.i.h.bf16 %v13823_v20  ;;  %v13824_v4 = vunpack.i.l.bf16 %v13823_v20 }
0x124e   :  { %6417 = vmatprep.subr.bf16.mxu0 %v18233_v58 }
0x124f   :  { %v6300_v44 = vsel %vm217_vm0, %v20429_v39, %v13814_v53  ;;  %v6301_v34 = vsel %vm217_vm0, %v20427_v32, %v13815_v9 }
0x1250   :  { %v18246_v19 = vpop.permute.xlu0 %13832  ;;  %v18248_v15 = vpop.permute.xlu1 %13837  ;;  %v18250_v10 = vpack.c.bf16 %v6301_v34, %v6300_v44 }
0x1251   :  { %v20426_v27 = vunpack.i.h.bf16 %v18246_v19  ;;  %v20425_v61 = vunpack.i.l.bf16 %v18246_v19  ;;  %v20424_v14 = vunpack.i.l.bf16 %v18248_v15  ;;  %v20428_v40 = vunpack.i.h.bf16 %v18248_v15 }
0x1252   :  { %6418 = vmatpush1.bf16.msra.mxu0 %v18250_v10 }
0x1253   :  { %6419 = vmatprep.subr.bf16.mxu0 %v18146_v13  ;;  %v6362_v25 = vsel %vm236_vm6, %v13824_v4, %v20425_v61  ;;  %v6363_v62 = vsel %vm236_vm6, %v13825_v49, %v20426_v27  ;;  %v6366_v52 = vsel %vm236_vm6, %v20424_v14, %v13824_v4  ;;  %v6367_v4 = vsel %vm236_vm6, %v20428_v40, %v13825_v49 }
0x1254   :  { %v13848_v12 = vpop.permute.xlu0 %13847  ;;  %v13843_v51 = vpop.permute.xlu1 %13842  ;;  %v18288_v61 = vpack.c.bf16 %v6363_v62, %v6362_v25 }
0x1255   :  { %v13850_v18 = vunpack.i.h.bf16 %v13848_v12  ;;  %v13849_v9 = vunpack.i.l.bf16 %v13848_v12  ;;  %v13845_v53 = vunpack.i.h.bf16 %v13843_v51  ;;  %v13844_v24 = vunpack.i.l.bf16 %v13843_v51 }
0x1256   :  { %6420 = vmatpush1.bf16.msra.mxu0 %v18152_v33 }
0x1257   :  { %v6291_v20 = vsel %vm217_vm0, %v13805_v38, %v13845_v53  ;;  %v6290_v44 = vsel %vm217_vm0, %v13804_v17, %v13844_v24  ;;  %6421 = vmatprep.subr.bf16.mxu0 %v18154_v6  ;;  %v6286_v34 = vsel %vm217_vm0, %v13844_v24, %v13849_v9  ;;  %v6287_v12 = vsel %vm217_vm0, %v13845_v53, %v13850_v18 }
0x1258   :  { %v13853_v51 = vpop.permute.xlu0 %13852  ;;  %v18284_v14 = vpop.permute.xlu1 %13857  ;;  %v18286_v38 = vpack.c.bf16 %v6287_v12, %v6286_v34  ;;  %v18290_v17 = vpack.c.bf16 %v6291_v20, %v6290_v44  ;;  %v18308_v44 = vpack.c.bf16 %v6367_v4, %v6366_v52 }
0x1259   :  { %v13855_v27 = vunpack.i.h.bf16 %v13853_v51  ;;  %v13854_v32 = vunpack.i.l.bf16 %v13853_v51  ;;  %v20430_v24 = vunpack.i.h.bf16 %v18284_v14  ;;  %v20431_v53 = vunpack.i.l.bf16 %v18284_v14 }
0x125a   :  { %6422 = vmatpush1.bf16.msra.mxu0 %v18156_v5  ;;  %6456 = vmatprep.subr.bf16.mxu1 %v18286_v38  ;;  %v20853_v22 = vunpack.i.l.bf16 %v18284_v14 }
0x125b   :  { %6423 = vmatprep.subr.bf16.mxu0 %v18288_v61  ;;  %6457 = vmatpush1.bf16.msra.mxu1 %v18290_v17  ;;  %v6364_v49 = vsel %vm236_vm6, %v13854_v32, %v20431_v53  ;;  %v6365_v25 = vsel %vm236_vm6, %v13855_v27, %v20430_v24 }
0x125c   :  { %v18306_v62 = vpop.permute.xlu0 %13867  ;;  %v13863_v20 = vpop.permute.xlu1 %13862  ;;  %v18310_v34 = vpack.c.bf16 %v6365_v25, %v6364_v49 }
0x125d   :  { %v20432_v12 = vunpack.i.h.bf16 %v18306_v62  ;;  %v20433_v51 = vunpack.i.l.bf16 %v18306_v62  ;;  %v13865_v40 = vunpack.i.h.bf16 %v13863_v20  ;;  %v13864_v39 = vunpack.i.l.bf16 %v13863_v20 }
0x125e   :  { %6424 = vmatpush1.bf16.msra.mxu0 %v18308_v44 }
0x125f   :  { %v6368_v24 = vsel %vm236_vm6, %v20433_v51, %v13854_v32  ;;  %v6369_v52 = vsel %vm236_vm6, %v20432_v12, %v13855_v27  ;;  %v6283_v4 = vsel %vm217_vm0, %v13850_v18, %v13865_v40  ;;  %6425 = vmatprep.subr.bf16.mxu0 %v18310_v34  ;;  %v6282_v49 = vsel %vm217_vm0, %v13849_v9, %v13864_v39 }
0x1260   :  { %v13873_v25 = vpop.permute.xlu0 %13872  ;;  %v13878_v20 = vpop.permute.xlu1 %13877  ;;  %v18328_v53 = vpack.c.bf16 %v6369_v52, %v6368_v24  ;;  %v6278_v32 = vsel %vm217_vm0, %v13864_v39, %v13809_v3  ;;  %v6279_v27 = vsel %vm217_vm0, %v13865_v40, %v13810_v41  ;;  %v18344_v24 = vld [vmem:[%s20117_s6 + $0xc] sm:$0x3]  ;;  %v20845_v41 = vunpack.i.h.bf16 %v18218_v23 }
0x1261   :  { %v13875_v18 = vunpack.i.h.bf16 %v13873_v25  ;;  %v13874_v12 = vunpack.i.l.bf16 %v13873_v25  ;;  %v13880_v51 = vunpack.i.h.bf16 %v13878_v20  ;;  %v13879_v37 = vunpack.i.l.bf16 %v13878_v20 }
0x1262   :  { %6426 = vmatpush1.bf16.msra.mxu0 %v18328_v53  ;;  %v18339_v9 = vpack.c.bf16 %v6279_v27, %v6278_v32  ;;  %v18361_v32 = vpack.c.bf16 %v6283_v4, %v6282_v49 }
0x1263   :  { %v6292_v63 = vsel %vm217_vm0, %v13819_v26, %v13874_v12  ;;  %v6293_v3 = vsel %vm217_vm0, %v20845_v41, %v13875_v18  ;;  %v6288_v39 = vsel %vm217_vm0, %v13874_v12, %v13879_v37  ;;  %v6289_v40 = vsel %vm217_vm0, %v13875_v18, %v13880_v51 }
0x1264   :  { %6497 = vmatprep.subr.bf16.mxu0 %v18339_v9  ;;  %v13883_v52 = vpop.permute.xlu0 %13882  ;;  %v13888_v25 = vpop.permute.xlu1 %13887  ;;  %v18359_v20 = vpack.c.bf16 %v6289_v40, %v6288_v39  ;;  %v18363_v26 = vpack.c.bf16 %v6293_v3, %v6292_v63  ;;  %v20847_v3 = vunpack.i.l.bf16 %v18231_v50  ;;  %v20848_v40 = vunpack.i.h.bf16 %v18231_v50 }
0x1265   :  { %v13885_v23 = vunpack.i.h.bf16 %v13883_v52  ;;  %v13884_v27 = vunpack.i.l.bf16 %v13883_v52  ;;  %9821 = vmatmul.mubr.msk.bf16.vlgmr.msra.gmra.mrb[164].mxu0 %vm20846_vm3, %v18344_v24  ;;  %v13890_v4 = vunpack.i.h.bf16 %v13888_v25  ;;  %v13889_v49 = vunpack.i.l.bf16 %v13888_v25 }
0x1266   :  { %6458 = vmatprep.subr.bf16.mxu1 %v18359_v20  ;;  %6498 = vmatpush1.bf16.msra.mxu0 %v18361_v32  ;;  %v20849_v50 = vunpack.i.h.bf16 %v18246_v19 }
0x1267   :  { %v6284_v12 = vsel %vm217_vm0, %v13879_v37, %v13884_v27  ;;  %v6285_v18 = vsel %vm217_vm0, %v13880_v51, %v13885_v23  ;;  %6459 = vmatpush1.bf16.msra.mxu1 %v18363_v26  ;;  %v6280_v39 = vsel %vm217_vm0, %v13884_v27, %v20847_v3  ;;  %v6281_v37 = vsel %vm217_vm0, %v13885_v23, %v20848_v40 }
0x1268   :  { %v13893_v63 = vpop.permute.xlu0 %13892  ;;  %v13898_v41 = vpop.permute.xlu1 %13897  ;;  %6460 = vmatprep.subr.bf16.mxu1 %v18158_v31  ;;  %v18383_v29 = vpack.c.bf16 %v6285_v18, %v6284_v12  ;;  %6529 = vmatprep.mubr.bf16.mxu0 %v20596_v7  ;;  %v18386_v25 = vpack.c.bf16 %v6281_v37, %v6280_v39  ;;  %v6359_v23 = vsel %vm236_vm6, %v20849_v50, %v13890_v4  ;;  %v20850_v12 = vunpack.i.l.bf16 %v18246_v19 }
0x1269   :  { %v13895_v52 = vunpack.i.h.bf16 %v13893_v63  ;;  %v13894_v51 = vunpack.i.l.bf16 %v13893_v63  ;;  %v13900_v63 = vunpack.i.h.bf16 %v13898_v41  ;;  %v13899_v3 = vunpack.i.l.bf16 %v13898_v41 }
0x126a   :  { %v6358_v18 = vsel %vm236_vm6, %v20850_v12, %v13889_v49  ;;  %6499 = vmatprep.subr.bf16.mxu0 %v18386_v25 }
0x126b   :  { %6461 = vmatpush1.bf16.msra.mxu1 %v18165_v46  ;;  %v6354_v36 = vsel %vm236_vm6, %v13889_v49, %v13894_v51  ;;  %v6355_v27 = vsel %vm236_vm6, %v13890_v4, %v13895_v52  ;;  %6500 = vmatpush1.bf16.msra.mxu0 %v18383_v29  ;;  %v18413_v50 = vpack.c.bf16 %v6359_v23, %v6358_v18  ;;  %v20854_v18 = vunpack.i.h.bf16 %v18284_v14 }
0x126c   :  { %v13903_v39 = vpop.permute.xlu0 %13902  ;;  %v13908_v40 = vpop.permute.xlu1 %13907  ;;  %6462 = vmatprep.subr.bf16.mxu1 %v18167_v0  ;;  %6501 = vmatprep.subr.bf16.mxu0 %v18171_v8  ;;  %v18405_v19 = vpack.c.bf16 %v6355_v27, %v6354_v36  ;;  %v20851_v36 = vunpack.i.l.bf16 %v18248_v15  ;;  %v20855_v14 = vunpack.i.l.bf16 %v18306_v62 }
0x126d   :  { %v13905_v37 = vunpack.i.h.bf16 %v13903_v39  ;;  %v13904_v2 = vunpack.i.l.bf16 %v13903_v39  ;;  %v13910_v48 = vunpack.i.h.bf16 %v13908_v40  ;;  %v13909_v55 = vunpack.i.l.bf16 %v13908_v40 }
0x126e   :  { %v6370_v27 = vsel %vm236_vm6, %v13899_v3, %v20851_v36  ;;  %v20852_v40 = vunpack.i.h.bf16 %v18248_v15  ;;  %v6351_v15 = vsel %vm236_vm6, %v13895_v52, %v13900_v63  ;;  %v6350_v36 = vsel %vm236_vm6, %v13894_v51, %v13899_v3 }
0x126f   :  { %6463 = vmatpush1.bf16.msra.mxu1 %v18173_v54  ;;  %v6356_v4 = vsel %vm236_vm6, %v13904_v2, %v13909_v55  ;;  %v6357_v49 = vsel %vm236_vm6, %v13905_v37, %v13910_v48  ;;  %6502 = vmatpush1.bf16.msra.mxu0 %v18175_v56  ;;  %v6360_v23 = vsel %vm236_vm6, %v20853_v22, %v13904_v2 }
0x1270   :  { %v13913_v41 = vpop.permute.xlu0 %13912  ;;  %6464 = vmatprep.subr.bf16.mxu1 %v18405_v19  ;;  %v6371_v45 = vsel %vm236_vm6, %v13900_v63, %v20852_v40  ;;  %6503 = vmatprep.subr.bf16.mxu0 %v18177_v60  ;;  %v18433_v28 = vpack.c.bf16 %v6357_v49, %v6356_v4  ;;  %v20856_v4 = vunpack.i.h.bf16 %v18306_v62 }
0x1271   :  { %v13915_v12 = vunpack.i.h.bf16 %v13913_v41  ;;  %v13914_v39 = vunpack.i.l.bf16 %v13913_v41  ;;  %v6361_v41 = vsel %vm236_vm6, %v20854_v18, %v13905_v37  ;;  %v18441_v22 = vpack.c.bf16 %v6371_v45, %v6370_v27 }
0x1272   :  { %v18444_v2 = vpack.c.bf16 %v6361_v41, %v6360_v23  ;;  %v18456_v45 = vpack.c.bf16 %v6351_v15, %v6350_v36 }
0x1273   :  { %6465 = vmatpush1.bf16.msra.mxu1 %v18413_v50  ;;  %6504 = vmatpush1.bf16.msra.mxu0 %v18179_v59  ;;  %v6372_v37 = vsel %vm236_vm6, %v13914_v39, %v20855_v14  ;;  %v6373_v52 = vsel %vm236_vm6, %v13915_v12, %v20856_v4  ;;  %v6352_v51 = vsel %vm236_vm6, %v13909_v55, %v13914_v39  ;;  %v9824_v55 = vld [vmem:[%s20117_s6 + $0xe] sm:$0x3] }
0x1274   :  { %6466 = vmatprep.subr.bf16.mxu1 %v18433_v28  ;;  %6505 = vmatprep.subr.bf16.mxu0 %v18441_v22  ;;  %v6353_v63 = vsel %vm236_vm6, %v13910_v48, %v13915_v12  ;;  %v18462_v3 = vpack.c.bf16 %v6373_v52, %v6372_v37  ;;  %v9828_v48 = vld [vmem:[%s20117_s6 + $0x10] sm:$0x3] }
0x1275   :  { %v18469_v62 = vpack.c.bf16 %v6353_v63, %v6352_v51 }
0x1277   :  { %6467 = vmatpush1.bf16.msra.mxu1 %v18444_v2  ;;  %6506 = vmatpush1.bf16.msra.mxu0 %v18456_v45 }
0x1278   :  { %6561 = vmatprep.subr.bf16.mxu1 %v18203_v47  ;;  %6507 = vmatprep.subr.bf16.mxu0 %v18462_v3 }
0x127a   :  { %9822 = vmatmul.mubr.msk.bf16.vlgmr.msra.gmra.mrb[148].mxu1 %vm20857_vm15, %v18344_v24  ;;  %vm20859_vm15 = vmmov %vm20846_vm3 }
0x127b   :  { %6562 = vmatpush1.bf16.msra.mxu1 %v18216_v16  ;;  %6593 = vmatprep.mubr.bf16.mxu1 %v20596_v7 }
0x127c   :  { %6563 = vmatprep.subr.bf16.mxu1 %v18233_v58  ;;  %6508 = vmatpush1.bf16.msra.mxu0 %v18469_v62 }
0x127d   :  { %6602 = vmatprep.subr.bf16.mxu0 %v18286_v38 }
0x127f   :  { %6564 = vmatpush1.bf16.msra.mxu1 %v18250_v10  ;;  %9823 = vmatmul.mubr.msk.bf16.vlgmr.msra.gmra.mrb[168].mxu0 %vm20858_vm12, %v18344_v24  ;;  %vm20860_vm12 = vmmov %vm20846_vm3  ;;  %v20888_v24 = vld [vmem:[#allocation30_spill] sm:$0xff] }
0x1280   :  { %6565 = vmatprep.subr.bf16.mxu1 %v18146_v13  ;;  %6603 = vmatpush1.bf16.msra.mxu0 %v18290_v17 }
0x1281   :  { %6634 = vmatprep.mubr.bf16.mxu0 %v20596_v7  ;;  %6604 = vmatprep.subr.bf16.mxu0 %v18359_v20 }
0x1283   :  { %6566 = vmatpush1.bf16.msra.mxu1 %v18152_v33 }
0x1284   :  { %6567 = vmatprep.subr.bf16.mxu1 %v18154_v6  ;;  %6605 = vmatpush1.bf16.msra.mxu0 %v18363_v26 }
0x1285   :  { %6606 = vmatprep.subr.bf16.mxu0 %v18158_v31 }
0x1287   :  { %6568 = vmatpush1.bf16.msra.mxu1 %v18156_v5 }
0x1288   :  { %6569 = vmatprep.subr.bf16.mxu1 %v18288_v61  ;;  %6607 = vmatpush1.bf16.msra.mxu0 %v18165_v46 }
0x1289   :  { %6608 = vmatprep.subr.bf16.mxu0 %v18167_v0 }
0x128b   :  { %6570 = vmatpush1.bf16.msra.mxu1 %v18308_v44 }
0x128c   :  { %6571 = vmatprep.subr.bf16.mxu1 %v18310_v34  ;;  %6609 = vmatpush1.bf16.msra.mxu0 %v18173_v54 }
0x128d   :  { %6610 = vmatprep.subr.bf16.mxu0 %v18405_v19 }
0x128f   :  { %6572 = vmatpush1.bf16.msra.mxu1 %v18328_v53 }
0x1290   :  { %6643 = vmatprep.subr.bf16.mxu1 %v18339_v9  ;;  %6611 = vmatpush1.bf16.msra.mxu0 %v18413_v50 }
0x1291   :  { %6612 = vmatprep.subr.bf16.mxu0 %v18433_v28 }
0x1292   :  { %9825 = vmatmul.mubr.msk.bf16.vlgmr.msra.gmra.mrb[152].mxu1 %vm20846_vm3, %v9824_v55 }
0x1293   :  { %6644 = vmatpush1.bf16.msra.mxu1 %v18361_v32  ;;  %6675 = vmatprep.mubr.bf16.mxu1 %v20596_v7 }
0x1294   :  { %6645 = vmatprep.subr.bf16.mxu1 %v18386_v25  ;;  %6613 = vmatpush1.bf16.msra.mxu0 %v18444_v2 }
0x1295   :  { %6695 = vmatprep.subr.bf16.mxu0 %v18203_v47  ;;  %v20877_v47 = vld [vmem:[#allocation16_spill] sm:$0xff] }
0x1297   :  { %6646 = vmatpush1.bf16.msra.mxu1 %v18383_v29  ;;  %9826 = vmatmul.mubr.msk.bf16.vlgmr.msra.gmra.mrb[172].mxu0 %vm20859_vm15, %v9824_v55  ;;  %vm20862_vm15 = vmmov %vm20846_vm3 }
0x1298   :  { %6647 = vmatprep.subr.bf16.mxu1 %v18171_v8  ;;  %6696 = vmatpush1.bf16.msra.mxu0 %v18216_v16  ;;  %v20878_v16 = vld [vmem:[#allocation24_spill] sm:$0xff] }
0x1299   :  { %6727 = vmatprep.mubr.bf16.mxu0 %v20596_v7  ;;  %6697 = vmatprep.subr.bf16.mxu0 %v18233_v58  ;;  %v20879_v58 = vld [vmem:[#allocation25_spill] sm:$0xff] }
0x129b   :  { %6648 = vmatpush1.bf16.msra.mxu1 %v18175_v56 }
0x129c   :  { %6649 = vmatprep.subr.bf16.mxu1 %v18177_v60  ;;  %6698 = vmatpush1.bf16.msra.mxu0 %v18250_v10  ;;  %v20880_v10 = vld [vmem:[#allocation19_spill] sm:$0xff] }
0x129d   :  { %6699 = vmatprep.subr.bf16.mxu0 %v18146_v13  ;;  %v20863_v13 = vld [vmem:[#allocation5_spill] sm:$0xff] }
0x129f   :  { %6650 = vmatpush1.bf16.msra.mxu1 %v18179_v59 }
0x12a0   :  { %6651 = vmatprep.subr.bf16.mxu1 %v18441_v22  ;;  %6700 = vmatpush1.bf16.msra.mxu0 %v18152_v33  ;;  %v20864_v33 = vld [vmem:[#allocation6_spill] sm:$0xff] }
0x12a1   :  { %6701 = vmatprep.subr.bf16.mxu0 %v18154_v6  ;;  %v20867_v6 = vld [vmem:[#allocation8_spill] sm:$0xff] }
0x12a3   :  { %6652 = vmatpush1.bf16.msra.mxu1 %v18456_v45 }
0x12a4   :  { %6653 = vmatprep.subr.bf16.mxu1 %v18462_v3  ;;  %6702 = vmatpush1.bf16.msra.mxu0 %v18156_v5  ;;  %v20868_v5 = vld [vmem:[#allocation9_spill] sm:$0xff] }
0x12a5   :  { %6703 = vmatprep.subr.bf16.mxu0 %v18288_v61  ;;  %v20881_v61 = vld [vmem:[#allocation20_spill] sm:$0xff] }
0x12a7   :  { %6654 = vmatpush1.bf16.msra.mxu1 %v18469_v62 }
0x12a8   :  { %6736 = vmatprep.subr.bf16.mxu1 %v18286_v38  ;;  %6704 = vmatpush1.bf16.msra.mxu0 %v18308_v44  ;;  %v20882_v38 = vld [vmem:[#allocation26_spill] sm:$0xff]  ;;  %v20885_v44 = vld [vmem:[#allocation31_spill] sm:$0xff] }
0x12a9   :  { %6705 = vmatprep.subr.bf16.mxu0 %v18310_v34  ;;  %v20886_v34 = vld [vmem:[#allocation28_spill] sm:$0xff] }
0x12aa   :  { %9827 = vmatmul.mubr.msk.bf16.vlgmr.msra.gmra.mrb[156].mxu1 %vm20860_vm12, %v9824_v55  ;;  %vm20866_vm12 = vmmov %vm20846_vm3 }
0x12ab   :  { %6737 = vmatpush1.bf16.msra.mxu1 %v18290_v17  ;;  %6768 = vmatprep.mubr.bf16.mxu1 %v20596_v7  ;;  %v20883_v17 = vld [vmem:[#allocation27_spill] sm:$0xff] }
0x12ac   :  { %6738 = vmatprep.subr.bf16.mxu1 %v18359_v20  ;;  %6706 = vmatpush1.bf16.msra.mxu0 %v18328_v53  ;;  %v20884_v53 = vld [vmem:[#allocation23_spill] sm:$0xff] }
0x12ad   :  { %6777 = vmatprep.subr.bf16.mxu0 %v18339_v9  ;;  %v20887_v9 = vld [vmem:[#allocation29_spill] sm:$0xff] }
0x12af   :  { %6739 = vmatpush1.bf16.msra.mxu1 %v18363_v26  ;;  %9829 = vmatmul.mubr.msk.bf16.vlgmr.msra.gmra.mrb[176].mxu0 %vm20846_vm3, %v9828_v48  ;;  %vm20910_vm3 = vcmask 1040384  }
0x12b0   :  { %6740 = vmatprep.subr.bf16.mxu1 %v18158_v31  ;;  %6778 = vmatpush1.bf16.msra.mxu0 %v18361_v32  ;;  %v20869_v31 = vld [vmem:[#allocation10_spill] sm:$0xff] }
0x12b1   :  { %6809 = vmatprep.mubr.bf16.mxu0 %v20596_v7  ;;  %6779 = vmatprep.subr.bf16.mxu0 %v18386_v25 }
0x12b3   :  { %6741 = vmatpush1.bf16.msra.mxu1 %v18165_v46  ;;  %v20870_v46 = vld [vmem:[#allocation11_spill] sm:$0xff] }
0x12b4   :  { %6742 = vmatprep.subr.bf16.mxu1 %v18167_v0  ;;  %6780 = vmatpush1.bf16.msra.mxu0 %v18383_v29  ;;  %v20861_v29 = vld [vmem:[#allocation4_spill] sm:$0xff] }
0x12b5   :  { %6781 = vmatprep.subr.bf16.mxu0 %v18171_v8  ;;  %v20871_v0 = vld [vmem:[#allocation12_spill] sm:$0xff]  ;;  %v20872_v8 = vld [vmem:[#allocation13_spill] sm:$0xff] }
0x12b7   :  { %6743 = vmatpush1.bf16.msra.mxu1 %v18173_v54  ;;  %v20873_v54 = vld [vmem:[#allocation14_spill] sm:$0xff] }
0x12b8   :  { %6744 = vmatprep.subr.bf16.mxu1 %v18405_v19  ;;  %6782 = vmatpush1.bf16.msra.mxu0 %v18175_v56  ;;  %v20874_v56 = vld [vmem:[#allocation21_spill] sm:$0xff] }
0x12b9   :  { %6783 = vmatprep.subr.bf16.mxu0 %v18177_v60  ;;  %v20875_v60 = vld [vmem:[#allocation22_spill] sm:$0xff] }
0x12bb   :  { %6745 = vmatpush1.bf16.msra.mxu1 %v18413_v50 }
0x12bc   :  { %6746 = vmatprep.subr.bf16.mxu1 %v18433_v28  ;;  %6784 = vmatpush1.bf16.msra.mxu0 %v18179_v59  ;;  %v20865_v28 = vld [vmem:[#allocation7_spill] sm:$0xff] }
0x12bd   :  { %6785 = vmatprep.subr.bf16.mxu0 %v18441_v22  ;;  %v20876_v59 = vld [vmem:[#allocation15_spill] sm:$0xff] }
0x12bf   :  { %6747 = vmatpush1.bf16.msra.mxu1 %v18444_v2 }
0x12c0   :  { %12725 = vmatprep.subr.bf16.mxu1 %v20861_v29  ;;  %6786 = vmatpush1.bf16.msra.mxu0 %v18456_v45 }
0x12c1   :  { %6787 = vmatprep.subr.bf16.mxu0 %v18462_v3 }
0x12c2   :  { %9830 = vmatmul.mubr.msk.bf16.vlgmr.msra.gmra.mrb[160].mxu1 %vm20862_vm15, %v9828_v48  ;;  %vm20913_vm15 = vmmov %vm20910_vm3 }
0x12c3   :  { %12727 = vmatpush3.bf16.msra.mxu1 %v20863_v13 }
0x12c4   :  { %12729 = vmatprep.subr.bf16.mxu1 %v20864_v33  ;;  %6788 = vmatpush1.bf16.msra.mxu0 %v18469_v62 }
0x12c5   :  { %12757 = vmatprep.subr.bf16.mxu0 %v14714_v30 }
0x12c7   :  { %12731 = vmatpush3.bf16.msra.mxu1 %v20865_v28  ;;  %9831 = vmatmul.mubr.msk.bf16.vlgmr.msra.gmra.mrb[180].mxu0 %vm20866_vm12, %v9828_v48  ;;  %vm20915_vm12 = vcmask 1041408  }
0x12c8   :  { %12733 = vmatprep.subr.bf16.mxu1 %v20867_v6  ;;  %12759 = vmatpush3.bf16.msra.mxu0 %v14746_v57 }
0x12c9   :  { %12761 = vmatprep.subr.bf16.mxu0 %v14749_v1 }
0x12cb   :  { %12735 = vmatpush3.bf16.msra.mxu1 %v20868_v5 }
0x12cc   :  { %12737 = vmatprep.subr.bf16.mxu1 %v20869_v31  ;;  %12763 = vmatpush3.bf16.msra.mxu0 %v14785_v21 }
0x12cd   :  { %12765 = vmatprep.subr.bf16.mxu0 %v14788_v42 }
0x12cf   :  { %12739 = vmatpush3.bf16.msra.mxu1 %v20870_v46 }
0x12d0   :  { %12741 = vmatprep.subr.bf16.mxu1 %v20871_v0  ;;  %12767 = vmatpush3.bf16.msra.mxu0 %v20806_v35 }
0x12d1   :  { %12769 = vmatprep.subr.bf16.mxu0 %v20808_v11 }
0x12d3   :  { %12743 = vmatpush3.bf16.msra.mxu1 %v20872_v8 }
0x12d4   :  { %12745 = vmatprep.subr.bf16.mxu1 %v20873_v54  ;;  %12771 = vmatpush3.bf16.msra.mxu0 %v20874_v56 }
0x12d5   :  { %12773 = vmatprep.subr.bf16.mxu0 %v20875_v60 }
0x12d7   :  { %12747 = vmatpush3.bf16.msra.mxu1 %v20876_v59 }
0x12d8   :  { %12749 = vmatprep.subr.bf16.mxu1 %v20877_v47  ;;  %12775 = vmatpush3.bf16.msra.mxu0 %v20878_v16 }
0x12d9   :  { %12777 = vmatprep.subr.bf16.mxu0 %v20879_v58 }
0x12db   :  { %12751 = vmatpush3.bf16.msra.mxu1 %v20880_v10 }
0x12dc   :  { %12753 = vmatprep.subr.bf16.mxu1 %v20881_v61  ;;  %12779 = vmatpush3.bf16.msra.mxu0 %v20882_v38 }
0x12dd   :  { %12781 = vmatprep.subr.bf16.mxu0 %v20883_v17 }
0x12df   :  { %12755 = vmatpush3.bf16.msra.mxu1 %v20884_v53 }
0x12e0   :  { %12789 = vmatprep.subr.bf16.mxu1 %v20885_v44  ;;  %12783 = vmatpush3.bf16.msra.mxu0 %v20886_v34 }
0x12e1   :  { %12785 = vmatprep.subr.bf16.mxu0 %v20887_v9 }
0x12e4   :  { %12787 = vmatpush3.bf16.msra.mxu0 %v20888_v24 }
0x12e5   :  { %12821 = vmatprep.subr.bf16.mxu0 %v20861_v29 }
0x1338   :  { %v6449_v20 = vpop.f32.mrb[164].mxu0 }
0x1339   :  { %v6451_v32 = vpop.f32.mrb[165].mxu0  ;;  %6538 = vrot.lane.b32.xlu1 %v6449_v20, %s14170_s15 }
0x133a   :  { %v6453_v26 = vpop.f32.mrb[166].mxu0 }
0x133b   :  { %v6454_v25 = vpop.f32.mrb[167].mxu0 }
0x134d   :  { %v6490_v19 = vpop.f32.mrb[148].mxu1 }
0x134e   :  { %6542 = vrot.lane.b32.xlu0 %v6490_v19, %s14170_s15  ;;  %v6492_v49 = vpop.f32.mrb[149].mxu1 }
0x134f   :  { %6544 = vrot.lane.b32.xlu1 %v6492_v49, %s14170_s15  ;;  %v6494_v50 = vpop.f32.mrb[150].mxu1 }
0x1350   :  { %v6495_v12 = vpop.f32.mrb[151].mxu1 }
0x1352   :  { %6540 = vrot.lane.b32.xlu0 %v6451_v32, %s14170_s15  ;;  %v6531_v39 = vpop.f32.mrb[168].mxu0 }
0x1353   :  { %v6533_v27 = vpop.f32.mrb[169].mxu0 }
0x1354   :  { %6548 = vrot.lane.b32.xlu1 %v6533_v27, %s14170_s15  ;;  %v6535_v40 = vpop.f32.mrb[170].mxu0 }
0x1355   :  { %v6536_v23 = vpop.f32.mrb[171].mxu0 }
0x1365   :  { %v6595_v18 = vpop.f32.mrb[152].mxu1 }
0x1366   :  { %v6597_v41 = vpop.f32.mrb[153].mxu1 }
0x1367   :  { %v6599_v15 = vpop.f32.mrb[154].mxu1 }
0x1368   :  { %v6600_v36 = vpop.f32.mrb[155].mxu1 }
0x136a   :  { %v6636_v22 = vpop.f32.mrb[172].mxu0 }
0x136b   :  { %v6638_v2 = vpop.f32.mrb[173].mxu0 }
0x136c   :  { %v6640_v14 = vpop.f32.mrb[174].mxu0 }
0x136d   :  { %v6641_v37 = vpop.f32.mrb[175].mxu0 }
0x137d   :  { %v18602_v4 = vpop.f32.mrb[156].mxu1 }
0x137e   :  { %v6679_v52 = vpop.f32.mrb[157].mxu1 }
0x137f   :  { %v6681_v45 = vpop.f32.mrb[158].mxu1 }
0x1380   :  { %v6682_v51 = vpop.f32.mrb[159].mxu1 }
0x1382   :  { %v6729_v63 = vpop.f32.mrb[176].mxu0 }
0x1383   :  { %6818 = vrot.lane.b32.xlu0 %v6729_v63, %s14176_s20  ;;  %v6731_v3 = vpop.f32.mrb[177].mxu0 }
0x1384   :  { %v6733_v62 = vpop.f32.mrb[178].mxu0 }
0x1385   :  { %v6734_v55 = vpop.f32.mrb[179].mxu0 }
0x1387   :  { %6820 = vrot.lane.b32.xlu0 %v6731_v3, %s14176_s20 }
0x1395   :  { %v6770_v48 = vpop.f32.mrb[160].mxu1 }
0x1396   :  { %6822 = vrot.lane.b32.xlu1 %v6770_v48, %s14176_s20  ;;  %v6772_v20 = vpop.f32.mrb[161].mxu1 }
0x1397   :  { %v6774_v32 = vpop.f32.mrb[162].mxu1 }
0x1398   :  { %v6775_v26 = vpop.f32.mrb[163].mxu1 }
0x139a   :  { %6824 = vrot.lane.b32.xlu1 %v6772_v20, %s14176_s20  ;;  %v6811_v25 = vpop.f32.mrb[180].mxu0 }
0x139b   :  { %6826 = vrot.lane.b32.xlu0 %v6811_v25, %s14176_s20  ;;  %v6813_v19 = vpop.f32.mrb[181].mxu0 }
0x139c   :  { %v6815_v49 = vpop.f32.mrb[182].mxu0 }
0x139d   :  { %v6816_v50 = vpop.f32.mrb[183].mxu0  ;;  %v20889_v49 = vld [vmem:[#allocation32_spill] sm:$0xff] }
0x139e   :  { %6546 = vrot.lane.b32.xlu1 %v6531_v39, %s14170_s15 }
0x139f   :  { %6828 = vrot.lane.b32.xlu0 %v6813_v19, %s14176_s20 }
0x13ab   :  { %v6539_v27 = vpop.permute.xlu1 %6538 }
0x13c0   :  { %v6543_v12 = vpop.permute.xlu0 %6542 }
0x13c1   :  { %v6545_v23 = vpop.permute.xlu1 %6544 }
0x13c2   :  { %v6552_v20 = vsel %vm179_vm2, %v6543_v12, %v6545_v23 }
0x13c3   :  { %v6687_v25 = vadd.f32 %v6638_v2, %v6552_v20  ;;  %v20898_v20 = vld [vmem:[#allocation41_spill] sm:$0xff] }
0x13c4   :  { %v6541_v40 = vpop.permute.xlu0 %6540 }
0x13c5   :  { %v6554_v14 = vsel %vm179_vm2, %v6539_v27, %v6541_v40  ;;  %v6553_v55 = vsel %vm179_vm2, %v6541_v40, %v6543_v12 }
0x13c6   :  { %v6549_v36 = vpop.permute.xlu1 %6548  ;;  %v6685_v51 = vadd.f32 %v6597_v41, %v6554_v14  ;;  %v6686_v41 = vadd.f32 %v6636_v22, %v6553_v55  ;;  %v20897_v55 = vld [vmem:[#allocation40_spill] sm:$0xff] }
0x13c7   :  { %v6555_v45 = vsel %vm179_vm2, %v6549_v36, %v6539_v27  ;;  %v20890_v27 = vld [vmem:[#allocation33_spill] sm:$0xff] }
0x13c8   :  { %v6684_v3 = vadd.f32 %v6595_v18, %v6555_v45  ;;  %v20891_v45 = vld [vmem:[#allocation34_spill] sm:$0xff] }
0x13f5   :  { %v6819_v15 = vpop.permute.xlu0 %6818 }
0x13f9   :  { %v6821_v37 = vpop.permute.xlu0 %6820 }
0x13fa   :  { %v6834_v39 = vsel %vm274_vm11, %v6819_v15, %v6821_v37 }
0x13fb   :  { %v18625_v32 = vadd.f32 %v6834_v39, %v6684_v3 }
0x1408   :  { %v6823_v63 = vpop.permute.xlu1 %6822 }
0x1409   :  { %v6833_v62 = vsel %vm274_vm11, %v6821_v37, %v6823_v63 }
0x140a   :  { %v18621_v48 = vadd.f32 %v6833_v62, %v6685_v51  ;;  %v20896_v62 = vld [vmem:[#allocation39_spill] sm:$0xff] }
0x140c   :  { %v6825_v26 = vpop.permute.xlu1 %6824  ;;  %6910 = vmatprep.mubr.f32.mxu1 %v18621_v48  ;;  %v7057_v51 = vmul.f32 %v18621_v48, %v18621_v48 }
0x140d   :  { %v6832_v18 = vsel %vm274_vm11, %v6823_v63, %v6825_v26  ;;  %6911 = vmatmul.mubr.f32.vlgmr.msra.gmra.mrb[164].mxu1 %v18625_v32  ;;  %v6827_v19 = vpop.permute.xlu0 %6826  ;;  %v20892_v63 = vld [vmem:[#allocation35_spill] sm:$0xff] }
0x140e   :  { %12791 = vmatpush3.bf16.msra.mxu1 %v20889_v49  ;;  %v18632_v50 = vadd.f32 %v6832_v18, %v6686_v41  ;;  %v6831_v12 = vsel %vm274_vm11, %v6825_v26, %v6827_v19  ;;  %v20899_v26 = vld [vmem:[#allocation42_spill] sm:$0xff]  ;;  %v20900_v41 = vld [vmem:[#allocation43_spill] sm:$0xff] }
0x140f   :  { %12793 = vmatprep.subr.bf16.mxu1 %v20890_v27  ;;  %v18637_v40 = vadd.f32 %v6831_v12, %v6687_v25  ;;  %v20901_v25 = vld [vmem:[#allocation44_spill] sm:$0xff] }
0x1410   :  { %v6547_v14 = vpop.permute.xlu1 %6546 }
0x1411   :  { %v6550_v22 = vsel %vm179_vm2, %v6547_v14, %v6549_v36  ;;  %6980 = vmatprep.mubr.f32.mxu0 %v18637_v40  ;;  %v6829_v2 = vpop.permute.xlu0 %6828  ;;  %v20894_v36 = vld [vmem:[#allocation37_spill] sm:$0xff]  ;;  %v6551_v18 = vsel %vm179_vm2, %v6545_v23, %v6547_v14 }
0x1412   :  { %v6689_v37 = vadd.f32 %v6679_v52, %v6550_v22  ;;  %12795 = vmatpush3.bf16.msra.mxu1 %v20891_v45  ;;  %v6835_v39 = vsel %vm274_vm11, %v6829_v2, %v6819_v15  ;;  %6981 = vmatmul.mubr.f32.vlgmr.msra.gmra.mrb[184].mxu0 %v18632_v50  ;;  %v20893_v52 = vld [vmem:[#allocation36_spill] sm:$0xff]  ;;  %v20895_v15 = vld [vmem:[#allocation38_spill] sm:$0xff]  ;;  %v6688_v12 = vadd.f32 %v18602_v4, %v6551_v18  ;;  %v20902_v22 = vld [vmem:[#allocation45_spill] sm:$0xff] }
0x1413   :  { %12797 = vmatprep.subr.bf16.mxu1 %v20892_v63  ;;  %12823 = vmatpush3.bf16.msra.mxu0 %v20863_v13  ;;  %v7059_v4 = vmul.f32 %v18637_v40, %v18637_v40 }
0x1414   :  { %v18649_v3 = vadd.f32 %v6835_v39, %v6689_v37  ;;  %7126 = vmatprep.mubr.f32.mxu0 %v7057_v51  ;;  %12825 = vmatprep.subr.bf16.mxu0 %v20864_v33  ;;  %v6830_v37 = vsel %vm274_vm11, %v6827_v19, %v6829_v2  ;;  %v20903_v51 = vld [vmem:[#allocation46_spill] sm:$0xff]  ;;  %v7056_v19 = vmul.f32 %v18625_v32, %v18625_v32 }
0x1415   :  { %v18680_v23 = vadd.f32 %v6830_v37, %v6688_v12  ;;  %v7058_v2 = vmul.f32 %v18632_v50, %v18632_v50 }
0x1416   :  { %12799 = vmatpush3.bf16.msra.mxu1 %v20893_v52  ;;  %7050 = vmatprep.mubr.f32.mxu1 %v18649_v3  ;;  %v7061_v14 = vmul.f32 %v18649_v3, %v18649_v3 }
0x1417   :  { %12801 = vmatprep.subr.bf16.mxu1 %v20894_v36  ;;  %12827 = vmatpush3.bf16.msra.mxu0 %v20865_v28  ;;  %v7060_v39 = vmul.f32 %v18680_v23, %v18680_v23 }
0x1418   :  { %12829 = vmatprep.subr.bf16.mxu0 %v20867_v6 }
0x141a   :  { %12803 = vmatpush3.bf16.msra.mxu1 %v20895_v15 }
0x141b   :  { %12805 = vmatprep.subr.bf16.mxu1 %v20896_v62  ;;  %12831 = vmatpush3.bf16.msra.mxu0 %v20868_v5 }
0x141c   :  { %12833 = vmatprep.subr.bf16.mxu0 %v20869_v31 }
0x141e   :  { %12807 = vmatpush3.bf16.msra.mxu1 %v20897_v55 }
0x141f   :  { %12809 = vmatprep.subr.bf16.mxu1 %v20898_v20  ;;  %12835 = vmatpush3.bf16.msra.mxu0 %v20870_v46 }
0x1420   :  { %12837 = vmatprep.subr.bf16.mxu0 %v20871_v0 }
0x1422   :  { %12811 = vmatpush3.bf16.msra.mxu1 %v20899_v26 }
0x1423   :  { %12813 = vmatprep.subr.bf16.mxu1 %v20900_v41  ;;  %12839 = vmatpush3.bf16.msra.mxu0 %v20872_v8 }
0x1424   :  { %12841 = vmatprep.subr.bf16.mxu0 %v20873_v54 }
0x1426   :  { %12815 = vmatpush3.bf16.msra.mxu1 %v20901_v25 }
0x1427   :  { %12817 = vmatprep.subr.bf16.mxu1 %v20902_v22  ;;  %12843 = vmatpush3.bf16.msra.mxu0 %v20876_v59 }
0x1428   :  { %12845 = vmatprep.subr.bf16.mxu0 %v20877_v47 }
0x142a   :  { %12819 = vmatpush3.bf16.msra.mxu1 %v20903_v51 }
0x142b   :  { %12853 = vmatprep.subr.bf16.mxu1 %v14714_v30  ;;  %12847 = vmatpush3.bf16.msra.mxu0 %v20880_v10 }
0x142c   :  { %12849 = vmatprep.subr.bf16.mxu0 %v20881_v61 }
0x142d   :  { %7051 = vmatmul.mubr.f32.vlgmr.msra.gmra.mrb[166].mxu1 %v18680_v23 }
0x142e   :  { %12855 = vmatpush3.bf16.msra.mxu1 %v14746_v57  ;;  %7196 = vmatprep.mubr.f32.mxu1 %v7059_v4 }
0x142f   :  { %12857 = vmatprep.subr.bf16.mxu1 %v14749_v1  ;;  %12851 = vmatpush3.bf16.msra.mxu0 %v20884_v53 }
0x1430   :  { %12885 = vmatprep.subr.bf16.mxu0 %v20885_v44 }
0x1432   :  { %12859 = vmatpush3.bf16.msra.mxu1 %v14785_v21  ;;  %7127 = vmatmul.mubr.f32.vlgmr.msra.gmra.mrb[186].mxu0 %v7056_v19 }
0x1433   :  { %12861 = vmatprep.subr.bf16.mxu1 %v14788_v42  ;;  %12887 = vmatpush3.bf16.msra.mxu0 %v20889_v49 }
0x1434   :  { %7266 = vmatprep.mubr.f32.mxu0 %v7061_v14  ;;  %12889 = vmatprep.subr.bf16.mxu0 %v20890_v27  ;;  %v20907_v27 = vld [vmem:[#allocation52_spill] sm:$0xff] }
0x1436   :  { %12863 = vmatpush3.bf16.msra.mxu1 %v20806_v35 }
0x1437   :  { %12865 = vmatprep.subr.bf16.mxu1 %v20808_v11  ;;  %12891 = vmatpush3.bf16.msra.mxu0 %v20891_v45 }
0x1438   :  { %12893 = vmatprep.subr.bf16.mxu0 %v20892_v63 }
0x143a   :  { %12867 = vmatpush3.bf16.msra.mxu1 %v20874_v56 }
0x143b   :  { %12869 = vmatprep.subr.bf16.mxu1 %v20875_v60  ;;  %12895 = vmatpush3.bf16.msra.mxu0 %v20893_v52 }
0x143c   :  { %12897 = vmatprep.subr.bf16.mxu0 %v20894_v36 }
0x143e   :  { %12871 = vmatpush3.bf16.msra.mxu1 %v20878_v16 }
0x143f   :  { %12873 = vmatprep.subr.bf16.mxu1 %v20879_v58  ;;  %12899 = vmatpush3.bf16.msra.mxu0 %v20895_v15 }
0x1440   :  { %12901 = vmatprep.subr.bf16.mxu0 %v20896_v62 }
0x1442   :  { %12875 = vmatpush3.bf16.msra.mxu1 %v20882_v38 }
0x1443   :  { %12877 = vmatprep.subr.bf16.mxu1 %v20883_v17  ;;  %12903 = vmatpush3.bf16.msra.mxu0 %v20897_v55 }
0x1444   :  { %12905 = vmatprep.subr.bf16.mxu0 %v20898_v20 }
0x1446   :  { %12879 = vmatpush3.bf16.msra.mxu1 %v20886_v34 }
0x1447   :  { %12881 = vmatprep.subr.bf16.mxu1 %v20887_v9  ;;  %12907 = vmatpush3.bf16.msra.mxu0 %v20899_v26 }
0x1448   :  { %12909 = vmatprep.subr.bf16.mxu0 %v20900_v41 }
0x144a   :  { %12883 = vmatpush3.bf16.msra.mxu1 %v20888_v24 }
0x144b   :  { %12911 = vmatpush3.bf16.msra.mxu0 %v20901_v25 }
0x144c   :  { %12913 = vmatprep.subr.bf16.mxu0 %v20902_v22 }
0x144d   :  { %7197 = vmatmul.mubr.f32.vlgmr.msra.gmra.mrb[168].mxu1 %v7058_v2 }
0x144e   :  { %7742 = vmatprep.mubr.bf16.mxu1 %v20596_v7 }
0x144f   :  { %12915 = vmatpush3.bf16.msra.mxu0 %v20903_v51 }
0x1452   :  { %7267 = vmatmul.mubr.f32.vlgmr.msra.gmra.mrb[188].mxu0 %v7060_v39  ;;  %v9833_v39 = vld [vmem:[%s20118_s8 + $0x8] sm:$0x7] }
0x1453   :  { %7732 = vmatprep.mubr.bf16.mxu0 %v20596_v7 }
0x14e0   :  { %v11112_v18 = vpop.f32.mrb[164].mxu1 }
0x14e1   :  { %v11113_v12 = vpop.f32.mrb[165].mxu1 }
0x14e2   :  { %v11114_v37 = vadd.f32 %v11113_v12, %v11112_v18 }
0x14e5   :  { %v11147_v4 = vpop.f32.mrb[184].mxu0 }
0x14e6   :  { %v11148_v19 = vpop.f32.mrb[185].mxu0 }
0x14e7   :  { %v11149_v14 = vadd.f32 %v11148_v19, %v11147_v4 }
0x14e9   :  { %v6983_v25 = vadd.f32 %v11149_v14, %v11114_v37 }
0x1500   :  { %v11182_v2 = vpop.f32.mrb[166].mxu1 }
0x1501   :  { %v11183_v41 = vpop.f32.mrb[167].mxu1 }
0x1502   :  { %v11184_v22 = vadd.f32 %v11183_v41, %v11182_v2 }
0x1504   :  { %v7053_v26 = vadd.f32 %v11184_v22, %v6983_v25 }
0x1505   :  { %v11217_v55 = vpop.f32.mrb[186].mxu0 }
0x1506   :  { %v7272_v20 = vmul.f32 0.001953125, %v7053_v26  ;;  %v11218_v51 = vpop.f32.mrb[187].mxu0 }
0x1507   :  { %v11219_v62 = vadd.f32 %v11218_v51, %v11217_v55  ;;  %v9832_v55 = vld [vmem:[%s20119_s7 + $0x8] sm:$0x7] }
0x1508   :  { %7282 = vperm.xlu1 %13394, %v7272_v20   ;;  %v7274_v41 = vmul.f32 %v7272_v20, %v7272_v20 }
0x150c   :  { %7304 = vperm.xlu1 %13394, %v9833_v39  }
0x1520   :  { %v11252_v15 = vpop.f32.mrb[168].mxu1 }
0x1521   :  { %v11253_v18 = vpop.f32.mrb[169].mxu1 }
0x1522   :  { %v11254_v12 = vadd.f32 %v11253_v18, %v11252_v15 }
0x1524   :  { %v7199_v36 = vadd.f32 %v11254_v12, %v11219_v62 }
0x1525   :  { %v11287_v4 = vpop.f32.mrb[188].mxu0 }
0x1526   :  { %v11288_v37 = vpop.f32.mrb[189].mxu0 }
0x1527   :  { %v11289_v19 = vadd.f32 %v11288_v37, %v11287_v4 }
0x1529   :  { %v7269_v14 = vadd.f32 %v11289_v19, %v7199_v36 }
0x152b   :  { %v7273_v25 = vmul.f32 0.001953125, %v7269_v14 }
0x152d   :  { %v7275_v26 = vsub.f32 %v7273_v25, %v7274_v41 }
0x152f   :  { %v7276_v22 = vmax.f32 %v7275_v26, 0.0 }
0x1531   :  { %v7277_v2 = vadd.f32 1e-05, %v7276_v22 }
0x1533   :  { %14158 = vrsqrt.f32 %v7277_v2 }
0x153d   :  { %v14159_v51 = vpop.eup %14158 }
0x153e   :  { %v7279_v39 = vmul.f32 %v14159_v51, %v9832_v55 }
0x1540   :  { %7293 = vperm.xlu0 %13395, %v7279_v39  }
0x1587   :  { %v7283_v52 = vpop.permute.xlu1 %7282 }
0x1588   :  { %v7285_v15 = vsub.f32 %v18625_v32, %v7283_v52  ;;  %v7286_v62 = vsub.f32 %v18621_v48, %v7283_v52  ;;  %v7287_v36 = vsub.f32 %v18632_v50, %v7283_v52  ;;  %v7290_v20 = vsub.f32 %v18649_v3, %v7283_v52  ;;  %v20904_v50 = vld [vmem:[#allocation47_spill] sm:$0xff]  ;;  %v20905_v3 = vld [vmem:[#allocation48_spill] sm:$0xff] }
0x1589   :  { %v7288_v19 = vsub.f32 %v18637_v40, %v7283_v52 }
0x158b   :  { %v7305_v14 = vpop.permute.xlu1 %7304 }
0x15bf   :  { %v7294_v18 = vpop.permute.xlu0 %7293 }
0x15c0   :  { %v7296_v12 = vmul.f32 %v7294_v18, %v7285_v15  ;;  %v7297_v4 = vmul.f32 %v7294_v18, %v7286_v62  ;;  %v7298_v37 = vmul.f32 %v7294_v18, %v7287_v36  ;;  %v7301_v41 = vmul.f32 %v7294_v18, %v7290_v20  ;;  %v20906_v15 = vld [vmem:[#allocation49_spill] sm:$0xff] }
0x15c1   :  { %v7299_v2 = vmul.f32 %v7294_v18, %v7288_v19 }
0x15c2   :  { %v7307_v25 = vadd.f32 %v7305_v14, %v7296_v12  ;;  %v7308_v26 = vadd.f32 %v7305_v14, %v7297_v4  ;;  %v7309_v22 = vadd.f32 %v7305_v14, %v7298_v37  ;;  %v7312_v55 = vadd.f32 %v7305_v14, %v7301_v41 }
0x15c3   :  { %v7310_v36 = vadd.f32 %v7305_v14, %v7299_v2 }
0x15c4   :  { %v7313_v32 = vmax.f32 %v7307_v25, 0.0  ;;  %v7314_v51 = vmax.f32 %v7308_v26, 0.0  ;;  %v7315_v48 = vmax.f32 %v7309_v22, 0.0  ;;  %v7318_v39 = vmax.f32 %v7312_v55, 0.0 }
0x15c5   :  { %v7316_v41 = vmax.f32 %v7310_v36, 0.0 }
0x15c6   :  { %v7319_v63 = vmul.f32 %v7313_v32, %v20904_v50  ;;  %v7320_v45 = vmul.f32 %v7314_v51, %v20905_v3  ;;  %v7321_v62 = vmul.f32 %v7315_v48, %v20906_v15  ;;  %v7324_v40 = vmul.f32 %v7318_v39, %v20907_v27 }
0x15c7   :  { %v7289_v51 = vsub.f32 %v18680_v23, %v7283_v52  ;;  %v20909_v52 = vld [vmem:[#allocation51_spill] sm:$0xff] }
0x15c8   :  { %v7325_v49 = vmul.f32 2.0, %v7319_v63  ;;  %v7326_v20 = vmul.f32 2.0, %v7320_v45  ;;  %v7327_v12 = vmul.f32 2.0, %v7321_v62  ;;  %v7330_v4 = vmul.f32 2.0, %v7324_v40  ;;  %v20908_v45 = vld [vmem:[#allocation50_spill] sm:$0xff] }
0x15c9   :  { %v7300_v48 = vmul.f32 %v7294_v18, %v7289_v51 }
0x15ca   :  { %v18746_v37 = vadd.f32 %v7325_v49, %v20904_v50  ;;  %v18749_v19 = vadd.f32 %v7326_v20, %v20905_v3  ;;  %v18752_v25 = vadd.f32 %v7327_v12, %v20906_v15  ;;  %v18755_v26 = vadd.f32 %v7330_v4, %v20907_v27  ;;  %v9851_v20 = vld [vmem:[%s20114_s5 + $0x68] sm:$0xff]  ;;  %v9850_v12 = vld [vmem:[%s20114_s5 + $0x60] sm:$0xff] }
0x15cb   :  { %v7322_v49 = vmul.f32 %v7316_v41, %v20908_v45  ;;  %v7311_v62 = vadd.f32 %v7305_v14, %v7300_v48 }
0x15cc   :  { %v13921_v22 = vpack.i.bf16 %v18749_v19, %v18746_v37  ;;  %v13931_v63 = vpack.i.bf16 %v18752_v25, %v18755_v26  ;;  %v13946_v32 = vpack.i.bf16 %v18752_v25, %v18749_v19 }
0x15cd   :  { %v7328_v2 = vmul.f32 2.0, %v7322_v49  ;;  %v7317_v36 = vmax.f32 %v7311_v62, 0.0 }
0x15ce   :  { %13922 = vrot.lane.b32.xlu1 %v13921_v22, %s14172_s17  ;;  %13917 = vrot.lane.b32.xlu0 %v13921_v22, %s14171_s16 }
0x15cf   :  { %v18769_v55 = vadd.f32 %v7328_v2, %v20908_v45  ;;  %v7323_v23 = vmul.f32 %v7317_v36, %v20909_v52 }
0x15d1   :  { %v13956_v39 = vpack.i.bf16 %v18769_v55, %v18746_v37  ;;  %v7329_v18 = vmul.f32 2.0, %v7323_v23  ;;  %v7549_v11 = vrot.slane %v18769_v55, 4 }
0x15d2   :  { %13932 = vrot.lane.b32.xlu1 %v13931_v63, %s14171_s16  ;;  %13927 = vrot.lane.b32.xlu0 %v13921_v22, %s14170_s15 }
0x15d3   :  { %v18794_v14 = vadd.f32 %v7329_v18, %v20909_v52 }
0x15d5   :  { %v13991_v40 = vpack.i.bf16 %v18794_v14, %v18769_v55 }
0x15d6   :  { %13942 = vrot.lane.b32.xlu1 %v13931_v63, %s14170_s15  ;;  %13937 = vrot.lane.b32.xlu0 %v13931_v63, %s14172_s17 }
0x15da   :  { %13952 = vrot.lane.b32.xlu1 %v13921_v22, %s14173_s0  ;;  %13947 = vrot.lane.b32.xlu0 %v13946_v32, %s14174_s18 }
0x15de   :  { %13962 = vrot.lane.b32.xlu1 %v13946_v32, %s14175_s19  ;;  %13957 = vrot.lane.b32.xlu0 %v13956_v39, %s14174_s18 }
0x15e2   :  { %13972 = vrot.lane.b32.xlu1 %v13956_v39, %s14175_s19  ;;  %13967 = vrot.lane.b32.xlu0 %v13931_v63, %s14173_s0 }
0x15e6   :  { %7450 = vrot.lane.b32.xlu1 %v18746_v37, %s14176_s20  ;;  %13977 = vrot.lane.b32.xlu0 %v13946_v32, %s14176_s20 }
0x15ea   :  { %7384 = vrot.lane.b32.xlu1 %v18769_v55, %s14171_s16  ;;  %13982 = vrot.lane.b32.xlu0 %v13946_v32, %s14177_s21 }
0x15ee   :  { %7468 = vrot.lane.b32.xlu1 %v18746_v37, %s14177_s21  ;;  %7402 = vrot.lane.b32.xlu0 %v18769_v55, %s14172_s17 }
0x15f2   :  { %7422 = vrot.lane.b32.xlu1 %v18794_v14, %s14174_s18  ;;  %7366 = vrot.lane.b32.xlu0 %v18769_v55, %s14170_s15 }
0x15f6   :  { %7440 = vrot.lane.b32.xlu1 %v18794_v14, %s14175_s19  ;;  %7348 = vrot.lane.b32.xlu0 %v18769_v55, %s14173_s0  ;;  %v7548_v55 = vrot.slane %v18752_v25, 4 }
0x15fa   :  { %13992 = vrot.lane.b32.xlu1 %v13991_v40, %s14177_s21  ;;  %13987 = vrot.lane.b32.xlu0 %v13991_v40, %s14176_s20 }
0x15fe   :  { %7404 = vrot.lane.b32.xlu1 %v18794_v14, %s14172_s17  ;;  %7386 = vrot.lane.b32.xlu0 %v18794_v14, %s14171_s16 }
0x1602   :  { %7424 = vrot.lane.b32.xlu1 %v18755_v26, %s14174_s18  ;;  %7368 = vrot.lane.b32.xlu0 %v18794_v14, %s14170_s15 }
0x1606   :  { %7442 = vrot.lane.b32.xlu1 %v18755_v26, %s14175_s19  ;;  %7350 = vrot.lane.b32.xlu0 %v18794_v14, %s14173_s0 }
0x160a   :  { %7478 = vrot.lane.b32.xlu1 %v18755_v26, %s14177_s21  ;;  %7460 = vrot.lane.b32.xlu0 %v18755_v26, %s14176_s20 }
0x160e   :  { %8530 = vperm.xlu1 %13394, %v9851_v20   ;;  %8525 = vperm.xlu0 %13395, %v9850_v12  }
0x1640   :  { %v18830_v4 = vpop.permute.xlu1 %13922  ;;  %v18832_v41 = vpop.permute.xlu0 %13917 }
0x1641   :  { %v20459_v22 = vunpack.i.h.bf16 %v18830_v4  ;;  %v13924_v49 = vunpack.i.l.bf16 %v18830_v4  ;;  %v20460_v63 = vunpack.i.h.bf16 %v18832_v41  ;;  %v13919_v2 = vunpack.i.l.bf16 %v18832_v41 }
0x1643   :  { %v7412_v48 = vsel %vm217_vm0, %v13924_v49, %v20459_v22  ;;  %v7394_v39 = vsel %vm198_vm1, %v13919_v2, %v20460_v63 }
0x1644   :  { %v18838_v32 = vpop.permute.xlu1 %13932  ;;  %v18840_v51 = vpop.permute.xlu0 %13927  ;;  %v7529_v20 = vrot.slane %v7412_v48, 7  ;;  %v7511_v12 = vrot.slane %v7394_v39, 2 }
0x1645   :  { %v20465_v62 = vunpack.i.h.bf16 %v18840_v51  ;;  %v13929_v36 = vunpack.i.l.bf16 %v18840_v51  ;;  %v20911_v24 = vunpack.i.l.bf16 %v18838_v32 }
0x1646   :  { %v7625_v3 = vsel %vm20910_vm3, %v7511_v12, %v7529_v20  ;;  %vm20917_vm3 = vmmov %vm20915_vm12 }
0x1647   :  { %v7376_v22 = vsel %vm179_vm2, %v13929_v36, %v20465_v62  ;;  %v7547_v62 = vrot.slane %v18749_v19, 4 }
0x1648   :  { %v18852_v23 = vpop.permute.xlu1 %13942  ;;  %v18854_v18 = vpop.permute.xlu0 %13937  ;;  %v7493_v50 = vrot.slane %v7376_v22, 5 }
0x1649   :  { %v20468_v40 = vunpack.i.l.bf16 %v18854_v18 }
0x164b   :  { %v7413_v63 = vsel %vm217_vm0, %v20468_v40, %v13924_v49  ;;  %v7395_v49 = vsel %vm198_vm1, %v20911_v24, %v13919_v2 }
0x164c   :  { %v18866_v45 = vpop.permute.xlu1 %13952  ;;  %v18868_v15 = vpop.permute.xlu0 %13947  ;;  %v7528_v19 = vrot.slane %v7413_v63, 7  ;;  %v7510_v44 = vrot.slane %v7395_v49, 2 }
0x164d   :  { %v20473_v27 = vunpack.i.h.bf16 %v18866_v45  ;;  %v13954_v48 = vunpack.i.l.bf16 %v18866_v45  ;;  %v20476_v39 = vunpack.i.h.bf16 %v18868_v15  ;;  %v13949_v52 = vunpack.i.l.bf16 %v18868_v15 }
0x164e   :  { %v7624_v2 = vsel %vm20913_vm15, %v7510_v44, %v7528_v19 }
0x164f   :  { %v7358_v9 = vsel %vm160_vm5, %v13954_v48, %v20473_v27  ;;  %v7429_v22 = vsel %vm236_vm6, %v13949_v52, %v20476_v39  ;;  %v7631_v27 = vsel %vm435_vm4, %v7625_v3, %v7547_v62 }
0x1650   :  { %v7565_v34 = vrot.slane %v7429_v22, 1  ;;  %v18889_v20 = vpop.permute.xlu1 %13962  ;;  %v18891_v17 = vpop.permute.xlu0 %13957  ;;  %v7613_v24 = vsel %vm414_vm7, %v7358_v9, %v7493_v50  ;;  %v20912_v22 = vunpack.i.l.bf16 %v18852_v23 }
0x1651   :  { %v13964_v40 = vunpack.i.l.bf16 %v18889_v20  ;;  %v20478_v38 = vunpack.i.l.bf16 %v18891_v17  ;;  %v7619_v58 = vsel %vm421_vm8, %v7613_v24, %v7511_v12  ;;  %v20924_v59 = vunpack.i.h.bf16 %v18889_v20 }
0x1652   :  { %v7637_v63 = vsel %vm442_vm9, %v7631_v27, %v7565_v34  ;;  %v7377_v39 = vsel %vm179_vm2, %v20912_v22, %v13929_v36  ;;  %v20914_v27 = vunpack.i.h.bf16 %v18889_v20 }
0x1653   :  { %v7430_v9 = vsel %vm236_vm6, %v20478_v38, %v13949_v52  ;;  %v7655_v50 = vpack.c.bf16 %v7637_v63, %v7619_v58  ;;  %v7546_v58 = vrot.slane %v18746_v37, 4  ;;  %v7492_v52 = vrot.slane %v7377_v39, 5 }
0x1654   :  { %v7564_v53 = vrot.slane %v7430_v9, 1  ;;  %v18909_v3 = vpop.permute.xlu1 %13972  ;;  %v18911_v62 = vpop.permute.xlu0 %13967  ;;  %v7447_v12 = vsel %vm255_vm10, %v13964_v40, %v20914_v27 }
0x1655   :  { %v20480_v36 = vunpack.i.l.bf16 %v18909_v3  ;;  %v20479_v49 = vunpack.i.l.bf16 %v18911_v62  ;;  %7700 = vmatprep.subr.bf16.mxu0 %v7655_v50  ;;  %13300 = vmatprep.subr.bf16.mxu1 %v7655_v50  ;;  %v7630_v24 = vsel %vm435_vm4, %v7624_v2, %v7546_v58  ;;  %v7583_v63 = vrot.slane %v7447_v12, 6 }
0x1656   :  { %v7636_v38 = vsel %vm442_vm9, %v7630_v24, %v7564_v53  ;;  %v13945_v12 = vunpack.i.h.bf16 %v18852_v23  ;;  %v13970_v16 = vunpack.i.h.bf16 %v18911_v62 }
0x1657   :  { %v7359_v19 = vsel %vm160_vm5, %v20479_v49, %v13954_v48  ;;  %v7448_v37 = vsel %vm255_vm10, %v20480_v36, %v13964_v40  ;;  %v13940_v40 = vunpack.i.h.bf16 %v18854_v18 }
0x1658   :  { %v7612_v22 = vsel %vm414_vm7, %v7359_v19, %v7492_v52  ;;  %v18926_v9 = vpop.permute.xlu1 %7450  ;;  %v18928_v27 = vpop.permute.xlu0 %13977  ;;  %v7582_v19 = vrot.slane %v7448_v37, 6  ;;  %v20916_v37 = vunpack.i.h.bf16 %v18840_v51  ;;  %v20918_v51 = vunpack.i.h.bf16 %v18830_v4 }
0x1659   :  { %v20481_v39 = vunpack.i.h.bf16 %v18928_v27  ;;  %v13979_v48 = vunpack.i.l.bf16 %v18928_v27  ;;  %v7618_v2 = vsel %vm421_vm8, %v7612_v22, %v7510_v44 }
0x165a   :  { %v7654_v50 = vpack.c.bf16 %v7636_v38, %v7618_v2  ;;  %v7643_v2 = vsel %vm20915_vm12, %v7565_v34, %v7583_v63  ;;  %v7642_v34 = vsel %vm20917_vm3, %v7564_v53, %v7582_v19  ;;  %v20919_v19 = vld [vmem:[#allocation3_spill] sm:$0xff]  ;;  %vm20923_vm12 = vmmov %vm20913_vm15  ;;  %vm20925_vm3 = vcmask 220160  }
0x165b   :  { %v7465_v58 = vsel %vm274_vm11, %v13979_v48, %v20481_v39  ;;  %v7466_v52 = vsel %vm274_vm11, %v18926_v9, %v13979_v48  ;;  %v13935_v48 = vunpack.i.h.bf16 %v18838_v32 }
0x165c   :  { %v7601_v24 = vrot.slane %v7465_v58, 3  ;;  %v18947_v49 = vpop.permute.xlu1 %7384  ;;  %v18949_v36 = vpop.permute.xlu0 %13982  ;;  %7701 = vmatpush1.bf16.msra.mxu0 %v7654_v50  ;;  %13302 = vmatpush1.bf16.msra.mxu1 %v7654_v50  ;;  %v7600_v38 = vrot.slane %v7466_v52, 3  ;;  %v7375_v58 = vsel %vm179_vm2, %v20916_v37, %v13945_v12  ;;  %v13960_v52 = vunpack.i.h.bf16 %v18891_v17 }
0x165d   :  { %v20484_v44 = vunpack.i.h.bf16 %v18949_v36  ;;  %v13984_v22 = vunpack.i.l.bf16 %v18949_v36  ;;  %v7392_v53 = vsel %vm198_vm1, %v13935_v48, %v18947_v49  ;;  %v7494_v10 = vrot.slane %v7375_v58, 5  ;;  %v19013_v58 = vld [vmem:[%s20112_s3 + $0x30] sm:$0xff]  }
0x165e   :  { %v7649_v39 = vsel %vm456_vm13, %v7643_v2, %v7601_v24  ;;  %v7411_v2 = vsel %vm217_vm0, %v20918_v51, %v13940_v40 }
0x165f   :  { %v7483_v50 = vsel %vm293_vm14, %v13984_v22, %v20484_v44  ;;  %v7648_v44 = vsel %vm456_vm13, %v7642_v34, %v7600_v38  ;;  %v7530_v56 = vrot.slane %v7411_v2, 7  ;;  %v20921_v38 = vunpack.i.h.bf16 %v18868_v15  ;;  %v19018_v2 = vld [vmem:[%s20112_s3 + $0x38] sm:$0xff]  }
0x1660   :  { %v18966_v61 = vpop.permute.xlu1 %7468  ;;  %v18969_v63 = vpop.permute.xlu0 %7402  ;;  %v7661_v24 = vpack.c.bf16 %v7483_v50, %v7649_v39  ;;  %v20920_v50 = vunpack.i.h.bf16 %v18832_v41  ;;  %v20922_v34 = vunpack.i.h.bf16 %v18866_v45 }
0x1661   :  { %v7484_v37 = vsel %vm293_vm14, %v18966_v61, %v13984_v22  ;;  %v7410_v60 = vsel %vm217_vm0, %v13940_v40, %v18969_v63  ;;  %v7428_v40 = vsel %vm236_vm6, %v20921_v38, %v13960_v52 }
0x1662   :  { %v7660_v39 = vpack.c.bf16 %v7484_v37, %v7648_v44  ;;  %v7686_v4 = vand.u32 %v7661_v24, %v20919_v19  ;;  %v7393_v51 = vsel %vm198_vm1, %v20920_v50, %v13935_v48  ;;  %v7531_v22 = vrot.slane %v7410_v60, 7 }
0x1663   :  { %v7357_v44 = vsel %vm160_vm5, %v20922_v34, %v13970_v16  ;;  %v13975_v60 = vunpack.i.h.bf16 %v18909_v3  ;;  %v7513_v48 = vrot.slane %v7392_v53, 2  ;;  %v7566_v50 = vrot.slane %v7428_v40, 1 }
0x1664   :  { %v7683_v24 = vand.u32 %v7660_v39, %v20919_v19  ;;  %v18999_v37 = vpop.permute.xlu1 %7422  ;;  %v19001_v41 = vpop.permute.xlu0 %7366  ;;  %7702 = vmatprep.subr.bf16.mxu0 %v7686_v4  ;;  %13301 = vmatprep.subr.bf16.mxu1 %v7686_v4  ;;  %v7512_v39 = vrot.slane %v7393_v51, 2  ;;  %v7614_v53 = vsel %vm414_vm7, %v7357_v44, %v7494_v10 }
0x1665   :  { %v7427_v15 = vsel %vm236_vm6, %v13960_v52, %v18999_v37  ;;  %v7374_v45 = vsel %vm179_vm2, %v13945_v12, %v19001_v41  ;;  %v7627_v52 = vsel %vm20913_vm15, %v7513_v48, %v7531_v22  ;;  %v7446_v51 = vsel %vm255_vm10, %v20924_v59, %v13975_v60  ;;  %vm20926_vm15 = vmmov %vm20925_vm3 }
0x1666   :  { %7703 = vmatpush1.bf16.msra.mxu0 %v7683_v24  ;;  %13303 = vmatpush1.bf16.msra.mxu1 %v7683_v24  ;;  %v7567_v4 = vrot.slane %v7427_v15, 1  ;;  %v7626_v12 = vsel %vm20923_vm12, %v7512_v39, %v7530_v56  ;;  %v7495_v38 = vrot.slane %v7374_v45, 5  ;;  %v7633_v59 = vsel %vm435_vm4, %v7627_v52, %v7549_v11 }
0x1667   :  { %v7620_v22 = vsel %vm421_vm8, %v7614_v53, %v7512_v39  ;;  %v7632_v44 = vsel %vm435_vm4, %v7626_v12, %v7548_v55  ;;  %v7584_v24 = vrot.slane %v7446_v51, 6  ;;  %v20927_v51 = vunpack.i.h.bf16 %v18928_v27 }
0x1668   :  { %v19023_v34 = vpop.permute.xlu1 %7440  ;;  %v19025_v47 = vpop.permute.xlu0 %7348  ;;  %v7639_v40 = vsel %vm442_vm9, %v7633_v59, %v7567_v4  ;;  %v7638_v11 = vsel %vm442_vm9, %v7632_v44, %v7566_v50  ;;  %vm20928_vm12 = vcmask 1041408  }
0x1669   :  { %v7445_v10 = vsel %vm255_vm10, %v13975_v60, %v19023_v34  ;;  %v7356_v56 = vsel %vm160_vm5, %v13970_v16, %v19025_v47  ;;  %9840 = vmatmul.mubr.msk.bf16.vlgmr.msra.gmra.mrb[192].mxu0 %vm20925_vm3, %v19013_v58  ;;  %9841 = vmatmul.mubr.msk.bf16.vlgmr.msra.gmra.mrb[172].mxu1 %vm20926_vm15, %v19018_v2  ;;  %v7656_v52 = vpack.c.bf16 %v7638_v11, %v7620_v22  ;;  %vm20929_vm3 = vmmov %vm20928_vm12  ;;  %vm20933_vm15 = vcmask 1040384  }
0x166a   :  { %v7615_v20 = vsel %vm414_vm7, %v7356_v56, %v7495_v38  ;;  %7785 = vmatprep.mubr.bf16.mxu1 %v20596_v7  ;;  %7838 = vmatprep.mubr.bf16.mxu0 %v20596_v7  ;;  %v7585_v60 = vrot.slane %v7445_v10, 6  ;;  %v7644_v56 = vsel %vm20928_vm12, %v7566_v50, %v7584_v24 }
0x166b   :  { %v7621_v16 = vsel %vm421_vm8, %v7615_v20, %v7513_v48 }
0x166c   :  { %v19051_v15 = vpop.permute.xlu1 %13992  ;;  %v19053_v25 = vpop.permute.xlu0 %13987  ;;  %v7657_v45 = vpack.c.bf16 %v7639_v40, %v7621_v16  ;;  %v7645_v55 = vsel %vm20929_vm3, %v7567_v4, %v7585_v60  ;;  %v20930_v40 = vunpack.i.l.bf16 %v18854_v18 }
0x166d   :  { %v13990_v39 = vunpack.i.h.bf16 %v19053_v25  ;;  %v13989_v53 = vunpack.i.l.bf16 %v19053_v25  ;;  %v13995_v48 = vunpack.i.h.bf16 %v19051_v15  ;;  %v13994_v38 = vunpack.i.l.bf16 %v19051_v15  ;;  %v20948_v15 = vld [vmem:[#allocation21_spill] sm:$0xff] }
0x166e   :  { %7753 = vmatprep.subr.bf16.mxu1 %v7657_v45  ;;  %v20931_v45 = vunpack.i.l.bf16 %v18838_v32 }
0x166f   :  { %v7463_v12 = vsel %vm274_vm11, %v13989_v53, %v13990_v39  ;;  %v7464_v10 = vsel %vm274_vm11, %v20927_v51, %v13989_v53  ;;  %7754 = vmatpush1.bf16.msra.mxu1 %v7656_v52  ;;  %v7481_v53 = vsel %vm293_vm14, %v13994_v38, %v13995_v48  ;;  %v7550_v51 = vrot.slane %v18794_v14, 4 }
0x1670   :  { %v7602_v20 = vrot.slane %v7464_v10, 3  ;;  %v7603_v59 = vrot.slane %v7463_v12, 3  ;;  %v7405_v22 = vpop.permute.xlu1 %7404  ;;  %v7387_v16 = vpop.permute.xlu0 %7386 }
0x1671   :  { %v7408_v44 = vsel %vm217_vm0, %v7405_v22, %v20930_v40  ;;  %v7409_v27 = vsel %vm217_vm0, %v18969_v63, %v7405_v22  ;;  %v7390_v50 = vsel %vm198_vm1, %v7387_v16, %v20931_v45  ;;  %v7391_v4 = vsel %vm198_vm1, %v18947_v49, %v7387_v16  ;;  %vm20934_vm1 = vmmov %vm20933_vm15 }
0x1672   :  { %v7532_v24 = vrot.slane %v7409_v27, 7  ;;  %v7533_v60 = vrot.slane %v7408_v44, 7  ;;  %v7514_v11 = vrot.slane %v7391_v4, 2  ;;  %v7515_v18 = vrot.slane %v7390_v50, 2 }
0x1673   :  { %v20932_v63 = vunpack.i.h.bf16 %v18949_v36  ;;  %v7651_v52 = vsel %vm456_vm13, %v7645_v55, %v7603_v59  ;;  %v7650_v12 = vsel %vm456_vm13, %v7644_v56, %v7602_v20  ;;  %v20936_v56 = vunpack.i.l.bf16 %v18852_v23 }
0x1674   :  { %v7628_v49 = vsel %vm20933_vm15, %v7514_v11, %v7532_v24  ;;  %v7425_v10 = vpop.permute.xlu1 %7424  ;;  %v7369_v22 = vpop.permute.xlu0 %7368  ;;  %v7663_v16 = vpack.c.bf16 %v7481_v53, %v7651_v52  ;;  %v7629_v44 = vsel %vm20934_vm1, %v7515_v18, %v7533_v60  ;;  %v7551_v45 = vrot.slane %v18755_v26, 4 }
0x1675   :  { %v7482_v32 = vsel %vm293_vm14, %v20932_v63, %v13994_v38  ;;  %v7426_v36 = vsel %vm236_vm6, %v18999_v37, %v7425_v10  ;;  %v20935_v38 = vunpack.i.l.bf16 %v18891_v17  ;;  %v7372_v14 = vsel %vm179_vm2, %v7369_v22, %v20936_v56 }
0x1676   :  { %v7662_v40 = vpack.c.bf16 %v7482_v32, %v7650_v12  ;;  %v7568_v20 = vrot.slane %v7426_v36, 1  ;;  %v7373_v27 = vsel %vm179_vm2, %v19001_v41, %v7369_v22  ;;  %v7692_v37 = vand.u32 %v7663_v16, %v20919_v19 }
0x1677   :  { %v7431_v55 = vsel %vm236_vm6, %v7425_v10, %v20935_v38  ;;  %v7634_v50 = vsel %vm435_vm4, %v7628_v49, %v7550_v51  ;;  %v7496_v4 = vrot.slane %v7373_v27, 5  ;;  %v7497_v24 = vrot.slane %v7372_v14, 5 }
0x1678   :  { %v7569_v59 = vrot.slane %v7431_v55, 1  ;;  %v7689_v17 = vand.u32 %v7662_v40, %v20919_v19  ;;  %v7443_v23 = vpop.permute.xlu1 %7442  ;;  %v7351_v60 = vpop.permute.xlu0 %7350  ;;  %v7635_v53 = vsel %vm435_vm4, %v7629_v44, %v7551_v45  ;;  %7755 = vmatprep.subr.bf16.mxu1 %v7692_v37  ;;  %v20937_v41 = vunpack.i.l.bf16 %v18909_v3 }
0x1679   :  { %v7444_v63 = vsel %vm255_vm10, %v19023_v34, %v7443_v23  ;;  %v20938_v32 = vunpack.i.l.bf16 %v18911_v62  ;;  %v7355_v12 = vsel %vm160_vm5, %v19025_v47, %v7351_v60  ;;  %v7640_v49 = vsel %vm442_vm9, %v7634_v50, %v7568_v20  ;;  %v20951_v50 = vld [vmem:[#allocation20_spill] sm:$0xff] }
0x167a   :  { %v7449_v26 = vsel %vm255_vm10, %v7443_v23, %v20937_v41  ;;  %v7616_v51 = vsel %vm414_vm7, %v7355_v12, %v7496_v4  ;;  %7756 = vmatpush1.bf16.msra.mxu1 %v7689_v17  ;;  %v7641_v3 = vsel %vm442_vm9, %v7635_v53, %v7569_v59  ;;  %v7586_v10 = vrot.slane %v7444_v63, 6  ;;  %v20950_v17 = vld [vmem:[#allocation22_spill] sm:$0xff]  ;;  %v20952_v4 = vld [vmem:[#allocation24_spill] sm:$0xff]  ;;  %v20955_v23 = vld [vmem:[#allocation31_spill] sm:$0xff] }
0x167b   :  { %v7354_v52 = vsel %vm160_vm5, %v7351_v60, %v20938_v32  ;;  %v7587_v22 = vrot.slane %v7449_v26, 6  ;;  %v7622_v62 = vsel %vm421_vm8, %v7616_v51, %v7514_v11  ;;  %12917 = vmatprep.subr.bf16.mxu1 %v20861_v29  ;;  %vm20939_vm4 = vcmask 220160   ;;  %vm20940_vm5 = vmmov %vm20929_vm3  ;;  %v20956_v60 = vld [vmem:[#allocation26_spill] sm:$0xff]  ;;  %v20957_v53 = vld [vmem:[#allocation27_spill] sm:$0xff] }
0x167c   :  { %v7617_v34 = vsel %vm414_vm7, %v7354_v52, %v7497_v24  ;;  %v7658_v40 = vpack.c.bf16 %v7640_v49, %v7622_v62  ;;  %v7461_v44 = vpop.permute.xlu0 %7460  ;;  %v7479_v36 = vpop.permute.xlu1 %7478  ;;  %v7646_v56 = vsel %vm20940_vm5, %v7568_v20, %v7586_v10  ;;  %vm20941_vm7 = vmmov %vm20929_vm3  ;;  %v20953_v24 = vld [vmem:[#allocation23_spill] sm:$0xff]  ;;  %v20958_v63 = vld [vmem:[#allocation28_spill] sm:$0xff] }
0x167d   :  { %v7623_v16 = vsel %vm421_vm8, %v7617_v34, %v7515_v18  ;;  %9842 = vmatmul.mubr.msk.bf16.vlgmr.msra.gmra.mrb[176].mxu1 %vm20939_vm4, %v19013_v58  ;;  %v7462_v38 = vsel %vm274_vm11, %v13990_v39, %v7461_v44  ;;  %v7467_v11 = vsel %vm274_vm11, %v7461_v44, %v18926_v9  ;;  %v7647_v14 = vsel %vm20941_vm7, %v7569_v59, %v7587_v22  ;;  %vm20942_vm8 = vmmov %vm20939_vm4  ;;  %v20959_v41 = vld [vmem:[#allocation29_spill] sm:$0xff]  ;;  %v20960_v26 = vld [vmem:[#allocation30_spill] sm:$0xff] }
0x167e   :  { %v7659_v47 = vpack.c.bf16 %v7641_v3, %v7623_v16  ;;  %v7604_v55 = vrot.slane %v7462_v38, 3  ;;  %v7605_v18 = vrot.slane %v7467_v11, 3  ;;  %7795 = vmatprep.mubr.bf16.mxu1 %v20596_v7  ;;  %12919 = vmatpush3.bf16.msra.mxu1 %v20863_v13  ;;  %v7480_v25 = vsel %vm293_vm14, %v13995_v48, %v7479_v36  ;;  %vm20943_vm9 = vmmov %vm20939_vm4  ;;  %v20949_v48 = vld [vmem:[#allocation19_spill] sm:$0xff]  ;;  %v20961_v22 = vld [vmem:[#allocation32_spill] sm:$0xff] }
0x167f   :  { %v7485_v9 = vsel %vm293_vm14, %v7479_v36, %v18966_v61  ;;  %12921 = vmatprep.subr.bf16.mxu1 %v20864_v33  ;;  %vm20944_vm10 = vmmov %vm20939_vm4  ;;  %v20945_v61 = vld [vmem:[#allocation15_spill] sm:$0xff]  ;;  %v20962_v62 = vld [vmem:[#allocation33_spill] sm:$0xff] }
0x1680   :  { %7806 = vmatprep.subr.bf16.mxu0 %v7659_v47  ;;  %v7652_v39 = vsel %vm456_vm13, %v7646_v56, %v7604_v55  ;;  %v7653_v27 = vsel %vm456_vm13, %v7647_v14, %v7605_v18  ;;  %v20963_v16 = vld [vmem:[#allocation34_spill] sm:$0xff]  ;;  %v20965_v44 = vld [vmem:[#allocation36_spill] sm:$0xff]  ;;  %v20966_v47 = vld [vmem:[#allocation37_spill] sm:$0xff]  ;;  %vm20984_vm13 = vcmask 785408  }
0x1681   :  { %7807 = vmatpush1.bf16.msra.mxu0 %v7658_v40  ;;  %v7664_v20 = vpack.c.bf16 %v7480_v25, %v7652_v39  ;;  %v7665_v59 = vpack.c.bf16 %v7485_v9, %v7653_v27  ;;  %v20964_v40 = vld [vmem:[#allocation35_spill] sm:$0xff]  ;;  %v20967_v36 = vld [vmem:[#allocation38_spill] sm:$0xff]  ;;  %v20969_v55 = vld [vmem:[#allocation40_spill] sm:$0xff] }
0x1682   :  { %12923 = vmatpush3.bf16.msra.mxu1 %v20865_v28  ;;  %v20968_v38 = vld [vmem:[#allocation39_spill] sm:$0xff]  ;;  %v20970_v56 = vld [vmem:[#allocation41_spill] sm:$0xff]  ;;  %v20971_v9 = vld [vmem:[#allocation42_spill] sm:$0xff] }
0x1683   :  { %v7698_v45 = vand.u32 %v7665_v59, %v20919_v19  ;;  %v7695_v37 = vand.u32 %v7664_v20, %v20919_v19  ;;  %12925 = vmatprep.subr.bf16.mxu1 %v20867_v6  ;;  %v20946_v19 = vld [vmem:[#allocation18_spill] sm:$0xff]  ;;  %v20972_v39 = vld [vmem:[#allocation43_spill] sm:$0xff]  ;;  %v20973_v20 = vld [vmem:[#allocation44_spill] sm:$0xff] }
0x1685   :  { %9843 = vmatmul.mubr.msk.bf16.gmra.mrb[180].mxu1 %vm20942_vm8, %v19018_v2  ;;  %7808 = vmatprep.subr.bf16.mxu0 %v7698_v45  ;;  %v20974_v45 = vld [vmem:[#allocation45_spill] sm:$0xff] }
0x1686   :  { %7809 = vmatpush1.bf16.msra.mxu0 %v7695_v37  ;;  %12927 = vmatpush3.bf16.msra.mxu1 %v20868_v5 }
0x1687   :  { %12949 = vmatprep.subr.bf16.mxu0 %v14714_v30  ;;  %12929 = vmatprep.subr.bf16.mxu1 %v20869_v31 }
0x1689   :  { %9844 = vmatmul.mubr.msk.bf16.vlgmr.msra.gmra.mrb[196].mxu0 %vm20943_vm9, %v19013_v58  ;;  %v20947_v58 = vld [vmem:[#allocation16_spill] sm:$0xff] }
0x168a   :  { %7848 = vmatprep.mubr.bf16.mxu0 %v20596_v7  ;;  %12951 = vmatpush3.bf16.msra.mxu0 %v14746_v57 }
0x168b   :  { %12931 = vmatpush3.bf16.msra.mxu1 %v20870_v46  ;;  %12953 = vmatprep.subr.bf16.mxu0 %v14749_v1 }
0x168c   :  { %12933 = vmatprep.subr.bf16.mxu1 %v20871_v0 }
0x168e   :  { %12955 = vmatpush3.bf16.msra.mxu0 %v14785_v21 }
0x168f   :  { %12935 = vmatpush3.bf16.msra.mxu1 %v20872_v8  ;;  %12957 = vmatprep.subr.bf16.mxu0 %v14788_v42 }
0x1690   :  { %12937 = vmatprep.subr.bf16.mxu1 %v20873_v54 }
0x1691   :  { %9845 = vmatmul.mubr.msk.bf16.gmra.mrb[200].mxu0 %vm20944_vm10, %v19018_v2  ;;  %v20954_v2 = vld [vmem:[#allocation25_spill] sm:$0xff] }
0x1692   :  { %12959 = vmatpush3.bf16.msra.mxu0 %v20806_v35 }
0x1693   :  { %12939 = vmatpush3.bf16.msra.mxu1 %v20945_v61  ;;  %12961 = vmatprep.subr.bf16.mxu0 %v20946_v19 }
0x1694   :  { %12941 = vmatprep.subr.bf16.mxu1 %v20947_v58 }
0x1696   :  { %12963 = vmatpush3.bf16.msra.mxu0 %v20948_v15 }
0x1697   :  { %12943 = vmatpush3.bf16.msra.mxu1 %v20949_v48  ;;  %12965 = vmatprep.subr.bf16.mxu0 %v20950_v17 }
0x1698   :  { %12945 = vmatprep.subr.bf16.mxu1 %v20951_v50 }
0x169a   :  { %12967 = vmatpush3.bf16.msra.mxu0 %v20952_v4 }
0x169b   :  { %12947 = vmatpush3.bf16.msra.mxu1 %v20953_v24  ;;  %12969 = vmatprep.subr.bf16.mxu0 %v20954_v2 }
0x169c   :  { %12981 = vmatprep.subr.bf16.mxu1 %v20955_v23 }
0x169e   :  { %12971 = vmatpush3.bf16.msra.mxu0 %v20956_v60 }
0x169f   :  { %12973 = vmatprep.subr.bf16.mxu0 %v20957_v53 }
0x16a2   :  { %12975 = vmatpush3.bf16.msra.mxu0 %v20958_v63 }
0x16a3   :  { %12977 = vmatprep.subr.bf16.mxu0 %v20959_v41 }
0x16a6   :  { %12979 = vmatpush3.bf16.msra.mxu0 %v20960_v26 }
0x16a7   :  { %13013 = vmatprep.subr.bf16.mxu0 %v20861_v29 }
0x173c   :  { %v19200_v32 = vpop.f32.mrb[192].mxu0  ;;  %v19202_v52 = vpop.f32.mrb[172].mxu1 }
0x173d   :  { %v19204_v12 = vpop.f32.mrb[193].mxu0  ;;  %v19206_v49 = vpop.f32.mrb[173].mxu1 }
0x173e   :  { %7933 = vmatprep.mubr.f32.mxu1 %v19204_v12  ;;  %v19209_v51 = vpop.f32.mrb[194].mxu0  ;;  %v19211_v34 = vpop.f32.mrb[174].mxu1  ;;  %v8125_v29 = vmul.f32 %v19204_v12, %v19204_v12 }
0x173f   :  { %7934 = vmatmul.mubr.f32.vlgmr.msra.gmra.mrb[170].mxu1 %v19200_v32  ;;  %v19214_v3 = vpop.f32.mrb[195].mxu0  ;;  %v19216_v10 = vpop.f32.mrb[175].mxu1 }
0x1740   :  { %12983 = vmatpush3.bf16.msra.mxu1 %v20961_v22  ;;  %7938 = vmatprep.mubr.f32.mxu1 %v19214_v3 }
0x1741   :  { %12985 = vmatprep.subr.bf16.mxu1 %v20962_v62 }
0x1743   :  { %7939 = vmatmul.mubr.f32.gmra.mrb[184].mxu1 %v19209_v51 }
0x1744   :  { %12987 = vmatpush3.bf16.msra.mxu1 %v20963_v16  ;;  %7943 = vmatprep.mubr.f32.mxu1 %v19206_v49 }
0x1745   :  { %12989 = vmatprep.subr.bf16.mxu1 %v20964_v40 }
0x1747   :  { %7944 = vmatmul.mubr.f32.gmra.mrb[186].mxu1 %v19202_v52 }
0x1748   :  { %12991 = vmatpush3.bf16.msra.mxu1 %v20965_v44  ;;  %7948 = vmatprep.mubr.f32.mxu1 %v19216_v10 }
0x1749   :  { %12993 = vmatprep.subr.bf16.mxu1 %v20966_v47 }
0x174b   :  { %7949 = vmatmul.mubr.f32.gmra.mrb[188].mxu1 %v19211_v34 }
0x174c   :  { %12995 = vmatpush3.bf16.msra.mxu1 %v20967_v36 }
0x174d   :  { %12997 = vmatprep.subr.bf16.mxu1 %v20968_v38 }
0x1750   :  { %v19232_v11 = vpop.f32.mrb[176].mxu1  ;;  %12999 = vmatpush3.bf16.msra.mxu1 %v20969_v55 }
0x1751   :  { %v19235_v18 = vpop.f32.mrb[177].mxu1  ;;  %13001 = vmatprep.subr.bf16.mxu1 %v20970_v56 }
0x1752   :  { %8018 = vmatprep.mubr.f32.mxu0 %v19235_v18  ;;  %v19239_v14 = vpop.f32.mrb[178].mxu1 }
0x1753   :  { %8019 = vmatmul.mubr.f32.vlgmr.msra.gmra.mrb[190].mxu0 %v19232_v11  ;;  %v19242_v25 = vpop.f32.mrb[179].mxu1 }
0x1754   :  { %13015 = vmatpush3.bf16.msra.mxu0 %v20863_v13  ;;  %13003 = vmatpush3.bf16.msra.mxu1 %v20971_v9 }
0x1755   :  { %8023 = vmatprep.mubr.f32.mxu0 %v19242_v25  ;;  %13017 = vmatprep.subr.bf16.mxu0 %v20864_v33 }
0x1756   :  { %13005 = vmatprep.subr.bf16.mxu1 %v20972_v39 }
0x1757   :  { %8024 = vmatmul.mubr.f32.gmra.mrb[204].mxu0 %v19239_v14 }
0x1758   :  { %13019 = vmatpush3.bf16.msra.mxu0 %v20865_v28  ;;  %v19251_v27 = vpop.f32.mrb[180].mxu1  ;;  %13007 = vmatpush3.bf16.msra.mxu1 %v20973_v20  ;;  %v20975_v28 = vld [vmem:[#allocation46_spill] sm:$0xff] }
0x1759   :  { %v19254_v59 = vpop.f32.mrb[181].mxu1  ;;  %13021 = vmatprep.subr.bf16.mxu0 %v20867_v6  ;;  %13009 = vmatprep.subr.bf16.mxu1 %v20974_v45 }
0x175a   :  { %8028 = vmatprep.mubr.f32.mxu0 %v19254_v59  ;;  %v19259_v37 = vpop.f32.mrb[182].mxu1 }
0x175b   :  { %8029 = vmatmul.mubr.f32.gmra.mrb[206].mxu0 %v19251_v27  ;;  %v19262_v33 = vpop.f32.mrb[183].mxu1 }
0x175c   :  { %13023 = vmatpush3.bf16.msra.mxu0 %v20868_v5  ;;  %13011 = vmatpush3.bf16.msra.mxu1 %v20975_v28  ;;  %v19266_v13 = vpop.f32.mrb[196].mxu0 }
0x175d   :  { %8033 = vmatprep.mubr.f32.mxu0 %v19262_v33  ;;  %13025 = vmatprep.subr.bf16.mxu0 %v20869_v31  ;;  %v19270_v6 = vpop.f32.mrb[197].mxu0 }
0x175e   :  { %8103 = vmatprep.mubr.f32.mxu1 %v19270_v6  ;;  %13045 = vmatprep.subr.bf16.mxu1 %v14714_v30  ;;  %v19276_v43 = vpop.f32.mrb[198].mxu0 }
0x175f   :  { %8034 = vmatmul.mubr.f32.gmra.mrb[208].mxu0 %v19259_v37  ;;  %8104 = vmatmul.mubr.f32.vlgmr.msra.gmra.mrb[190].mxu1 %v19266_v13  ;;  %v19280_v5 = vpop.f32.mrb[199].mxu0 }
0x1760   :  { %13027 = vmatpush3.bf16.msra.mxu0 %v20870_v46  ;;  %8212 = vmatprep.mubr.f32.mxu0 %v8125_v29 }
0x1761   :  { %13047 = vmatpush3.bf16.msra.mxu1 %v14746_v57  ;;  %13029 = vmatprep.subr.bf16.mxu0 %v20871_v0 }
0x1762   :  { %8108 = vmatprep.mubr.f32.mxu1 %v19280_v5  ;;  %13049 = vmatprep.subr.bf16.mxu1 %v14749_v1 }
0x1763   :  { %8109 = vmatmul.mubr.f32.gmra.mrb[192].mxu1 %v19276_v43 }
0x1764   :  { %13031 = vmatpush3.bf16.msra.mxu0 %v20872_v8  ;;  %v19289_v31 = vpop.f32.mrb[200].mxu0 }
0x1765   :  { %13051 = vmatpush3.bf16.msra.mxu1 %v14785_v21  ;;  %13033 = vmatprep.subr.bf16.mxu0 %v20873_v54  ;;  %v19293_v46 = vpop.f32.mrb[201].mxu0  ;;  %v8127_v54 = vmul.f32 %v19235_v18, %v19235_v18 }
0x1766   :  { %8113 = vmatprep.mubr.f32.mxu1 %v19293_v46  ;;  %13053 = vmatprep.subr.bf16.mxu1 %v14788_v42  ;;  %v19297_v29 = vpop.f32.mrb[202].mxu0 }
0x1767   :  { %8114 = vmatmul.mubr.f32.gmra.mrb[194].mxu1 %v19289_v31  ;;  %v19300_v0 = vpop.f32.mrb[203].mxu0 }
0x1768   :  { %13035 = vmatpush3.bf16.msra.mxu0 %v20945_v61  ;;  %8118 = vmatprep.mubr.f32.mxu1 %v19300_v0  ;;  %v8131_v61 = vmul.f32 %v19214_v3, %v19214_v3 }
0x1769   :  { %13055 = vmatpush3.bf16.msra.mxu1 %v20806_v35  ;;  %13037 = vmatprep.subr.bf16.mxu0 %v20947_v58  ;;  %v8124_v58 = vmul.f32 %v19200_v32, %v19200_v32 }
0x176a   :  { %13057 = vmatprep.subr.bf16.mxu1 %v20946_v19 }
0x176b   :  { %8119 = vmatmul.mubr.f32.gmra.mrb[196].mxu1 %v19297_v29 }
0x176c   :  { %13039 = vmatpush3.bf16.msra.mxu0 %v20949_v48  ;;  %8297 = vmatprep.mubr.f32.mxu1 %v8127_v54  ;;  %v8130_v54 = vmul.f32 %v19209_v51, %v19209_v51 }
0x176d   :  { %13059 = vmatpush3.bf16.msra.mxu1 %v20948_v15  ;;  %13041 = vmatprep.subr.bf16.mxu0 %v20951_v50 }
0x176e   :  { %13061 = vmatprep.subr.bf16.mxu1 %v20950_v17 }
0x1770   :  { %13043 = vmatpush3.bf16.msra.mxu0 %v20953_v24  ;;  %v8137_v24 = vmul.f32 %v19206_v49, %v19206_v49 }
0x1771   :  { %13063 = vmatpush3.bf16.msra.mxu1 %v20952_v4  ;;  %13077 = vmatprep.subr.bf16.mxu0 %v20955_v23 }
0x1772   :  { %13065 = vmatprep.subr.bf16.mxu1 %v20954_v2 }
0x1773   :  { %8213 = vmatmul.mubr.f32.vlgmr.msra.gmra.mrb[210].mxu0 %v8124_v58  ;;  %v8143_v58 = vmul.f32 %v19216_v10, %v19216_v10 }
0x1774   :  { %8217 = vmatprep.mubr.f32.mxu0 %v8131_v61  ;;  %13079 = vmatpush3.bf16.msra.mxu0 %v20961_v22  ;;  %v8136_v61 = vmul.f32 %v19202_v52, %v19202_v52 }
0x1775   :  { %13067 = vmatpush3.bf16.msra.mxu1 %v20956_v60  ;;  %13081 = vmatprep.subr.bf16.mxu0 %v20962_v62 }
0x1776   :  { %13069 = vmatprep.subr.bf16.mxu1 %v20957_v53 }
0x1777   :  { %8218 = vmatmul.mubr.f32.gmra.mrb[212].mxu0 %v8130_v54  ;;  %v8129_v54 = vmul.f32 %v19270_v6, %v19270_v6 }
0x1778   :  { %8222 = vmatprep.mubr.f32.mxu0 %v8137_v24  ;;  %13083 = vmatpush3.bf16.msra.mxu0 %v20963_v16  ;;  %v8142_v24 = vmul.f32 %v19211_v34, %v19211_v34 }
0x1779   :  { %13071 = vmatpush3.bf16.msra.mxu1 %v20958_v63  ;;  %13085 = vmatprep.subr.bf16.mxu0 %v20964_v40  ;;  %v8126_v40 = vmul.f32 %v19232_v11, %v19232_v11 }
0x177a   :  { %13073 = vmatprep.subr.bf16.mxu1 %v20959_v41 }
0x177b   :  { %8223 = vmatmul.mubr.f32.gmra.mrb[214].mxu0 %v8136_v61  ;;  %v8133_v61 = vmul.f32 %v19242_v25, %v19242_v25 }
0x177c   :  { %8227 = vmatprep.mubr.f32.mxu0 %v8143_v58  ;;  %13087 = vmatpush3.bf16.msra.mxu0 %v20965_v44  ;;  %v8132_v58 = vmul.f32 %v19239_v14, %v19239_v14 }
0x177d   :  { %13075 = vmatpush3.bf16.msra.mxu1 %v20960_v26  ;;  %13089 = vmatprep.subr.bf16.mxu0 %v20966_v47  ;;  %v8139_v47 = vmul.f32 %v19254_v59, %v19254_v59 }
0x177f   :  { %8228 = vmatmul.mubr.f32.gmra.mrb[216].mxu0 %v8142_v24  ;;  %v8138_v24 = vmul.f32 %v19251_v27, %v19251_v27 }
0x1780   :  { %13091 = vmatpush3.bf16.msra.mxu0 %v20967_v36  ;;  %8382 = vmatprep.mubr.f32.mxu0 %v8129_v54  ;;  %v8144_v54 = vmul.f32 %v19259_v37, %v19259_v37 }
0x1781   :  { %8298 = vmatmul.mubr.f32.vlgmr.msra.gmra.mrb[198].mxu1 %v8126_v40  ;;  %13093 = vmatprep.subr.bf16.mxu0 %v20968_v38  ;;  %v8145_v40 = vmul.f32 %v19262_v33, %v19262_v33 }
0x1782   :  { %8302 = vmatprep.mubr.f32.mxu1 %v8133_v61  ;;  %v8135_v61 = vmul.f32 %v19280_v5, %v19280_v5 }
0x1784   :  { %13095 = vmatpush3.bf16.msra.mxu0 %v20969_v55 }
0x1785   :  { %8303 = vmatmul.mubr.f32.gmra.mrb[200].mxu1 %v8132_v58  ;;  %13097 = vmatprep.subr.bf16.mxu0 %v20970_v56  ;;  %v8134_v58 = vmul.f32 %v19276_v43, %v19276_v43 }
0x1786   :  { %8307 = vmatprep.mubr.f32.mxu1 %v8139_v47  ;;  %v8128_v47 = vmul.f32 %v19266_v13, %v19266_v13 }
0x1788   :  { %13099 = vmatpush3.bf16.msra.mxu0 %v20971_v9 }
0x1789   :  { %8308 = vmatmul.mubr.f32.gmra.mrb[202].mxu1 %v8138_v24  ;;  %13101 = vmatprep.subr.bf16.mxu0 %v20972_v39  ;;  %v8141_v24 = vmul.f32 %v19293_v46, %v19293_v46 }
0x178a   :  { %8312 = vmatprep.mubr.f32.mxu1 %v8145_v40  ;;  %v8140_v40 = vmul.f32 %v19289_v31, %v19289_v31 }
0x178c   :  { %13103 = vmatpush3.bf16.msra.mxu0 %v20973_v20 }
0x178d   :  { %8313 = vmatmul.mubr.f32.gmra.mrb[204].mxu1 %v8144_v54  ;;  %13105 = vmatprep.subr.bf16.mxu0 %v20974_v45  ;;  %v8147_v54 = vmul.f32 %v19300_v0, %v19300_v0 }
0x178e   :  { %8832 = vmatprep.mubr.bf16.mxu1 %v20596_v7 }
0x1790   :  { %13107 = vmatpush3.bf16.msra.mxu0 %v20975_v28 }
0x1793   :  { %8383 = vmatmul.mubr.f32.vlgmr.msra.gmra.mrb[218].mxu0 %v8128_v47  ;;  %v8146_v47 = vmul.f32 %v19297_v29, %v19297_v29 }
0x1794   :  { %8387 = vmatprep.mubr.f32.mxu0 %v8135_v61 }
0x1797   :  { %8388 = vmatmul.mubr.f32.gmra.mrb[220].mxu0 %v8134_v58 }
0x1798   :  { %8392 = vmatprep.mubr.f32.mxu0 %v8141_v24 }
0x179b   :  { %8393 = vmatmul.mubr.f32.gmra.mrb[222].mxu0 %v8140_v40 }
0x179c   :  { %8397 = vmatprep.mubr.f32.mxu0 %v8147_v54 }
0x179f   :  { %8398 = vmatmul.mubr.f32.gmra.mrb[224].mxu0 %v8146_v47 }
0x17a0   :  { %8873 = vmatprep.mubr.bf16.mxu0 %v20596_v7 }
0x1812   :  { %v11322_v61 = vpop.f32.mrb[170].mxu1 }
0x1813   :  { %v11323_v28 = vpop.f32.mrb[171].mxu1 }
0x1814   :  { %v11324_v45 = vadd.f32 %v11323_v28, %v11322_v61 }
0x1816   :  { %v11325_v20 = vpop.f32.mrb[184].mxu1 }
0x1817   :  { %v11326_v58 = vpop.f32.mrb[185].mxu1 }
0x1818   :  { %v11327_v24 = vadd.f32 %v11326_v58, %v11325_v20 }
0x181a   :  { %v11328_v39 = vpop.f32.mrb[186].mxu1 }
0x181b   :  { %v11329_v9 = vpop.f32.mrb[187].mxu1 }
0x181c   :  { %v11330_v56 = vadd.f32 %v11329_v9, %v11328_v39 }
0x181e   :  { %v11331_v55 = vpop.f32.mrb[188].mxu1 }
0x181f   :  { %v11332_v38 = vpop.f32.mrb[189].mxu1 }
0x1820   :  { %v11333_v36 = vadd.f32 %v11332_v38, %v11331_v55 }
0x1826   :  { %v11366_v40 = vpop.f32.mrb[190].mxu0 }
0x1827   :  { %v11367_v54 = vpop.f32.mrb[191].mxu0 }
0x1828   :  { %v11368_v44 = vadd.f32 %v11367_v54, %v11366_v40 }
0x182a   :  { %v8021_v16 = vadd.f32 %v11368_v44, %v11324_v45  ;;  %v11369_v62 = vpop.f32.mrb[204].mxu0 }
0x182b   :  { %v11370_v47 = vpop.f32.mrb[205].mxu0 }
0x182c   :  { %v11371_v22 = vadd.f32 %v11370_v47, %v11369_v62 }
0x182e   :  { %v8026_v26 = vadd.f32 %v11371_v22, %v11327_v24  ;;  %v11372_v23 = vpop.f32.mrb[206].mxu0 }
0x182f   :  { %v11373_v41 = vpop.f32.mrb[207].mxu0 }
0x1830   :  { %v11374_v28 = vadd.f32 %v11373_v41, %v11372_v23 }
0x1832   :  { %v8031_v61 = vadd.f32 %v11374_v28, %v11330_v56  ;;  %v11375_v63 = vpop.f32.mrb[208].mxu0  ;;  %v11410_v20 = vpop.f32.mrb[190].mxu1 }
0x1833   :  { %v11376_v58 = vpop.f32.mrb[209].mxu0  ;;  %v11411_v53 = vpop.f32.mrb[191].mxu1 }
0x1834   :  { %v11377_v9 = vadd.f32 %v11376_v58, %v11375_v63  ;;  %v11412_v39 = vadd.f32 %v11411_v53, %v11410_v20 }
0x1836   :  { %v8036_v50 = vadd.f32 %v11377_v9, %v11333_v36  ;;  %v8106_v38 = vadd.f32 %v11412_v39, %v8021_v16  ;;  %v11413_v55 = vpop.f32.mrb[192].mxu1 }
0x1837   :  { %v11414_v60 = vpop.f32.mrb[193].mxu1 }
0x1838   :  { %v8403_v40 = vmul.f32 0.001953125, %v8106_v38  ;;  %v11415_v44 = vadd.f32 %v11414_v60, %v11413_v55 }
0x183a   :  { %v8111_v45 = vadd.f32 %v11415_v44, %v8026_v26  ;;  %v11416_v54 = vpop.f32.mrb[194].mxu1  ;;  %8437 = vperm.xlu0 %13395, %v8403_v40  }
0x183b   :  { %v11417_v22 = vpop.f32.mrb[195].mxu1 }
0x183c   :  { %v8404_v62 = vmul.f32 0.001953125, %v8111_v45  ;;  %v11418_v24 = vadd.f32 %v11417_v22, %v11416_v54 }
0x183e   :  { %v8116_v23 = vadd.f32 %v11418_v24, %v8031_v61  ;;  %v11419_v41 = vpop.f32.mrb[196].mxu1  ;;  %8442 = vperm.xlu1 %13394, %v8404_v62  }
0x183f   :  { %v11420_v56 = vpop.f32.mrb[197].mxu1 }
0x1840   :  { %v8405_v47 = vmul.f32 0.001953125, %v8116_v23  ;;  %v11421_v28 = vadd.f32 %v11420_v56, %v11419_v41 }
0x1842   :  { %v8121_v63 = vadd.f32 %v11421_v28, %v8036_v50  ;;  %8447 = vperm.xlu0 %13395, %v8405_v47  }
0x1844   :  { %v8406_v53 = vmul.f32 0.001953125, %v8121_v63 }
0x1846   :  { %v11454_v16 = vpop.f32.mrb[210].mxu0  ;;  %8452 = vperm.xlu1 %13394, %v8406_v53  }
0x1847   :  { %v11455_v36 = vpop.f32.mrb[211].mxu0 }
0x1848   :  { %v11456_v20 = vadd.f32 %v11455_v36, %v11454_v16 }
0x184a   :  { %v11457_v60 = vpop.f32.mrb[212].mxu0 }
0x184b   :  { %v11458_v26 = vpop.f32.mrb[213].mxu0 }
0x184c   :  { %v11459_v58 = vadd.f32 %v11458_v26, %v11457_v60 }
0x184e   :  { %v11460_v9 = vpop.f32.mrb[214].mxu0 }
0x184f   :  { %v11461_v39 = vpop.f32.mrb[215].mxu0 }
0x1850   :  { %v11462_v38 = vadd.f32 %v11461_v39, %v11460_v9 }
0x1852   :  { %v11463_v55 = vpop.f32.mrb[216].mxu0 }
0x1853   :  { %v11464_v61 = vpop.f32.mrb[217].mxu0 }
0x1854   :  { %v11465_v44 = vadd.f32 %v11464_v61, %v11463_v55  ;;  %v11498_v45 = vpop.f32.mrb[198].mxu1 }
0x1855   :  { %v11499_v54 = vpop.f32.mrb[199].mxu1 }
0x1856   :  { %v11500_v22 = vadd.f32 %v11499_v54, %v11498_v45  ;;  %v8411_v45 = vmul.f32 %v8403_v40, %v8403_v40 }
0x1858   :  { %v8300_v24 = vadd.f32 %v11500_v22, %v11456_v20  ;;  %v11501_v50 = vpop.f32.mrb[200].mxu1 }
0x1859   :  { %v11502_v23 = vpop.f32.mrb[201].mxu1 }
0x185a   :  { %v11503_v41 = vadd.f32 %v11502_v23, %v11501_v50 }
0x185c   :  { %v8305_v56 = vadd.f32 %v11503_v41, %v11459_v58  ;;  %v11504_v28 = vpop.f32.mrb[202].mxu1  ;;  %v8412_v41 = vmul.f32 %v8404_v62, %v8404_v62 }
0x185d   :  { %v11505_v63 = vpop.f32.mrb[203].mxu1 }
0x185e   :  { %v11506_v16 = vadd.f32 %v11505_v63, %v11504_v28 }
0x1860   :  { %v8310_v36 = vadd.f32 %v11506_v16, %v11462_v38  ;;  %v11507_v48 = vpop.f32.mrb[204].mxu1 }
0x1861   :  { %v11508_v60 = vpop.f32.mrb[205].mxu1 }
0x1862   :  { %v11509_v26 = vadd.f32 %v11508_v60, %v11507_v48 }
0x1864   :  { %v8315_v2 = vadd.f32 %v11509_v26, %v11465_v44  ;;  %v8413_v26 = vmul.f32 %v8405_v47, %v8405_v47  ;;  %v9846_v47 = vld [vmem:[%s20115_s4 + $0x60] sm:$0xff] }
0x1866   :  { %v11542_v9 = vpop.f32.mrb[218].mxu0 }
0x1867   :  { %v11543_v39 = vpop.f32.mrb[219].mxu0 }
0x1868   :  { %v11544_v4 = vadd.f32 %v11543_v39, %v11542_v9 }
0x186a   :  { %v8385_v55 = vadd.f32 %v11544_v4, %v8300_v24  ;;  %v11545_v61 = vpop.f32.mrb[220].mxu0 }
0x186b   :  { %v11546_v17 = vpop.f32.mrb[221].mxu0 }
0x186c   :  { %v8407_v20 = vmul.f32 0.001953125, %v8385_v55  ;;  %v11547_v54 = vadd.f32 %v11546_v17, %v11545_v61 }
0x186e   :  { %v8415_v22 = vsub.f32 %v8407_v20, %v8411_v45  ;;  %v8390_v50 = vadd.f32 %v11547_v54, %v8305_v56  ;;  %v11548_v58 = vpop.f32.mrb[222].mxu0  ;;  %v8414_v56 = vmul.f32 %v8406_v53, %v8406_v53 }
0x186f   :  { %v11549_v23 = vpop.f32.mrb[223].mxu0 }
0x1870   :  { %v8419_v28 = vmax.f32 %v8415_v22, 0.0  ;;  %v8408_v38 = vmul.f32 0.001953125, %v8390_v50  ;;  %v11550_v63 = vadd.f32 %v11549_v23, %v11548_v58  ;;  %v9848_v23 = vld [vmem:[%s20115_s4 + $0x70] sm:$0xff] }
0x1872   :  { %v8423_v16 = vadd.f32 1e-05, %v8419_v28  ;;  %v8416_v48 = vsub.f32 %v8408_v38, %v8412_v41  ;;  %v8395_v44 = vadd.f32 %v11550_v63, %v8310_v36  ;;  %v11551_v60 = vpop.f32.mrb[224].mxu0  ;;  %v9849_v38 = vld [vmem:[%s20115_s4 + $0x78] sm:$0xff] }
0x1873   :  { %v11552_v9 = vpop.f32.mrb[225].mxu0 }
0x1874   :  { %14160 = vrsqrt.f32 %v8423_v16  ;;  %v8420_v4 = vmax.f32 %v8416_v48, 0.0  ;;  %v8409_v24 = vmul.f32 0.001953125, %v8395_v44  ;;  %v11553_v40 = vadd.f32 %v11552_v9, %v11551_v60  ;;  %v9852_v16 = vld [vmem:[%s20114_s5 + $0x70] sm:$0xff]  ;;  %v9853_v44 = vld [vmem:[%s20114_s5 + $0x78] sm:$0xff]  ;;  %v8526_v60 = vpop.permute.xlu0 %8525 }
0x1876   :  { %v8424_v39 = vadd.f32 1e-05, %v8420_v4  ;;  %v8417_v17 = vsub.f32 %v8409_v24, %v8413_v26  ;;  %v8400_v55 = vadd.f32 %v11553_v40, %v8315_v2  ;;  %v9847_v2 = vld [vmem:[%s20115_s4 + $0x68] sm:$0xff]  ;;  %v8531_v26 = vpop.permute.xlu1 %8530 }
0x1878   :  { %14162 = vrsqrt.f32 %v8424_v39  ;;  %v8421_v61 = vmax.f32 %v8417_v17, 0.0  ;;  %v8410_v62 = vmul.f32 0.001953125, %v8400_v55 }
0x187a   :  { %v8425_v45 = vadd.f32 1e-05, %v8421_v61  ;;  %v8418_v20 = vsub.f32 %v8410_v62, %v8414_v56 }
0x187c   :  { %14164 = vrsqrt.f32 %v8425_v45  ;;  %v8422_v54 = vmax.f32 %v8418_v20, 0.0 }
0x187e   :  { %v14161_v36 = vpop.eup %14160  ;;  %v8426_v22 = vadd.f32 1e-05, %v8422_v54 }
0x187f   :  { %v8431_v50 = vmul.f32 %v14161_v36, %v9846_v47 }
0x1880   :  { %14166 = vrsqrt.f32 %v8426_v22 }
0x1881   :  { %8481 = vperm.xlu0 %13395, %v8431_v50  }
0x1882   :  { %v14163_v53 = vpop.eup %14162 }
0x1883   :  { %v8432_v58 = vmul.f32 %v14163_v53, %v9847_v2 }
0x1885   :  { %8486 = vperm.xlu1 %13394, %v8432_v58  }
0x1886   :  { %v14165_v41 = vpop.eup %14164 }
0x1887   :  { %v8433_v28 = vmul.f32 %v14165_v41, %v9848_v23 }
0x1889   :  { %8491 = vperm.xlu0 %13395, %v8433_v28  }
0x188a   :  { %v14167_v63 = vpop.eup %14166 }
0x188b   :  { %v8434_v48 = vmul.f32 %v14167_v63, %v9849_v38 }
0x188d   :  { %8496 = vperm.xlu1 %13394, %v8434_v48   ;;  %8535 = vperm.xlu0 %13395, %v9852_v16  }
0x1891   :  { %8540 = vperm.xlu1 %13394, %v9853_v44  }
0x18b9   :  { %v8438_v9 = vpop.permute.xlu0 %8437 }
0x18ba   :  { %v8455_v24 = vsub.f32 %v19200_v32, %v8438_v9  ;;  %v8456_v40 = vsub.f32 %v19204_v12, %v8438_v9  ;;  %v8457_v39 = vsub.f32 %v19232_v11, %v8438_v9  ;;  %v8458_v17 = vsub.f32 %v19235_v18, %v8438_v9 }
0x18bb   :  { %v8459_v56 = vsub.f32 %v19266_v13, %v8438_v9  ;;  %v8460_v61 = vsub.f32 %v19270_v6, %v8438_v9 }
0x18bd   :  { %v8443_v4 = vpop.permute.xlu1 %8442 }
0x18be   :  { %v8461_v62 = vsub.f32 %v19209_v51, %v8443_v4  ;;  %v8462_v45 = vsub.f32 %v19214_v3, %v8443_v4  ;;  %v8463_v54 = vsub.f32 %v19239_v14, %v8443_v4  ;;  %v8464_v32 = vsub.f32 %v19242_v25, %v8443_v4 }
0x18bf   :  { %v8465_v12 = vsub.f32 %v19276_v43, %v8443_v4  ;;  %v8466_v11 = vsub.f32 %v19280_v5, %v8443_v4 }
0x18c1   :  { %v8448_v55 = vpop.permute.xlu0 %8447 }
0x18c2   :  { %v8467_v18 = vsub.f32 %v19202_v52, %v8448_v55  ;;  %v8468_v13 = vsub.f32 %v19206_v49, %v8448_v55  ;;  %v8469_v6 = vsub.f32 %v19251_v27, %v8448_v55  ;;  %v8470_v51 = vsub.f32 %v19254_v59, %v8448_v55 }
0x18c3   :  { %v8471_v3 = vsub.f32 %v19289_v31, %v8448_v55  ;;  %v8472_v47 = vsub.f32 %v19293_v46, %v8448_v55  ;;  %v20977_v55 = vld [vmem:[#allocation47_spill] sm:$0xff] }
0x18c5   :  { %v19410_v20 = vpop.permute.xlu1 %8452 }
0x18c6   :  { %v8473_v14 = vsub.f32 %v19211_v34, %v19410_v20  ;;  %v8474_v43 = vsub.f32 %v19216_v10, %v19410_v20  ;;  %v8475_v49 = vsub.f32 %v19259_v37, %v19410_v20  ;;  %v8476_v27 = vsub.f32 %v19262_v33, %v19410_v20 }
0x18c7   :  { %v8477_v46 = vsub.f32 %v19297_v29, %v19410_v20  ;;  %v8478_v34 = vsub.f32 %v19300_v0, %v19410_v20 }
0x1900   :  { %v8482_v25 = vpop.permute.xlu0 %8481 }
0x1901   :  { %v8499_v5 = vmul.f32 %v8482_v25, %v8455_v24  ;;  %v8500_v36 = vmul.f32 %v8482_v25, %v8456_v40  ;;  %v8501_v52 = vmul.f32 %v8482_v25, %v8457_v39  ;;  %v8502_v22 = vmul.f32 %v8482_v25, %v8458_v17  ;;  %v20976_v39 = vld [vmem:[#allocation48_spill] sm:$0xff] }
0x1902   :  { %v8503_v31 = vmul.f32 %v8482_v25, %v8459_v56  ;;  %v8504_v59 = vmul.f32 %v8482_v25, %v8460_v61 }
0x1903   :  { %v8543_v10 = vadd.f32 %v8526_v60, %v8499_v5  ;;  %v8544_v50 = vadd.f32 %v8526_v60, %v8500_v36  ;;  %v19434_v2 = vadd.f32 %v8526_v60, %v8501_v52  ;;  %v19436_v53 = vadd.f32 %v8526_v60, %v8502_v22 }
0x1904   :  { %v19438_v58 = vadd.f32 %v8526_v60, %v8503_v31  ;;  %v19440_v37 = vadd.f32 %v8526_v60, %v8504_v59  ;;  %v8487_v23 = vpop.permute.xlu1 %8486 }
0x1905   :  { %v8505_v33 = vmul.f32 %v8487_v23, %v8461_v62  ;;  %v8506_v41 = vmul.f32 %v8487_v23, %v8462_v45  ;;  %v8507_v28 = vmul.f32 %v8487_v23, %v8463_v54  ;;  %v8508_v38 = vmul.f32 %v8487_v23, %v8464_v32 }
0x1906   :  { %v8509_v63 = vmul.f32 %v8487_v23, %v8465_v12  ;;  %v8510_v29 = vmul.f32 %v8487_v23, %v8466_v11  ;;  %v8568_v16 = vmax.f32 %v8544_v50, 0.0  ;;  %v8567_v48 = vmax.f32 %v8543_v10, 0.0 }
0x1907   :  { %v8549_v0 = vadd.f32 %v8531_v26, %v8505_v33  ;;  %v8550_v44 = vadd.f32 %v8531_v26, %v8506_v41  ;;  %v19442_v9 = vadd.f32 %v8531_v26, %v8507_v28  ;;  %v19444_v4 = vadd.f32 %v8531_v26, %v8508_v38 }
0x1908   :  { %v19446_v24 = vadd.f32 %v8531_v26, %v8509_v63  ;;  %v8554_v40 = vadd.f32 %v8531_v26, %v8510_v29  ;;  %v8492_v60 = vpop.permute.xlu0 %8491  ;;  %v19449_v17 = vmul.f32 %v8568_v16, %v20976_v39  ;;  %v19452_v56 = vmul.f32 %v8567_v48, %v20977_v55 }
0x1909   :  { %v8511_v61 = vmul.f32 %v8492_v60, %v8467_v18  ;;  %v8512_v62 = vmul.f32 %v8492_v60, %v8468_v13  ;;  %v8513_v45 = vmul.f32 %v8492_v60, %v8469_v6  ;;  %v8514_v20 = vmul.f32 %v8492_v60, %v8470_v51 }
0x190a   :  { %v8515_v54 = vmul.f32 %v8492_v60, %v8471_v3  ;;  %v8516_v32 = vmul.f32 %v8492_v60, %v8472_v47  ;;  %v8574_v12 = vmax.f32 %v8550_v44, 0.0  ;;  %v8573_v11 = vmax.f32 %v8549_v0, 0.0 }
0x190b   :  { %v8572_v25 = vmax.f32 %v19440_v37, 0.0  ;;  %v8578_v5 = vmax.f32 %v8554_v40, 0.0  ;;  %v8569_v26 = vmax.f32 %v19434_v2, 0.0  ;;  %v8575_v36 = vmax.f32 %v19442_v9, 0.0  ;;  %v20978_v40 = vld [vmem:[#allocation52_spill] sm:$0xff] }
0x190c   :  { %v8497_v52 = vpop.permute.xlu1 %8496  ;;  %v8536_v22 = vpop.permute.xlu0 %8535  ;;  %v19458_v31 = vmul.f32 %v8574_v12, %v20976_v39  ;;  %v19461_v18 = vmul.f32 %v8573_v11, %v20977_v55  ;;  %v8570_v13 = vmax.f32 %v19436_v53, 0.0  ;;  %v8576_v6 = vmax.f32 %v19444_v4, 0.0 }
0x190d   :  { %v8517_v51 = vmul.f32 %v8497_v52, %v8473_v14  ;;  %v8518_v3 = vmul.f32 %v8497_v52, %v8474_v43  ;;  %v8519_v47 = vmul.f32 %v8497_v52, %v8475_v49  ;;  %v8520_v59 = vmul.f32 %v8497_v52, %v8476_v27 }
0x190e   :  { %v8521_v10 = vmul.f32 %v8497_v52, %v8477_v46  ;;  %v8522_v50 = vmul.f32 %v8497_v52, %v8478_v34  ;;  %v8555_v2 = vadd.f32 %v8536_v22, %v8511_v61  ;;  %v8556_v37 = vadd.f32 %v8536_v22, %v8512_v62 }
0x190f   :  { %v8557_v23 = vadd.f32 %v8536_v22, %v8513_v45  ;;  %v8558_v33 = vadd.f32 %v8536_v22, %v8514_v20  ;;  %v8559_v41 = vadd.f32 %v8536_v22, %v8515_v54  ;;  %v8560_v28 = vadd.f32 %v8536_v22, %v8516_v32 }
0x1910   :  { %v8579_v38 = vmax.f32 %v8555_v2, 0.0  ;;  %v8580_v63 = vmax.f32 %v8556_v37, 0.0  ;;  %v14001_v29 = vpack.i.bf16 %v19458_v31, %v19449_v17  ;;  %v19469_v53 = vpack.i.bf16 %v19461_v18, %v19452_v56  ;;  %v8541_v14 = vpop.permute.xlu1 %8540  ;;  %v20980_v37 = vld [vmem:[#allocation50_spill] sm:$0xff] }
0x1911   :  { %v8581_v43 = vmax.f32 %v8557_v23, 0.0  ;;  %v8582_v49 = vmax.f32 %v8558_v33, 0.0  ;;  %v8583_v27 = vmax.f32 %v8559_v41, 0.0  ;;  %v8584_v46 = vmax.f32 %v8560_v28, 0.0 }
0x1912   :  { %14002 = vrot.lane.b32.xlu1 %v14001_v29, %s14172_s17  ;;  %13997 = vrot.lane.b32.xlu0 %v19469_v53, %s14172_s17  ;;  %v8561_v34 = vadd.f32 %v8541_v14, %v8517_v51  ;;  %v8562_v16 = vadd.f32 %v8541_v14, %v8518_v3  ;;  %v8563_v48 = vadd.f32 %v8541_v14, %v8519_v47  ;;  %v8571_v0 = vmax.f32 %v19438_v58, 0.0 }
0x1913   :  { %v8564_v44 = vadd.f32 %v8541_v14, %v8520_v59  ;;  %v8565_v9 = vadd.f32 %v8541_v14, %v8521_v10  ;;  %v8566_v4 = vadd.f32 %v8541_v14, %v8522_v50  ;;  %v8596_v60 = vmul.f32 %v8572_v25, %v20978_v40  ;;  %v20979_v59 = vld [vmem:[#allocation49_spill] sm:$0xff] }
0x1914   :  { %v8585_v61 = vmax.f32 %v8561_v34, 0.0  ;;  %v8586_v62 = vmax.f32 %v8562_v16, 0.0  ;;  %v8587_v45 = vmax.f32 %v8563_v48, 0.0  ;;  %v8602_v20 = vmul.f32 %v8578_v5, %v20978_v40 }
0x1915   :  { %v8588_v54 = vmax.f32 %v8564_v44, 0.0  ;;  %v8589_v32 = vmax.f32 %v8565_v9, 0.0  ;;  %v8590_v12 = vmax.f32 %v8566_v4, 0.0  ;;  %v8604_v11 = vmul.f32 %v8580_v63, %v20976_v39 }
0x1916   :  { %v14006_v52 = vpack.i.bf16 %v8602_v20, %v8596_v60  ;;  %v8610_v22 = vmul.f32 %v8586_v62, %v20976_v39  ;;  %v8603_v58 = vmul.f32 %v8579_v38, %v20977_v55  ;;  %v8609_v51 = vmul.f32 %v8585_v61, %v20977_v55 }
0x1917   :  { %v8608_v3 = vmul.f32 %v8584_v46, %v20978_v40  ;;  %v8614_v25 = vmul.f32 %v8590_v12, %v20978_v40  ;;  %v8593_v10 = vmul.f32 %v8569_v26, %v20979_v59  ;;  %v8599_v50 = vmul.f32 %v8575_v36, %v20979_v59  ;;  %v20981_v46 = vld [vmem:[#allocation51_spill] sm:$0xff] }
0x1918   :  { %14007 = vrot.lane.b32.xlu0 %v14006_v52, %s14172_s17  ;;  %v14016_v47 = vpack.i.bf16 %v8610_v22, %v8604_v11  ;;  %v14011_v5 = vpack.i.bf16 %v8609_v51, %v8603_v58  ;;  %v8594_v23 = vmul.f32 %v8570_v13, %v20980_v37  ;;  %v8600_v33 = vmul.f32 %v8576_v6, %v20980_v37 }
0x1919   :  { %v14026_v2 = vpack.i.bf16 %v8614_v25, %v8608_v3  ;;  %v8605_v41 = vmul.f32 %v8581_v43, %v20979_v59  ;;  %v14031_v28 = vpack.i.bf16 %v8599_v50, %v8593_v10  ;;  %v8611_v38 = vmul.f32 %v8587_v45, %v20979_v59 }
0x191a   :  { %14012 = vrot.lane.b32.xlu1 %v14011_v5, %s14172_s17  ;;  %v14046_v63 = vpack.i.bf16 %v8600_v33, %v8594_v23  ;;  %v8577_v14 = vmax.f32 %v19446_v24, 0.0  ;;  %v8595_v34 = vmul.f32 %v8571_v0, %v20981_v46  ;;  %v8606_v36 = vmul.f32 %v8582_v49, %v20980_v37 }
0x191b   :  { %v14056_v26 = vpack.i.bf16 %v8611_v38, %v8605_v41  ;;  %v8612_v13 = vmul.f32 %v8588_v54, %v20980_v37  ;;  %v8607_v43 = vmul.f32 %v8583_v27, %v20981_v46  ;;  %v8613_v16 = vmul.f32 %v8589_v32, %v20981_v46 }
0x191c   :  { %14017 = vrot.lane.b32.xlu0 %v14016_v47, %s14172_s17  ;;  %v8601_v6 = vmul.f32 %v8577_v14, %v20981_v46  ;;  %v19503_v0 = vpack.c.bf16 %v19458_v31, %v19449_v17  ;;  %v19507_v49 = vpack.c.bf16 %v19461_v18, %v19452_v56  ;;  %v19509_v9 = vpack.c.bf16 %v8610_v22, %v8604_v11 }
0x191d   :  { %v14076_v48 = vpack.i.bf16 %v8612_v13, %v8606_v36  ;;  %v14081_v24 = vpack.i.bf16 %v8613_v16, %v8607_v43  ;;  %v19511_v27 = vpack.c.bf16 %v8609_v51, %v8603_v58  ;;  %v19513_v4 = vpack.c.bf16 %v8600_v33, %v8594_v23 }
0x191e   :  { %14027 = vrot.lane.b32.xlu1 %v14026_v2, %s14172_s17  ;;  %v14061_v44 = vpack.i.bf16 %v8601_v6, %v8595_v34  ;;  %v19515_v61 = vpack.c.bf16 %v8599_v50, %v8593_v10  ;;  %v19517_v62 = vpack.c.bf16 %v8612_v13, %v8606_v36  ;;  %v19519_v45 = vpack.c.bf16 %v8602_v20, %v8596_v60 }
0x191f   :  { %v19522_v17 = vpack.c.bf16 %v8611_v38, %v8605_v41  ;;  %v19524_v31 = vpack.c.bf16 %v8601_v6, %v8595_v34  ;;  %v19526_v56 = vpack.c.bf16 %v8614_v25, %v8608_v3  ;;  %v19528_v18 = vpack.c.bf16 %v8613_v16, %v8607_v43 }
0x1920   :  { %14022 = vrot.lane.b32.xlu0 %v14001_v29, %s14174_s18 }
0x1922   :  { %14032 = vrot.lane.b32.xlu1 %v14031_v28, %s14174_s18 }
0x1924   :  { %14037 = vrot.lane.b32.xlu0 %v19469_v53, %s14174_s18 }
0x1926   :  { %14047 = vrot.lane.b32.xlu1 %v14046_v63, %s14172_s17 }
0x1928   :  { %14042 = vrot.lane.b32.xlu0 %v14031_v28, %s14172_s17 }
0x192a   :  { %14052 = vrot.lane.b32.xlu1 %v14016_v47, %s14174_s18 }
0x192c   :  { %14057 = vrot.lane.b32.xlu0 %v14056_v26, %s14174_s18 }
0x192e   :  { %14067 = vrot.lane.b32.xlu1 %v14011_v5, %s14174_s18 }
0x1930   :  { %14062 = vrot.lane.b32.xlu0 %v14061_v44, %s14172_s17 }
0x1932   :  { %14072 = vrot.lane.b32.xlu1 %v14056_v26, %s14172_s17 }
0x1934   :  { %14077 = vrot.lane.b32.xlu0 %v14076_v48, %s14172_s17 }
0x1936   :  { %14082 = vrot.lane.b32.xlu1 %v14081_v24, %s14172_s17 }
0x1938   :  { %14087 = vrot.lane.b32.xlu0 %v14046_v63, %s14174_s18 }
0x193a   :  { %14092 = vrot.lane.b32.xlu1 %v14061_v44, %s14174_s18 }
0x193c   :  { %14097 = vrot.lane.b32.xlu0 %v14006_v52, %s14174_s18 }
0x193e   :  { %14102 = vrot.lane.b32.xlu1 %v14076_v48, %s14174_s18 }
0x1940   :  { %14107 = vrot.lane.b32.xlu0 %v14081_v24, %s14174_s18 }
0x1942   :  { %14112 = vrot.lane.b32.xlu1 %v14026_v2, %s14174_s18 }
0x1984   :  { %v14003_v29 = vpop.permute.xlu1 %14002  ;;  %v13998_v53 = vpop.permute.xlu0 %13997 }
0x1985   :  { %v14005_v60 = vunpack.i.h.bf16 %v14003_v29  ;;  %v14004_v20 = vunpack.i.l.bf16 %v14003_v29  ;;  %v14000_v54 = vunpack.i.h.bf16 %v13998_v53  ;;  %v13999_v32 = vunpack.i.l.bf16 %v13998_v53 }
0x1987   :  { %v8679_v11 = vsel %vm217_vm0, %v13999_v32, %v14004_v20  ;;  %v8680_v22 = vsel %vm217_vm0, %v14000_v54, %v14005_v60 }
0x1988   :  { %v19551_v58 = vpack.c.bf16 %v8680_v22, %v8679_v11 }
0x198a   :  { %v19553_v52 = vpop.permute.xlu0 %14007  ;;  %8800 = vmatprep.subr.bf16.mxu1 %v19551_v58 }
0x198b   :  { %v14010_v51 = vunpack.i.h.bf16 %v19553_v52  ;;  %v14009_v3 = vunpack.i.l.bf16 %v19553_v52 }
0x198c   :  { %v14013_v25 = vpop.permute.xlu1 %14012 }
0x198d   :  { %v8683_v47 = vsel %vm217_vm0, %v14009_v3, %v13999_v32  ;;  %v8684_v5 = vsel %vm217_vm0, %v14010_v51, %v14000_v54  ;;  %v14015_v10 = vunpack.i.h.bf16 %v14013_v25  ;;  %v14014_v50 = vunpack.i.l.bf16 %v14013_v25 }
0x198e   :  { %v19566_v2 = vpack.c.bf16 %v8684_v5, %v8683_v47  ;;  %v19568_v23 = vpop.permute.xlu0 %14017 }
0x198f   :  { %v20539_v33 = vunpack.i.h.bf16 %v19568_v23  ;;  %v14019_v41 = vunpack.i.l.bf16 %v19568_v23 }
0x1990   :  { %8801 = vmatpush1.bf16.msra.mxu1 %v19566_v2  ;;  %v19573_v28 = vpop.permute.xlu1 %14027 }
0x1991   :  { %v20533_v38 = vunpack.i.h.bf16 %v19573_v28  ;;  %v20534_v63 = vunpack.i.l.bf16 %v19573_v28  ;;  %v8681_v14 = vsel %vm217_vm0, %v14014_v50, %v14019_v41  ;;  %v8682_v34 = vsel %vm217_vm0, %v14015_v10, %v20539_v33 }
0x1992   :  { %v14023_v26 = vpop.permute.xlu0 %14022  ;;  %v19585_v36 = vpack.c.bf16 %v8682_v34, %v8681_v14 }
0x1993   :  { %v8685_v13 = vsel %vm217_vm0, %v20534_v63, %v14014_v50  ;;  %v8686_v6 = vsel %vm217_vm0, %v20533_v38, %v14015_v10  ;;  %v14025_v29 = vunpack.i.h.bf16 %v14023_v26  ;;  %v14024_v53 = vunpack.i.l.bf16 %v14023_v26 }
0x1994   :  { %v19595_v43 = vpack.c.bf16 %v8686_v6, %v8685_v13  ;;  %8802 = vmatprep.subr.bf16.mxu1 %v19585_v36  ;;  %v19598_v16 = vpop.permute.xlu1 %14032 }
0x1995   :  { %v20532_v48 = vunpack.i.h.bf16 %v19598_v16  ;;  %v20531_v44 = vunpack.i.l.bf16 %v19598_v16 }
0x1996   :  { %v19602_v24 = vpop.permute.xlu0 %14037  ;;  %8803 = vmatpush1.bf16.msra.mxu1 %v19595_v43 }
0x1997   :  { %8804 = vmatprep.subr.bf16.mxu1 %v19503_v0  ;;  %v20536_v54 = vunpack.i.h.bf16 %v19602_v24  ;;  %v20538_v32 = vunpack.i.l.bf16 %v19602_v24  ;;  %v8747_v22 = vsel %vm236_vm6, %v14024_v53, %v20531_v44  ;;  %v8748_v25 = vsel %vm236_vm6, %v14025_v29, %v20532_v48 }
0x1998   :  { %v14048_v11 = vpop.permute.xlu1 %14047  ;;  %v19626_v6 = vpack.c.bf16 %v8748_v25, %v8747_v22  ;;  %v20989_v55 = vunpack.i.l.bf16 %v19602_v24  ;;  %v20990_v8 = vunpack.i.h.bf16 %v19602_v24 }
0x1999   :  { %v14050_v47 = vunpack.i.h.bf16 %v14048_v11  ;;  %v14049_v5 = vunpack.i.l.bf16 %v14048_v11  ;;  %v8751_v34 = vsel %vm236_vm6, %v20538_v32, %v14024_v53  ;;  %v8752_v26 = vsel %vm236_vm6, %v20536_v54, %v14025_v29 }
0x199a   :  { %v14043_v10 = vpop.permute.xlu0 %14042  ;;  %8805 = vmatpush1.bf16.msra.mxu1 %v19507_v49 }
0x199b   :  { %v14045_v50 = vunpack.i.h.bf16 %v14043_v10  ;;  %v14044_v14 = vunpack.i.l.bf16 %v14043_v10  ;;  %8806 = vmatprep.subr.bf16.mxu1 %v19509_v9 }
0x199c   :  { %v14053_v13 = vpop.permute.xlu1 %14052 }
0x199d   :  { %v8676_v11 = vsel %vm217_vm0, %v14005_v60, %v14045_v50  ;;  %v8675_v10 = vsel %vm217_vm0, %v14004_v20, %v14044_v14  ;;  %v14055_v44 = vunpack.i.h.bf16 %v14053_v13  ;;  %v14054_v48 = vunpack.i.l.bf16 %v14053_v13 }
0x199e   :  { %v19632_v38 = vpack.c.bf16 %v8676_v11, %v8675_v10  ;;  %v19634_v63 = vpop.permute.xlu0 %14057  ;;  %8807 = vmatpush1.bf16.msra.mxu1 %v19511_v27  ;;  %v8671_v29 = vsel %vm217_vm0, %v14044_v14, %v14049_v5  ;;  %v8672_v53 = vsel %vm217_vm0, %v14045_v50, %v14050_v47  ;;  %v19646_v20 = vpack.c.bf16 %v8752_v26, %v8751_v34 }
0x199f   :  { %v20537_v22 = vunpack.i.h.bf16 %v19634_v63  ;;  %v20535_v60 = vunpack.i.l.bf16 %v19634_v63  ;;  %v19643_v25 = vpack.c.bf16 %v8672_v53, %v8671_v29  ;;  %8808 = vmatprep.subr.bf16.mxu1 %v19626_v6 }
0x19a0   :  { %v19648_v13 = vpop.permute.xlu1 %14067 }
0x19a1   :  { %8841 = vmatprep.subr.bf16.mxu0 %v19643_v25  ;;  %v20541_v11 = vunpack.i.h.bf16 %v19648_v13  ;;  %v20540_v14 = vunpack.i.l.bf16 %v19648_v13  ;;  %v8749_v50 = vsel %vm236_vm6, %v14054_v48, %v20535_v60  ;;  %v8750_v10 = vsel %vm236_vm6, %v14055_v44, %v20537_v22 }
0x19a2   :  { %8842 = vmatpush1.bf16.msra.mxu0 %v19632_v38  ;;  %v14063_v34 = vpop.permute.xlu0 %14062  ;;  %8809 = vmatpush1.bf16.msra.mxu1 %v19646_v20  ;;  %v19663_v26 = vpack.c.bf16 %v8750_v10, %v8749_v50 }
0x19a3   :  { %v8753_v29 = vsel %vm236_vm6, %v20540_v14, %v14054_v48  ;;  %v8754_v53 = vsel %vm236_vm6, %v20541_v11, %v14055_v44  ;;  %v14065_v60 = vunpack.i.h.bf16 %v14063_v34  ;;  %v14064_v54 = vunpack.i.l.bf16 %v14063_v34 }
0x19a4   :  { %v19673_v22 = vpack.c.bf16 %v8754_v53, %v8753_v29  ;;  %8810 = vmatprep.subr.bf16.mxu1 %v19663_v26  ;;  %v14073_v32 = vpop.permute.xlu1 %14072 }
0x19a5   :  { %v8668_v50 = vsel %vm217_vm0, %v14050_v47, %v14065_v60  ;;  %v8667_v10 = vsel %vm217_vm0, %v14049_v5, %v14064_v54  ;;  %v14075_v33 = vunpack.i.h.bf16 %v14073_v32  ;;  %v14074_v48 = vunpack.i.l.bf16 %v14073_v32  ;;  %v19692_v47 = vld [vmem:[%s20117_s6 + $0x12] sm:$0x3] }
0x19a6   :  { %v14078_v14 = vpop.permute.xlu0 %14077  ;;  %8811 = vmatpush1.bf16.msra.mxu1 %v19673_v22  ;;  %v8663_v44 = vsel %vm217_vm0, %v14064_v54, %v14009_v3  ;;  %v8664_v34 = vsel %vm217_vm0, %v14065_v60, %v14010_v51  ;;  %v20983_v5 = vunpack.i.h.bf16 %v19568_v23  ;;  %v19702_v29 = vpack.c.bf16 %v8668_v50, %v8667_v10 }
0x19a7   :  { %v8677_v32 = vsel %vm217_vm0, %v14019_v41, %v14074_v48  ;;  %v14080_v54 = vunpack.i.h.bf16 %v14078_v14  ;;  %v14079_v52 = vunpack.i.l.bf16 %v14078_v14  ;;  %v19706_v60 = vpack.c.bf16 %v8664_v34, %v8663_v44 }
0x19a8   :  { %v8678_v3 = vsel %vm217_vm0, %v20983_v5, %v14075_v33  ;;  %v14083_v53 = vpop.permute.xlu1 %14082 }
0x19a9   :  { %v19704_v51 = vpack.c.bf16 %v8678_v3, %v8677_v32  ;;  %v14085_v11 = vunpack.i.h.bf16 %v14083_v53  ;;  %v14084_v40 = vunpack.i.l.bf16 %v14083_v53  ;;  %9855 = vmatmul.mubr.msk.bf16.vlgmr.msra.gmra.mrb[208].mxu1 %vm20984_vm13, %v19692_v47  ;;  %v8673_v23 = vsel %vm217_vm0, %v14074_v48, %v14079_v52  ;;  %8882 = vmatprep.subr.bf16.mxu1 %v19706_v60 }
0x19aa   :  { %v8674_v41 = vsel %vm217_vm0, %v14075_v33, %v14080_v54  ;;  %v14088_v14 = vpop.permute.xlu0 %14087  ;;  %8914 = vmatprep.mubr.bf16.mxu1 %v20596_v7  ;;  %8883 = vmatpush1.bf16.msra.mxu1 %v19702_v29  ;;  %v20985_v33 = vunpack.i.l.bf16 %v19573_v28  ;;  %v20986_v32 = vunpack.i.h.bf16 %v19573_v28 }
0x19ab   :  { %v19715_v50 = vpack.c.bf16 %v8674_v41, %v8673_v23  ;;  %v8669_v10 = vsel %vm217_vm0, %v14079_v52, %v14084_v40  ;;  %v8670_v44 = vsel %vm217_vm0, %v14080_v54, %v14085_v11  ;;  %v14090_v41 = vunpack.i.h.bf16 %v14088_v14 }
0x19ac   :  { %v14093_v48 = vpop.permute.xlu1 %14092  ;;  %v8665_v34 = vsel %vm217_vm0, %v14084_v40, %v20985_v33  ;;  %v8666_v5 = vsel %vm217_vm0, %v14085_v11, %v20986_v32  ;;  %v19732_v3 = vpack.c.bf16 %v8670_v44, %v8669_v10  ;;  %v14089_v46 = vunpack.i.l.bf16 %v14088_v14  ;;  %vm20995_vm0 = vmmov %vm20984_vm13 }
0x19ad   :  { %8843 = vmatprep.subr.bf16.mxu0 %v19715_v50  ;;  %v14095_v54 = vunpack.i.h.bf16 %v14093_v48  ;;  %v14094_v52 = vunpack.i.l.bf16 %v14093_v48  ;;  %v19736_v23 = vpack.c.bf16 %v8666_v5, %v8665_v34  ;;  %v20987_v14 = vunpack.i.h.bf16 %v19598_v16  ;;  %vm20997_vm14 = vmmov %vm20995_vm0 }
0x19ae   :  { %8844 = vmatpush1.bf16.msra.mxu0 %v19704_v51  ;;  %v14098_v53 = vpop.permute.xlu0 %14097  ;;  %vm20998_vm12 = vmmov %vm20995_vm0 }
0x19af   :  { %8845 = vmatprep.subr.bf16.mxu0 %v19513_v4  ;;  %v14100_v37 = vunpack.i.h.bf16 %v14098_v53  ;;  %v14099_v40 = vunpack.i.l.bf16 %v14098_v53  ;;  %8884 = vmatprep.subr.bf16.mxu1 %v19736_v23  ;;  %v8739_v44 = vsel %vm236_vm6, %v14089_v46, %v14094_v52  ;;  %v8740_v48 = vsel %vm236_vm6, %v14090_v41, %v14095_v54  ;;  %vm20999_vm3 = vmmov %vm20995_vm0 }
0x19b0   :  { %v14103_v28 = vpop.permute.xlu1 %14102  ;;  %8885 = vmatpush1.bf16.msra.mxu1 %v19732_v3  ;;  %v8744_v34 = vsel %vm236_vm6, %v20987_v14, %v14090_v41  ;;  %v20988_v53 = vunpack.i.l.bf16 %v19598_v16  ;;  %v19755_v39 = vpack.c.bf16 %v8740_v48, %v8739_v44  ;;  %v20992_v14 = vunpack.i.h.bf16 %v19634_v63  ;;  %vm21000_vm15 = vmmov %vm20995_vm0 }
0x19b1   :  { %v14105_v11 = vunpack.i.h.bf16 %v14103_v28  ;;  %v14104_v10 = vunpack.i.l.bf16 %v14103_v28  ;;  %8886 = vmatprep.subr.bf16.mxu1 %v19519_v45  ;;  %v8755_v15 = vsel %vm236_vm6, %v14099_v40, %v20989_v55  ;;  %v8756_v41 = vsel %vm236_vm6, %v14100_v37, %v20990_v8  ;;  %vm21002_vm1 = vmmov %vm20995_vm0 }
0x19b2   :  { %8846 = vmatpush1.bf16.msra.mxu0 %v19515_v61  ;;  %v14108_v33 = vpop.permute.xlu0 %14107  ;;  %v8743_v28 = vsel %vm236_vm6, %v20988_v53, %v14089_v46  ;;  %v8736_v8 = vsel %vm236_vm6, %v14095_v54, %v14100_v37  ;;  %v8735_v24 = vsel %vm236_vm6, %v14094_v52, %v14099_v40  ;;  %v20993_v37 = vunpack.i.l.bf16 %v19648_v13  ;;  %vm21005_vm4 = vmmov %vm20995_vm0 }
0x19b3   :  { %8847 = vmatprep.subr.bf16.mxu0 %v19517_v62  ;;  %v14110_v32 = vunpack.i.h.bf16 %v14108_v33  ;;  %v14109_v5 = vunpack.i.l.bf16 %v14108_v33  ;;  %v19773_v55 = vpack.c.bf16 %v8744_v34, %v8743_v28  ;;  %v8746_v53 = vsel %vm236_vm6, %v20992_v14, %v14105_v11 }
0x19b4   :  { %v14113_v59 = vpop.permute.xlu1 %14112  ;;  %8887 = vmatpush1.bf16.msra.mxu1 %v19524_v31  ;;  %v19789_v34 = vpack.c.bf16 %v8756_v41, %v8755_v15  ;;  %v20994_v52 = vunpack.i.h.bf16 %v19648_v13  ;;  %v19803_v15 = vpack.c.bf16 %v8736_v8, %v8735_v24 }
0x19b5   :  { %v14115_v16 = vunpack.i.h.bf16 %v14113_v59  ;;  %v14114_v33 = vunpack.i.l.bf16 %v14113_v59  ;;  %v8741_v46 = vsel %vm236_vm6, %v14104_v10, %v14109_v5  ;;  %v8742_v44 = vsel %vm236_vm6, %v14105_v11, %v14110_v32  ;;  %8888 = vmatprep.subr.bf16.mxu1 %v19526_v56 }
0x19b6   :  { %8848 = vmatpush1.bf16.msra.mxu0 %v19522_v17  ;;  %v20991_v59 = vunpack.i.l.bf16 %v19634_v63  ;;  %v19787_v19 = vpack.c.bf16 %v8742_v44, %v8741_v46 }
0x19b7   :  { %8849 = vmatprep.subr.bf16.mxu0 %v19755_v39  ;;  %v8757_v54 = vsel %vm236_vm6, %v14114_v33, %v20993_v37  ;;  %v8758_v63 = vsel %vm236_vm6, %v14115_v16, %v20994_v52  ;;  %v8737_v11 = vsel %vm236_vm6, %v14109_v5, %v14114_v33 }
0x19b8   :  { %v8745_v48 = vsel %vm236_vm6, %v20991_v59, %v14104_v10  ;;  %8889 = vmatpush1.bf16.msra.mxu1 %v19528_v18  ;;  %v8738_v10 = vsel %vm236_vm6, %v14110_v32, %v14115_v16  ;;  %v19811_v28 = vpack.c.bf16 %v8758_v63, %v8757_v54  ;;  %vm20996_vm6 = vmmov %vm20995_vm0 }
0x19b9   :  { %8890 = vmatprep.subr.bf16.mxu1 %v19789_v34  ;;  %v19805_v40 = vpack.c.bf16 %v8746_v53, %v8745_v48  ;;  %v19817_v13 = vpack.c.bf16 %v8738_v10, %v8737_v11 }
0x19ba   :  { %8850 = vmatpush1.bf16.msra.mxu0 %v19773_v55 }
0x19bb   :  { %8851 = vmatprep.subr.bf16.mxu0 %v19787_v19 }
0x19bc   :  { %8891 = vmatpush1.bf16.msra.mxu1 %v19803_v15 }
0x19bd   :  { %8892 = vmatprep.subr.bf16.mxu1 %v19811_v28 }
0x19be   :  { %8852 = vmatpush1.bf16.msra.mxu0 %v19805_v40 }
0x19bf   :  { %8946 = vmatprep.subr.bf16.mxu0 %v19551_v58 }
0x19c0   :  { %8893 = vmatpush1.bf16.msra.mxu1 %v19817_v13 }
0x19c1   :  { %9856 = vmatmul.mubr.msk.bf16.vlgmr.msra.gmra.mrb[228].mxu0 %vm20995_vm0, %v19692_v47  ;;  %8987 = vmatprep.subr.bf16.mxu1 %v19643_v25 }
0x19c2   :  { %8947 = vmatpush1.bf16.msra.mxu0 %v19566_v2  ;;  %8978 = vmatprep.mubr.bf16.mxu0 %v20596_v7 }
0x19c3   :  { %8948 = vmatprep.subr.bf16.mxu0 %v19585_v36  ;;  %9857 = vmatmul.mubr.msk.bf16.vlgmr.msra.gmra.mrb[212].mxu1 %vm20996_vm6, %v19692_v47  ;;  %v9858_v47 = vld [vmem:[%s20117_s6 + $0x14] sm:$0x3] }
0x19c4   :  { %8988 = vmatpush1.bf16.msra.mxu1 %v19632_v38  ;;  %9019 = vmatprep.mubr.bf16.mxu1 %v20596_v7 }
0x19c5   :  { %8989 = vmatprep.subr.bf16.mxu1 %v19715_v50 }
0x19c6   :  { %8949 = vmatpush1.bf16.msra.mxu0 %v19595_v43 }
0x19c7   :  { %8950 = vmatprep.subr.bf16.mxu0 %v19503_v0 }
0x19c8   :  { %8990 = vmatpush1.bf16.msra.mxu1 %v19704_v51 }
0x19c9   :  { %8991 = vmatprep.subr.bf16.mxu1 %v19513_v4 }
0x19ca   :  { %8951 = vmatpush1.bf16.msra.mxu0 %v19507_v49 }
0x19cb   :  { %8952 = vmatprep.subr.bf16.mxu0 %v19509_v9 }
0x19cc   :  { %8992 = vmatpush1.bf16.msra.mxu1 %v19515_v61 }
0x19cd   :  { %8993 = vmatprep.subr.bf16.mxu1 %v19517_v62 }
0x19ce   :  { %8953 = vmatpush1.bf16.msra.mxu0 %v19511_v27 }
0x19cf   :  { %8954 = vmatprep.subr.bf16.mxu0 %v19626_v6 }
0x19d0   :  { %8994 = vmatpush1.bf16.msra.mxu1 %v19522_v17 }
0x19d1   :  { %8995 = vmatprep.subr.bf16.mxu1 %v19755_v39 }
0x19d2   :  { %8955 = vmatpush1.bf16.msra.mxu0 %v19646_v20 }
0x19d3   :  { %8956 = vmatprep.subr.bf16.mxu0 %v19663_v26 }
0x19d4   :  { %8996 = vmatpush1.bf16.msra.mxu1 %v19773_v55 }
0x19d5   :  { %8997 = vmatprep.subr.bf16.mxu1 %v19787_v19 }
0x19d6   :  { %8957 = vmatpush1.bf16.msra.mxu0 %v19673_v22 }
0x19d7   :  { %9028 = vmatprep.subr.bf16.mxu0 %v19706_v60 }
0x19d8   :  { %8998 = vmatpush1.bf16.msra.mxu1 %v19805_v40 }
0x19d9   :  { %9859 = vmatmul.mubr.msk.bf16.vlgmr.msra.gmra.mrb[232].mxu0 %vm20997_vm14, %v9858_v47  ;;  %9080 = vmatprep.subr.bf16.mxu1 %v19551_v58  ;;  %v21017_v58 = vld [vmem:[#allocation15_spill] sm:$0xff] }
0x19da   :  { %9029 = vmatpush1.bf16.msra.mxu0 %v19702_v29  ;;  %9060 = vmatprep.mubr.bf16.mxu0 %v20596_v7 }
0x19db   :  { %9030 = vmatprep.subr.bf16.mxu0 %v19736_v23  ;;  %9860 = vmatmul.mubr.msk.bf16.vlgmr.msra.gmra.mrb[216].mxu1 %vm20998_vm12, %v9858_v47 }
0x19dc   :  { %9081 = vmatpush1.bf16.msra.mxu1 %v19566_v2  ;;  %9112 = vmatprep.mubr.bf16.mxu1 %v20596_v7  ;;  %v21018_v2 = vld [vmem:[#allocation24_spill] sm:$0xff] }
0x19dd   :  { %9082 = vmatprep.subr.bf16.mxu1 %v19585_v36  ;;  %v21020_v36 = vld [vmem:[#allocation25_spill] sm:$0xff] }
0x19de   :  { %9031 = vmatpush1.bf16.msra.mxu0 %v19732_v3 }
0x19df   :  { %9032 = vmatprep.subr.bf16.mxu0 %v19519_v45 }
0x19e0   :  { %9083 = vmatpush1.bf16.msra.mxu1 %v19595_v43  ;;  %v21021_v43 = vld [vmem:[#allocation19_spill] sm:$0xff] }
0x19e1   :  { %9084 = vmatprep.subr.bf16.mxu1 %v19503_v0  ;;  %v9862_v0 = vld [vmem:[%s20117_s6 + $0x16] sm:$0x3] }
0x19e2   :  { %9033 = vmatpush1.bf16.msra.mxu0 %v19524_v31 }
0x19e3   :  { %9034 = vmatprep.subr.bf16.mxu0 %v19526_v56 }
0x19e4   :  { %9085 = vmatpush1.bf16.msra.mxu1 %v19507_v49  ;;  %v21004_v49 = vld [vmem:[#allocation6_spill] sm:$0xff] }
0x19e5   :  { %9086 = vmatprep.subr.bf16.mxu1 %v19509_v9  ;;  %v21007_v9 = vld [vmem:[#allocation8_spill] sm:$0xff] }
0x19e6   :  { %9035 = vmatpush1.bf16.msra.mxu0 %v19528_v18 }
0x19e7   :  { %9036 = vmatprep.subr.bf16.mxu0 %v19789_v34 }
0x19e8   :  { %9087 = vmatpush1.bf16.msra.mxu1 %v19511_v27  ;;  %v21008_v27 = vld [vmem:[#allocation9_spill] sm:$0xff] }
0x19e9   :  { %9088 = vmatprep.subr.bf16.mxu1 %v19626_v6  ;;  %v21022_v6 = vld [vmem:[#allocation26_spill] sm:$0xff] }
0x19ea   :  { %9037 = vmatpush1.bf16.msra.mxu0 %v19803_v15 }
0x19eb   :  { %9038 = vmatprep.subr.bf16.mxu0 %v19811_v28 }
0x19ec   :  { %9089 = vmatpush1.bf16.msra.mxu1 %v19646_v20  ;;  %v21025_v20 = vld [vmem:[#allocation23_spill] sm:$0xff] }
0x19ed   :  { %9090 = vmatprep.subr.bf16.mxu1 %v19663_v26  ;;  %v21026_v26 = vld [vmem:[#allocation28_spill] sm:$0xff] }
0x19ee   :  { %9039 = vmatpush1.bf16.msra.mxu0 %v19817_v13 }
0x19ef   :  { %9121 = vmatprep.subr.bf16.mxu0 %v19643_v25  ;;  %v21024_v25 = vld [vmem:[#allocation27_spill] sm:$0xff] }
0x19f0   :  { %9091 = vmatpush1.bf16.msra.mxu1 %v19673_v22  ;;  %v21023_v22 = vld [vmem:[#allocation20_spill] sm:$0xff] }
0x19f1   :  { %9861 = vmatmul.mubr.msk.bf16.vlgmr.msra.gmra.mrb[236].mxu0 %vm20999_vm3, %v9858_v47  ;;  %9162 = vmatprep.subr.bf16.mxu1 %v19706_v60  ;;  %v21029_v60 = vld [vmem:[#allocation30_spill] sm:$0xff] }
0x19f2   :  { %9122 = vmatpush1.bf16.msra.mxu0 %v19632_v38  ;;  %9153 = vmatprep.mubr.bf16.mxu0 %v20596_v7  ;;  %v21019_v38 = vld [vmem:[#allocation16_spill] sm:$0xff] }
0x19f3   :  { %9123 = vmatprep.subr.bf16.mxu0 %v19715_v50  ;;  %9863 = vmatmul.mubr.msk.bf16.vlgmr.msra.gmra.mrb[220].mxu1 %vm21000_vm15, %v9862_v0 }
0x19f4   :  { %9163 = vmatpush1.bf16.msra.mxu1 %v19702_v29  ;;  %9194 = vmatprep.mubr.bf16.mxu1 %v20596_v7  ;;  %v21001_v7 = vld [vmem:[#allocation4_spill] sm:$0xff]  ;;  %v21027_v29 = vld [vmem:[#allocation29_spill] sm:$0xff] }
0x19f5   :  { %9164 = vmatprep.subr.bf16.mxu1 %v19736_v23 }
0x19f6   :  { %9124 = vmatpush1.bf16.msra.mxu0 %v19704_v51  ;;  %v21028_v51 = vld [vmem:[#allocation31_spill] sm:$0xff] }
0x19f7   :  { %9125 = vmatprep.subr.bf16.mxu0 %v19513_v4  ;;  %v21009_v4 = vld [vmem:[#allocation10_spill] sm:$0xff] }
0x19f8   :  { %9165 = vmatpush1.bf16.msra.mxu1 %v19732_v3 }
0x19f9   :  { %9166 = vmatprep.subr.bf16.mxu1 %v19519_v45  ;;  %v21012_v45 = vld [vmem:[#allocation18_spill] sm:$0xff] }
0x19fa   :  { %9126 = vmatpush1.bf16.msra.mxu0 %v19515_v61  ;;  %v21010_v61 = vld [vmem:[#allocation11_spill] sm:$0xff] }
0x19fb   :  { %9127 = vmatprep.subr.bf16.mxu0 %v19517_v62  ;;  %v21011_v62 = vld [vmem:[#allocation12_spill] sm:$0xff] }
0x19fc   :  { %9167 = vmatpush1.bf16.msra.mxu1 %v19524_v31  ;;  %v21014_v31 = vld [vmem:[#allocation21_spill] sm:$0xff] }
0x19fd   :  { %9168 = vmatprep.subr.bf16.mxu1 %v19526_v56  ;;  %v21015_v56 = vld [vmem:[#allocation14_spill] sm:$0xff] }
0x19fe   :  { %9128 = vmatpush1.bf16.msra.mxu0 %v19522_v17  ;;  %v21013_v17 = vld [vmem:[#allocation13_spill] sm:$0xff] }
0x19ff   :  { %9129 = vmatprep.subr.bf16.mxu0 %v19755_v39  ;;  %v21003_v39 = vld [vmem:[#allocation5_spill] sm:$0xff] }
0x1a00   :  { %9169 = vmatpush1.bf16.msra.mxu1 %v19528_v18  ;;  %v21016_v18 = vld [vmem:[#allocation22_spill] sm:$0xff] }
0x1a01   :  { %9170 = vmatprep.subr.bf16.mxu1 %v19789_v34 }
0x1a02   :  { %9130 = vmatpush1.bf16.msra.mxu0 %v19773_v55 }
0x1a03   :  { %9131 = vmatprep.subr.bf16.mxu0 %v19787_v19  ;;  %v21006_v19 = vld [vmem:[#allocation7_spill] sm:$0xff] }
0x1a04   :  { %9171 = vmatpush1.bf16.msra.mxu1 %v19803_v15 }
0x1a05   :  { %9172 = vmatprep.subr.bf16.mxu1 %v19811_v28 }
0x1a06   :  { %9132 = vmatpush1.bf16.msra.mxu0 %v19805_v40 }
0x1a07   :  { %13109 = vmatprep.subr.bf16.mxu0 %v21001_v7 }
0x1a08   :  { %9173 = vmatpush1.bf16.msra.mxu1 %v19817_v13 }
0x1a09   :  { %9864 = vmatmul.mubr.msk.bf16.vlgmr.msra.gmra.mrb[240].mxu0 %vm21002_vm1, %v9862_v0  ;;  %13141 = vmatprep.subr.bf16.mxu1 %v14714_v30 }
0x1a0a   :  { %13111 = vmatpush3.bf16.msra.mxu0 %v21003_v39 }
0x1a0b   :  { %13113 = vmatprep.subr.bf16.mxu0 %v21004_v49  ;;  %9865 = vmatmul.mubr.msk.bf16.vlgmr.msra.gmra.mrb[224].mxu1 %vm21005_vm4, %v9862_v0 }
0x1a0c   :  { %13143 = vmatpush3.bf16.msra.mxu1 %v14746_v57 }
0x1a0d   :  { %13145 = vmatprep.subr.bf16.mxu1 %v14749_v1 }
0x1a0e   :  { %13115 = vmatpush3.bf16.msra.mxu0 %v21006_v19 }
0x1a0f   :  { %13117 = vmatprep.subr.bf16.mxu0 %v21007_v9 }
0x1a10   :  { %13147 = vmatpush3.bf16.msra.mxu1 %v14785_v21 }
0x1a11   :  { %13149 = vmatprep.subr.bf16.mxu1 %v14788_v42 }
0x1a12   :  { %13119 = vmatpush3.bf16.msra.mxu0 %v21008_v27 }
0x1a13   :  { %13121 = vmatprep.subr.bf16.mxu0 %v21009_v4 }
0x1a14   :  { %13151 = vmatpush3.bf16.msra.mxu1 %v20806_v35 }
0x1a15   :  { %13153 = vmatprep.subr.bf16.mxu1 %v21012_v45 }
0x1a16   :  { %13123 = vmatpush3.bf16.msra.mxu0 %v21010_v61 }
0x1a17   :  { %13125 = vmatprep.subr.bf16.mxu0 %v21011_v62 }
0x1a18   :  { %13155 = vmatpush3.bf16.msra.mxu1 %v21014_v31 }
0x1a19   :  { %13157 = vmatprep.subr.bf16.mxu1 %v21016_v18 }
0x1a1a   :  { %13127 = vmatpush3.bf16.msra.mxu0 %v21013_v17 }
0x1a1b   :  { %13129 = vmatprep.subr.bf16.mxu0 %v21015_v56 }
0x1a1c   :  { %13159 = vmatpush3.bf16.msra.mxu1 %v21018_v2 }
0x1a1d   :  { %13161 = vmatprep.subr.bf16.mxu1 %v21020_v36 }
0x1a1e   :  { %13131 = vmatpush3.bf16.msra.mxu0 %v21017_v58 }
0x1a1f   :  { %13133 = vmatprep.subr.bf16.mxu0 %v21019_v38 }
0x1a20   :  { %13163 = vmatpush3.bf16.msra.mxu1 %v21022_v6 }
0x1a21   :  { %13165 = vmatprep.subr.bf16.mxu1 %v21024_v25 }
0x1a22   :  { %13135 = vmatpush3.bf16.msra.mxu0 %v21021_v43 }
0x1a23   :  { %13137 = vmatprep.subr.bf16.mxu0 %v21023_v22 }
0x1a24   :  { %13167 = vmatpush3.bf16.msra.mxu1 %v21026_v26 }
0x1a25   :  { %13169 = vmatprep.subr.bf16.mxu1 %v21027_v29 }
0x1a26   :  { %13139 = vmatpush3.bf16.msra.mxu0 %v21025_v20 }
0x1a27   :  { %13173 = vmatprep.subr.bf16.mxu0 %v21028_v51 }
0x1a28   :  { %13171 = vmatpush3.bf16.msra.mxu1 %v21029_v60 }
0x1a29   :  { %13205 = vmatprep.subr.bf16.mxu1 %v21001_v7 }
0x1a7c   :  { %v8834_v50 = vpop.f32.mrb[208].mxu1 }
0x1a7d   :  { %v8836_v3 = vpop.f32.mrb[209].mxu1  ;;  %8923 = vrot.lane.b32.xlu0 %v8834_v50, %s14170_s15 }
0x1a7e   :  { %v8838_v23 = vpop.f32.mrb[210].mxu1 }
0x1a7f   :  { %v8839_v32 = vpop.f32.mrb[211].mxu1 }
0x1a94   :  { %v8875_v5 = vpop.f32.mrb[228].mxu0 }
0x1a95   :  { %8927 = vrot.lane.b32.xlu1 %v8875_v5, %s14170_s15  ;;  %v8877_v41 = vpop.f32.mrb[229].mxu0 }
0x1a96   :  { %8929 = vrot.lane.b32.xlu0 %v8877_v41, %s14170_s15  ;;  %v8879_v16 = vpop.f32.mrb[230].mxu0  ;;  %v8916_v46 = vpop.f32.mrb[212].mxu1 }
0x1a97   :  { %v8880_v33 = vpop.f32.mrb[231].mxu0  ;;  %v8918_v44 = vpop.f32.mrb[213].mxu1 }
0x1a98   :  { %v8920_v55 = vpop.f32.mrb[214].mxu1 }
0x1a99   :  { %8925 = vrot.lane.b32.xlu1 %v8836_v3, %s14170_s15  ;;  %v8921_v8 = vpop.f32.mrb[215].mxu1 }
0x1a9a   :  { %8933 = vrot.lane.b32.xlu0 %v8918_v44, %s14170_s15 }
0x1aac   :  { %v8980_v24 = vpop.f32.mrb[232].mxu0 }
0x1aad   :  { %v8982_v59 = vpop.f32.mrb[233].mxu0 }
0x1aae   :  { %v8984_v48 = vpop.f32.mrb[234].mxu0  ;;  %v9021_v53 = vpop.f32.mrb[216].mxu1 }
0x1aaf   :  { %v8985_v14 = vpop.f32.mrb[235].mxu0  ;;  %v9023_v34 = vpop.f32.mrb[217].mxu1 }
0x1ab0   :  { %v9025_v37 = vpop.f32.mrb[218].mxu1 }
0x1ab1   :  { %v9026_v54 = vpop.f32.mrb[219].mxu1 }
0x1ac4   :  { %v19952_v52 = vpop.f32.mrb[236].mxu0 }
0x1ac5   :  { %v9064_v63 = vpop.f32.mrb[237].mxu0 }
0x1ac6   :  { %v9066_v15 = vpop.f32.mrb[238].mxu0  ;;  %v9114_v11 = vpop.f32.mrb[220].mxu1 }
0x1ac7   :  { %v9067_v40 = vpop.f32.mrb[239].mxu0  ;;  %9203 = vrot.lane.b32.xlu1 %v9114_v11, %s14176_s20  ;;  %v9116_v10 = vpop.f32.mrb[221].mxu1 }
0x1ac8   :  { %v9118_v28 = vpop.f32.mrb[222].mxu1 }
0x1ac9   :  { %v9119_v13 = vpop.f32.mrb[223].mxu1 }
0x1acb   :  { %9205 = vrot.lane.b32.xlu1 %v9116_v10, %s14176_s20 }
0x1adc   :  { %v9155_v47 = vpop.f32.mrb[240].mxu0 }
0x1add   :  { %9207 = vrot.lane.b32.xlu0 %v9155_v47, %s14176_s20  ;;  %v9157_v0 = vpop.f32.mrb[241].mxu0 }
0x1ade   :  { %v9159_v7 = vpop.f32.mrb[242].mxu0  ;;  %v9196_v3 = vpop.f32.mrb[224].mxu1 }
0x1adf   :  { %v9160_v50 = vpop.f32.mrb[243].mxu0  ;;  %9211 = vrot.lane.b32.xlu1 %v9196_v3, %s14176_s20  ;;  %v9198_v23 = vpop.f32.mrb[225].mxu1 }
0x1ae0   :  { %v9200_v32 = vpop.f32.mrb[226].mxu1 }
0x1ae1   :  { %9209 = vrot.lane.b32.xlu0 %v9157_v0, %s14176_s20  ;;  %v9201_v5 = vpop.f32.mrb[227].mxu1 }
0x1ae2   :  { %v21030_v5 = vld [vmem:[#allocation32_spill] sm:$0xff] }
0x1ae3   :  { %9213 = vrot.lane.b32.xlu1 %v9198_v23, %s14176_s20 }
0x1ae5   :  { %8931 = vrot.lane.b32.xlu0 %v8916_v46, %s14170_s15 }
0x1aef   :  { %v8924_v16 = vpop.permute.xlu0 %8923 }
0x1b07   :  { %v8928_v41 = vpop.permute.xlu1 %8927 }
0x1b08   :  { %v8930_v44 = vpop.permute.xlu0 %8929 }
0x1b09   :  { %v8937_v40 = vsel %vm179_vm2, %v8928_v41, %v8930_v44 }
0x1b0a   :  { %v9072_v0 = vadd.f32 %v9023_v34, %v8937_v40  ;;  %v21031_v34 = vld [vmem:[#allocation33_spill] sm:$0xff] }
0x1b0b   :  { %v8926_v33 = vpop.permute.xlu1 %8925  ;;  %v21043_v40 = vld [vmem:[#allocation45_spill] sm:$0xff] }
0x1b0c   :  { %v8934_v8 = vpop.permute.xlu0 %8933  ;;  %v8939_v48 = vsel %vm179_vm2, %v8924_v16, %v8926_v33  ;;  %v8938_v11 = vsel %vm179_vm2, %v8926_v33, %v8928_v41 }
0x1b0d   :  { %v8940_v37 = vsel %vm179_vm2, %v8934_v8, %v8924_v16  ;;  %v9070_v54 = vadd.f32 %v8982_v59, %v8939_v48  ;;  %v9071_v59 = vadd.f32 %v9021_v53, %v8938_v11 }
0x1b0e   :  { %v9069_v10 = vadd.f32 %v8980_v24, %v8940_v37 }
0x1b39   :  { %v9204_v55 = vpop.permute.xlu1 %9203 }
0x1b3d   :  { %v9206_v14 = vpop.permute.xlu1 %9205 }
0x1b3e   :  { %v9219_v15 = vsel %vm274_vm11, %v9204_v55, %v9206_v14 }
0x1b3f   :  { %v19975_v47 = vadd.f32 %v9219_v15, %v9069_v10 }
0x1b41   :  { %v9441_v12 = vmul.f32 %v19975_v47, %v19975_v47 }
0x1b4f   :  { %v9208_v46 = vpop.permute.xlu0 %9207 }
0x1b50   :  { %v9218_v28 = vsel %vm274_vm11, %v9206_v14, %v9208_v46  ;;  %v21032_v14 = vld [vmem:[#allocation34_spill] sm:$0xff] }
0x1b51   :  { %v19973_v13 = vadd.f32 %v9218_v28, %v9070_v54  ;;  %v9212_v50 = vpop.permute.xlu1 %9211  ;;  %v21033_v54 = vld [vmem:[#allocation35_spill] sm:$0xff] }
0x1b53   :  { %v9210_v7 = vpop.permute.xlu0 %9209  ;;  %9295 = vmatprep.mubr.f32.mxu0 %v19973_v13  ;;  %v9442_v33 = vmul.f32 %v19973_v13, %v19973_v13 }
0x1b54   :  { %v9217_v3 = vsel %vm274_vm11, %v9208_v46, %v9210_v7  ;;  %v9216_v23 = vsel %vm274_vm11, %v9210_v7, %v9212_v50  ;;  %9296 = vmatmul.mubr.f32.vlgmr.msra.gmra.mrb[226].mxu0 %v19975_v47  ;;  %v21038_v46 = vld [vmem:[#allocation40_spill] sm:$0xff] }
0x1b55   :  { %v19983_v24 = vadd.f32 %v9217_v3, %v9071_v59  ;;  %v19985_v32 = vadd.f32 %v9216_v23, %v9072_v0  ;;  %13175 = vmatpush3.bf16.msra.mxu0 %v21030_v5  ;;  %v9214_v41 = vpop.permute.xlu1 %9213 }
0x1b56   :  { %13177 = vmatprep.subr.bf16.mxu0 %v21031_v34  ;;  %v9220_v37 = vsel %vm274_vm11, %v9214_v41, %v9204_v55  ;;  %v21037_v55 = vld [vmem:[#allocation39_spill] sm:$0xff] }
0x1b57   :  { %v8932_v53 = vpop.permute.xlu0 %8931  ;;  %9365 = vmatprep.mubr.f32.mxu1 %v19985_v32 }
0x1b58   :  { %v8935_v16 = vsel %vm179_vm2, %v8932_v53, %v8934_v8  ;;  %9366 = vmatmul.mubr.f32.vlgmr.msra.gmra.mrb[206].mxu1 %v19983_v24  ;;  %v21034_v8 = vld [vmem:[#allocation36_spill] sm:$0xff] }
0x1b59   :  { %v9074_v48 = vadd.f32 %v9064_v63, %v8935_v16  ;;  %13179 = vmatpush3.bf16.msra.mxu0 %v21032_v14  ;;  %13207 = vmatpush3.bf16.msra.mxu1 %v21003_v39  ;;  %v21035_v63 = vld [vmem:[#allocation37_spill] sm:$0xff]  ;;  %v21036_v39 = vld [vmem:[#allocation38_spill] sm:$0xff] }
0x1b5a   :  { %9511 = vmatprep.mubr.f32.mxu1 %v9442_v33  ;;  %13181 = vmatprep.subr.bf16.mxu0 %v21033_v54 }
0x1b5b   :  { %v20000_v15 = vadd.f32 %v9220_v37, %v9074_v48  ;;  %13209 = vmatprep.subr.bf16.mxu1 %v21004_v49  ;;  %v21039_v49 = vld [vmem:[#allocation41_spill] sm:$0xff] }
0x1b5d   :  { %13183 = vmatpush3.bf16.msra.mxu0 %v21034_v8  ;;  %13211 = vmatpush3.bf16.msra.mxu1 %v21006_v19  ;;  %v21040_v19 = vld [vmem:[#allocation42_spill] sm:$0xff] }
0x1b5e   :  { %9435 = vmatprep.mubr.f32.mxu0 %v20000_v15  ;;  %13185 = vmatprep.subr.bf16.mxu0 %v21035_v63 }
0x1b5f   :  { %13213 = vmatprep.subr.bf16.mxu1 %v21007_v9  ;;  %v21041_v9 = vld [vmem:[#allocation43_spill] sm:$0xff] }
0x1b61   :  { %13187 = vmatpush3.bf16.msra.mxu0 %v21036_v39  ;;  %13215 = vmatpush3.bf16.msra.mxu1 %v21008_v27  ;;  %v8936_v27 = vsel %vm179_vm2, %v8930_v44, %v8932_v53 }
0x1b62   :  { %13189 = vmatprep.subr.bf16.mxu0 %v21037_v55  ;;  %13217 = vmatprep.subr.bf16.mxu1 %v21009_v4  ;;  %v21042_v4 = vld [vmem:[#allocation44_spill] sm:$0xff] }
0x1b65   :  { %13191 = vmatpush3.bf16.msra.mxu0 %v21038_v46  ;;  %13219 = vmatpush3.bf16.msra.mxu1 %v21010_v61  ;;  %v9073_v61 = vadd.f32 %v19952_v52, %v8936_v27 }
0x1b66   :  { %13193 = vmatprep.subr.bf16.mxu0 %v21039_v49  ;;  %13221 = vmatprep.subr.bf16.mxu1 %v21011_v62  ;;  %v9215_v62 = vsel %vm274_vm11, %v9212_v50, %v9214_v41 }
0x1b69   :  { %13195 = vmatpush3.bf16.msra.mxu0 %v21040_v19  ;;  %13223 = vmatpush3.bf16.msra.mxu1 %v21013_v17  ;;  %v21044_v17 = vld [vmem:[#allocation46_spill] sm:$0xff] }
0x1b6a   :  { %13197 = vmatprep.subr.bf16.mxu0 %v21041_v9  ;;  %13225 = vmatprep.subr.bf16.mxu1 %v21015_v56  ;;  %v20031_v56 = vadd.f32 %v9215_v62, %v9073_v61 }
0x1b6d   :  { %13199 = vmatpush3.bf16.msra.mxu0 %v21042_v4  ;;  %13227 = vmatpush3.bf16.msra.mxu1 %v21017_v58  ;;  %v9444_v58 = vmul.f32 %v19985_v32, %v19985_v32 }
0x1b6e   :  { %13201 = vmatprep.subr.bf16.mxu0 %v21043_v40  ;;  %13229 = vmatprep.subr.bf16.mxu1 %v21019_v38 }
0x1b71   :  { %13203 = vmatpush3.bf16.msra.mxu0 %v21044_v17  ;;  %13231 = vmatpush3.bf16.msra.mxu1 %v21021_v43 }
0x1b72   :  { %13233 = vmatprep.subr.bf16.mxu1 %v21023_v22  ;;  %13237 = vmatprep.subr.bf16.mxu0 %v14714_v30  ;;  %v9446_v30 = vmul.f32 %v20000_v15, %v20000_v15 }
0x1b74   :  { %9436 = vmatmul.mubr.f32.vlgmr.msra.gmra.mrb[244].mxu0 %v20031_v56 }
0x1b75   :  { %13235 = vmatpush3.bf16.msra.mxu1 %v21025_v20  ;;  %13239 = vmatpush3.bf16.msra.mxu0 %v14746_v57  ;;  %v9443_v57 = vmul.f32 %v19983_v24, %v19983_v24 }
0x1b76   :  { %9581 = vmatprep.mubr.f32.mxu0 %v9444_v58  ;;  %13241 = vmatprep.subr.bf16.mxu0 %v14749_v1  ;;  %v9445_v1 = vmul.f32 %v20031_v56, %v20031_v56  ;;  %v21045_v58 = vld [vmem:[#allocation47_spill] sm:$0xff] }
0x1b77   :  { %13269 = vmatprep.subr.bf16.mxu1 %v21028_v51 }
0x1b78   :  { %9512 = vmatmul.mubr.f32.vlgmr.msra.gmra.mrb[228].mxu1 %v9441_v12 }
0x1b79   :  { %13243 = vmatpush3.bf16.msra.mxu0 %v14785_v21  ;;  %13271 = vmatpush3.bf16.msra.mxu1 %v21030_v5  ;;  %v9866_v5 = vld [vmem:[%s20119_s7 + $0xc] sm:$0x7] }
0x1b7a   :  { %9651 = vmatprep.mubr.f32.mxu1 %v9446_v30  ;;  %13245 = vmatprep.subr.bf16.mxu0 %v14788_v42  ;;  %v21046_v30 = vld [vmem:[#allocation48_spill] sm:$0xff] }
0x1b7b   :  { %13273 = vmatprep.subr.bf16.mxu1 %v21031_v34 }
0x1b7d   :  { %13247 = vmatpush3.bf16.msra.mxu0 %v20806_v35  ;;  %13275 = vmatpush3.bf16.msra.mxu1 %v21032_v14 }
0x1b7e   :  { %13249 = vmatprep.subr.bf16.mxu0 %v21012_v45  ;;  %13277 = vmatprep.subr.bf16.mxu1 %v21033_v54 }
0x1b81   :  { %13251 = vmatpush3.bf16.msra.mxu0 %v21014_v31  ;;  %13279 = vmatpush3.bf16.msra.mxu1 %v21034_v8 }
0x1b82   :  { %13253 = vmatprep.subr.bf16.mxu0 %v21016_v18  ;;  %13281 = vmatprep.subr.bf16.mxu1 %v21035_v63 }
0x1b85   :  { %13255 = vmatpush3.bf16.msra.mxu0 %v21018_v2  ;;  %13283 = vmatpush3.bf16.msra.mxu1 %v21036_v39 }
0x1b86   :  { %13257 = vmatprep.subr.bf16.mxu0 %v21020_v36  ;;  %13285 = vmatprep.subr.bf16.mxu1 %v21037_v55 }
0x1b89   :  { %13259 = vmatpush3.bf16.msra.mxu0 %v21022_v6  ;;  %13287 = vmatpush3.bf16.msra.mxu1 %v21038_v46 }
0x1b8a   :  { %13261 = vmatprep.subr.bf16.mxu0 %v21024_v25  ;;  %13289 = vmatprep.subr.bf16.mxu1 %v21039_v49 }
0x1b8d   :  { %13263 = vmatpush3.bf16.msra.mxu0 %v21026_v26  ;;  %13291 = vmatpush3.bf16.msra.mxu1 %v21040_v19 }
0x1b8e   :  { %13265 = vmatprep.subr.bf16.mxu0 %v21027_v29  ;;  %13293 = vmatprep.subr.bf16.mxu1 %v21041_v9  ;;  %v9867_v29 = vld [vmem:[%s20118_s8 + $0xc] sm:$0x7] }
0x1b91   :  { %13267 = vmatpush3.bf16.msra.mxu0 %v21029_v60  ;;  %13295 = vmatpush3.bf16.msra.mxu1 %v21042_v4 }
0x1b92   :  { %13297 = vmatprep.subr.bf16.mxu1 %v21043_v40 }
0x1b94   :  { %9582 = vmatmul.mubr.f32.vlgmr.msra.gmra.mrb[246].mxu0 %v9443_v57 }
0x1b95   :  { %13299 = vmatpush3.bf16.msra.mxu1 %v21044_v17 }
0x1b98   :  { %9652 = vmatmul.mubr.f32.vlgmr.msra.gmra.mrb[230].mxu1 %v9445_v1  ;;  %v21047_v1 = vld [vmem:[#allocation49_spill] sm:$0xff] }
0x1c27   :  { %v11586_v21 = vpop.f32.mrb[226].mxu0 }
0x1c28   :  { %v11587_v42 = vpop.f32.mrb[227].mxu0 }
0x1c29   :  { %v11588_v35 = vadd.f32 %v11587_v42, %v11586_v21  ;;  %v21048_v42 = vld [vmem:[#allocation50_spill] sm:$0xff] }
0x1c2b   :  { %v11621_v45 = vpop.f32.mrb[206].mxu1 }
0x1c2c   :  { %v11622_v31 = vpop.f32.mrb[207].mxu1 }
0x1c2d   :  { %v11623_v18 = vadd.f32 %v11622_v31, %v11621_v45  ;;  %v21049_v45 = vld [vmem:[#allocation51_spill] sm:$0xff] }
0x1c2f   :  { %v9368_v2 = vadd.f32 %v11623_v18, %v11588_v35  ;;  %v21050_v18 = vld [vmem:[#allocation52_spill] sm:$0xff] }
0x1c47   :  { %v11656_v38 = vpop.f32.mrb[244].mxu0 }
0x1c48   :  { %v11657_v36 = vpop.f32.mrb[245].mxu0 }
0x1c49   :  { %v11658_v43 = vadd.f32 %v11657_v36, %v11656_v38 }
0x1c4b   :  { %v9438_v6 = vadd.f32 %v11658_v43, %v9368_v2  ;;  %v11691_v22 = vpop.f32.mrb[228].mxu1 }
0x1c4c   :  { %v11692_v25 = vpop.f32.mrb[229].mxu1 }
0x1c4d   :  { %v9657_v20 = vmul.f32 0.001953125, %v9438_v6  ;;  %v11693_v26 = vadd.f32 %v11692_v25, %v11691_v22 }
0x1c4f   :  { %9667 = vperm.xlu0 %13395, %v9657_v20   ;;  %v9659_v59 = vmul.f32 %v9657_v20, %v9657_v20 }
0x1c53   :  { %9689 = vperm.xlu0 %13395, %v9867_v29  }
0x1c67   :  { %v11726_v51 = vpop.f32.mrb[246].mxu0 }
0x1c68   :  { %v11727_v60 = vpop.f32.mrb[247].mxu0 }
0x1c69   :  { %v11728_v52 = vadd.f32 %v11727_v60, %v11726_v51 }
0x1c6b   :  { %v9584_v44 = vadd.f32 %v11728_v52, %v11693_v26  ;;  %v11761_v11 = vpop.f32.mrb[230].mxu1 }
0x1c6c   :  { %v11762_v10 = vpop.f32.mrb[231].mxu1 }
0x1c6d   :  { %v11763_v28 = vadd.f32 %v11762_v10, %v11761_v11 }
0x1c6f   :  { %v9654_v0 = vadd.f32 %v11763_v28, %v9584_v44 }
0x1c71   :  { %v9658_v7 = vmul.f32 0.001953125, %v9654_v0 }
0x1c73   :  { %v9660_v50 = vsub.f32 %v9658_v7, %v9659_v59 }
0x1c75   :  { %v9661_v3 = vmax.f32 %v9660_v50, 0.0 }
0x1c77   :  { %v9662_v23 = vadd.f32 1e-05, %v9661_v3 }
0x1c79   :  { %14168 = vrsqrt.f32 %v9662_v23 }
0x1c83   :  { %v14169_v34 = vpop.eup %14168 }
0x1c84   :  { %v9664_v53 = vmul.f32 %v14169_v34, %v9866_v5 }
0x1c86   :  { %9678 = vperm.xlu1 %13394, %v9664_v53  }
0x1cce   :  { %v9668_v41 = vpop.permute.xlu0 %9667 }
0x1ccf   :  { %v9670_v16 = vsub.f32 %v19975_v47, %v9668_v41  ;;  %v9671_v33 = vsub.f32 %v19973_v13, %v9668_v41  ;;  %v9672_v48 = vsub.f32 %v19983_v24, %v9668_v41  ;;  %v9673_v14 = vsub.f32 %v19985_v32, %v9668_v41 }
0x1cd0   :  { %v9674_v37 = vsub.f32 %v20031_v56, %v9668_v41  ;;  %v9675_v54 = vsub.f32 %v20000_v15, %v9668_v41 }
0x1cd2   :  { %v9690_v49 = vpop.permute.xlu0 %9689 }
0x1d05   :  { %v9679_v8 = vpop.permute.xlu1 %9678 }
0x1d06   :  { %v9681_v63 = vmul.f32 %v9679_v8, %v9670_v16  ;;  %v9682_v39 = vmul.f32 %v9679_v8, %v9671_v33  ;;  %v9683_v55 = vmul.f32 %v9679_v8, %v9672_v48  ;;  %v9684_v46 = vmul.f32 %v9679_v8, %v9673_v14 }
0x1d07   :  { %v9685_v19 = vmul.f32 %v9679_v8, %v9674_v37  ;;  %v9686_v9 = vmul.f32 %v9679_v8, %v9675_v54 }
0x1d08   :  { %v9692_v27 = vadd.f32 %v9690_v49, %v9681_v63  ;;  %v9693_v47 = vadd.f32 %v9690_v49, %v9682_v39  ;;  %v9694_v4 = vadd.f32 %v9690_v49, %v9683_v55  ;;  %v9695_v13 = vadd.f32 %v9690_v49, %v9684_v46 }
0x1d09   :  { %v9696_v61 = vadd.f32 %v9690_v49, %v9685_v19  ;;  %v9697_v24 = vadd.f32 %v9690_v49, %v9686_v9 }
0x1d0a   :  { %v9698_v40 = vmax.f32 %v9692_v27, 0.0  ;;  %v9699_v32 = vmax.f32 %v9693_v47, 0.0  ;;  %v9700_v62 = vmax.f32 %v9694_v4, 0.0  ;;  %v9701_v17 = vmax.f32 %v9695_v13, 0.0 }
0x1d0b   :  { %v9702_v56 = vmax.f32 %v9696_v61, 0.0  ;;  %v9703_v15 = vmax.f32 %v9697_v24, 0.0 }
0x1d0c   :  { %v9704_v12 = vmul.f32 %v9698_v40, %v21045_v58  ;;  %v9705_v57 = vmul.f32 %v9699_v32, %v21046_v30  ;;  %v9706_v21 = vmul.f32 %v9700_v62, %v21047_v1  ;;  %v9707_v35 = vmul.f32 %v9701_v17, %v21048_v42 }
0x1d0d   :  { %v9708_v31 = vmul.f32 %v9702_v56, %v21049_v45  ;;  %v9709_v2 = vmul.f32 %v9703_v15, %v21050_v18 }
0x1d0e   :  { %v9710_v38 = vmul.f32 2.0, %v9704_v12  ;;  %v9711_v36 = vmul.f32 2.0, %v9705_v57  ;;  %v9712_v43 = vmul.f32 2.0, %v9706_v21  ;;  %v9713_v6 = vmul.f32 2.0, %v9707_v35 }
0x1d0f   :  { %v9714_v22 = vmul.f32 2.0, %v9708_v31  ;;  %v9715_v25 = vmul.f32 2.0, %v9709_v2 }
0x1d10   :  { %v9716_v20 = vadd.f32 %v9710_v38, %v21045_v58  ;;  %v9717_v26 = vadd.f32 %v9711_v36, %v21046_v30  ;;  %v9718_v29 = vadd.f32 %v9712_v43, %v21047_v1  ;;  %v9719_v51 = vadd.f32 %v9713_v6, %v21048_v42 }
0x1d11   :  { %v9720_v60 = vadd.f32 %v9714_v22, %v21049_v45  ;;  %v9721_v52 = vadd.f32 %v9715_v25, %v21050_v18 }
0x1d12   :  { %v9722_v44 = vmul.f32 2.0, %v9716_v20  ;;  %v9723_v11 = vmul.f32 2.0, %v9717_v26  ;;  %v9724_v10 = vmul.f32 2.0, %v9718_v29  ;;  %v9725_v28 = vmul.f32 2.0, %v9719_v51 }
0x1d13   :  { %v9726_v0 = vmul.f32 2.0, %v9720_v60  ;;  %v9727_v59 = vmul.f32 2.0, %v9721_v52 }
0x1d14   :  { %v9734_v7 = vcombine.low %v9722_v44, %v9723_v11  ;;  %v9735_v50 = vcombine.low %v9724_v10, %v9725_v28 }
0x1d15   :  { %v9736_v3 = vcombine.low %v9726_v0, %v9727_v59 }
0x1d16   :  { %9740 = vst [vmem:[%s20120_s9] sm:$0x77] %v9734_v7  ;;  %9741 = vst [vmem:[%s20120_s9 + $0x8] sm:$0x77] %v9735_v50 }
0x1d17   :  { %9742 = vst [vmem:[%s20120_s9 + $0x10] sm:$0x77] %v9736_v3 }

</bundles_post_ra>
